<compile_context>
chip_gen: v7x
topology: tpu7x:2x2x1
jax: 0.10.0
libtpu: 0.0.40
codegen_flags: <defaults>
</compile_context>

<pallas_src>
import functools

import numpy as np

import jax
import jax.numpy as jnp
from jax.experimental import pallas as pl
from jax.experimental.pallas import tpu as pltpu


# ----------------------------------------------------------------------------
# Fused tap-streamed 3x3 conv kernel (whole problem resident in VMEM)
# ----------------------------------------------------------------------------
def _conv_kernel(*refs, offsets, nf, cout, pre_leaky, post_leaky, has_res):
    """refs = (x, [h], w, [wsc], b, mask, out, [scratch]).

    x      : (nf + 2G, Cin)  guard-padded, spatially padded, flattened NHWC
             activation (bf16), G = Wp + 1.
    h      : (nf, Cin_h)     flattened padded residual input (1x1 shortcut).
    w      : (9, Cin, Cout)  bf16 tap weights, tap t = kh*3 + kw.
    wsc    : (Cin_h, Cout)   bf16 shortcut weight.
    b      : (1, Cout)       f32 bias.
    mask   : (nf, 1)         f32: 1.0 on interior rows, 0.0 on halo rows.
    out    : (nf, Cout)      conv output over the padded spatial grid.
    scratch: (nf + 2G, Cin)  bf16, only when pre_leaky (holds leaky(x) once).
    """
    if pre_leaky:
        *refs, s_ref = refs
    if has_res:
        x_ref, h_ref, w_ref, wsc_ref, b_ref, m_ref, o_ref = refs
    else:
        x_ref, w_ref, b_ref, m_ref, o_ref = refs

    if pre_leaky:
        xv = x_ref[...]
        s_ref[...] = jnp.where(xv > 0, xv, 0.2 * xv)   # LeakyReLU(0.2), once
        src = s_ref
    else:
        src = x_ref

    acc = jnp.zeros((nf, cout), jnp.float32)
    for t, off in enumerate(offsets):                  # 9 taps -> MXU, f32 acc
        acc = acc + jnp.dot(src[off:off + nf, :], w_ref[t],
                            preferred_element_type=jnp.float32)
    if has_res:                                        # fused 1x1 shortcut
        acc = acc + jnp.dot(h_ref[...], wsc_ref[...],
                            preferred_element_type=jnp.float32)

    out = acc + b_ref[...]                             # bias in f32
    if post_leaky:
        out = jnp.where(out > 0, out, 0.2 * out)       # fused epilogue LeakyReLU
    out = out * m_ref[...]                             # zero halo rows
    o_ref[...] = out.astype(o_ref.dtype)


def fused_conv3x3(xg, w_taps, bias, mask, *, wp, nf, h=None, wsc=None,
                  pre_leaky=False, post_leaky=False, out_dtype=jnp.bfloat16):
    """out[q] = sum_t xg[q + off_t] @ w_taps[t] (+ h[q] @ wsc) + bias  with
    optional pre/post LeakyReLU(0.2).  q ranges over the zero-padded spatial
    grid (nf = B*Hp*Wp rows); halo rows are forced to zero via `mask`."""
    cout = w_taps.shape[2]
    offsets = tuple(kh * wp + kw for kh in range(3) for kw in range(3))
    has_res = h is not None

    operands = [xg] + ([h] if has_res else []) + [w_taps] + \
               ([wsc] if has_res else []) + [bias, mask]
    kernel = functools.partial(_conv_kernel, offsets=offsets, nf=nf, cout=cout,
                               pre_leaky=pre_leaky, post_leaky=post_leaky,
                               has_res=has_res)
    scratch = [pltpu.VMEM(xg.shape, xg.dtype)] if pre_leaky else []
    vspec = pl.BlockSpec(memory_space=pltpu.MemorySpace.VMEM)

    # Explicit VMEM budget, capped well below the 64 MiB per-TC VMEM of v7x.
    op_bytes = sum(int(a.size) * a.dtype.itemsize for a in operands)
    op_bytes += 2 * int(xg.size) * 2 + nf * cout * 8
    vmem_limit = int(min(48 * 2 ** 20, max(8 * 2 ** 20, 6 * op_bytes)))

    return pl.pallas_call(
        kernel,
        out_shape=jax.ShapeDtypeStruct((nf, cout), out_dtype),
        in_specs=[vspec] * len(operands),
        out_specs=vspec,
        scratch_shapes=scratch,
        compiler_params=pltpu.CompilerParams(vmem_limit_bytes=vmem_limit),
    )(*operands)


# ----------------------------------------------------------------------------
# XLA glue (layout plumbing only; all conv compute is in the kernel)
# ----------------------------------------------------------------------------
def upsample2(x):  # nn.Upsample(scale_factor=2, mode='nearest'), NHWC
    return jnp.repeat(jnp.repeat(x, 2, axis=1), 2, axis=2)


def _pad_flatten(x):
    """NHWC (B,H,W,C) -> spatial zero-pad by 1 -> flatten to (B*Hp*Wp, C)."""
    B, H, W, C = x.shape
    xp = jnp.pad(x, ((0, 0), (1, 1), (1, 1), (0, 0)))
    return xp.reshape(B * (H + 2) * (W + 2), C)


def _guard(xf, g):
    """Prepend/append g zero rows so every tap slice stays in bounds."""
    return jnp.pad(xf, ((g, g), (0, 0)))


def _interior_mask(B, Hp, Wp):
    m = np.zeros((B, Hp, Wp, 1), np.float32)
    m[:, 1:-1, 1:-1, :] = 1.0
    return jnp.asarray(m.reshape(B * Hp * Wp, 1))


def _conv3x3_taps(w):
    """torch OIHW (Cout, Cin, 3, 3) -> (9, Cin, Cout) bf16, tap t = kh*3 + kw."""
    cout, cin = w.shape[0], w.shape[1]
    return jnp.transpose(w, (2, 3, 1, 0)).reshape(9, cin, cout).astype(jnp.bfloat16)


def prepare_params(params):
    """One-time weight re-layout / bf16 cast / head fusion (not per forward)."""
    prep = {
        "fl_w2d": params["fl_w"].reshape(params["fl_w"].shape[0], -1).astype(jnp.float32),
        "fl_b": params["fl_b"].astype(jnp.float32),
    }
    blocks = []
    for blk in params["blocks"]:
        blocks.append({
            "w1": _conv3x3_taps(blk["w1"]),
            "b1": blk["b1"].reshape(1, -1).astype(jnp.float32),
            "w2": _conv3x3_taps(blk["w2"]),
            "b2": blk["b2"].reshape(1, -1).astype(jnp.float32),
            "wsc": jnp.transpose(blk["wsc"][:, :, 0, 0], (1, 0)).astype(jnp.bfloat16),
        })
    prep["blocks"] = blocks
    prep["w_head"] = jnp.concatenate(
        [_conv3x3_taps(params["rgb_w"]), _conv3x3_taps(params["mask_w"])], axis=2)
    prep["b_head"] = jnp.concatenate(
        [params["rgb_b"], params["mask_b"]]).reshape(1, -1).astype(jnp.float32)
    return prep


# ----------------------------------------------------------------------------
# Deterministic parameter construction (synthetic; mirrors module __init__)
# ----------------------------------------------------------------------------
def spectral_normalize(w, n_iter=20):
    """sp_norm: divide the weight by its top singular value (power iteration)."""
    m = w.reshape(w.shape[0], -1).astype(jnp.float32)
    v = jnp.ones((m.shape[1],), jnp.float32) / jnp.sqrt(m.shape[1])
    u = jnp.ones((m.shape[0],), jnp.float32) / jnp.sqrt(m.shape[0])
    for _ in range(n_iter):
        u = m @ v
        u = u / (jnp.linalg.norm(u) + 1e-12)
        v = m.T @ u
        v = v / (jnp.linalg.norm(v) + 1e-12)
    sigma = u @ (m @ v)
    return w / sigma


def init_generator_params(key, num_blocks, input_shape, input_dim, num_mask_channels):
    chans = [256, 256, 256, 256, 256, 256, 256, 128, 128, 64, 32][-num_blocks - 1:]
    keys = iter(jax.random.split(key, 5 * num_blocks + 8))
    nrm = lambda k, shape, fan_in: jax.random.normal(k, shape, jnp.float32) / jnp.sqrt(fan_in)

    params = {}
    # first_linear = ConvTranspose2d(input_dim, chans[0], input_shape): weight (in,out,kh,kw)
    params["fl_w"] = nrm(next(keys), (input_dim, chans[0], input_shape, input_shape), input_dim)
    params["fl_b"] = 0.01 * jax.random.normal(next(keys), (chans[0],), jnp.float32)

    blocks = []
    for i in range(num_blocks):
        cin, cout = chans[i], chans[i + 1]
        mid = min(cin, cout)
        blocks.append({
            "w1": spectral_normalize(nrm(next(keys), (mid, cin, 3, 3), cin * 9)),
            "b1": 0.01 * jax.random.normal(next(keys), (mid,), jnp.float32),
            "w2": spectral_normalize(nrm(next(keys), (cout, mid, 3, 3), mid * 9)),
            "b2": 0.01 * jax.random.normal(next(keys), (cout,), jnp.float32),
            "wsc": spectral_normalize(nrm(next(keys), (cout, cin, 1, 1), cin)),
        })
    params["blocks"] = blocks
    params["rgb_w"] = spectral_normalize(nrm(next(keys), (3, chans[-1], 3, 3), chans[-1] * 9))
    params["rgb_b"] = 0.01 * jax.random.normal(next(keys), (3,), jnp.float32)
    params["mask_w"] = nrm(next(keys), (num_mask_channels, chans[-1], 3, 3), chans[-1] * 9)
    params["mask_b"] = 0.01 * jax.random.normal(next(keys), (num_mask_channels,), jnp.float32)
    return params, chans


# ----------------------------------------------------------------------------
# Generator forward (Pallas path)
# ----------------------------------------------------------------------------
def generator_forward(prep, z, input_shape, num_mask_channels):
    """z: (B, input_dim, 1, 1) NCHW -> (im (B,3,H,W), mask (B,M,H,W)) NCHW."""
    B, Din = z.shape[0], z.shape[1]
    z2 = z.reshape(B, Din).astype(jnp.float32)
    C0, S = prep["fl_b"].shape[0], input_shape

    # first_linear: ConvTranspose2d on a 1x1 input == a (B x Din) matmul.
    # M = batch uses a sliver of the MXU; plain XLA is the right tool here.
    x = jnp.dot(z2, prep["fl_w2d"], precision=jax.lax.Precision.HIGHEST)
    x = x.reshape(B, C0, S, S) + prep["fl_b"][None, :, None, None]
    x = jnp.transpose(x, (0, 2, 3, 1)).astype(jnp.bfloat16)      # NHWC bf16

    for i, blk in enumerate(prep["blocks"]):
        if i != 0:                       # is_first=False -> nearest 2x upsample
            x = upsample2(x)
        Bb, H, W, cin = x.shape
        Hp, Wp = H + 2, W + 2
        nf, G = Bb * Hp * Wp, Wp + 1
        cout = blk["w2"].shape[2]
        mask = _interior_mask(Bb, Hp, Wp)

        h_flat = _pad_flatten(x)         # shared by conv1 input & 1x1 shortcut

        # conv1: leaky(x) -> 3x3 conv -> +b1 -> leaky, all inside one kernel,
        # bf16 out with halo rows zeroed (so it feeds conv2 directly).
        x1 = fused_conv3x3(_guard(h_flat, G), blk["w1"], blk["b1"], mask,
                           wp=Wp, nf=nf, pre_leaky=True, post_leaky=True)

        # conv2 + 1x1 shortcut + bias in one kernel: the residual add happens
        # inside the f32 MXU accumulator.
        xf = fused_conv3x3(_guard(x1, G), blk["w2"], blk["b2"], mask,
                           wp=Wp, nf=nf, h=h_flat, wsc=blk["wsc"])
        x = xf.reshape(Bb, Hp, Wp, cout)[:, 1:H + 1, 1:W + 1, :]

    # rgb + mask heads share one kernel (shared A); f32 out for tanh/softmax,
    # which run on the sliced real channels only.
    Bb, H, W, C = x.shape
    Hp, Wp = H + 2, W + 2
    nf, G = Bb * Hp * Wp, Wp + 1
    mask = _interior_mask(Bb, Hp, Wp)
    y = fused_conv3x3(_guard(_pad_flatten(x), G), prep["w_head"], prep["b_head"],
                      mask, wp=Wp, nf=nf, out_dtype=jnp.float32)
    y = y.reshape(Bb, Hp, Wp, 3 + num_mask_channels)[:, 1:H + 1, 1:W + 1, :]
    im = jnp.tanh(y[..., :3])
    msk = jax.nn.softmax(y[..., 3:], axis=-1)
    return jnp.transpose(im, (0, 3, 1, 2)), jnp.transpose(msk, (0, 3, 1, 2))


# ----------------------------------------------------------------------------
# Pure-JAX reference (for correctness check)
# ----------------------------------------------------------------------------
def _ref_conv(x, w, b, k):
    w_hwio = jnp.transpose(w, (2, 3, 1, 0))
    y = jax.lax.conv_general_dilated(
        x, w_hwio, (1, 1), "SAME" if k == 3 else "VALID",
        dimension_numbers=("NHWC", "HWIO", "NHWC"),
        precision=jax.lax.Precision.HIGHEST)
    return y if b is None else y + b


def reference_forward(params, z):
    B, Din = z.shape[0], z.shape[1]
    x = jnp.einsum("bc,cohw->bohw", z.reshape(B, Din), params["fl_w"],
                   precision=jax.lax.Precision.HIGHEST)
    x = x + params["fl_b"][None, :, None, None]
    x = jnp.transpose(x, (0, 2, 3, 1))
    lrelu = lambda t: jnp.where(t > 0, t, 0.2 * t)
    for i, blk in enumerate(params["blocks"]):
        h = x
        t = lrelu(x)
        if i != 0:
            t = upsample2(t)
            h = upsample2(h)
        t = _ref_conv(t, blk["w1"], blk["b1"], 3)
        t = _ref_conv(lrelu(t), blk["w2"], blk["b2"], 3)
        h = _ref_conv(h, blk["wsc"], None, 1)
        x = h + t
    im = jnp.tanh(_ref_conv(x, params["rgb_w"], params["rgb_b"], 3))
    msk = jax.nn.softmax(_ref_conv(x, params["mask_w"], params["mask_b"], 3), axis=-1)
    return jnp.transpose(im, (0, 3, 1, 2)), jnp.transpose(msk, (0, 3, 1, 2))


# ----------------------------------------------------------------------------
if __name__ == "__main__":
    num_blocks = 2          # channel schedule becomes [128, 64, 32]
    input_shape = 4
    input_dim = 32
    num_mask_channels = 2
    batch = 2

    key = jax.random.PRNGKey(0)
    kp, kz = jax.random.split(key)
    params, chans = init_generator_params(kp, num_blocks, input_shape, input_dim,
                                          num_mask_channels)
    prep = prepare_params(params)        # one-time weight re-layout / bf16 cast
    z = jax.random.normal(kz, (batch, input_dim, 1, 1), jnp.float32)

    fwd = jax.jit(lambda p, zz: generator_forward(p, zz, input_shape,
                                                  num_mask_channels))
    im, mask = jax.block_until_ready(fwd(prep, z))

    out_hw = input_shape * 2 ** (num_blocks - 1)
    assert im.shape == (batch, 3, out_hw, out_hw)
    assert mask.shape == (batch, num_mask_channels, out_hw, out_hw)

    # Reference is f32 HIGHEST; the Pallas path uses bf16 MXU inputs / bf16
    # intermediate activations with f32 accumulation, hence the loose tolerance.
    im_ref, mask_ref = jax.jit(reference_forward)(params, z)
    im_ref, mask_ref = jax.block_until_ready((im_ref, mask_ref))
    assert jnp.allclose(im, im_ref, atol=5e-2, rtol=5e-2)
    assert jnp.allclose(mask, mask_ref, atol=5e-2, rtol=5e-2)

    print("KERNEL_OK")
</pallas_src>

<mosaic_0001>
module attributes {stable_mosaic.version = 11 : i64} {
  func.func @_conv_kernel(%arg0: memref<86x128xbf16, #tpu.memory_space<vmem>>, %arg1: memref<9x128x64xbf16, #tpu.memory_space<vmem>>, %arg2: memref<1x64xf32, #tpu.memory_space<vmem>>, %arg3: memref<72x1xf32, #tpu.memory_space<vmem>>, %arg4: memref<72x64xbf16, #tpu.memory_space<vmem>>, %arg5: memref<86x128xbf16, #tpu.memory_space<vmem>>) attributes {dimension_semantics = [], scalar_prefetch = 0 : i64, scratch_operands = 1 : i64, tpu.core_type = #tpu.core_type<tc>} {
    %c0 = arith.constant 0 : index
    %c0_0 = arith.constant 0 : index
    %0 = vector.load %arg0[%c0, %c0_0] : memref<86x128xbf16, #tpu.memory_space<vmem>>, vector<86x128xbf16>
    %cst = arith.constant 0.000000e+00 : bf16
    %1 = vector.broadcast %cst : bf16 to vector<86x128xbf16>
    %2 = arith.cmpf ogt, %0, %1 : vector<86x128xbf16>
    %cst_1 = arith.constant 2.001950e-01 : bf16
    %3 = vector.broadcast %cst_1 : bf16 to vector<86x128xbf16>
    %4 = arith.mulf %3, %0 : vector<86x128xbf16>
    %5 = arith.select %2, %0, %4 : vector<86x128xi1>, vector<86x128xbf16>
    %c0_2 = arith.constant 0 : index
    %c0_3 = arith.constant 0 : index
    %6 = vector.load %arg5[%c0_2, %c0_3] : memref<86x128xbf16, #tpu.memory_space<vmem>>, vector<86x128xbf16>
    tpu.vector_store %arg5[%c0_2, %c0_3], %5 {strides = array<i32>} : memref<86x128xbf16, #tpu.memory_space<vmem>>, vector<86x128xbf16>,
    %cst_4 = arith.constant 0.000000e+00 : f32
    %7 = vector.broadcast %cst_4 : f32 to vector<72x64xf32>
    %c0_5 = arith.constant 0 : index
    %c0_6 = arith.constant 0 : index
    %8 = vector.load %arg5[%c0_5, %c0_6] : memref<86x128xbf16, #tpu.memory_space<vmem>>, vector<72x128xbf16>
    %c0_7 = arith.constant 0 : index
    %c0_8 = arith.constant 0 : index
    %c0_9 = arith.constant 0 : index
    %9 = vector.load %arg1[%c0_7, %c0_8, %c0_9] : memref<9x128x64xbf16, #tpu.memory_space<vmem>>, vector<1x128x64xbf16>
    %10 = vector.shape_cast %9 : vector<1x128x64xbf16> to vector<128x64xbf16>
    %cst_10 = arith.constant dense<0.000000e+00> : vector<72x64xf32>
    %11 = tpu.matmul %8, %10, %cst_10 {dimension_numbers = #tpu.dot_dimension_numbers<[1], [0], [0], [1], [0, 0, 1, 1], [], []>} : vector<72x128xbf16>, vector<128x64xbf16>, vector<72x64xf32> -> vector<72x64xf32>
    %12 = arith.addf %7, %11 : vector<72x64xf32>
    %c1 = arith.constant 1 : index
    %c0_11 = arith.constant 0 : index
    %13 = vector.load %arg5[%c1, %c0_11] : memref<86x128xbf16, #tpu.memory_space<vmem>>, vector<72x128xbf16>
    %c1_12 = arith.constant 1 : index
    %c0_13 = arith.constant 0 : index
    %c0_14 = arith.constant 0 : index
    %14 = vector.load %arg1[%c1_12, %c0_13, %c0_14] : memref<9x128x64xbf16, #tpu.memory_space<vmem>>, vector<1x128x64xbf16>
    %15 = vector.shape_cast %14 : vector<1x128x64xbf16> to vector<128x64xbf16>
    %cst_15 = arith.constant dense<0.000000e+00> : vector<72x64xf32>
    %16 = tpu.matmul %13, %15, %cst_15 {dimension_numbers = #tpu.dot_dimension_numbers<[1], [0], [0], [1], [0, 0, 1, 1], [], []>} : vector<72x128xbf16>, vector<128x64xbf16>, vector<72x64xf32> -> vector<72x64xf32>
    %17 = arith.addf %12, %16 : vector<72x64xf32>
    %c2 = arith.constant 2 : index
    %c0_16 = arith.constant 0 : index
    %18 = vector.load %arg5[%c2, %c0_16] : memref<86x128xbf16, #tpu.memory_space<vmem>>, vector<72x128xbf16>
    %c2_17 = arith.constant 2 : index
    %c0_18 = arith.constant 0 : index
    %c0_19 = arith.constant 0 : index
    %19 = vector.load %arg1[%c2_17, %c0_18, %c0_19] : memref<9x128x64xbf16, #tpu.memory_space<vmem>>, vector<1x128x64xbf16>
    %20 = vector.shape_cast %19 : vector<1x128x64xbf16> to vector<128x64xbf16>
    %cst_20 = arith.constant dense<0.000000e+00> : vector<72x64xf32>
    %21 = tpu.matmul %18, %20, %cst_20 {dimension_numbers = #tpu.dot_dimension_numbers<[1], [0], [0], [1], [0, 0, 1, 1], [], []>} : vector<72x128xbf16>, vector<128x64xbf16>, vector<72x64xf32> -> vector<72x64xf32>
    %22 = arith.addf %17, %21 : vector<72x64xf32>
    %c6 = arith.constant 6 : index
    %c0_21 = arith.constant 0 : index
    %23 = vector.load %arg5[%c6, %c0_21] : memref<86x128xbf16, #tpu.memory_space<vmem>>, vector<72x128xbf16>
    %c3 = arith.constant 3 : index
    %c0_22 = arith.constant 0 : index
    %c0_23 = arith.constant 0 : index
    %24 = vector.load %arg1[%c3, %c0_22, %c0_23] : memref<9x128x64xbf16, #tpu.memory_space<vmem>>, vector<1x128x64xbf16>
    %25 = vector.shape_cast %24 : vector<1x128x64xbf16> to vector<128x64xbf16>
    %cst_24 = arith.constant dense<0.000000e+00> : vector<72x64xf32>
    %26 = tpu.matmul %23, %25, %cst_24 {dimension_numbers = #tpu.dot_dimension_numbers<[1], [0], [0], [1], [0, 0, 1, 1], [], []>} : vector<72x128xbf16>, vector<128x64xbf16>, vector<72x64xf32> -> vector<72x64xf32>
    %27 = arith.addf %22, %26 : vector<72x64xf32>
    %c7 = arith.constant 7 : index
    %c0_25 = arith.constant 0 : index
    %28 = vector.load %arg5[%c7, %c0_25] : memref<86x128xbf16, #tpu.memory_space<vmem>>, vector<72x128xbf16>
    %c4 = arith.constant 4 : index
    %c0_26 = arith.constant 0 : index
    %c0_27 = arith.constant 0 : index
    %29 = vector.load %arg1[%c4, %c0_26, %c0_27] : memref<9x128x64xbf16, #tpu.memory_space<vmem>>, vector<1x128x64xbf16>
    %30 = vector.shape_cast %29 : vector<1x128x64xbf16> to vector<128x64xbf16>
    %cst_28 = arith.constant dense<0.000000e+00> : vector<72x64xf32>
    %31 = tpu.matmul %28, %30, %cst_28 {dimension_numbers = #tpu.dot_dimension_numbers<[1], [0], [0], [1], [0, 0, 1, 1], [], []>} : vector<72x128xbf16>, vector<128x64xbf16>, vector<72x64xf32> -> vector<72x64xf32>
    %32 = arith.addf %27, %31 : vector<72x64xf32>
    %c8 = arith.constant 8 : index
    %c0_29 = arith.constant 0 : index
    %33 = vector.load %arg5[%c8, %c0_29] : memref<86x128xbf16, #tpu.memory_space<vmem>>, vector<72x128xbf16>
    %c5 = arith.constant 5 : index
    %c0_30 = arith.constant 0 : index
    %c0_31 = arith.constant 0 : index
    %34 = vector.load %arg1[%c5, %c0_30, %c0_31] : memref<9x128x64xbf16, #tpu.memory_space<vmem>>, vector<1x128x64xbf16>
    %35 = vector.shape_cast %34 : vector<1x128x64xbf16> to vector<128x64xbf16>
    %cst_32 = arith.constant dense<0.000000e+00> : vector<72x64xf32>
    %36 = tpu.matmul %33, %35, %cst_32 {dimension_numbers = #tpu.dot_dimension_numbers<[1], [0], [0], [1], [0, 0, 1, 1], [], []>} : vector<72x128xbf16>, vector<128x64xbf16>, vector<72x64xf32> -> vector<72x64xf32>
    %37 = arith.addf %32, %36 : vector<72x64xf32>
    %c12 = arith.constant 12 : index
    %c0_33 = arith.constant 0 : index
    %38 = vector.load %arg5[%c12, %c0_33] : memref<86x128xbf16, #tpu.memory_space<vmem>>, vector<72x128xbf16>
    %c6_34 = arith.constant 6 : index
    %c0_35 = arith.constant 0 : index
    %c0_36 = arith.constant 0 : index
    %39 = vector.load %arg1[%c6_34, %c0_35, %c0_36] : memref<9x128x64xbf16, #tpu.memory_space<vmem>>, vector<1x128x64xbf16>
    %40 = vector.shape_cast %39 : vector<1x128x64xbf16> to vector<128x64xbf16>
    %cst_37 = arith.constant dense<0.000000e+00> : vector<72x64xf32>
    %41 = tpu.matmul %38, %40, %cst_37 {dimension_numbers = #tpu.dot_dimension_numbers<[1], [0], [0], [1], [0, 0, 1, 1], [], []>} : vector<72x128xbf16>, vector<128x64xbf16>, vector<72x64xf32> -> vector<72x64xf32>
    %42 = arith.addf %37, %41 : vector<72x64xf32>
    %c13 = arith.constant 13 : index
    %c0_38 = arith.constant 0 : index
    %43 = vector.load %arg5[%c13, %c0_38] : memref<86x128xbf16, #tpu.memory_space<vmem>>, vector<72x128xbf16>
    %c7_39 = arith.constant 7 : index
    %c0_40 = arith.constant 0 : index
    %c0_41 = arith.constant 0 : index
    %44 = vector.load %arg1[%c7_39, %c0_40, %c0_41] : memref<9x128x64xbf16, #tpu.memory_space<vmem>>, vector<1x128x64xbf16>
    %45 = vector.shape_cast %44 : vector<1x128x64xbf16> to vector<128x64xbf16>
    %cst_42 = arith.constant dense<0.000000e+00> : vector<72x64xf32>
    %46 = tpu.matmul %43, %45, %cst_42 {dimension_numbers = #tpu.dot_dimension_numbers<[1], [0], [0], [1], [0, 0, 1, 1], [], []>} : vector<72x128xbf16>, vector<128x64xbf16>, vector<72x64xf32> -> vector<72x64xf32>
    %47 = arith.addf %42, %46 : vector<72x64xf32>
    %c14 = arith.constant 14 : index
    %c0_43 = arith.constant 0 : index
    %48 = vector.load %arg5[%c14, %c0_43] : memref<86x128xbf16, #tpu.memory_space<vmem>>, vector<72x128xbf16>
    %c8_44 = arith.constant 8 : index
    %c0_45 = arith.constant 0 : index
    %c0_46 = arith.constant 0 : index
    %49 = vector.load %arg1[%c8_44, %c0_45, %c0_46] : memref<9x128x64xbf16, #tpu.memory_space<vmem>>, vector<1x128x64xbf16>
    %50 = vector.shape_cast %49 : vector<1x128x64xbf16> to vector<128x64xbf16>
    %cst_47 = arith.constant dense<0.000000e+00> : vector<72x64xf32>
    %51 = tpu.matmul %48, %50, %cst_47 {dimension_numbers = #tpu.dot_dimension_numbers<[1], [0], [0], [1], [0, 0, 1, 1], [], []>} : vector<72x128xbf16>, vector<128x64xbf16>, vector<72x64xf32> -> vector<72x64xf32>
    %52 = arith.addf %47, %51 : vector<72x64xf32>
    %c0_48 = arith.constant 0 : index
    %c0_49 = arith.constant 0 : index
    %53 = vector.load %arg2[%c0_48, %c0_49] : memref<1x64xf32, #tpu.memory_space<vmem>>, vector<1x64xf32>
    %54 = vector.broadcast %53 : vector<1x64xf32> to vector<72x64xf32>
    %55 = arith.addf %52, %54 : vector<72x64xf32>
    %cst_50 = arith.constant 0.000000e+00 : f32
    %56 = vector.broadcast %cst_50 : f32 to vector<72x64xf32>
    %57 = arith.cmpf ogt, %55, %56 : vector<72x64xf32>
    %cst_51 = arith.constant 2.000000e-01 : f32
    %58 = vector.broadcast %cst_51 : f32 to vector<72x64xf32>
    %59 = arith.mulf %58, %55 : vector<72x64xf32>
    %60 = arith.select %57, %55, %59 : vector<72x64xi1>, vector<72x64xf32>
    %c0_52 = arith.constant 0 : index
    %c0_53 = arith.constant 0 : index
    %61 = vector.load %arg3[%c0_52, %c0_53] : memref<72x1xf32, #tpu.memory_space<vmem>>, vector<72x1xf32>
    %62 = vector.broadcast %61 : vector<72x1xf32> to vector<72x64xf32>
    %63 = arith.mulf %60, %62 : vector<72x64xf32>
    %64 = arith.truncf %63 : vector<72x64xf32> to vector<72x64xbf16>
    %c0_54 = arith.constant 0 : index
    %c0_55 = arith.constant 0 : index
    %65 = vector.load %arg4[%c0_54, %c0_55] : memref<72x64xbf16, #tpu.memory_space<vmem>>, vector<72x64xbf16>
    tpu.vector_store %arg4[%c0_54, %c0_55], %64 {strides = array<i32>} : memref<72x64xbf16, #tpu.memory_space<vmem>>, vector<72x64xbf16>,
    return
  }
}

module attributes {stable_mosaic.version = 11 : i64} {
  func.func @_conv_kernel(%arg0: memref<86x64xbf16, #tpu.memory_space<vmem>>, %arg1: memref<72x128xbf16, #tpu.memory_space<vmem>>, %arg2: memref<9x64x64xbf16, #tpu.memory_space<vmem>>, %arg3: memref<128x64xbf16, #tpu.memory_space<vmem>>, %arg4: memref<1x64xf32, #tpu.memory_space<vmem>>, %arg5: memref<72x1xf32, #tpu.memory_space<vmem>>, %arg6: memref<72x64xbf16, #tpu.memory_space<vmem>>) attributes {dimension_semantics = [], scalar_prefetch = 0 : i64, scratch_operands = 0 : i64, tpu.core_type = #tpu.core_type<tc>} {
    %cst = arith.constant 0.000000e+00 : f32
    %0 = vector.broadcast %cst : f32 to vector<72x64xf32>
    %c0 = arith.constant 0 : index
    %c0_0 = arith.constant 0 : index
    %1 = vector.load %arg0[%c0, %c0_0] : memref<86x64xbf16, #tpu.memory_space<vmem>>, vector<72x64xbf16>
    %c0_1 = arith.constant 0 : index
    %c0_2 = arith.constant 0 : index
    %c0_3 = arith.constant 0 : index
    %2 = vector.load %arg2[%c0_1, %c0_2, %c0_3] : memref<9x64x64xbf16, #tpu.memory_space<vmem>>, vector<1x64x64xbf16>
    %3 = vector.shape_cast %2 : vector<1x64x64xbf16> to vector<64x64xbf16>
    %cst_4 = arith.constant dense<0.000000e+00> : vector<72x64xf32>
    %4 = tpu.matmul %1, %3, %cst_4 {dimension_numbers = #tpu.dot_dimension_numbers<[1], [0], [0], [1], [0, 0, 1, 1], [], []>} : vector<72x64xbf16>, vector<64x64xbf16>, vector<72x64xf32> -> vector<72x64xf32>
    %5 = arith.addf %0, %4 : vector<72x64xf32>
    %c1 = arith.constant 1 : index
    %c0_5 = arith.constant 0 : index
    %6 = vector.load %arg0[%c1, %c0_5] : memref<86x64xbf16, #tpu.memory_space<vmem>>, vector<72x64xbf16>
    %c1_6 = arith.constant 1 : index
    %c0_7 = arith.constant 0 : index
    %c0_8 = arith.constant 0 : index
    %7 = vector.load %arg2[%c1_6, %c0_7, %c0_8] : memref<9x64x64xbf16, #tpu.memory_space<vmem>>, vector<1x64x64xbf16>
    %8 = vector.shape_cast %7 : vector<1x64x64xbf16> to vector<64x64xbf16>
    %cst_9 = arith.constant dense<0.000000e+00> : vector<72x64xf32>
    %9 = tpu.matmul %6, %8, %cst_9 {dimension_numbers = #tpu.dot_dimension_numbers<[1], [0], [0], [1], [0, 0, 1, 1], [], []>} : vector<72x64xbf16>, vector<64x64xbf16>, vector<72x64xf32> -> vector<72x64xf32>
    %10 = arith.addf %5, %9 : vector<72x64xf32>
    %c2 = arith.constant 2 : index
    %c0_10 = arith.constant 0 : index
    %11 = vector.load %arg0[%c2, %c0_10] : memref<86x64xbf16, #tpu.memory_space<vmem>>, vector<72x64xbf16>
    %c2_11 = arith.constant 2 : index
    %c0_12 = arith.constant 0 : index
    %c0_13 = arith.constant 0 : index
    %12 = vector.load %arg2[%c2_11, %c0_12, %c0_13] : memref<9x64x64xbf16, #tpu.memory_space<vmem>>, vector<1x64x64xbf16>
    %13 = vector.shape_cast %12 : vector<1x64x64xbf16> to vector<64x64xbf16>
    %cst_14 = arith.constant dense<0.000000e+00> : vector<72x64xf32>
    %14 = tpu.matmul %11, %13, %cst_14 {dimension_numbers = #tpu.dot_dimension_numbers<[1], [0], [0], [1], [0, 0, 1, 1], [], []>} : vector<72x64xbf16>, vector<64x64xbf16>, vector<72x64xf32> -> vector<72x64xf32>
    %15 = arith.addf %10, %14 : vector<72x64xf32>
    %c6 = arith.constant 6 : index
    %c0_15 = arith.constant 0 : index
    %16 = vector.load %arg0[%c6, %c0_15] : memref<86x64xbf16, #tpu.memory_space<vmem>>, vector<72x64xbf16>
    %c3 = arith.constant 3 : index
    %c0_16 = arith.constant 0 : index
    %c0_17 = arith.constant 0 : index
    %17 = vector.load %arg2[%c3, %c0_16, %c0_17] : memref<9x64x64xbf16, #tpu.memory_space<vmem>>, vector<1x64x64xbf16>
    %18 = vector.shape_cast %17 : vector<1x64x64xbf16> to vector<64x64xbf16>
    %cst_18 = arith.constant dense<0.000000e+00> : vector<72x64xf32>
    %19 = tpu.matmul %16, %18, %cst_18 {dimension_numbers = #tpu.dot_dimension_numbers<[1], [0], [0], [1], [0, 0, 1, 1], [], []>} : vector<72x64xbf16>, vector<64x64xbf16>, vector<72x64xf32> -> vector<72x64xf32>
    %20 = arith.addf %15, %19 : vector<72x64xf32>
    %c7 = arith.constant 7 : index
    %c0_19 = arith.constant 0 : index
    %21 = vector.load %arg0[%c7, %c0_19] : memref<86x64xbf16, #tpu.memory_space<vmem>>, vector<72x64xbf16>
    %c4 = arith.constant 4 : index
    %c0_20 = arith.constant 0 : index
    %c0_21 = arith.constant 0 : index
    %22 = vector.load %arg2[%c4, %c0_20, %c0_21] : memref<9x64x64xbf16, #tpu.memory_space<vmem>>, vector<1x64x64xbf16>
    %23 = vector.shape_cast %22 : vector<1x64x64xbf16> to vector<64x64xbf16>
    %cst_22 = arith.constant dense<0.000000e+00> : vector<72x64xf32>
    %24 = tpu.matmul %21, %23, %cst_22 {dimension_numbers = #tpu.dot_dimension_numbers<[1], [0], [0], [1], [0, 0, 1, 1], [], []>} : vector<72x64xbf16>, vector<64x64xbf16>, vector<72x64xf32> -> vector<72x64xf32>
    %25 = arith.addf %20, %24 : vector<72x64xf32>
    %c8 = arith.constant 8 : index
    %c0_23 = arith.constant 0 : index
    %26 = vector.load %arg0[%c8, %c0_23] : memref<86x64xbf16, #tpu.memory_space<vmem>>, vector<72x64xbf16>
    %c5 = arith.constant 5 : index
    %c0_24 = arith.constant 0 : index
    %c0_25 = arith.constant 0 : index
    %27 = vector.load %arg2[%c5, %c0_24, %c0_25] : memref<9x64x64xbf16, #tpu.memory_space<vmem>>, vector<1x64x64xbf16>
    %28 = vector.shape_cast %27 : vector<1x64x64xbf16> to vector<64x64xbf16>
    %cst_26 = arith.constant dense<0.000000e+00> : vector<72x64xf32>
    %29 = tpu.matmul %26, %28, %cst_26 {dimension_numbers = #tpu.dot_dimension_numbers<[1], [0], [0], [1], [0, 0, 1, 1], [], []>} : vector<72x64xbf16>, vector<64x64xbf16>, vector<72x64xf32> -> vector<72x64xf32>
    %30 = arith.addf %25, %29 : vector<72x64xf32>
    %c12 = arith.constant 12 : index
    %c0_27 = arith.constant 0 : index
    %31 = vector.load %arg0[%c12, %c0_27] : memref<86x64xbf16, #tpu.memory_space<vmem>>, vector<72x64xbf16>
    %c6_28 = arith.constant 6 : index
    %c0_29 = arith.constant 0 : index
    %c0_30 = arith.constant 0 : index
    %32 = vector.load %arg2[%c6_28, %c0_29, %c0_30] : memref<9x64x64xbf16, #tpu.memory_space<vmem>>, vector<1x64x64xbf16>
    %33 = vector.shape_cast %32 : vector<1x64x64xbf16> to vector<64x64xbf16>
    %cst_31 = arith.constant dense<0.000000e+00> : vector<72x64xf32>
    %34 = tpu.matmul %31, %33, %cst_31 {dimension_numbers = #tpu.dot_dimension_numbers<[1], [0], [0], [1], [0, 0, 1, 1], [], []>} : vector<72x64xbf16>, vector<64x64xbf16>, vector<72x64xf32> -> vector<72x64xf32>
    %35 = arith.addf %30, %34 : vector<72x64xf32>
    %c13 = arith.constant 13 : index
    %c0_32 = arith.constant 0 : index
    %36 = vector.load %arg0[%c13, %c0_32] : memref<86x64xbf16, #tpu.memory_space<vmem>>, vector<72x64xbf16>
    %c7_33 = arith.constant 7 : index
    %c0_34 = arith.constant 0 : index
    %c0_35 = arith.constant 0 : index
    %37 = vector.load %arg2[%c7_33, %c0_34, %c0_35] : memref<9x64x64xbf16, #tpu.memory_space<vmem>>, vector<1x64x64xbf16>
    %38 = vector.shape_cast %37 : vector<1x64x64xbf16> to vector<64x64xbf16>
    %cst_36 = arith.constant dense<0.000000e+00> : vector<72x64xf32>
    %39 = tpu.matmul %36, %38, %cst_36 {dimension_numbers = #tpu.dot_dimension_numbers<[1], [0], [0], [1], [0, 0, 1, 1], [], []>} : vector<72x64xbf16>, vector<64x64xbf16>, vector<72x64xf32> -> vector<72x64xf32>
    %40 = arith.addf %35, %39 : vector<72x64xf32>
    %c14 = arith.constant 14 : index
    %c0_37 = arith.constant 0 : index
    %41 = vector.load %arg0[%c14, %c0_37] : memref<86x64xbf16, #tpu.memory_space<vmem>>, vector<72x64xbf16>
    %c8_38 = arith.constant 8 : index
    %c0_39 = arith.constant 0 : index
    %c0_40 = arith.constant 0 : index
    %42 = vector.load %arg2[%c8_38, %c0_39, %c0_40] : memref<9x64x64xbf16, #tpu.memory_space<vmem>>, vector<1x64x64xbf16>
    %43 = vector.shape_cast %42 : vector<1x64x64xbf16> to vector<64x64xbf16>
    %cst_41 = arith.constant dense<0.000000e+00> : vector<72x64xf32>
    %44 = tpu.matmul %41, %43, %cst_41 {dimension_numbers = #tpu.dot_dimension_numbers<[1], [0], [0], [1], [0, 0, 1, 1], [], []>} : vector<72x64xbf16>, vector<64x64xbf16>, vector<72x64xf32> -> vector<72x64xf32>
    %45 = arith.addf %40, %44 : vector<72x64xf32>
    %c0_42 = arith.constant 0 : index
    %c0_43 = arith.constant 0 : index
    %46 = vector.load %arg1[%c0_42, %c0_43] : memref<72x128xbf16, #tpu.memory_space<vmem>>, vector<72x128xbf16>
    %c0_44 = arith.constant 0 : index
    %c0_45 = arith.constant 0 : index
    %47 = vector.load %arg3[%c0_44, %c0_45] : memref<128x64xbf16, #tpu.memory_space<vmem>>, vector<128x64xbf16>
    %cst_46 = arith.constant dense<0.000000e+00> : vector<72x64xf32>
    %48 = tpu.matmul %46, %47, %cst_46 {dimension_numbers = #tpu.dot_dimension_numbers<[1], [0], [0], [1], [0, 0, 1, 1], [], []>} : vector<72x128xbf16>, vector<128x64xbf16>, vector<72x64xf32> -> vector<72x64xf32>
    %49 = arith.addf %45, %48 : vector<72x64xf32>
    %c0_47 = arith.constant 0 : index
    %c0_48 = arith.constant 0 : index
    %50 = vector.load %arg4[%c0_47, %c0_48] : memref<1x64xf32, #tpu.memory_space<vmem>>, vector<1x64xf32>
    %51 = vector.broadcast %50 : vector<1x64xf32> to vector<72x64xf32>
    %52 = arith.addf %49, %51 : vector<72x64xf32>
    %c0_49 = arith.constant 0 : index
    %c0_50 = arith.constant 0 : index
    %53 = vector.load %arg5[%c0_49, %c0_50] : memref<72x1xf32, #tpu.memory_space<vmem>>, vector<72x1xf32>
    %54 = vector.broadcast %53 : vector<72x1xf32> to vector<72x64xf32>
    %55 = arith.mulf %52, %54 : vector<72x64xf32>
    %56 = arith.truncf %55 : vector<72x64xf32> to vector<72x64xbf16>
    %c0_51 = arith.constant 0 : index
    %c0_52 = arith.constant 0 : index
    %57 = vector.load %arg6[%c0_51, %c0_52] : memref<72x64xbf16, #tpu.memory_space<vmem>>, vector<72x64xbf16>
    tpu.vector_store %arg6[%c0_51, %c0_52], %56 {strides = array<i32>} : memref<72x64xbf16, #tpu.memory_space<vmem>>, vector<72x64xbf16>,
    return
  }
}

module attributes {stable_mosaic.version = 11 : i64} {
  func.func @_conv_kernel(%arg0: memref<222x64xbf16, #tpu.memory_space<vmem>>, %arg1: memref<9x64x32xbf16, #tpu.memory_space<vmem>>, %arg2: memref<1x32xf32, #tpu.memory_space<vmem>>, %arg3: memref<200x1xf32, #tpu.memory_space<vmem>>, %arg4: memref<200x32xbf16, #tpu.memory_space<vmem>>, %arg5: memref<222x64xbf16, #tpu.memory_space<vmem>>) attributes {dimension_semantics = [], scalar_prefetch = 0 : i64, scratch_operands = 1 : i64, tpu.core_type = #tpu.core_type<tc>} {
    %c0 = arith.constant 0 : index
    %c0_0 = arith.constant 0 : index
    %0 = vector.load %arg0[%c0, %c0_0] : memref<222x64xbf16, #tpu.memory_space<vmem>>, vector<222x64xbf16>
    %cst = arith.constant 0.000000e+00 : bf16
    %1 = vector.broadcast %cst : bf16 to vector<222x64xbf16>
    %2 = arith.cmpf ogt, %0, %1 : vector<222x64xbf16>
    %cst_1 = arith.constant 2.001950e-01 : bf16
    %3 = vector.broadcast %cst_1 : bf16 to vector<222x64xbf16>
    %4 = arith.mulf %3, %0 : vector<222x64xbf16>
    %5 = arith.select %2, %0, %4 : vector<222x64xi1>, vector<222x64xbf16>
    %c0_2 = arith.constant 0 : index
    %c0_3 = arith.constant 0 : index
    %6 = vector.load %arg5[%c0_2, %c0_3] : memref<222x64xbf16, #tpu.memory_space<vmem>>, vector<222x64xbf16>
    tpu.vector_store %arg5[%c0_2, %c0_3], %5 {strides = array<i32>} : memref<222x64xbf16, #tpu.memory_space<vmem>>, vector<222x64xbf16>,
    %cst_4 = arith.constant 0.000000e+00 : f32
    %7 = vector.broadcast %cst_4 : f32 to vector<200x32xf32>
    %c0_5 = arith.constant 0 : index
    %c0_6 = arith.constant 0 : index
    %8 = vector.load %arg5[%c0_5, %c0_6] : memref<222x64xbf16, #tpu.memory_space<vmem>>, vector<200x64xbf16>
    %c0_7 = arith.constant 0 : index
    %c0_8 = arith.constant 0 : index
    %c0_9 = arith.constant 0 : index
    %9 = vector.load %arg1[%c0_7, %c0_8, %c0_9] : memref<9x64x32xbf16, #tpu.memory_space<vmem>>, vector<1x64x32xbf16>
    %10 = vector.shape_cast %9 : vector<1x64x32xbf16> to vector<64x32xbf16>
    %cst_10 = arith.constant dense<0.000000e+00> : vector<200x32xf32>
    %11 = tpu.matmul %8, %10, %cst_10 {dimension_numbers = #tpu.dot_dimension_numbers<[1], [0], [0], [1], [0, 0, 1, 1], [], []>} : vector<200x64xbf16>, vector<64x32xbf16>, vector<200x32xf32> -> vector<200x32xf32>
    %12 = arith.addf %7, %11 : vector<200x32xf32>
    %c1 = arith.constant 1 : index
    %c0_11 = arith.constant 0 : index
    %13 = vector.load %arg5[%c1, %c0_11] : memref<222x64xbf16, #tpu.memory_space<vmem>>, vector<200x64xbf16>
    %c1_12 = arith.constant 1 : index
    %c0_13 = arith.constant 0 : index
    %c0_14 = arith.constant 0 : index
    %14 = vector.load %arg1[%c1_12, %c0_13, %c0_14] : memref<9x64x32xbf16, #tpu.memory_space<vmem>>, vector<1x64x32xbf16>
    %15 = vector.shape_cast %14 : vector<1x64x32xbf16> to vector<64x32xbf16>
    %cst_15 = arith.constant dense<0.000000e+00> : vector<200x32xf32>
    %16 = tpu.matmul %13, %15, %cst_15 {dimension_numbers = #tpu.dot_dimension_numbers<[1], [0], [0], [1], [0, 0, 1, 1], [], []>} : vector<200x64xbf16>, vector<64x32xbf16>, vector<200x32xf32> -> vector<200x32xf32>
    %17 = arith.addf %12, %16 : vector<200x32xf32>
    %c2 = arith.constant 2 : index
    %c0_16 = arith.constant 0 : index
    %18 = vector.load %arg5[%c2, %c0_16] : memref<222x64xbf16, #tpu.memory_space<vmem>>, vector<200x64xbf16>
    %c2_17 = arith.constant 2 : index
    %c0_18 = arith.constant 0 : index
    %c0_19 = arith.constant 0 : index
    %19 = vector.load %arg1[%c2_17, %c0_18, %c0_19] : memref<9x64x32xbf16, #tpu.memory_space<vmem>>, vector<1x64x32xbf16>
    %20 = vector.shape_cast %19 : vector<1x64x32xbf16> to vector<64x32xbf16>
    %cst_20 = arith.constant dense<0.000000e+00> : vector<200x32xf32>
    %21 = tpu.matmul %18, %20, %cst_20 {dimension_numbers = #tpu.dot_dimension_numbers<[1], [0], [0], [1], [0, 0, 1, 1], [], []>} : vector<200x64xbf16>, vector<64x32xbf16>, vector<200x32xf32> -> vector<200x32xf32>
    %22 = arith.addf %17, %21 : vector<200x32xf32>
    %c10 = arith.constant 10 : index
    %c0_21 = arith.constant 0 : index
    %23 = vector.load %arg5[%c10, %c0_21] : memref<222x64xbf16, #tpu.memory_space<vmem>>, vector<200x64xbf16>
    %c3 = arith.constant 3 : index
    %c0_22 = arith.constant 0 : index
    %c0_23 = arith.constant 0 : index
    %24 = vector.load %arg1[%c3, %c0_22, %c0_23] : memref<9x64x32xbf16, #tpu.memory_space<vmem>>, vector<1x64x32xbf16>
    %25 = vector.shape_cast %24 : vector<1x64x32xbf16> to vector<64x32xbf16>
    %cst_24 = arith.constant dense<0.000000e+00> : vector<200x32xf32>
    %26 = tpu.matmul %23, %25, %cst_24 {dimension_numbers = #tpu.dot_dimension_numbers<[1], [0], [0], [1], [0, 0, 1, 1], [], []>} : vector<200x64xbf16>, vector<64x32xbf16>, vector<200x32xf32> -> vector<200x32xf32>
    %27 = arith.addf %22, %26 : vector<200x32xf32>
    %c11 = arith.constant 11 : index
    %c0_25 = arith.constant 0 : index
    %28 = vector.load %arg5[%c11, %c0_25] : memref<222x64xbf16, #tpu.memory_space<vmem>>, vector<200x64xbf16>
    %c4 = arith.constant 4 : index
    %c0_26 = arith.constant 0 : index
    %c0_27 = arith.constant 0 : index
    %29 = vector.load %arg1[%c4, %c0_26, %c0_27] : memref<9x64x32xbf16, #tpu.memory_space<vmem>>, vector<1x64x32xbf16>
    %30 = vector.shape_cast %29 : vector<1x64x32xbf16> to vector<64x32xbf16>
    %cst_28 = arith.constant dense<0.000000e+00> : vector<200x32xf32>
    %31 = tpu.matmul %28, %30, %cst_28 {dimension_numbers = #tpu.dot_dimension_numbers<[1], [0], [0], [1], [0, 0, 1, 1], [], []>} : vector<200x64xbf16>, vector<64x32xbf16>, vector<200x32xf32> -> vector<200x32xf32>
    %32 = arith.addf %27, %31 : vector<200x32xf32>
    %c12 = arith.constant 12 : index
    %c0_29 = arith.constant 0 : index
    %33 = vector.load %arg5[%c12, %c0_29] : memref<222x64xbf16, #tpu.memory_space<vmem>>, vector<200x64xbf16>
    %c5 = arith.constant 5 : index
    %c0_30 = arith.constant 0 : index
    %c0_31 = arith.constant 0 : index
    %34 = vector.load %arg1[%c5, %c0_30, %c0_31] : memref<9x64x32xbf16, #tpu.memory_space<vmem>>, vector<1x64x32xbf16>
    %35 = vector.shape_cast %34 : vector<1x64x32xbf16> to vector<64x32xbf16>
    %cst_32 = arith.constant dense<0.000000e+00> : vector<200x32xf32>
    %36 = tpu.matmul %33, %35, %cst_32 {dimension_numbers = #tpu.dot_dimension_numbers<[1], [0], [0], [1], [0, 0, 1, 1], [], []>} : vector<200x64xbf16>, vector<64x32xbf16>, vector<200x32xf32> -> vector<200x32xf32>
    %37 = arith.addf %32, %36 : vector<200x32xf32>
    %c20 = arith.constant 20 : index
    %c0_33 = arith.constant 0 : index
    %38 = vector.load %arg5[%c20, %c0_33] : memref<222x64xbf16, #tpu.memory_space<vmem>>, vector<200x64xbf16>
    %c6 = arith.constant 6 : index
    %c0_34 = arith.constant 0 : index
    %c0_35 = arith.constant 0 : index
    %39 = vector.load %arg1[%c6, %c0_34, %c0_35] : memref<9x64x32xbf16, #tpu.memory_space<vmem>>, vector<1x64x32xbf16>
    %40 = vector.shape_cast %39 : vector<1x64x32xbf16> to vector<64x32xbf16>
    %cst_36 = arith.constant dense<0.000000e+00> : vector<200x32xf32>
    %41 = tpu.matmul %38, %40, %cst_36 {dimension_numbers = #tpu.dot_dimension_numbers<[1], [0], [0], [1], [0, 0, 1, 1], [], []>} : vector<200x64xbf16>, vector<64x32xbf16>, vector<200x32xf32> -> vector<200x32xf32>
    %42 = arith.addf %37, %41 : vector<200x32xf32>
    %c21 = arith.constant 21 : index
    %c0_37 = arith.constant 0 : index
    %43 = vector.load %arg5[%c21, %c0_37] : memref<222x64xbf16, #tpu.memory_space<vmem>>, vector<200x64xbf16>
    %c7 = arith.constant 7 : index
    %c0_38 = arith.constant 0 : index
    %c0_39 = arith.constant 0 : index
    %44 = vector.load %arg1[%c7, %c0_38, %c0_39] : memref<9x64x32xbf16, #tpu.memory_space<vmem>>, vector<1x64x32xbf16>
    %45 = vector.shape_cast %44 : vector<1x64x32xbf16> to vector<64x32xbf16>
    %cst_40 = arith.constant dense<0.000000e+00> : vector<200x32xf32>
    %46 = tpu.matmul %43, %45, %cst_40 {dimension_numbers = #tpu.dot_dimension_numbers<[1], [0], [0], [1], [0, 0, 1, 1], [], []>} : vector<200x64xbf16>, vector<64x32xbf16>, vector<200x32xf32> -> vector<200x32xf32>
    %47 = arith.addf %42, %46 : vector<200x32xf32>
    %c22 = arith.constant 22 : index
    %c0_41 = arith.constant 0 : index
    %48 = vector.load %arg5[%c22, %c0_41] : memref<222x64xbf16, #tpu.memory_space<vmem>>, vector<200x64xbf16>
    %c8 = arith.constant 8 : index
    %c0_42 = arith.constant 0 : index
    %c0_43 = arith.constant 0 : index
    %49 = vector.load %arg1[%c8, %c0_42, %c0_43] : memref<9x64x32xbf16, #tpu.memory_space<vmem>>, vector<1x64x32xbf16>
    %50 = vector.shape_cast %49 : vector<1x64x32xbf16> to vector<64x32xbf16>
    %cst_44 = arith.constant dense<0.000000e+00> : vector<200x32xf32>
    %51 = tpu.matmul %48, %50, %cst_44 {dimension_numbers = #tpu.dot_dimension_numbers<[1], [0], [0], [1], [0, 0, 1, 1], [], []>} : vector<200x64xbf16>, vector<64x32xbf16>, vector<200x32xf32> -> vector<200x32xf32>
    %52 = arith.addf %47, %51 : vector<200x32xf32>
    %c0_45 = arith.constant 0 : index
    %c0_46 = arith.constant 0 : index
    %53 = vector.load %arg2[%c0_45, %c0_46] : memref<1x32xf32, #tpu.memory_space<vmem>>, vector<1x32xf32>
    %54 = vector.broadcast %53 : vector<1x32xf32> to vector<200x32xf32>
    %55 = arith.addf %52, %54 : vector<200x32xf32>
    %cst_47 = arith.constant 0.000000e+00 : f32
    %56 = vector.broadcast %cst_47 : f32 to vector<200x32xf32>
    %57 = arith.cmpf ogt, %55, %56 : vector<200x32xf32>
    %cst_48 = arith.constant 2.000000e-01 : f32
    %58 = vector.broadcast %cst_48 : f32 to vector<200x32xf32>
    %59 = arith.mulf %58, %55 : vector<200x32xf32>
    %60 = arith.select %57, %55, %59 : vector<200x32xi1>, vector<200x32xf32>
    %c0_49 = arith.constant 0 : index
    %c0_50 = arith.constant 0 : index
    %61 = vector.load %arg3[%c0_49, %c0_50] : memref<200x1xf32, #tpu.memory_space<vmem>>, vector<200x1xf32>
    %62 = vector.broadcast %61 : vector<200x1xf32> to vector<200x32xf32>
    %63 = arith.mulf %60, %62 : vector<200x32xf32>
    %64 = arith.truncf %63 : vector<200x32xf32> to vector<200x32xbf16>
    %c0_51 = arith.constant 0 : index
    %c0_52 = arith.constant 0 : index
    %65 = vector.load %arg4[%c0_51, %c0_52] : memref<200x32xbf16, #tpu.memory_space<vmem>>, vector<200x32xbf16>
    tpu.vector_store %arg4[%c0_51, %c0_52], %64 {strides = array<i32>} : memref<200x32xbf16, #tpu.memory_space<vmem>>, vector<200x32xbf16>,
    return
  }
}

module attributes {stable_mosaic.version = 11 : i64} {
  func.func @_conv_kernel(%arg0: memref<222x32xbf16, #tpu.memory_space<vmem>>, %arg1: memref<200x64xbf16, #tpu.memory_space<vmem>>, %arg2: memref<9x32x32xbf16, #tpu.memory_space<vmem>>, %arg3: memref<64x32xbf16, #tpu.memory_space<vmem>>, %arg4: memref<1x32xf32, #tpu.memory_space<vmem>>, %arg5: memref<200x1xf32, #tpu.memory_space<vmem>>, %arg6: memref<200x32xbf16, #tpu.memory_space<vmem>>) attributes {dimension_semantics = [], scalar_prefetch = 0 : i64, scratch_operands = 0 : i64, tpu.core_type = #tpu.core_type<tc>} {
    %cst = arith.constant 0.000000e+00 : f32
    %0 = vector.broadcast %cst : f32 to vector<200x32xf32>
    %c0 = arith.constant 0 : index
    %c0_0 = arith.constant 0 : index
    %1 = vector.load %arg0[%c0, %c0_0] : memref<222x32xbf16, #tpu.memory_space<vmem>>, vector<200x32xbf16>
    %c0_1 = arith.constant 0 : index
    %c0_2 = arith.constant 0 : index
    %c0_3 = arith.constant 0 : index
    %2 = vector.load %arg2[%c0_1, %c0_2, %c0_3] : memref<9x32x32xbf16, #tpu.memory_space<vmem>>, vector<1x32x32xbf16>
    %3 = vector.shape_cast %2 : vector<1x32x32xbf16> to vector<32x32xbf16>
    %cst_4 = arith.constant dense<0.000000e+00> : vector<200x32xf32>
    %4 = tpu.matmul %1, %3, %cst_4 {dimension_numbers = #tpu.dot_dimension_numbers<[1], [0], [0], [1], [0, 0, 1, 1], [], []>} : vector<200x32xbf16>, vector<32x32xbf16>, vector<200x32xf32> -> vector<200x32xf32>
    %5 = arith.addf %0, %4 : vector<200x32xf32>
    %c1 = arith.constant 1 : index
    %c0_5 = arith.constant 0 : index
    %6 = vector.load %arg0[%c1, %c0_5] : memref<222x32xbf16, #tpu.memory_space<vmem>>, vector<200x32xbf16>
    %c1_6 = arith.constant 1 : index
    %c0_7 = arith.constant 0 : index
    %c0_8 = arith.constant 0 : index
    %7 = vector.load %arg2[%c1_6, %c0_7, %c0_8] : memref<9x32x32xbf16, #tpu.memory_space<vmem>>, vector<1x32x32xbf16>
    %8 = vector.shape_cast %7 : vector<1x32x32xbf16> to vector<32x32xbf16>
    %cst_9 = arith.constant dense<0.000000e+00> : vector<200x32xf32>
    %9 = tpu.matmul %6, %8, %cst_9 {dimension_numbers = #tpu.dot_dimension_numbers<[1], [0], [0], [1], [0, 0, 1, 1], [], []>} : vector<200x32xbf16>, vector<32x32xbf16>, vector<200x32xf32> -> vector<200x32xf32>
    %10 = arith.addf %5, %9 : vector<200x32xf32>
    %c2 = arith.constant 2 : index
    %c0_10 = arith.constant 0 : index
    %11 = vector.load %arg0[%c2, %c0_10] : memref<222x32xbf16, #tpu.memory_space<vmem>>, vector<200x32xbf16>
    %c2_11 = arith.constant 2 : index
    %c0_12 = arith.constant 0 : index
    %c0_13 = arith.constant 0 : index
    %12 = vector.load %arg2[%c2_11, %c0_12, %c0_13] : memref<9x32x32xbf16, #tpu.memory_space<vmem>>, vector<1x32x32xbf16>
    %13 = vector.shape_cast %12 : vector<1x32x32xbf16> to vector<32x32xbf16>
    %cst_14 = arith.constant dense<0.000000e+00> : vector<200x32xf32>
    %14 = tpu.matmul %11, %13, %cst_14 {dimension_numbers = #tpu.dot_dimension_numbers<[1], [0], [0], [1], [0, 0, 1, 1], [], []>} : vector<200x32xbf16>, vector<32x32xbf16>, vector<200x32xf32> -> vector<200x32xf32>
    %15 = arith.addf %10, %14 : vector<200x32xf32>
    %c10 = arith.constant 10 : index
    %c0_15 = arith.constant 0 : index
    %16 = vector.load %arg0[%c10, %c0_15] : memref<222x32xbf16, #tpu.memory_space<vmem>>, vector<200x32xbf16>
    %c3 = arith.constant 3 : index
    %c0_16 = arith.constant 0 : index
    %c0_17 = arith.constant 0 : index
    %17 = vector.load %arg2[%c3, %c0_16, %c0_17] : memref<9x32x32xbf16, #tpu.memory_space<vmem>>, vector<1x32x32xbf16>
    %18 = vector.shape_cast %17 : vector<1x32x32xbf16> to vector<32x32xbf16>
    %cst_18 = arith.constant dense<0.000000e+00> : vector<200x32xf32>
    %19 = tpu.matmul %16, %18, %cst_18 {dimension_numbers = #tpu.dot_dimension_numbers<[1], [0], [0], [1], [0, 0, 1, 1], [], []>} : vector<200x32xbf16>, vector<32x32xbf16>, vector<200x32xf32> -> vector<200x32xf32>
    %20 = arith.addf %15, %19 : vector<200x32xf32>
    %c11 = arith.constant 11 : index
    %c0_19 = arith.constant 0 : index
    %21 = vector.load %arg0[%c11, %c0_19] : memref<222x32xbf16, #tpu.memory_space<vmem>>, vector<200x32xbf16>
    %c4 = arith.constant 4 : index
    %c0_20 = arith.constant 0 : index
    %c0_21 = arith.constant 0 : index
    %22 = vector.load %arg2[%c4, %c0_20, %c0_21] : memref<9x32x32xbf16, #tpu.memory_space<vmem>>, vector<1x32x32xbf16>
    %23 = vector.shape_cast %22 : vector<1x32x32xbf16> to vector<32x32xbf16>
    %cst_22 = arith.constant dense<0.000000e+00> : vector<200x32xf32>
    %24 = tpu.matmul %21, %23, %cst_22 {dimension_numbers = #tpu.dot_dimension_numbers<[1], [0], [0], [1], [0, 0, 1, 1], [], []>} : vector<200x32xbf16>, vector<32x32xbf16>, vector<200x32xf32> -> vector<200x32xf32>
    %25 = arith.addf %20, %24 : vector<200x32xf32>
    %c12 = arith.constant 12 : index
    %c0_23 = arith.constant 0 : index
    %26 = vector.load %arg0[%c12, %c0_23] : memref<222x32xbf16, #tpu.memory_space<vmem>>, vector<200x32xbf16>
    %c5 = arith.constant 5 : index
    %c0_24 = arith.constant 0 : index
    %c0_25 = arith.constant 0 : index
    %27 = vector.load %arg2[%c5, %c0_24, %c0_25] : memref<9x32x32xbf16, #tpu.memory_space<vmem>>, vector<1x32x32xbf16>
    %28 = vector.shape_cast %27 : vector<1x32x32xbf16> to vector<32x32xbf16>
    %cst_26 = arith.constant dense<0.000000e+00> : vector<200x32xf32>
    %29 = tpu.matmul %26, %28, %cst_26 {dimension_numbers = #tpu.dot_dimension_numbers<[1], [0], [0], [1], [0, 0, 1, 1], [], []>} : vector<200x32xbf16>, vector<32x32xbf16>, vector<200x32xf32> -> vector<200x32xf32>
    %30 = arith.addf %25, %29 : vector<200x32xf32>
    %c20 = arith.constant 20 : index
    %c0_27 = arith.constant 0 : index
    %31 = vector.load %arg0[%c20, %c0_27] : memref<222x32xbf16, #tpu.memory_space<vmem>>, vector<200x32xbf16>
    %c6 = arith.constant 6 : index
    %c0_28 = arith.constant 0 : index
    %c0_29 = arith.constant 0 : index
    %32 = vector.load %arg2[%c6, %c0_28, %c0_29] : memref<9x32x32xbf16, #tpu.memory_space<vmem>>, vector<1x32x32xbf16>
    %33 = vector.shape_cast %32 : vector<1x32x32xbf16> to vector<32x32xbf16>
    %cst_30 = arith.constant dense<0.000000e+00> : vector<200x32xf32>
    %34 = tpu.matmul %31, %33, %cst_30 {dimension_numbers = #tpu.dot_dimension_numbers<[1], [0], [0], [1], [0, 0, 1, 1], [], []>} : vector<200x32xbf16>, vector<32x32xbf16>, vector<200x32xf32> -> vector<200x32xf32>
    %35 = arith.addf %30, %34 : vector<200x32xf32>
    %c21 = arith.constant 21 : index
    %c0_31 = arith.constant 0 : index
    %36 = vector.load %arg0[%c21, %c0_31] : memref<222x32xbf16, #tpu.memory_space<vmem>>, vector<200x32xbf16>
    %c7 = arith.constant 7 : index
    %c0_32 = arith.constant 0 : index
    %c0_33 = arith.constant 0 : index
    %37 = vector.load %arg2[%c7, %c0_32, %c0_33] : memref<9x32x32xbf16, #tpu.memory_space<vmem>>, vector<1x32x32xbf16>
    %38 = vector.shape_cast %37 : vector<1x32x32xbf16> to vector<32x32xbf16>
    %cst_34 = arith.constant dense<0.000000e+00> : vector<200x32xf32>
    %39 = tpu.matmul %36, %38, %cst_34 {dimension_numbers = #tpu.dot_dimension_numbers<[1], [0], [0], [1], [0, 0, 1, 1], [], []>} : vector<200x32xbf16>, vector<32x32xbf16>, vector<200x32xf32> -> vector<200x32xf32>
    %40 = arith.addf %35, %39 : vector<200x32xf32>
    %c22 = arith.constant 22 : index
    %c0_35 = arith.constant 0 : index
    %41 = vector.load %arg0[%c22, %c0_35] : memref<222x32xbf16, #tpu.memory_space<vmem>>, vector<200x32xbf16>
    %c8 = arith.constant 8 : index
    %c0_36 = arith.constant 0 : index
    %c0_37 = arith.constant 0 : index
    %42 = vector.load %arg2[%c8, %c0_36, %c0_37] : memref<9x32x32xbf16, #tpu.memory_space<vmem>>, vector<1x32x32xbf16>
    %43 = vector.shape_cast %42 : vector<1x32x32xbf16> to vector<32x32xbf16>
    %cst_38 = arith.constant dense<0.000000e+00> : vector<200x32xf32>
    %44 = tpu.matmul %41, %43, %cst_38 {dimension_numbers = #tpu.dot_dimension_numbers<[1], [0], [0], [1], [0, 0, 1, 1], [], []>} : vector<200x32xbf16>, vector<32x32xbf16>, vector<200x32xf32> -> vector<200x32xf32>
    %45 = arith.addf %40, %44 : vector<200x32xf32>
    %c0_39 = arith.constant 0 : index
    %c0_40 = arith.constant 0 : index
    %46 = vector.load %arg1[%c0_39, %c0_40] : memref<200x64xbf16, #tpu.memory_space<vmem>>, vector<200x64xbf16>
    %c0_41 = arith.constant 0 : index
    %c0_42 = arith.constant 0 : index
    %47 = vector.load %arg3[%c0_41, %c0_42] : memref<64x32xbf16, #tpu.memory_space<vmem>>, vector<64x32xbf16>
    %cst_43 = arith.constant dense<0.000000e+00> : vector<200x32xf32>
    %48 = tpu.matmul %46, %47, %cst_43 {dimension_numbers = #tpu.dot_dimension_numbers<[1], [0], [0], [1], [0, 0, 1, 1], [], []>} : vector<200x64xbf16>, vector<64x32xbf16>, vector<200x32xf32> -> vector<200x32xf32>
    %49 = arith.addf %45, %48 : vector<200x32xf32>
    %c0_44 = arith.constant 0 : index
    %c0_45 = arith.constant 0 : index
    %50 = vector.load %arg4[%c0_44, %c0_45] : memref<1x32xf32, #tpu.memory_space<vmem>>, vector<1x32xf32>
    %51 = vector.broadcast %50 : vector<1x32xf32> to vector<200x32xf32>
    %52 = arith.addf %49, %51 : vector<200x32xf32>
    %c0_46 = arith.constant 0 : index
    %c0_47 = arith.constant 0 : index
    %53 = vector.load %arg5[%c0_46, %c0_47] : memref<200x1xf32, #tpu.memory_space<vmem>>, vector<200x1xf32>
    %54 = vector.broadcast %53 : vector<200x1xf32> to vector<200x32xf32>
    %55 = arith.mulf %52, %54 : vector<200x32xf32>
    %56 = arith.truncf %55 : vector<200x32xf32> to vector<200x32xbf16>
    %c0_48 = arith.constant 0 : index
    %c0_49 = arith.constant 0 : index
    %57 = vector.load %arg6[%c0_48, %c0_49] : memref<200x32xbf16, #tpu.memory_space<vmem>>, vector<200x32xbf16>
    tpu.vector_store %arg6[%c0_48, %c0_49], %56 {strides = array<i32>} : memref<200x32xbf16, #tpu.memory_space<vmem>>, vector<200x32xbf16>,
    return
  }
}

module attributes {stable_mosaic.version = 11 : i64} {
  func.func @_conv_kernel(%arg0: memref<222x32xbf16, #tpu.memory_space<vmem>>, %arg1: memref<9x32x5xbf16, #tpu.memory_space<vmem>>, %arg2: memref<1x5xf32, #tpu.memory_space<vmem>>, %arg3: memref<200x1xf32, #tpu.memory_space<vmem>>, %arg4: memref<200x5xf32, #tpu.memory_space<vmem>>) attributes {dimension_semantics = [], scalar_prefetch = 0 : i64, scratch_operands = 0 : i64, tpu.core_type = #tpu.core_type<tc>} {
    %cst = arith.constant 0.000000e+00 : f32
    %0 = vector.broadcast %cst : f32 to vector<200x5xf32>
    %c0 = arith.constant 0 : index
    %c0_0 = arith.constant 0 : index
    %1 = vector.load %arg0[%c0, %c0_0] : memref<222x32xbf16, #tpu.memory_space<vmem>>, vector<200x32xbf16>
    %c0_1 = arith.constant 0 : index
    %c0_2 = arith.constant 0 : index
    %c0_3 = arith.constant 0 : index
    %2 = vector.load %arg1[%c0_1, %c0_2, %c0_3] : memref<9x32x5xbf16, #tpu.memory_space<vmem>>, vector<1x32x5xbf16>
    %3 = vector.shape_cast %2 : vector<1x32x5xbf16> to vector<32x5xbf16>
    %cst_4 = arith.constant dense<0.000000e+00> : vector<200x5xf32>
    %4 = tpu.matmul %1, %3, %cst_4 {dimension_numbers = #tpu.dot_dimension_numbers<[1], [0], [0], [1], [0, 0, 1, 1], [], []>} : vector<200x32xbf16>, vector<32x5xbf16>, vector<200x5xf32> -> vector<200x5xf32>
    %5 = arith.addf %0, %4 : vector<200x5xf32>
    %c1 = arith.constant 1 : index
    %c0_5 = arith.constant 0 : index
    %6 = vector.load %arg0[%c1, %c0_5] : memref<222x32xbf16, #tpu.memory_space<vmem>>, vector<200x32xbf16>
    %c1_6 = arith.constant 1 : index
    %c0_7 = arith.constant 0 : index
    %c0_8 = arith.constant 0 : index
    %7 = vector.load %arg1[%c1_6, %c0_7, %c0_8] : memref<9x32x5xbf16, #tpu.memory_space<vmem>>, vector<1x32x5xbf16>
    %8 = vector.shape_cast %7 : vector<1x32x5xbf16> to vector<32x5xbf16>
    %cst_9 = arith.constant dense<0.000000e+00> : vector<200x5xf32>
    %9 = tpu.matmul %6, %8, %cst_9 {dimension_numbers = #tpu.dot_dimension_numbers<[1], [0], [0], [1], [0, 0, 1, 1], [], []>} : vector<200x32xbf16>, vector<32x5xbf16>, vector<200x5xf32> -> vector<200x5xf32>
    %10 = arith.addf %5, %9 : vector<200x5xf32>
    %c2 = arith.constant 2 : index
    %c0_10 = arith.constant 0 : index
    %11 = vector.load %arg0[%c2, %c0_10] : memref<222x32xbf16, #tpu.memory_space<vmem>>, vector<200x32xbf16>
    %c2_11 = arith.constant 2 : index
    %c0_12 = arith.constant 0 : index
    %c0_13 = arith.constant 0 : index
    %12 = vector.load %arg1[%c2_11, %c0_12, %c0_13] : memref<9x32x5xbf16, #tpu.memory_space<vmem>>, vector<1x32x5xbf16>
    %13 = vector.shape_cast %12 : vector<1x32x5xbf16> to vector<32x5xbf16>
    %cst_14 = arith.constant dense<0.000000e+00> : vector<200x5xf32>
    %14 = tpu.matmul %11, %13, %cst_14 {dimension_numbers = #tpu.dot_dimension_numbers<[1], [0], [0], [1], [0, 0, 1, 1], [], []>} : vector<200x32xbf16>, vector<32x5xbf16>, vector<200x5xf32> -> vector<200x5xf32>
    %15 = arith.addf %10, %14 : vector<200x5xf32>
    %c10 = arith.constant 10 : index
    %c0_15 = arith.constant 0 : index
    %16 = vector.load %arg0[%c10, %c0_15] : memref<222x32xbf16, #tpu.memory_space<vmem>>, vector<200x32xbf16>
    %c3 = arith.constant 3 : index
    %c0_16 = arith.constant 0 : index
    %c0_17 = arith.constant 0 : index
    %17 = vector.load %arg1[%c3, %c0_16, %c0_17] : memref<9x32x5xbf16, #tpu.memory_space<vmem>>, vector<1x32x5xbf16>
    %18 = vector.shape_cast %17 : vector<1x32x5xbf16> to vector<32x5xbf16>
    %cst_18 = arith.constant dense<0.000000e+00> : vector<200x5xf32>
    %19 = tpu.matmul %16, %18, %cst_18 {dimension_numbers = #tpu.dot_dimension_numbers<[1], [0], [0], [1], [0, 0, 1, 1], [], []>} : vector<200x32xbf16>, vector<32x5xbf16>, vector<200x5xf32> -> vector<200x5xf32>
    %20 = arith.addf %15, %19 : vector<200x5xf32>
    %c11 = arith.constant 11 : index
    %c0_19 = arith.constant 0 : index
    %21 = vector.load %arg0[%c11, %c0_19] : memref<222x32xbf16, #tpu.memory_space<vmem>>, vector<200x32xbf16>
    %c4 = arith.constant 4 : index
    %c0_20 = arith.constant 0 : index
    %c0_21 = arith.constant 0 : index
    %22 = vector.load %arg1[%c4, %c0_20, %c0_21] : memref<9x32x5xbf16, #tpu.memory_space<vmem>>, vector<1x32x5xbf16>
    %23 = vector.shape_cast %22 : vector<1x32x5xbf16> to vector<32x5xbf16>
    %cst_22 = arith.constant dense<0.000000e+00> : vector<200x5xf32>
    %24 = tpu.matmul %21, %23, %cst_22 {dimension_numbers = #tpu.dot_dimension_numbers<[1], [0], [0], [1], [0, 0, 1, 1], [], []>} : vector<200x32xbf16>, vector<32x5xbf16>, vector<200x5xf32> -> vector<200x5xf32>
    %25 = arith.addf %20, %24 : vector<200x5xf32>
    %c12 = arith.constant 12 : index
    %c0_23 = arith.constant 0 : index
    %26 = vector.load %arg0[%c12, %c0_23] : memref<222x32xbf16, #tpu.memory_space<vmem>>, vector<200x32xbf16>
    %c5 = arith.constant 5 : index
    %c0_24 = arith.constant 0 : index
    %c0_25 = arith.constant 0 : index
    %27 = vector.load %arg1[%c5, %c0_24, %c0_25] : memref<9x32x5xbf16, #tpu.memory_space<vmem>>, vector<1x32x5xbf16>
    %28 = vector.shape_cast %27 : vector<1x32x5xbf16> to vector<32x5xbf16>
    %cst_26 = arith.constant dense<0.000000e+00> : vector<200x5xf32>
    %29 = tpu.matmul %26, %28, %cst_26 {dimension_numbers = #tpu.dot_dimension_numbers<[1], [0], [0], [1], [0, 0, 1, 1], [], []>} : vector<200x32xbf16>, vector<32x5xbf16>, vector<200x5xf32> -> vector<200x5xf32>
    %30 = arith.addf %25, %29 : vector<200x5xf32>
    %c20 = arith.constant 20 : index
    %c0_27 = arith.constant 0 : index
    %31 = vector.load %arg0[%c20, %c0_27] : memref<222x32xbf16, #tpu.memory_space<vmem>>, vector<200x32xbf16>
    %c6 = arith.constant 6 : index
    %c0_28 = arith.constant 0 : index
    %c0_29 = arith.constant 0 : index
    %32 = vector.load %arg1[%c6, %c0_28, %c0_29] : memref<9x32x5xbf16, #tpu.memory_space<vmem>>, vector<1x32x5xbf16>
    %33 = vector.shape_cast %32 : vector<1x32x5xbf16> to vector<32x5xbf16>
    %cst_30 = arith.constant dense<0.000000e+00> : vector<200x5xf32>
    %34 = tpu.matmul %31, %33, %cst_30 {dimension_numbers = #tpu.dot_dimension_numbers<[1], [0], [0], [1], [0, 0, 1, 1], [], []>} : vector<200x32xbf16>, vector<32x5xbf16>, vector<200x5xf32> -> vector<200x5xf32>
    %35 = arith.addf %30, %34 : vector<200x5xf32>
    %c21 = arith.constant 21 : index
    %c0_31 = arith.constant 0 : index
    %36 = vector.load %arg0[%c21, %c0_31] : memref<222x32xbf16, #tpu.memory_space<vmem>>, vector<200x32xbf16>
    %c7 = arith.constant 7 : index
    %c0_32 = arith.constant 0 : index
    %c0_33 = arith.constant 0 : index
    %37 = vector.load %arg1[%c7, %c0_32, %c0_33] : memref<9x32x5xbf16, #tpu.memory_space<vmem>>, vector<1x32x5xbf16>
    %38 = vector.shape_cast %37 : vector<1x32x5xbf16> to vector<32x5xbf16>
    %cst_34 = arith.constant dense<0.000000e+00> : vector<200x5xf32>
    %39 = tpu.matmul %36, %38, %cst_34 {dimension_numbers = #tpu.dot_dimension_numbers<[1], [0], [0], [1], [0, 0, 1, 1], [], []>} : vector<200x32xbf16>, vector<32x5xbf16>, vector<200x5xf32> -> vector<200x5xf32>
    %40 = arith.addf %35, %39 : vector<200x5xf32>
    %c22 = arith.constant 22 : index
    %c0_35 = arith.constant 0 : index
    %41 = vector.load %arg0[%c22, %c0_35] : memref<222x32xbf16, #tpu.memory_space<vmem>>, vector<200x32xbf16>
    %c8 = arith.constant 8 : index
    %c0_36 = arith.constant 0 : index
    %c0_37 = arith.constant 0 : index
    %42 = vector.load %arg1[%c8, %c0_36, %c0_37] : memref<9x32x5xbf16, #tpu.memory_space<vmem>>, vector<1x32x5xbf16>
    %43 = vector.shape_cast %42 : vector<1x32x5xbf16> to vector<32x5xbf16>
    %cst_38 = arith.constant dense<0.000000e+00> : vector<200x5xf32>
    %44 = tpu.matmul %41, %43, %cst_38 {dimension_numbers = #tpu.dot_dimension_numbers<[1], [0], [0], [1], [0, 0, 1, 1], [], []>} : vector<200x32xbf16>, vector<32x5xbf16>, vector<200x5xf32> -> vector<200x5xf32>
    %45 = arith.addf %40, %44 : vector<200x5xf32>
    %c0_39 = arith.constant 0 : index
    %c0_40 = arith.constant 0 : index
    %46 = vector.load %arg2[%c0_39, %c0_40] : memref<1x5xf32, #tpu.memory_space<vmem>>, vector<1x5xf32>
    %47 = vector.broadcast %46 : vector<1x5xf32> to vector<200x5xf32>
    %48 = arith.addf %45, %47 : vector<200x5xf32>
    %c0_41 = arith.constant 0 : index
    %c0_42 = arith.constant 0 : index
    %49 = vector.load %arg3[%c0_41, %c0_42] : memref<200x1xf32, #tpu.memory_space<vmem>>, vector<200x1xf32>
    %50 = vector.broadcast %49 : vector<200x1xf32> to vector<200x5xf32>
    %51 = arith.mulf %48, %50 : vector<200x5xf32>
    %c0_43 = arith.constant 0 : index
    %c0_44 = arith.constant 0 : index
    %52 = vector.load %arg4[%c0_43, %c0_44] : memref<200x5xf32, #tpu.memory_space<vmem>>, vector<200x5xf32>
    tpu.vector_store %arg4[%c0_43, %c0_44], %51 {strides = array<i32>} : memref<200x5xf32, #tpu.memory_space<vmem>>, vector<200x5xf32>,
    return
  }
}

</mosaic_0001>

<bundles_post_ra>
// kernel: _lambda_.6
= control target key start
LH: loop header
LB: loop body
LE: loop exit
PB: predicated region body
PF: predicated region fallthrough
CT: control target
= control target key end

     0   :  { %v2386_v0 = vmov 0.0   ;;  %vm2387_vm0 = vmmov 0   ;;  %vm76_vm1 = vsmask.f32 7424  ;;  %vm140_vm2 = vcmask 523264   ;;  %s3105_s2 = inlined_call_operand.vmem [shape: bf16[9,64,64], index: 2, kind: input, shape index: {}]   ;;  %s3106_s0 = inlined_call_operand.vmem [shape: bf16[86,64], index: 0, kind: input, shape index: {}]   ;;  %s3107_s3 = inlined_call_operand.vmem [shape: bf16[128,64], index: 3, kind: input, shape index: {}]   ;;  %s3108_s1 = inlined_call_operand.vmem [shape: bf16[72,128], index: 1, kind: input, shape index: {}]   ;;  %s3109_s5 = inlined_call_operand.vmem [shape: f32[72,1], index: 5, kind: input, shape index: {}]   ;;  %s3110_s4 = inlined_call_operand.vmem [shape: f32[1,64], index: 4, kind: input, shape index: {}]   ;;  %s3111_s6 = inlined_call_operand.vmem [shape: bf16[72,64], index: 6, kind: output, shape index: {}]  }
   0x1   :  { %2022 = vmatprep.subr.bf16.mxu0 %v2386_v0  ;;  %2050 = vmatprep.subr.bf16.mxu1 %v2386_v0  ;;  %v2315_v1 = vld [vmem:[%s3105_s2 + $0x20] sm:$0xff]   ;;  %v2317_v3 = vld [vmem:[%s3105_s2 + $0x28] sm:$0xff]   ;;  %v2319_v5 = vld [vmem:[%s3105_s2 + $0x30] sm:$0xff]   ;;  %vm639_vm3 = vsmask.f32 4352  ;;  %vm349_vm4 = vcmask 1046528  }
   0x2   :  { %v2316_v2 = vld [vmem:[%s3105_s2] sm:$0xff]   ;;  %2030 = vmatprep.mubr.msk.bf16.mxu0 %vm2387_vm0, %v2386_v0  ;;  %2058 = vmatprep.mubr.msk.bf16.mxu1 %vm2387_vm0, %v2386_v0  ;;  %v2318_v4 = vld [vmem:[%s3105_s2 + $0x8] sm:$0xff]   ;;  %v2320_v6 = vld [vmem:[%s3105_s2 + $0x10] sm:$0xff]   ;;  %vm496_vm5 = vcmask 1044480   ;;  %vm967_vm6 = vcmask 1045504   ;;  %vm1715_vm8 = vcmask 519168  }
   0x3   :  { %2023 = vmatpush3.bf16.msra.mxu0 %v2315_v1  ;;  %2051 = vmatpush3.bf16.msra.mxu1 %v2316_v2  ;;  %v24_v7 = vld [vmem:[%s3106_s0] sm:$0xf]  ;;  %v2458_v8 = vld [vmem:[%s3106_s0 + $0x4] sm:$0xf]  ;;  %v2463_v9 = vld [vmem:[%s3106_s0 + $0x8] sm:$0xf] }
   0x4   :  { %2024 = vmatprep.subr.bf16.mxu0 %v2386_v0  ;;  %2052 = vmatprep.subr.bf16.mxu1 %v2386_v0  ;;  %v2468_v10 = vld [vmem:[%s3106_s0 + $0xc] sm:$0xf]  ;;  %v1737_v11 = vcombine.low %v24_v7, %v2458_v8  ;;  %v1824_v12 = vcombine.low %v2458_v8, %v2463_v9  ;;  %v2321_v13 = vld [vmem:[%s3105_s2 + $0x38] sm:$0xff]   ;;  %v2487_v18 = vld [vmem:[%s3106_s0 + $0x10] sm:$0xf] }
   0x5   :  { %v2478_v14 = vcombine.low %v2463_v9, %v2468_v10  ;;  %v2322_v15 = vld [vmem:[%s3105_s2 + $0x18] sm:$0xff]   ;;  %v2494_v20 = vld [vmem:[%s3106_s0 + $0x14] sm:$0xf]  ;;  %v1825_v22 = vcombine.low %v2468_v10, %v2487_v18  ;;  %v2325_v27 = vld [vmem:[%s3105_s2 + $0x40] sm:$0xff]   ;;  %vm1110_vm7 = vsmask.f32 5376 }
   0x6   :  { %v78_v16 = vshrl.u32 %v1737_v11, 16  ;;  %v80_v17 = vshll.u32 %v1737_v11, 16  ;;  %v2501_v24 = vcombine.low %v2487_v18, %v2494_v20  ;;  %v2326_v30 = vld [vmem:[%s3105_s2 + $0x60] sm:$0xff]   ;;  %v2514_v32 = vld [vmem:[%s3106_s0 + $0x18] sm:$0xf]  ;;  %v2328_v39 = vld [vmem:[%s3105_s2 + $0x48] sm:$0xff]  }
   0x7   :  { %2025 = vmatpush3.bf16.msra.mxu0 %v2317_v3  ;;  %2053 = vmatpush3.bf16.msra.mxu1 %v2318_v4  ;;  %v85_v19 = vshll.u32 %v2478_v14, 16  ;;  %v89_v21 = vshrl.u32 %v2478_v14, 16  ;;  %v2519_v33 = vld [vmem:[%s3106_s0 + $0x1c] sm:$0xf]  ;;  %v1826_v35 = vcombine.low %v2494_v20, %v2514_v32  ;;  %v2534_v38 = vld [vmem:[%s3106_s0 + $0x20] sm:$0xf] }
   0x8   :  { %2026 = vmatprep.subr.bf16.mxu0 %v2386_v0  ;;  %2054 = vmatprep.subr.bf16.mxu1 %v2386_v0  ;;  %v82_v23 = vrot.slane %v80_v17, 1  ;;  %v93_v31 = vshll.u32 %v2501_v24, 16  ;;  %v2529_v37 = vcombine.low %v2514_v32, %v2519_v33  ;;  %v1827_v40 = vcombine.low %v2519_v33, %v2534_v38  ;;  %v2329_v43 = vld [vmem:[%s3105_s2 + $0x68] sm:$0xff]   ;;  %v41_v45 = vld [vmem:[%s3106_s0 + $0x24] sm:$0x1]  ;;  %v2331_v48 = vld [vmem:[%s3105_s2 + $0x50] sm:$0xff]  }
   0x9   :  { %v87_v25 = vrot.slane %v85_v19, 1  ;;  %v649_v26 = vrot.slane %v85_v19, 4  ;;  %v648_v28 = vrot.slane %v89_v21, 3  ;;  %v97_v47 = vshrl.u32 %v2501_v24, 16  ;;  %v2332_v49 = vld [vmem:[%s3105_s2 + $0x70] sm:$0xff]   ;;  %v2334_v53 = vld [vmem:[%s3105_s2 + $0x58] sm:$0xff]  }
   0xa   :  { %v83_v29 = vor.u32 %v82_v23, %v78_v16  ;;  %v95_v42 = vrot.slane %v93_v31, 1  ;;  %v101_v44 = vshll.u32 %v2529_v37, 16  ;;  %v2567_v50 = vcombine.low %v2534_v38, %v41_v45  ;;  %v2336_v54 = vld [vmem:[%s3105_s2 + $0x78] sm:$0xff]   ;;  %v2603_v4 = vld [vmem:[%s3106_s0 + $0x24] sm:$0xf]  ;;  %v2356_v9 = vld [vmem:[%s3105_s2 + $0xf0] sm:$0xff]  }
   0xb   :  { %2027 = vmatpush3.bf16.msra.mxu0 %v2319_v5  ;;  %2055 = vmatpush3.bf16.msra.mxu1 %v2320_v6  ;;  %v2522_v34 = vor.u32 %v649_v26, %v648_v28  ;;  %v91_v41 = vor.u32 %v89_v21, %v87_v25  ;;  %v105_v56 = vshrl.u32 %v2529_v37, 16  ;;  %v652_v59 = vrot.slane %v97_v47, 3  ;;  %v336_v19 = vld [vmem:[%s3106_s0] sm:$0xe]  ;;  %v923_v10 = vld [vmem:[%s3106_s0 + $0x4] sm:$0xc] }
   0xc   :  { %2028 = vmatprep.subr.bf16.mxu0 %v2386_v0  ;;  %2056 = vmatprep.subr.bf16.mxu1 %v2386_v0  ;;  %v88_v36 = vsel %vm76_vm1, %v83_v29, %v87_v25  ;;  %v103_v51 = vrot.slane %v101_v44, 1  ;;  %v99_v52 = vor.u32 %v97_v47, %v95_v42  ;;  %v109_v55 = vshll.u32 %v2567_v50, 16  ;;  %v479_v21 = vld [vmem:[%s3106_s0] sm:$0x8] }
   0xd   :  { %v96_v46 = vsel %vm76_vm1, %v91_v41, %v95_v42  ;;  %v653_v60 = vrot.slane %v93_v31, 4  ;;  %v656_v63 = vrot.slane %v105_v56, 3  ;;  %v657_v1 = vrot.slane %v101_v44, 4  ;;  %v2645_v31 = vld [vmem:[%s3106_s0 + $0x14] sm:$0xff]   ;;  %v2339_v45 = vld [vmem:[%s3105_s2 + $0x80] sm:$0xff]  }
   0xe   :  { %v104_v57 = vsel %vm76_vm1, %v99_v52, %v103_v51  ;;  %v111_v58 = vrot.slane %v109_v55, 1  ;;  %v107_v61 = vor.u32 %v105_v56, %v103_v51  ;;  %v1806_v5 = vcombine.low %v2534_v38, %v2603_v4  ;;  %v2341_v51 = vld [vmem:[%s3105_s2 + $0x88] sm:$0xff]   ;;  %v2687_v55 = vld [vmem:[%s3106_s0 + $0x1c] sm:$0xff]   ;;  %v1275_v56 = vld [vmem:[%s3106_s0 + $0x4] sm:$0x8] }
   0xf   :  { %2029 = vmatpush3.bf16.msra.mxu0 %v2321_v13  ;;  %2057 = vmatpush3.bf16.msra.mxu1 %v2322_v15  ;;  %v654_v62 = vor.u32 %v653_v60, %v652_v59  ;;  %v658_v3 = vor.u32 %v657_v1, %v656_v63  ;;  %v113_v15 = vshrl.u32 %v2567_v50, 16  ;;  %v1751_v26 = vcombine.low %v2534_v38, %v2534_v38  ;;  %v2342_v52 = vld [vmem:[%s3105_s2 + $0xa8] sm:$0xff]   ;;  %v2343_v1 = vld [vmem:[%s3105_s2 + $0x90] sm:$0xff]  }
  0x10   :  { %2078 = vmatprep.subr.bf16.mxu0 %v2386_v0  ;;  %2106 = vmatprep.subr.bf16.mxu1 %v2386_v0  ;;  %v112_v6 = vsel %vm76_vm1, %v107_v61, %v111_v58  ;;  %v664_v13 = vshll.u32 %v1806_v5, 16  ;;  %v1769_v28 = vcombine.low %v336_v19, %v2458_v8  ;;  %v2635_v29 = vcombine.low %v479_v21, %v2458_v8  ;;  %v2347_v19 = vld [vmem:[%s3105_s2 + $0xb8] sm:$0xff]   ;;  %v2355_v8 = vld [vmem:[%s3105_s2 + $0xd0] sm:$0xff]  }
  0x11   :  { %v2598_v2 = vsel %vm639_vm3, %v2522_v34, %v654_v62  ;;  %v2609_v7 = vsel %vm639_vm3, %v654_v62, %v658_v3  ;;  %v115_v25 = vor.u32 %v113_v15, %v111_v58  ;;  %v498_v42 = vrot.slane %v2478_v14, 3 }
  0x12   :  { %2031 = vmatmul.mubr.msk.bf16.vlgmr.msra.gmra.mrb[0].mxu0 %vm140_vm2, %v88_v36  ;;  %2059 = vmatmul.mubr.msk.bf16.vlgmr.msra.gmra.mrb[0].mxu1 %vm140_vm2, %v1737_v11  ;;  %v661_v11 = vshrl.u32 %v1806_v5, 16  ;;  %v666_v17 = vrot.slane %v664_v13, 4  ;;  %v350_v36 = vrot.slane %v1769_v28, 1  ;;  %v497_v41 = vrot.slane %v2635_v29, 3 }
  0x13   :  { %2079 = vmatpush3.bf16.msra.mxu0 %v2325_v27  ;;  %2107 = vmatpush3.bf16.msra.mxu1 %v2326_v30  ;;  %v2640_v30 = vld [vmem:[%s3106_s0 + $0xc] sm:$0xff]   ;;  %v1291_v44 = vrot.slane %v2645_v31, 3  ;;  %v1293_v59 = vrot.slane %v2687_v55, 3  ;;  %v502_v13 = vrot.slane %v2529_v37, 3  ;;  %v357_v28 = vrot.slane %v2567_v50, 1 }
  0x14   :  { %2034 = vmatprep.mubr.msk.bf16.mxu0 %vm2387_vm0, %v2386_v0  ;;  %2062 = vmatprep.mubr.msk.bf16.mxu1 %vm2387_vm0, %v2386_v0  ;;  %v663_v16 = vrot.slane %v661_v11, 3  ;;  %v355_v11 = vrot.slane %v2529_v37, 1  ;;  %v1120_v32 = vshrl.u32 %v2640_v30, 16 }
  0x15   :  { %2080 = vmatprep.subr.bf16.mxu0 %v2386_v0  ;;  %2108 = vmatprep.subr.bf16.mxu1 %v2386_v0  ;;  %v2711_v63 = vsel %vm496_vm5, %v1291_v44, %v1293_v59 }
  0x16   :  { %v2625_v23 = vor.u32 %v666_v17, %v663_v16  ;;  %v480_v16 = vld [vmem:[%s3106_s0 + $0x24] sm:$0x7]  ;;  %v2346_v17 = vld [vmem:[%s3105_s2 + $0x98] sm:$0xff]   ;;  %v1122_v33 = vrot.slane %v1120_v32, 2 }
  0x17   :  { %2081 = vmatpush3.bf16.msra.mxu0 %v2328_v39  ;;  %2109 = vmatpush3.bf16.msra.mxu1 %v2329_v43  ;;  %v351_v39 = vrot.slane %v2478_v14, 1  ;;  %v1289_v43 = vrot.slane %v2640_v30, 3 }
  0x18   :  { %2082 = vmatprep.subr.bf16.mxu0 %v2386_v0  ;;  %2110 = vmatprep.subr.bf16.mxu1 %v2386_v0  ;;  %v2631_v27 = vsel %vm639_vm3, %v658_v3, %v2625_v23  ;;  %v2344_v3 = vld [vmem:[%s3105_s2 + $0xb0] sm:$0xff]  }
  0x19   :  { %v352_v47 = vsel %vm349_vm4, %v350_v36, %v351_v39 }
  0x1a   :  { %2035 = vmatmul.mubr.msk.bf16.gmra.mrb[4].mxu0 %vm140_vm2, %v96_v46  ;;  %2063 = vmatmul.mubr.msk.bf16.gmra.mrb[4].mxu1 %vm140_vm2, %v2478_v14  ;;  %v2662_v46 = vsel %vm496_vm5, %v1289_v43, %v1291_v44  ;;  %v353_v14 = vrot.slane %v2501_v24, 1 }
  0x1b   :  { %2038 = vmatprep.mubr.msk.bf16.mxu0 %vm2387_vm0, %v2386_v0  ;;  %2066 = vmatprep.mubr.msk.bf16.mxu1 %vm2387_vm0, %v2386_v0 }
  0x1c   :  { %2083 = vmatpush3.bf16.msra.mxu0 %v2331_v48  ;;  %2111 = vmatpush3.bf16.msra.mxu1 %v2332_v49  ;;  %v499_v48 = vsel %vm496_vm5, %v497_v41, %v498_v42  ;;  %v2340_v49 = vld [vmem:[%s3105_s2 + $0xa0] sm:$0xff]   ;;  %v354_v61 = vsel %vm349_vm4, %v351_v39, %v353_v14  ;;  %v356_v21 = vsel %vm349_vm4, %v353_v14, %v355_v11 }
  0x1d   :  { %2084 = vmatprep.subr.bf16.mxu0 %v2386_v0  ;;  %2112 = vmatprep.subr.bf16.mxu1 %v2386_v0  ;;  %v358_v39 = vsel %vm349_vm4, %v355_v11, %v357_v28  ;;  %v1138_v11 = vshrl.u32 %v2687_v55, 16 }
  0x20   :  { %2085 = vmatpush3.bf16.msra.mxu0 %v2334_v53  ;;  %2113 = vmatpush3.bf16.msra.mxu1 %v2336_v54  ;;  %v500_v53 = vrot.slane %v2501_v24, 3  ;;  %v2682_v54 = vld [vmem:[%s3106_s0 + $0x8] sm:$0xf] }
  0x21   :  { %2134 = vmatprep.subr.bf16.mxu0 %v2386_v0  ;;  %2162 = vmatprep.subr.bf16.mxu1 %v2386_v0  ;;  %v1886_v58 = vcombine.low %v1275_v56, %v2682_v54  ;;  %v1846_v18 = vcombine.low %v923_v10, %v2682_v54  ;;  %v1132_v54 = vshll.u32 %v2645_v31, 16  ;;  %v2376_v10 = vld [vmem:[%s3107_s3 + $0x28] sm:$0xff]  }
  0x22   :  { %2039 = vmatmul.mubr.msk.bf16.gmra.mrb[8].mxu0 %vm140_vm2, %v104_v57  ;;  %2067 = vmatmul.mubr.msk.bf16.gmra.mrb[8].mxu1 %vm140_vm2, %v2501_v24  ;;  %v2699_v24 = vld [vmem:[%s3106_s0 + $0x24] sm:$0xf]  ;;  %v1097_v57 = vld [vmem:[%s3106_s0 + $0x28] sm:$0x7]  ;;  %v501_v62 = vsel %vm496_vm5, %v498_v42, %v500_v53  ;;  %v641_v42 = vshrl.u32 %v2635_v29, 16 }
  0x23   :  { %2042 = vmatprep.mubr.msk.bf16.mxu0 %vm2387_vm0, %v2386_v0  ;;  %2070 = vmatprep.mubr.msk.bf16.mxu1 %vm2387_vm0, %v2386_v0  ;;  %v1288_v60 = vrot.slane %v1886_v58, 3  ;;  %v1112_v20 = vshrl.u32 %v1846_v18, 16 }
  0x24   :  { %v643_v50 = vrot.slane %v641_v42, 3 }
  0x25   :  { %v2722_v5 = vsel %vm496_vm5, %v1288_v60, %v1289_v43  ;;  %v644_v43 = vshll.u32 %v2635_v29, 16  ;;  %v2349_v29 = vld [vmem:[%s3105_s2 + $0xc0] sm:$0xff]   ;;  %v2388_v60 = vmov 0  }
  0x26   :  { %2313 = vset.pattern.permute.xlu0 %v2388_v60  ;;  %2314 = vset.pattern.permute.xlu1 %v2388_v60 }
  0x27   :  { %v646_v44 = vrot.slane %v644_v43, 4 }
  0x2a   :  { %2043 = vmatmul.mubr.msk.bf16.gmra.mrb[12].mxu0 %vm140_vm2, %v112_v6  ;;  %2071 = vmatmul.mubr.msk.bf16.gmra.mrb[12].mxu1 %vm140_vm2, %v2529_v37  ;;  %v2725_v6 = vcombine.low %v2699_v24, %v1097_v57  ;;  %v2365_v57 = vld [vmem:[%s3107_s3] sm:$0xff]  }
  0x2b   :  { %2046 = vmatprep.mubr.msk.bf16.mxu0 %vm2387_vm0, %v2386_v0  ;;  %2074 = vmatprep.mubr.msk.bf16.mxu1 %vm2387_vm0, %v2386_v0 }
  0x2c   :  { %v1295_v15 = vrot.slane %v2725_v6, 3  ;;  %v1147_v42 = vshrl.u32 %v2725_v6, 16  ;;  %v1150_v43 = vshll.u32 %v2725_v6, 16 }
  0x2e   :  { %v2750_v37 = vsel %vm496_vm5, %v1293_v59, %v1295_v15  ;;  %v1134_v59 = vrot.slane %v1132_v54, 3 }
  0x32   :  { %2047 = vmatmul.mubr.msk.bf16.gmra.mrb[16].mxu0 %vm140_vm2, %v115_v25  ;;  %2075 = vmatmul.mubr.msk.bf16.gmra.mrb[16].mxu1 %vm140_vm2, %v1751_v26  ;;  %v503_v25 = vsel %vm496_vm5, %v500_v53, %v502_v13  ;;  %v1788_v26 = vcombine.low %v2534_v38, %v480_v16  ;;  %v1129_v53 = vshrl.u32 %v2645_v31, 16  ;;  %v1615_v16 = vld [vmem:[%s3109_s5] sm:$0xff] }
  0x33   :  { %2086 = vmatprep.mubr.msk.bf16.mxu0 %vm2387_vm0, %v2386_v0  ;;  %2114 = vmatprep.mubr.msk.bf16.mxu1 %vm2387_vm0, %v2386_v0 }
  0x34   :  { %v504_v36 = vrot.slane %v1788_v26, 3  ;;  %v1131_v58 = vrot.slane %v1129_v53, 2  ;;  %1626 = vperm.xlu0 %2313, %v1615_v16   ;;  %v2372_v26 = vld [vmem:[%s3105_s2 + $0x110] sm:$0xff]  }
  0x36   :  { %v505_v41 = vsel %vm496_vm5, %v502_v13, %v504_v36  ;;  %v1141_v13 = vshll.u32 %v2687_v55, 16 }
  0x3a   :  { %2087 = vmatmul.mubr.msk.bf16.vlgmr.msra.gmra.mrb[20].mxu0 %vm140_vm2, %v352_v47  ;;  %2115 = vmatmul.mubr.msk.bf16.vlgmr.msra.gmra.mrb[20].mxu1 %vm140_vm2, %v499_v48  ;;  %v2350_v48 = vld [vmem:[%s3105_s2 + $0xe0] sm:$0xff]  }
  0x3b   :  { %2135 = vmatpush3.bf16.msra.mxu0 %v2339_v45  ;;  %2163 = vmatpush3.bf16.msra.mxu1 %v2340_v49  ;;  %v647_v45 = vor.u32 %v646_v44, %v643_v50  ;;  %v2353_v49 = vld [vmem:[%s3105_s2 + $0xe8] sm:$0xff]   ;;  %v2377_v44 = vld [vmem:[%s3105_s2 + $0x118] sm:$0xff]  }
  0x3c   :  { %2090 = vmatprep.mubr.msk.bf16.mxu0 %vm2387_vm0, %v2386_v0  ;;  %2118 = vmatprep.mubr.msk.bf16.mxu1 %vm2387_vm0, %v2386_v0  ;;  %v932_v50 = vld [vmem:[%s3106_s0 + $0x28] sm:$0x3] }
  0x3d   :  { %2136 = vmatprep.subr.bf16.mxu0 %v2386_v0  ;;  %2164 = vmatprep.subr.bf16.mxu1 %v2386_v0  ;;  %v651_v47 = vsel %vm639_vm3, %v647_v45, %v2522_v34  ;;  %v2352_v34 = vld [vmem:[%s3105_s2 + $0xc8] sm:$0xff]  }
  0x3f   :  { %2137 = vmatpush3.bf16.msra.mxu0 %v2341_v51  ;;  %2165 = vmatpush3.bf16.msra.mxu1 %v2342_v52  ;;  %v969_v51 = vrot.slane %v2640_v30, 2 }
  0x40   :  { %2138 = vmatprep.subr.bf16.mxu0 %v2386_v0  ;;  %2166 = vmatprep.subr.bf16.mxu1 %v2386_v0 }
  0x42   :  { %2091 = vmatmul.mubr.msk.bf16.gmra.mrb[24].mxu0 %vm140_vm2, %v354_v61  ;;  %2119 = vmatmul.mubr.msk.bf16.gmra.mrb[24].mxu1 %vm140_vm2, %v501_v62  ;;  %v971_v61 = vrot.slane %v2645_v31, 2  ;;  %v1135_v62 = vor.u32 %v1134_v59, %v1131_v58 }
  0x43   :  { %2094 = vmatprep.mubr.msk.bf16.mxu0 %vm2387_vm0, %v2386_v0  ;;  %2122 = vmatprep.mubr.msk.bf16.mxu1 %vm2387_vm0, %v2386_v0 }
  0x44   :  { %2139 = vmatpush3.bf16.msra.mxu0 %v2343_v1  ;;  %2167 = vmatpush3.bf16.msra.mxu1 %v2344_v3  ;;  %v2367_v1 = vld [vmem:[%s3107_s3 + $0x8] sm:$0xff]   ;;  %v972_v31 = vsel %vm967_vm6, %v969_v51, %v971_v61 }
  0x45   :  { %2140 = vmatprep.subr.bf16.mxu0 %v2386_v0  ;;  %2168 = vmatprep.subr.bf16.mxu1 %v2386_v0  ;;  %v2368_v3 = vld [vmem:[%s3105_s2 + $0x108] sm:$0xff]  }
  0x48   :  { %2141 = vmatpush3.bf16.msra.mxu0 %v2346_v17  ;;  %2169 = vmatpush3.bf16.msra.mxu1 %v2347_v19  ;;  %v2369_v19 = vld [vmem:[%s3107_s3 + $0x10] sm:$0xff]  }
  0x49   :  { %2190 = vmatprep.subr.bf16.mxu0 %v2386_v0  ;;  %2218 = vmatprep.subr.bf16.mxu1 %v2386_v0 }
  0x4a   :  { %2095 = vmatmul.mubr.msk.bf16.gmra.mrb[28].mxu0 %vm140_vm2, %v356_v21  ;;  %2123 = vmatmul.mubr.msk.bf16.gmra.mrb[28].mxu1 %vm140_vm2, %v503_v25  ;;  %v1140_v21 = vrot.slane %v1138_v11, 2  ;;  %v1143_v25 = vrot.slane %v1141_v13, 3 }
  0x4b   :  { %2098 = vmatprep.mubr.msk.bf16.mxu0 %vm2387_vm0, %v2386_v0  ;;  %2126 = vmatprep.mubr.msk.bf16.mxu1 %vm2387_vm0, %v2386_v0 }
  0x52   :  { %2099 = vmatmul.mubr.msk.bf16.gmra.mrb[32].mxu0 %vm140_vm2, %v358_v39  ;;  %2127 = vmatmul.mubr.msk.bf16.gmra.mrb[32].mxu1 %vm140_vm2, %v505_v41  ;;  %v1144_v39 = vor.u32 %v1143_v25, %v1140_v21  ;;  %v2371_v41 = vld [vmem:[%s3107_s3 + $0x18] sm:$0xff]  }
  0x53   :  { %2102 = vmatprep.mubr.msk.bf16.mxu0 %vm2387_vm0, %v2386_v0  ;;  %2130 = vmatprep.mubr.msk.bf16.mxu1 %vm2387_vm0, %v2386_v0 }
  0x5a   :  { %2103 = vmatmul.mubr.msk.bf16.gmra.mrb[36].mxu0 %vm140_vm2, %v357_v28  ;;  %2131 = vmatmul.mubr.msk.bf16.gmra.mrb[36].mxu1 %vm140_vm2, %v504_v36  ;;  %v973_v28 = vrot.slane %v2687_v55, 2  ;;  %v1616_v36 = vld [vmem:[%s3109_s5 + $0x8] sm:$0xff]  ;;  %v1617_v55 = vld [vmem:[%s3109_s5 + $0x10] sm:$0xff] }
  0x5b   :  { %2142 = vmatprep.mubr.msk.bf16.mxu0 %vm2387_vm0, %v2386_v0  ;;  %2170 = vmatprep.mubr.msk.bf16.mxu1 %vm2387_vm0, %v2386_v0 }
  0x5c   :  { %1631 = vperm.xlu0 %2313, %v1616_v36   ;;  %v974_v45 = vsel %vm967_vm6, %v971_v61, %v973_v28  ;;  %1636 = vperm.xlu1 %2314, %v1617_v55  }
  0x62   :  { %2143 = vmatmul.mubr.msk.bf16.vlgmr.msra.gmra.mrb[40].mxu0 %vm140_vm2, %v651_v47  ;;  %2171 = vmatmul.mubr.msk.bf16.vlgmr.msra.gmra.mrb[40].mxu1 %vm140_vm2, %v1824_v12  ;;  %v2359_v12 = vld [vmem:[%s3105_s2 + $0xd8] sm:$0xff]   ;;  %v1619_v47 = vld [vmem:[%s3109_s5 + $0x20] sm:$0xff] }
  0x63   :  { %2191 = vmatpush3.bf16.msra.mxu0 %v2349_v29  ;;  %2219 = vmatpush3.bf16.msra.mxu1 %v2350_v48  ;;  %v1145_v29 = vsel %vm1110_vm7, %v1135_v62, %v1144_v39  ;;  %v1850_v48 = vcombine.low %v2699_v24, %v932_v50  ;;  %v1621_v24 = vld [vmem:[%s3109_s5 + $0x30] sm:$0xff] }
  0x64   :  { %2146 = vmatprep.mubr.msk.bf16.mxu0 %vm2387_vm0, %v2386_v0  ;;  %2174 = vmatprep.mubr.msk.bf16.mxu1 %vm2387_vm0, %v2386_v0 }
  0x65   :  { %2192 = vmatprep.subr.bf16.mxu0 %v2386_v0  ;;  %2220 = vmatprep.subr.bf16.mxu1 %v2386_v0 }
  0x66   :  { %1646 = vperm.xlu0 %2313, %v1619_v47  }
  0x67   :  { %2193 = vmatpush3.bf16.msra.mxu0 %v2352_v34  ;;  %2221 = vmatpush3.bf16.msra.mxu1 %v2353_v49  ;;  %v1149_v34 = vrot.slane %v1147_v42, 2  ;;  %v1152_v49 = vrot.slane %v1150_v43, 3 }
  0x68   :  { %2194 = vmatprep.subr.bf16.mxu0 %v2386_v0  ;;  %2222 = vmatprep.subr.bf16.mxu1 %v2386_v0 }
  0x6a   :  { %2147 = vmatmul.mubr.msk.bf16.gmra.mrb[44].mxu0 %vm140_vm2, %v2598_v2  ;;  %2175 = vmatmul.mubr.msk.bf16.gmra.mrb[44].mxu1 %vm140_vm2, %v1825_v22  ;;  %v2361_v2 = vld [vmem:[%s3105_s2 + $0xf8] sm:$0xff]   ;;  %v1115_v22 = vshll.u32 %v1846_v18, 16 }
  0x6b   :  { %2150 = vmatprep.mubr.msk.bf16.mxu0 %vm2387_vm0, %v2386_v0  ;;  %2178 = vmatprep.mubr.msk.bf16.mxu1 %vm2387_vm0, %v2386_v0 }
  0x6c   :  { %2195 = vmatpush3.bf16.msra.mxu0 %v2355_v8  ;;  %2223 = vmatpush3.bf16.msra.mxu1 %v2356_v9  ;;  %v1117_v14 = vrot.slane %v1115_v22, 3  ;;  %v2373_v8 = vld [vmem:[%s3107_s3 + $0x20] sm:$0xff]   ;;  %v1618_v9 = vld [vmem:[%s3109_s5 + $0x18] sm:$0xff] }
  0x6d   :  { %2196 = vmatprep.subr.bf16.mxu0 %v2386_v0  ;;  %2224 = vmatprep.subr.bf16.mxu1 %v2386_v0 }
  0x6e   :  { %1641 = vperm.xlu1 %2314, %v1618_v9   ;;  %1656 = vperm.xlu0 %2313, %v1621_v24  }
  0x70   :  { %2197 = vmatpush3.bf16.msra.mxu0 %v2359_v12  ;;  %2225 = vmatpush3.bf16.msra.mxu1 %v2361_v2  ;;  %v975_v12 = vrot.slane %v1850_v48, 2  ;;  %v1153_v2 = vor.u32 %v1152_v49, %v1149_v34 }
  0x71   :  { %2246 = vmatprep.subr.bf16.mxu0 %v2386_v0  ;;  %2274 = vmatprep.subr.bf16.mxu1 %v2386_v0 }
  0x72   :  { %2151 = vmatmul.mubr.msk.bf16.gmra.mrb[48].mxu0 %vm140_vm2, %v2609_v7  ;;  %2179 = vmatmul.mubr.msk.bf16.gmra.mrb[48].mxu1 %vm140_vm2, %v1826_v35  ;;  %v1123_v35 = vshll.u32 %v2640_v30, 16  ;;  %v1828_v7 = vcombine.low %v2603_v4, %v2603_v4  ;;  %v2364_v30 = vld [vmem:[%s3105_s2 + $0x100] sm:$0xff]   ;;  %v976_v22 = vsel %vm967_vm6, %v973_v28, %v975_v12  ;;  %v1154_v32 = vsel %vm1110_vm7, %v1144_v39, %v1153_v2 }
  0x73   :  { %2154 = vmatprep.mubr.msk.bf16.mxu0 %vm2387_vm0, %v2386_v0  ;;  %2182 = vmatprep.mubr.msk.bf16.mxu1 %vm2387_vm0, %v2386_v0 }
  0x74   :  { %v1125_v38 = vrot.slane %v1123_v35, 3  ;;  %v2378_v35 = vld [vmem:[%s3107_s3 + $0x30] sm:$0xff]  }
  0x76   :  { %v1126_v4 = vor.u32 %v1125_v38, %v1122_v33  ;;  %v2382_v33 = vld [vmem:[%s3108_s1 + $0x8] sm:$0xff]  }
  0x78   :  { %v1136_v17 = vsel %vm1110_vm7, %v1126_v4, %v1135_v62 }
  0x7a   :  { %2155 = vmatmul.mubr.msk.bf16.gmra.mrb[52].mxu0 %vm140_vm2, %v2631_v27  ;;  %2183 = vmatmul.mubr.msk.bf16.gmra.mrb[52].mxu1 %vm140_vm2, %v1827_v40  ;;  %v1114_v27 = vrot.slane %v1112_v20, 2  ;;  %v968_v40 = vrot.slane %v1846_v18, 2  ;;  %v1620_v18 = vld [vmem:[%s3109_s5 + $0x28] sm:$0xff]  ;;  %v1623_v20 = vld [vmem:[%s3109_s5 + $0x40] sm:$0xff] }
  0x7b   :  { %2158 = vmatprep.mubr.msk.bf16.mxu0 %vm2387_vm0, %v2386_v0  ;;  %2186 = vmatprep.mubr.msk.bf16.mxu1 %vm2387_vm0, %v2386_v0 }
  0x7c   :  { %v1118_v52 = vor.u32 %v1117_v14, %v1114_v27  ;;  %1651 = vperm.xlu1 %2314, %v1620_v18   ;;  %1666 = vperm.xlu0 %2313, %v1623_v20   ;;  %v2379_v27 = vld [vmem:[%s3107_s3 + $0x38] sm:$0xff]   ;;  %v2381_v14 = vld [vmem:[%s3108_s1] sm:$0xff]  }
  0x7e   :  { %v1127_v56 = vsel %vm1110_vm7, %v1118_v52, %v1126_v4 }
  0x82   :  { %2159 = vmatmul.mubr.msk.bf16.gmra.mrb[56].mxu0 %vm140_vm2, %v2625_v23  ;;  %2187 = vmatmul.mubr.msk.bf16.gmra.mrb[56].mxu1 %vm140_vm2, %v1828_v7  ;;  %v970_v23 = vsel %vm967_vm6, %v968_v40, %v969_v51  ;;  %v1622_v7 = vld [vmem:[%s3109_s5 + $0x38] sm:$0xff] }
  0x83   :  { %2198 = vmatprep.mubr.msk.bf16.mxu0 %vm2387_vm0, %v2386_v0  ;;  %2226 = vmatprep.mubr.msk.bf16.mxu1 %vm2387_vm0, %v2386_v0 }
  0x84   :  { %1661 = vperm.xlu1 %2314, %v1622_v7  }
  0x8a   :  { %2199 = vmatmul.mubr.msk.bf16.vlgmr.msra.gmra.mrb[60].mxu0 %vm140_vm2, %v970_v23  ;;  %2227 = vmatmul.mubr.msk.bf16.vlgmr.msra.gmra.mrb[60].mxu1 %vm140_vm2, %v1127_v56 }
  0x8b   :  { %2247 = vmatpush3.bf16.msra.mxu0 %v2364_v30  ;;  %2275 = vmatpush3.bf16.msra.mxu1 %v2365_v57 }
  0x8c   :  { %2202 = vmatprep.mubr.msk.bf16.mxu0 %vm2387_vm0, %v2386_v0  ;;  %2230 = vmatprep.mubr.msk.bf16.mxu1 %vm2387_vm0, %v2386_v0 }
  0x8d   :  { %2276 = vmatprep.subr.bf16.mxu1 %v2386_v0  ;;  %2248 = vmatprep.subr.bf16.mxu0 %v2386_v0 }
  0x8f   :  { %2277 = vmatpush3.bf16.msra.mxu1 %v2367_v1  ;;  %2249 = vmatpush3.bf16.msra.mxu0 %v2368_v3 }
  0x90   :  { %2278 = vmatprep.subr.bf16.mxu1 %v2386_v0  ;;  %2250 = vmatprep.subr.bf16.mxu0 %v2386_v0 }
  0x92   :  { %2203 = vmatmul.mubr.msk.bf16.gmra.mrb[64].mxu0 %vm140_vm2, %v972_v31  ;;  %2231 = vmatmul.mubr.msk.bf16.gmra.mrb[64].mxu1 %vm140_vm2, %v1136_v17 }
  0x93   :  { %2279 = vmatpush3.bf16.msra.mxu1 %v2369_v19  ;;  %2206 = vmatprep.mubr.msk.bf16.mxu0 %vm2387_vm0, %v2386_v0 }
  0x94   :  { %2234 = vmatprep.mubr.msk.bf16.mxu1 %vm2387_vm0, %v2386_v0  ;;  %2280 = vmatprep.subr.bf16.mxu1 %v2386_v0 }
  0x95   :  { %2251 = vmatpush3.bf16.msra.mxu0 %v2372_v26 }
  0x96   :  { %2252 = vmatprep.subr.bf16.mxu0 %v2386_v0 }
  0x97   :  { %2281 = vmatpush3.bf16.msra.mxu1 %v2371_v41 }
  0x98   :  { %2282 = vmatprep.subr.bf16.mxu1 %v2386_v0 }
  0x99   :  { %2253 = vmatpush3.bf16.msra.mxu0 %v2377_v44 }
  0x9a   :  { %2207 = vmatmul.mubr.msk.bf16.gmra.mrb[68].mxu0 %vm140_vm2, %v974_v45  ;;  %2235 = vmatmul.mubr.msk.bf16.gmra.mrb[68].mxu1 %vm140_vm2, %v1145_v29 }
  0x9b   :  { %2210 = vmatprep.mubr.msk.bf16.mxu0 %vm2387_vm0, %v2386_v0  ;;  %2238 = vmatprep.mubr.msk.bf16.mxu1 %vm2387_vm0, %v2386_v0 }
  0x9c   :  { %2283 = vmatpush3.bf16.msra.mxu1 %v2373_v8 }
  0x9d   :  { %2284 = vmatprep.subr.bf16.mxu1 %v2386_v0 }
  0xa0   :  { %2285 = vmatpush3.bf16.msra.mxu1 %v2376_v10 }
  0xa1   :  { %2286 = vmatprep.subr.bf16.mxu1 %v2386_v0 }
  0xa2   :  { %2211 = vmatmul.mubr.msk.bf16.gmra.mrb[72].mxu0 %vm140_vm2, %v976_v22  ;;  %2239 = vmatmul.mubr.msk.bf16.gmra.mrb[72].mxu1 %vm140_vm2, %v1154_v32 }
  0xa3   :  { %2214 = vmatprep.mubr.msk.bf16.mxu0 %vm2387_vm0, %v2386_v0  ;;  %2242 = vmatprep.mubr.msk.bf16.mxu1 %vm2387_vm0, %v2386_v0 }
  0xa4   :  { %2287 = vmatpush3.bf16.msra.mxu1 %v2378_v35 }
  0xa5   :  { %2288 = vmatprep.subr.bf16.mxu1 %v2386_v0 }
  0xa8   :  { %2289 = vmatpush3.bf16.msra.mxu1 %v2379_v27 }
  0xaa   :  { %2215 = vmatmul.mubr.msk.bf16.gmra.mrb[76].mxu0 %vm140_vm2, %v975_v12  ;;  %2243 = vmatmul.mubr.msk.bf16.gmra.mrb[76].mxu1 %vm140_vm2, %v1153_v2 }
  0xab   :  { %2254 = vmatprep.mubr.msk.bf16.mxu0 %vm2387_vm0, %v2386_v0  ;;  %2290 = vmatprep.mubr.msk.bf16.mxu1 %vm2387_vm0, %v2386_v0 }
  0xb2   :  { %2255 = vmatmul.mubr.msk.bf16.vlgmr.msra.gmra.mrb[80].mxu0 %vm140_vm2, %v2722_v5  ;;  %2291 = vmatmul.mubr.bf16.vlgmr.msra.gmra.mrb[80].mxu1 %v2381_v14  ;;  %v2383_v5 = vld [vmem:[%s3108_s1 + $0x10] sm:$0xff]  }
  0xb3   :  { %2258 = vmatprep.mubr.msk.bf16.mxu0 %vm2387_vm0, %v2386_v0  ;;  %2294 = vmatprep.mubr.msk.bf16.mxu1 %vm2387_vm0, %v2386_v0 }
  0xba   :  { %2259 = vmatmul.mubr.msk.bf16.gmra.mrb[84].mxu0 %vm140_vm2, %v2662_v46  ;;  %2295 = vmatmul.mubr.bf16.gmra.mrb[84].mxu1 %v2382_v33  ;;  %v2384_v46 = vld [vmem:[%s3108_s1 + $0x18] sm:$0xff]  }
  0xbb   :  { %2262 = vmatprep.mubr.msk.bf16.mxu0 %vm2387_vm0, %v2386_v0  ;;  %2298 = vmatprep.mubr.msk.bf16.mxu1 %vm2387_vm0, %v2386_v0 }
  0xc2   :  { %2263 = vmatmul.mubr.msk.bf16.gmra.mrb[88].mxu0 %vm140_vm2, %v2711_v63  ;;  %2299 = vmatmul.mubr.bf16.gmra.mrb[88].mxu1 %v2383_v5  ;;  %v2385_v63 = vld [vmem:[%s3108_s1 + $0x20] ss:$0 sps:$4 sm:$0xff]  }
  0xc3   :  { %2266 = vmatprep.mubr.msk.bf16.mxu0 %vm2387_vm0, %v2386_v0  ;;  %2302 = vmatprep.mubr.msk.bf16.mxu1 %vm2387_vm0, %v2386_v0 }
  0xca   :  { %2267 = vmatmul.mubr.msk.bf16.gmra.mrb[92].mxu0 %vm140_vm2, %v2750_v37  ;;  %2303 = vmatmul.mubr.bf16.gmra.mrb[92].mxu1 %v2384_v46 }
  0xcb   :  { %2270 = vmatprep.mubr.msk.bf16.mxu0 %vm2387_vm0, %v2386_v0  ;;  %2306 = vmatprep.mubr.msk.bf16.mxu1 %vm2387_vm0, %v2386_v0 }
  0xd2   :  { %2271 = vmatmul.mubr.msk.bf16.gmra.mrb[96].mxu0 %vm140_vm2, %v1295_v15  ;;  %2307 = vmatmul.mubr.bf16.gmra.mrb[96].mxu1 %v2385_v63 }
  0xe5   :  { %v190_v38 = vpop.f32.mrb[0].mxu0  ;;  %v298_v40 = vpop.f32.mrb[0].mxu1 }
  0xe6   :  { %v299_v51 = vadd.f32 %v298_v40, %v190_v38  ;;  %v2032_v37 = vpop.f32.mrb[1].mxu0  ;;  %v2060_v52 = vpop.f32.mrb[1].mxu1 }
  0xe7   :  { %v193_v4 = vpop.f32.mrb[2].mxu0  ;;  %v301_v53 = vpop.f32.mrb[2].mxu1 }
  0xe8   :  { %v302_v54 = vadd.f32 %v301_v53, %v193_v4  ;;  %v2033_v23 = vpop.f32.mrb[3].mxu0  ;;  %v2061_v56 = vpop.f32.mrb[3].mxu1 }
  0xed   :  { %v198_v0 = vpop.f32.mrb[4].mxu0  ;;  %v306_v30 = vpop.f32.mrb[4].mxu1 }
  0xee   :  { %v307_v57 = vadd.f32 %v306_v30, %v198_v0  ;;  %v2036_v58 = vpop.f32.mrb[5].mxu0  ;;  %v2064_v59 = vpop.f32.mrb[5].mxu1 }
  0xef   :  { %v201_v60 = vpop.f32.mrb[6].mxu0  ;;  %v309_v6 = vpop.f32.mrb[6].mxu1 }
  0xf0   :  { %v310_v61 = vadd.f32 %v309_v6, %v201_v60  ;;  %v2037_v15 = vpop.f32.mrb[7].mxu0  ;;  %v2065_v62 = vpop.f32.mrb[7].mxu1 }
  0xf5   :  { %v206_v1 = vpop.f32.mrb[8].mxu0  ;;  %v314_v3 = vpop.f32.mrb[8].mxu1 }
  0xf6   :  { %v315_v11 = vadd.f32 %v314_v3, %v206_v1  ;;  %v2040_v13 = vpop.f32.mrb[9].mxu0  ;;  %v2068_v16 = vpop.f32.mrb[9].mxu1 }
  0xf7   :  { %v209_v31 = vpop.f32.mrb[10].mxu0  ;;  %v317_v17 = vpop.f32.mrb[10].mxu1 }
  0xf8   :  { %v318_v19 = vadd.f32 %v317_v17, %v209_v31  ;;  %v2041_v21 = vpop.f32.mrb[11].mxu0  ;;  %v2069_v25 = vpop.f32.mrb[11].mxu1 }
  0xfd   :  { %v214_v26 = vpop.f32.mrb[12].mxu0  ;;  %v322_v28 = vpop.f32.mrb[12].mxu1 }
  0xfe   :  { %v323_v36 = vadd.f32 %v322_v28, %v214_v26  ;;  %v2044_v39 = vpop.f32.mrb[13].mxu0  ;;  %v2072_v41 = vpop.f32.mrb[13].mxu1 }
  0xff   :  { %v217_v42 = vpop.f32.mrb[14].mxu0  ;;  %v325_v43 = vpop.f32.mrb[14].mxu1 }
 0x100   :  { %v326_v55 = vadd.f32 %v325_v43, %v217_v42  ;;  %v2045_v50 = vpop.f32.mrb[15].mxu0  ;;  %v2073_v44 = vpop.f32.mrb[15].mxu1 }
 0x105   :  { %v222_v45 = vpop.f32.mrb[16].mxu0  ;;  %v330_v47 = vpop.f32.mrb[16].mxu1 }
 0x106   :  { %v331_v29 = vadd.f32 %v330_v47, %v222_v45  ;;  %v2048_v48 = vpop.f32.mrb[17].mxu0  ;;  %v2076_v34 = vpop.f32.mrb[17].mxu1 }
 0x107   :  { %v225_v49 = vpop.f32.mrb[18].mxu0  ;;  %v333_v8 = vpop.f32.mrb[18].mxu1 }
 0x108   :  { %v2049_v9 = vpop.f32.mrb[19].mxu0  ;;  %v2077_v24 = vpop.f32.mrb[19].mxu1 }
 0x10d   :  { %v432_v12 = vpop.f32.mrb[20].mxu0  ;;  %v579_v2 = vpop.f32.mrb[20].mxu1 }
 0x10e   :  { %v470_v10 = vadd.f32 %v432_v12, %v299_v51  ;;  %v2088_v18 = vpop.f32.mrb[21].mxu0  ;;  %v2116_v20 = vpop.f32.mrb[21].mxu1 }
 0x10f   :  { %v435_v22 = vpop.f32.mrb[22].mxu0  ;;  %v582_v32 = vpop.f32.mrb[22].mxu1 }
 0x110   :  { %v617_v35 = vadd.f32 %v579_v2, %v470_v10  ;;  %v471_v7 = vadd.f32 %v435_v22, %v302_v54  ;;  %v2089_v27 = vpop.f32.mrb[23].mxu0  ;;  %v2117_v14 = vpop.f32.mrb[23].mxu1 }
 0x112   :  { %v618_v33 = vadd.f32 %v582_v32, %v471_v7 }
 0x115   :  { %v440_v5 = vpop.f32.mrb[24].mxu0  ;;  %v587_v46 = vpop.f32.mrb[24].mxu1 }
 0x116   :  { %v472_v63 = vadd.f32 %v440_v5, %v307_v57  ;;  %v2092_v38 = vpop.f32.mrb[25].mxu0  ;;  %v2120_v40 = vpop.f32.mrb[25].mxu1 }
 0x117   :  { %v443_v37 = vpop.f32.mrb[26].mxu0  ;;  %v590_v52 = vpop.f32.mrb[26].mxu1 }
 0x118   :  { %v619_v4 = vadd.f32 %v587_v46, %v472_v63  ;;  %v473_v53 = vadd.f32 %v443_v37, %v310_v61  ;;  %v2093_v23 = vpop.f32.mrb[27].mxu0  ;;  %v2121_v51 = vpop.f32.mrb[27].mxu1 }
 0x11a   :  { %v620_v56 = vadd.f32 %v590_v52, %v473_v53 }
 0x11d   :  { %v448_v0 = vpop.f32.mrb[28].mxu0  ;;  %v595_v30 = vpop.f32.mrb[28].mxu1 }
 0x11e   :  { %v474_v58 = vadd.f32 %v448_v0, %v315_v11  ;;  %v2096_v59 = vpop.f32.mrb[29].mxu0  ;;  %v2124_v54 = vpop.f32.mrb[29].mxu1 }
 0x11f   :  { %v451_v60 = vpop.f32.mrb[30].mxu0  ;;  %v598_v6 = vpop.f32.mrb[30].mxu1 }
 0x120   :  { %v621_v15 = vadd.f32 %v595_v30, %v474_v58  ;;  %v475_v62 = vadd.f32 %v451_v60, %v318_v19  ;;  %v2097_v1 = vpop.f32.mrb[31].mxu0  ;;  %v2125_v57 = vpop.f32.mrb[31].mxu1 }
 0x122   :  { %v622_v3 = vadd.f32 %v598_v6, %v475_v62 }
 0x125   :  { %v456_v13 = vpop.f32.mrb[32].mxu0  ;;  %v603_v16 = vpop.f32.mrb[32].mxu1 }
 0x126   :  { %v476_v31 = vadd.f32 %v456_v13, %v323_v36  ;;  %v2100_v17 = vpop.f32.mrb[33].mxu0  ;;  %v2128_v61 = vpop.f32.mrb[33].mxu1 }
 0x127   :  { %v459_v21 = vpop.f32.mrb[34].mxu0  ;;  %v606_v25 = vpop.f32.mrb[34].mxu1 }
 0x128   :  { %v623_v26 = vadd.f32 %v603_v16, %v476_v31  ;;  %v477_v28 = vadd.f32 %v459_v21, %v326_v55  ;;  %v2101_v39 = vpop.f32.mrb[35].mxu0  ;;  %v2129_v11 = vpop.f32.mrb[35].mxu1 }
 0x12a   :  { %v624_v41 = vadd.f32 %v606_v25, %v477_v28 }
 0x12d   :  { %v464_v42 = vpop.f32.mrb[36].mxu0  ;;  %v611_v43 = vpop.f32.mrb[36].mxu1 }
 0x12e   :  { %v478_v50 = vadd.f32 %v464_v42, %v331_v29  ;;  %v2104_v44 = vpop.f32.mrb[37].mxu0  ;;  %v2132_v19 = vpop.f32.mrb[37].mxu1 }
 0x12f   :  { %v467_v45 = vpop.f32.mrb[38].mxu0  ;;  %v614_v47 = vpop.f32.mrb[38].mxu1 }
 0x130   :  { %v625_v48 = vadd.f32 %v611_v43, %v478_v50  ;;  %v2105_v34 = vpop.f32.mrb[39].mxu0  ;;  %v2133_v49 = vpop.f32.mrb[39].mxu1 }
 0x135   :  { %v742_v36 = vpop.f32.mrb[40].mxu0  ;;  %v876_v8 = vpop.f32.mrb[40].mxu1 }
 0x136   :  { %v780_v9 = vadd.f32 %v742_v36, %v617_v35  ;;  %v2144_v24 = vpop.f32.mrb[41].mxu0  ;;  %v2172_v12 = vpop.f32.mrb[41].mxu1 }
 0x137   :  { %v745_v2 = vpop.f32.mrb[42].mxu0  ;;  %v879_v55 = vpop.f32.mrb[42].mxu1 }
 0x138   :  { %v914_v10 = vadd.f32 %v876_v8, %v780_v9  ;;  %v781_v18 = vadd.f32 %v745_v2, %v618_v33  ;;  %v2145_v20 = vpop.f32.mrb[43].mxu0  ;;  %v2173_v22 = vpop.f32.mrb[43].mxu1 }
 0x13a   :  { %v915_v32 = vadd.f32 %v879_v55, %v781_v18 }
 0x13d   :  { %v750_v29 = vpop.f32.mrb[44].mxu0  ;;  %v884_v7 = vpop.f32.mrb[44].mxu1 }
 0x13e   :  { %v782_v27 = vadd.f32 %v750_v29, %v619_v4  ;;  %v2148_v14 = vpop.f32.mrb[45].mxu0  ;;  %v2176_v5 = vpop.f32.mrb[45].mxu1 }
 0x13f   :  { %v753_v46 = vpop.f32.mrb[46].mxu0  ;;  %v887_v63 = vpop.f32.mrb[46].mxu1 }
 0x140   :  { %v916_v38 = vadd.f32 %v884_v7, %v782_v27  ;;  %v783_v40 = vadd.f32 %v753_v46, %v620_v56  ;;  %v2149_v37 = vpop.f32.mrb[47].mxu0  ;;  %v2177_v35 = vpop.f32.mrb[47].mxu1 }
 0x142   :  { %v917_v52 = vadd.f32 %v887_v63, %v783_v40 }
 0x145   :  { %v758_v53 = vpop.f32.mrb[48].mxu0  ;;  %v892_v23 = vpop.f32.mrb[48].mxu1 }
 0x146   :  { %v784_v51 = vadd.f32 %v758_v53, %v621_v15  ;;  %v2152_v0 = vpop.f32.mrb[49].mxu0  ;;  %v2180_v33 = vpop.f32.mrb[49].mxu1 }
 0x147   :  { %v761_v30 = vpop.f32.mrb[50].mxu0  ;;  %v895_v58 = vpop.f32.mrb[50].mxu1 }
 0x148   :  { %v918_v59 = vadd.f32 %v892_v23, %v784_v51  ;;  %v785_v54 = vadd.f32 %v761_v30, %v622_v3  ;;  %v2153_v60 = vpop.f32.mrb[51].mxu0  ;;  %v2181_v4 = vpop.f32.mrb[51].mxu1 }
 0x14a   :  { %v919_v6 = vadd.f32 %v895_v58, %v785_v54 }
 0x14d   :  { %v766_v62 = vpop.f32.mrb[52].mxu0  ;;  %v900_v1 = vpop.f32.mrb[52].mxu1 }
 0x14e   :  { %v786_v57 = vadd.f32 %v766_v62, %v623_v26  ;;  %v2156_v13 = vpop.f32.mrb[53].mxu0  ;;  %v2184_v56 = vpop.f32.mrb[53].mxu1 }
 0x14f   :  { %v769_v16 = vpop.f32.mrb[54].mxu0  ;;  %v903_v31 = vpop.f32.mrb[54].mxu1 }
 0x150   :  { %v920_v17 = vadd.f32 %v900_v1, %v786_v57  ;;  %v787_v61 = vadd.f32 %v769_v16, %v624_v41  ;;  %v2157_v21 = vpop.f32.mrb[55].mxu0  ;;  %v2185_v15 = vpop.f32.mrb[55].mxu1 }
 0x152   :  { %v921_v25 = vadd.f32 %v903_v31, %v787_v61 }
 0x155   :  { %v774_v28 = vpop.f32.mrb[56].mxu0  ;;  %v908_v39 = vpop.f32.mrb[56].mxu1 }
 0x156   :  { %v788_v11 = vadd.f32 %v774_v28, %v625_v48  ;;  %v2160_v42 = vpop.f32.mrb[57].mxu0  ;;  %v2188_v3 = vpop.f32.mrb[57].mxu1 }
 0x157   :  { %v777_v43 = vpop.f32.mrb[58].mxu0  ;;  %v911_v50 = vpop.f32.mrb[58].mxu1 }
 0x158   :  { %v922_v44 = vadd.f32 %v908_v39, %v788_v11  ;;  %v2161_v19 = vpop.f32.mrb[59].mxu0  ;;  %v2189_v45 = vpop.f32.mrb[59].mxu1 }
 0x159   :  { %v1627_v43 = vpop.permute.xlu0 %1626 }
 0x15d   :  { %v1050_v26 = vpop.f32.mrb[60].mxu0  ;;  %v1228_v47 = vpop.f32.mrb[60].mxu1 }
 0x15e   :  { %v1088_v34 = vadd.f32 %v1050_v26, %v914_v10  ;;  %v2200_v49 = vpop.f32.mrb[61].mxu0  ;;  %v2228_v36 = vpop.f32.mrb[61].mxu1 }
 0x15f   :  { %v1053_v8 = vpop.f32.mrb[62].mxu0  ;;  %v1231_v41 = vpop.f32.mrb[62].mxu1 }
 0x160   :  { %v1266_v9 = vadd.f32 %v1228_v47, %v1088_v34  ;;  %v1089_v24 = vadd.f32 %v1053_v8, %v915_v32  ;;  %v2201_v12 = vpop.f32.mrb[63].mxu0  ;;  %v2229_v2 = vpop.f32.mrb[63].mxu1 }
 0x161   :  { %v1632_v2 = vpop.permute.xlu0 %1631 }
 0x162   :  { %v1267_v55 = vadd.f32 %v1231_v41, %v1089_v24 }
 0x165   :  { %v1058_v48 = vpop.f32.mrb[64].mxu0  ;;  %v1236_v18 = vpop.f32.mrb[64].mxu1 }
 0x166   :  { %v1090_v20 = vadd.f32 %v1058_v48, %v916_v38  ;;  %v2204_v22 = vpop.f32.mrb[65].mxu0  ;;  %v2232_v29 = vpop.f32.mrb[65].mxu1 }
 0x167   :  { %v1061_v7 = vpop.f32.mrb[66].mxu0  ;;  %v1239_v27 = vpop.f32.mrb[66].mxu1 }
 0x168   :  { %v3034_v14 = vadd.f32 %v1236_v18, %v1090_v20  ;;  %v1091_v5 = vadd.f32 %v1061_v7, %v917_v52  ;;  %v2205_v10 = vpop.f32.mrb[67].mxu0  ;;  %v2233_v46 = vpop.f32.mrb[67].mxu1 }
 0x169   :  { %v1637_v18 = vpop.permute.xlu1 %1636 }
 0x16a   :  { %v3036_v63 = vadd.f32 %v1239_v27, %v1091_v5 }
 0x16d   :  { %v1066_v40 = vpop.f32.mrb[68].mxu0  ;;  %v1244_v37 = vpop.f32.mrb[68].mxu1 }
 0x16e   :  { %v1092_v32 = vadd.f32 %v1066_v40, %v918_v59  ;;  %v2208_v35 = vpop.f32.mrb[69].mxu0  ;;  %v2236_v53 = vpop.f32.mrb[69].mxu1 }
 0x16f   :  { %v1069_v23 = vpop.f32.mrb[70].mxu0  ;;  %v1247_v51 = vpop.f32.mrb[70].mxu1 }
 0x170   :  { %v3038_v0 = vadd.f32 %v1244_v37, %v1092_v32  ;;  %v1093_v38 = vadd.f32 %v1069_v23, %v919_v6  ;;  %v2209_v33 = vpop.f32.mrb[71].mxu0  ;;  %v2237_v30 = vpop.f32.mrb[71].mxu1 }
 0x172   :  { %v3040_v58 = vadd.f32 %v1247_v51, %v1093_v38  ;;  %v1642_v51 = vpop.permute.xlu1 %1641 }
 0x175   :  { %v1074_v54 = vpop.f32.mrb[72].mxu0  ;;  %v1252_v52 = vpop.f32.mrb[72].mxu1 }
 0x176   :  { %v1094_v60 = vadd.f32 %v1074_v54, %v920_v17  ;;  %v2212_v4 = vpop.f32.mrb[73].mxu0  ;;  %v2240_v62 = vpop.f32.mrb[73].mxu1 }
 0x177   :  { %v1077_v1 = vpop.f32.mrb[74].mxu0  ;;  %v1255_v57 = vpop.f32.mrb[74].mxu1 }
 0x178   :  { %v3042_v13 = vadd.f32 %v1252_v52, %v1094_v60  ;;  %v1095_v59 = vadd.f32 %v1077_v1, %v921_v25  ;;  %v2213_v56 = vpop.f32.mrb[75].mxu0  ;;  %v2241_v16 = vpop.f32.mrb[75].mxu1 }
 0x17a   :  { %v3044_v31 = vadd.f32 %v1255_v57, %v1095_v59 }
 0x17d   :  { %v1082_v61 = vpop.f32.mrb[76].mxu0  ;;  %v1260_v6 = vpop.f32.mrb[76].mxu1 }
 0x17e   :  { %v1096_v21 = vadd.f32 %v1082_v61, %v922_v44  ;;  %v2216_v15 = vpop.f32.mrb[77].mxu0  ;;  %v2244_v28 = vpop.f32.mrb[77].mxu1  ;;  %v3051_v44 = vld [vmem:[%s3110_s4] ss:$0 sm:$0xff] }
 0x17f   :  { %v1085_v39 = vpop.f32.mrb[78].mxu0  ;;  %v1263_v11 = vpop.f32.mrb[78].mxu1 }
 0x180   :  { %v3046_v42 = vadd.f32 %v1260_v6, %v1096_v21  ;;  %v2217_v17 = vpop.f32.mrb[79].mxu0  ;;  %v2245_v3 = vpop.f32.mrb[79].mxu1 }
 0x181   :  { %v1647_v15 = vpop.permute.xlu0 %1646  ;;  %v1652_v39 = vpop.permute.xlu1 %1651 }
 0x185   :  { %v1370_v50 = vpop.f32.mrb[80].mxu0  ;;  %v1552_v19 = vpop.f32.mrb[80].mxu1 }
 0x186   :  { %v1408_v45 = vadd.f32 %v1370_v50, %v1266_v9  ;;  %v2256_v25 = vpop.f32.mrb[81].mxu0  ;;  %v2292_v26 = vpop.f32.mrb[81].mxu1 }
 0x187   :  { %v1373_v47 = vpop.f32.mrb[82].mxu0  ;;  %v1555_v34 = vpop.f32.mrb[82].mxu1 }
 0x188   :  { %v1590_v49 = vadd.f32 %v1552_v19, %v1408_v45  ;;  %v1409_v36 = vadd.f32 %v1373_v47, %v1267_v55  ;;  %v2257_v8 = vpop.f32.mrb[83].mxu0  ;;  %v2293_v41 = vpop.f32.mrb[83].mxu1 }
 0x18a   :  { %v1591_v24 = vadd.f32 %v1555_v34, %v1409_v36  ;;  %v1606_v12 = vadd.f32 %v3051_v44, %v1590_v49 }
 0x18c   :  { %v1669_v48 = vmul.f32 %v1627_v43, %v1606_v12  ;;  %v1607_v9 = vadd.f32 %v3051_v44, %v1591_v24  ;;  %v1657_v24 = vpop.permute.xlu0 %1656 }
 0x18d   :  { %v1378_v20 = vpop.f32.mrb[84].mxu0  ;;  %v1560_v22 = vpop.f32.mrb[84].mxu1 }
 0x18e   :  { %v1919_v29 = vpack.c.bf16 %v1669_v48, %v1669_v48  ;;  %v1670_v7 = vmul.f32 %v1632_v2, %v1607_v9  ;;  %v1410_v27 = vadd.f32 %v1378_v20, %v3034_v14  ;;  %v2260_v5 = vpop.f32.mrb[85].mxu0  ;;  %v2296_v10 = vpop.f32.mrb[85].mxu1 }
 0x18f   :  { %v1381_v55 = vpop.f32.mrb[86].mxu0  ;;  %v1563_v46 = vpop.f32.mrb[86].mxu1 }
 0x190   :  { %1716 = vst.msk [vmem:[%s3111_s6] sm:$0xf] %vm1715_vm8, %v1919_v29  ;;  %v1920_v40 = vpack.c.bf16 %v1670_v7, %v1670_v7  ;;  %v1592_v37 = vadd.f32 %v1560_v22, %v1410_v27  ;;  %v1411_v32 = vadd.f32 %v1381_v55, %v3036_v63  ;;  %v2261_v35 = vpop.f32.mrb[87].mxu0  ;;  %v2297_v53 = vpop.f32.mrb[87].mxu1 }
 0x191   :  { %v1662_v2 = vpop.permute.xlu1 %1661 }
 0x192   :  { %1717 = vst.msk [vmem:[%s3111_s6 + $0x4] sm:$0xf] %vm1715_vm8, %v1920_v40  ;;  %v1593_v14 = vadd.f32 %v1563_v46, %v1411_v32  ;;  %v1608_v23 = vadd.f32 %v3051_v44, %v1592_v37  ;;  %v1667_v37 = vpop.permute.xlu0 %1666 }
 0x194   :  { %v1671_v38 = vmul.f32 %v1637_v18, %v1608_v23  ;;  %v1609_v33 = vadd.f32 %v3051_v44, %v1593_v14 }
 0x195   :  { %v1386_v30 = vpop.f32.mrb[88].mxu0  ;;  %v1568_v54 = vpop.f32.mrb[88].mxu1 }
 0x196   :  { %v1921_v52 = vpack.c.bf16 %v1671_v38, %v1671_v38  ;;  %v1672_v60 = vmul.f32 %v1642_v51, %v1609_v33  ;;  %v1412_v63 = vadd.f32 %v1386_v30, %v3038_v0  ;;  %v2264_v4 = vpop.f32.mrb[89].mxu0  ;;  %v2300_v62 = vpop.f32.mrb[89].mxu1 }
 0x197   :  { %v1389_v1 = vpop.f32.mrb[90].mxu0  ;;  %v1571_v57 = vpop.f32.mrb[90].mxu1 }
 0x198   :  { %1718 = vst.msk [vmem:[%s3111_s6 + $0x8] sm:$0xf] %vm1715_vm8, %v1921_v52  ;;  %v1922_v59 = vpack.c.bf16 %v1672_v60, %v1672_v60  ;;  %v1594_v56 = vadd.f32 %v1568_v54, %v1412_v63  ;;  %v1413_v16 = vadd.f32 %v1389_v1, %v3040_v58  ;;  %v2265_v61 = vpop.f32.mrb[91].mxu0  ;;  %v2301_v6 = vpop.f32.mrb[91].mxu1 }
 0x19a   :  { %1719 = vst.msk [vmem:[%s3111_s6 + $0xc] sm:$0xf] %vm1715_vm8, %v1922_v59  ;;  %v1610_v0 = vadd.f32 %v3051_v44, %v1594_v56  ;;  %v1595_v21 = vadd.f32 %v1571_v57, %v1413_v16 }
 0x19c   :  { %v1673_v28 = vmul.f32 %v1647_v15, %v1610_v0  ;;  %v1611_v11 = vadd.f32 %v3051_v44, %v1595_v21 }
 0x19d   :  { %v1394_v17 = vpop.f32.mrb[92].mxu0  ;;  %v1576_v3 = vpop.f32.mrb[92].mxu1 }
 0x19e   :  { %v1923_v43 = vpack.c.bf16 %v1673_v28, %v1673_v28  ;;  %v1674_v50 = vmul.f32 %v1652_v39, %v1611_v11  ;;  %v1414_v58 = vadd.f32 %v1394_v17, %v3042_v13  ;;  %v2268_v19 = vpop.f32.mrb[93].mxu0  ;;  %v2304_v45 = vpop.f32.mrb[93].mxu1 }
 0x19f   :  { %v1397_v25 = vpop.f32.mrb[94].mxu0  ;;  %v1579_v26 = vpop.f32.mrb[94].mxu1 }
 0x1a0   :  { %1720 = vst.msk [vmem:[%s3111_s6 + $0x10] sm:$0xf] %vm1715_vm8, %v1923_v43  ;;  %v1924_v47 = vpack.c.bf16 %v1674_v50, %v1674_v50  ;;  %v1596_v34 = vadd.f32 %v1576_v3, %v1414_v58  ;;  %v1415_v49 = vadd.f32 %v1397_v25, %v3044_v31  ;;  %v2269_v36 = vpop.f32.mrb[95].mxu0  ;;  %v2305_v8 = vpop.f32.mrb[95].mxu1 }
 0x1a2   :  { %1721 = vst.msk [vmem:[%s3111_s6 + $0x14] sm:$0xf] %vm1715_vm8, %v1924_v47  ;;  %v1612_v13 = vadd.f32 %v3051_v44, %v1596_v34  ;;  %v1597_v41 = vadd.f32 %v1579_v26, %v1415_v49 }
 0x1a4   :  { %v1675_v12 = vmul.f32 %v1657_v24, %v1612_v13  ;;  %v1613_v48 = vadd.f32 %v3051_v44, %v1597_v41 }
 0x1a5   :  { %v1402_v9 = vpop.f32.mrb[96].mxu0  ;;  %v1584_v18 = vpop.f32.mrb[96].mxu1 }
 0x1a6   :  { %v1925_v20 = vpack.c.bf16 %v1675_v12, %v1675_v12  ;;  %v1676_v22 = vmul.f32 %v1662_v2, %v1613_v48  ;;  %v1416_v31 = vadd.f32 %v1402_v9, %v3046_v42  ;;  %v2272_v29 = vpop.f32.mrb[97].mxu0  ;;  %v2308_v7 = vpop.f32.mrb[97].mxu1 }
 0x1a7   :  { %v1405_v27 = vpop.f32.mrb[98].mxu0  ;;  %v1587_v5 = vpop.f32.mrb[98].mxu1 }
 0x1a8   :  { %1722 = vst.msk [vmem:[%s3111_s6 + $0x18] sm:$0xf] %vm1715_vm8, %v1925_v20  ;;  %v1926_v10 = vpack.c.bf16 %v1676_v22, %v1676_v22  ;;  %v1598_v55 = vadd.f32 %v1584_v18, %v1416_v31  ;;  %v2273_v46 = vpop.f32.mrb[99].mxu0  ;;  %v2309_v40 = vpop.f32.mrb[99].mxu1 }
 0x1aa   :  { %1723 = vst.msk [vmem:[%s3111_s6 + $0x1c] sm:$0xf] %vm1715_vm8, %v1926_v10  ;;  %v1614_v42 = vadd.f32 %v3051_v44, %v1598_v55 }
 0x1ac   :  { %v1677_v32 = vmul.f32 %v1667_v37, %v1614_v42 }
 0x1ae   :  { %v1927_v35 = vpack.c.bf16 %v1677_v32, %v1677_v32 }
 0x1b0   :  { %1724 = vst.msk [vmem:[%s3111_s6 + $0x20] sm:$0xf] %vm1715_vm8, %v1927_v35 }

// kernel: _lambda_.5
= control target key start
LH: loop header
LB: loop body
LE: loop exit
PB: predicated region body
PF: predicated region fallthrough
CT: control target
= control target key end

     0   :  { %v2619_v0 = vmov 0.0   ;;  %vm2620_vm0 = vmmov 0   ;;  %vm142_vm7 = vsmask.f32 7424  ;;  %vm788_vm12 = vsmask.f32 4352  ;;  %s3344_s1 = inlined_call_operand.vmem [shape: bf16[9,128,64], index: 1, kind: input, shape index: {}]   ;;  %s3345_s0 = inlined_call_operand.vmem [shape: bf16[86,128], index: 0, kind: input, shape index: {}]   ;;  %s3346_s3 = inlined_call_operand.vmem [shape: f32[72,1], index: 3, kind: input, shape index: {}]   ;;  %s3347_s2 = inlined_call_operand.vmem [shape: f32[1,64], index: 2, kind: input, shape index: {}]   ;;  %s3348_s4 = inlined_call_operand.vmem [shape: bf16[72,64], index: 4, kind: output, shape index: {}]  }
   0x1   :  { %2183 = vmatprep.subr.bf16.mxu0 %v2619_v0  ;;  %2219 = vmatprep.subr.bf16.mxu1 %v2619_v0  ;;  %v2528_v1 = vld [vmem:[%s3344_s1 + $0x40] sm:$0xff]   ;;  %v2530_v3 = vld [vmem:[%s3344_s1 + $0x48] sm:$0xff]   ;;  %v2532_v5 = vld [vmem:[%s3344_s1 + $0x50] sm:$0xff]   ;;  %vm623_vm13 = vcmask 1044480   ;;  %vm454_vm14 = vcmask 1046528  }
   0x2   :  { %v2529_v2 = vld [vmem:[%s3344_s1] sm:$0xff]   ;;  %2199 = vmatprep.mubr.msk.bf16.mxu0 %vm2620_vm0, %v2619_v0  ;;  %2235 = vmatprep.mubr.msk.bf16.mxu1 %vm2620_vm0, %v2619_v0  ;;  %v2531_v4 = vld [vmem:[%s3344_s1 + $0x8] sm:$0xff]   ;;  %v2533_v6 = vld [vmem:[%s3344_s1 + $0x10] sm:$0xff]  }
   0x3   :  { %2184 = vmatpush3.bf16.msra.mxu0 %v2528_v1  ;;  %2220 = vmatpush3.bf16.msra.mxu1 %v2529_v2  ;;  %v2534_v7 = vld [vmem:[%s3344_s1 + $0x58] sm:$0xff]   ;;  %v2536_v9 = vld [vmem:[%s3344_s1 + $0x60] sm:$0xff]   ;;  %v21_v13 = vld [vmem:[%s3345_s0 + $0x8] sm:$0xf] }
   0x4   :  { %2185 = vmatprep.subr.bf16.mxu0 %v2619_v0  ;;  %2221 = vmatprep.subr.bf16.mxu1 %v2619_v0  ;;  %v2535_v8 = vld [vmem:[%s3344_s1 + $0x18] sm:$0xff]   ;;  %v2537_v10 = vld [vmem:[%s3344_s1 + $0x20] sm:$0xff]   ;;  %v2538_v14 = vld [vmem:[%s3344_s1 + $0x68] sm:$0xff]   ;;  %vm32_vm3 = vcmp.gt.bf16.partialorder %v21_v13, 0  ;;  %v43_v19 = vmul.bf16 1045249613, %v21_v13 }
   0x5   :  { %v19_v11 = vld [vmem:[%s3345_s0] sm:$0xf]  ;;  %v20_v12 = vld [vmem:[%s3345_s0 + $0x4] sm:$0xf]  ;;  %v2539_v15 = vld [vmem:[%s3344_s1 + $0x28] sm:$0xff]  }
   0x6   :  { %v22_v16 = vld [vmem:[%s3345_s0 + $0xc] sm:$0xf]  ;;  %vm30_vm1 = vcmp.gt.bf16.partialorder %v19_v11, 0  ;;  %vm31_vm2 = vcmp.gt.bf16.partialorder %v20_v12, 0  ;;  %v41_v17 = vmul.bf16 1045249613, %v19_v11  ;;  %v54_v24 = vsel %vm32_vm3, %v21_v13, %v43_v19 }
   0x7   :  { %2186 = vmatpush3.bf16.msra.mxu0 %v2530_v3  ;;  %2222 = vmatpush3.bf16.msra.mxu1 %v2531_v4  ;;  %vm33_vm4 = vcmp.gt.bf16.partialorder %v22_v16, 0  ;;  %v42_v18 = vmul.bf16 1045249613, %v20_v12  ;;  %v44_v20 = vmul.bf16 1045249613, %v22_v16  ;;  %v2540_v21 = vld [vmem:[%s3344_s1 + $0x70] sm:$0xff]  }
   0x8   :  { %2187 = vmatprep.subr.bf16.mxu0 %v2619_v0  ;;  %2223 = vmatprep.subr.bf16.mxu1 %v2619_v0  ;;  %v52_v22 = vsel %vm30_vm1, %v19_v11, %v41_v17  ;;  %v23_v26 = vld [vmem:[%s3345_s0 + $0x10] sm:$0xf]  ;;  %v24_v27 = vld [vmem:[%s3345_s0 + $0x14] sm:$0xf]  ;;  %65 = vst [vmem:[#allocation2 + $0x8] sm:$0xf] %v54_v24 }
   0x9   :  { %v53_v23 = vsel %vm31_vm2, %v20_v12, %v42_v18  ;;  %v55_v25 = vsel %vm33_vm4, %v22_v16, %v44_v20  ;;  %63 = vst [vmem:[#allocation2] sm:$0xf] %v52_v22  ;;  %vm34_vm5 = vcmp.gt.bf16.partialorder %v23_v26, 0  ;;  %vm35_vm6 = vcmp.gt.bf16.partialorder %v24_v27, 0  ;;  %v2541_v30 = vld [vmem:[%s3344_s1 + $0x30] sm:$0xff]   ;;  %v2542_v34 = vld [vmem:[%s3344_s1 + $0x78] sm:$0xff]  }
   0xa   :  { %64 = vst [vmem:[#allocation2 + $0x4] sm:$0xf] %v53_v23  ;;  %66 = vst [vmem:[#allocation2 + $0xc] sm:$0xf] %v55_v25  ;;  %v45_v28 = vmul.bf16 1045249613, %v23_v26 }
   0xb   :  { %2188 = vmatpush3.bf16.msra.mxu0 %v2532_v5  ;;  %2224 = vmatpush3.bf16.msra.mxu1 %v2533_v6  ;;  %v46_v29 = vmul.bf16 1045249613, %v24_v27  ;;  %v25_v33 = vld [vmem:[%s3345_s0 + $0x18] sm:$0xf]  ;;  %v26_v35 = vld [vmem:[%s3345_s0 + $0x1c] sm:$0xf] }
   0xc   :  { %2189 = vmatprep.subr.bf16.mxu0 %v2619_v0  ;;  %2225 = vmatprep.subr.bf16.mxu1 %v2619_v0  ;;  %v56_v31 = vsel %vm34_vm5, %v23_v26, %v45_v28  ;;  %vm36_vm8 = vcmp.gt.bf16.partialorder %v25_v33, 0  ;;  %v47_v36 = vmul.bf16 1045249613, %v25_v33  ;;  %v2543_v37 = vld [vmem:[%s3344_s1 + $0x38] sm:$0xff]   ;;  %vm37_vm9 = vcmp.gt.bf16.partialorder %v26_v35, 0  ;;  %v2549_v50 = vld [vmem:[%s3344_s1 + $0xc0] sm:$0xff]  }
   0xd   :  { %v57_v32 = vsel %vm35_vm6, %v24_v27, %v46_v29  ;;  %67 = vst [vmem:[#allocation2 + $0x10] sm:$0xf] %v56_v31  ;;  %v48_v38 = vmul.bf16 1045249613, %v26_v35  ;;  %v27_v57 = vld [vmem:[%s3345_s0 + $0x20] sm:$0xf] }
   0xe   :  { %68 = vst [vmem:[#allocation2 + $0x14] sm:$0xf] %v57_v32  ;;  %v58_v41 = vsel %vm36_vm8, %v25_v33, %v47_v36  ;;  %v2546_v61 = vld [vmem:[%s3344_s1 + $0x80] sm:$0xff]   ;;  %v2551_v3 = vld [vmem:[%s3344_s1 + $0xc8] sm:$0xff]   ;;  %vm38_vm10 = vcmp.gt.bf16.partialorder %v27_v57, 0  ;;  %v2554_v17 = vld [vmem:[%s3344_s1 + $0xd0] sm:$0xff]  }
   0xf   :  { %2190 = vmatpush3.bf16.msra.mxu0 %v2534_v7  ;;  %2226 = vmatpush3.bf16.msra.mxu1 %v2535_v8  ;;  %v2741_v42 = vld [vmem:[#allocation2 + $0x8] sm:$0xf]  ;;  %v59_v45 = vsel %vm37_vm9, %v26_v35, %v48_v38  ;;  %69 = vst [vmem:[#allocation2 + $0x18] sm:$0xf] %v58_v41  ;;  %v28_v63 = vld [vmem:[%s3345_s0 + $0x24] sm:$0xf] }
  0x10   :  { %2191 = vmatprep.subr.bf16.mxu0 %v2619_v0  ;;  %2227 = vmatprep.subr.bf16.mxu1 %v2619_v0  ;;  %v74_v39 = vld [vmem:[#allocation2] sm:$0xf]  ;;  %70 = vst [vmem:[#allocation2 + $0x1c] sm:$0xf] %v59_v45  ;;  %vm39_vm11 = vcmp.gt.bf16.partialorder %v28_v63, 0  ;;  %v2550_v19 = vld [vmem:[%s3344_s1 + $0x90] sm:$0xff]  }
  0x11   :  { %v2739_v40 = vld [vmem:[#allocation2 + $0x4] sm:$0xf]  ;;  %v2743_v43 = vld [vmem:[#allocation2 + $0xc] sm:$0xf]  ;;  %v49_v5 = vmul.bf16 1045249613, %v27_v57 }
  0x12   :  { %v1841_v44 = vcombine.low %v74_v39, %v2739_v40  ;;  %v2748_v46 = vcombine.low %v2741_v42, %v2743_v43  ;;  %v1955_v47 = vcombine.low %v2739_v40, %v2741_v42  ;;  %v50_v6 = vmul.bf16 1045249613, %v28_v63  ;;  %v2556_v22 = vld [vmem:[%s3344_s1 + $0xd8] sm:$0xff]   ;;  %v2558_v29 = vld [vmem:[%s3344_s1 + $0xe0] sm:$0xff]   ;;  %v2560_v35 = vld [vmem:[%s3344_s1 + $0xe8] sm:$0xff]  }
  0x13   :  { %2192 = vmatpush3.bf16.msra.mxu0 %v2536_v9  ;;  %2228 = vmatpush3.bf16.msra.mxu1 %v2537_v10  ;;  %v2547_v9 = vld [vmem:[%s3344_s1 + $0x88] sm:$0xff]   ;;  %v60_v13 = vsel %vm38_vm10, %v27_v57, %v49_v5  ;;  %v2553_v27 = vld [vmem:[%s3344_s1 + $0x98] sm:$0xff]   ;;  %v2555_v31 = vld [vmem:[%s3344_s1 + $0xa0] sm:$0xff]   ;;  %vm1325_vm1 = vsmask.f32 5376  ;;  %vm1160_vm2 = vcmask 1045504  }
  0x14   :  { %2193 = vmatprep.subr.bf16.mxu0 %v2619_v0  ;;  %2229 = vmatprep.subr.bf16.mxu1 %v2619_v0  ;;  %v144_v48 = vshrl.u32 %v1841_v44, 16  ;;  %v146_v49 = vshll.u32 %v1841_v44, 16  ;;  %v151_v51 = vshll.u32 %v2748_v46, 16  ;;  %v2757_v52 = vld [vmem:[#allocation2 + $0x10] sm:$0xf]  ;;  %v155_v54 = vshrl.u32 %v2748_v46, 16 }
  0x15   :  { %v2759_v53 = vld [vmem:[#allocation2 + $0x14] sm:$0xf]  ;;  %v1956_v58 = vcombine.low %v2743_v43, %v2757_v52  ;;  %71 = vst [vmem:[#allocation2 + $0x20] sm:$0xf] %v60_v13  ;;  %v2559_v38 = vld [vmem:[%s3344_s1 + $0xa8] sm:$0xff]   ;;  %v2591_v43 = vld [vmem:[%s3344_s1 + $0x198] sm:$0xff]  }
  0x16   :  { %v148_v55 = vrot.slane %v146_v49, 1  ;;  %v2765_v56 = vcombine.low %v2757_v52, %v2759_v53  ;;  %v153_v59 = vrot.slane %v151_v51, 1  ;;  %v798_v60 = vrot.slane %v151_v51, 4  ;;  %v2785_v4 = vld [vmem:[#allocation2 + $0x18] sm:$0xf]  ;;  %v2563_v39 = vld [vmem:[%s3344_s1 + $0xf0] sm:$0xff]  }
  0x17   :  { %2194 = vmatpush3.bf16.msra.mxu0 %v2538_v14  ;;  %2230 = vmatpush3.bf16.msra.mxu1 %v2539_v15  ;;  %v797_v62 = vrot.slane %v155_v54, 3  ;;  %v2795_v11 = vld [vmem:[#allocation2 + $0x1c] sm:$0xf]  ;;  %v1957_v12 = vcombine.low %v2759_v53, %v2785_v4  ;;  %v61_v14 = vsel %vm39_vm11, %v28_v63, %v50_v6  ;;  %v2561_v41 = vld [vmem:[%s3344_s1 + $0xb0] sm:$0xff]   ;;  %v433_v63 = vld [vmem:[#allocation2] sm:$0xe] }
  0x18   :  { %2195 = vmatprep.subr.bf16.mxu0 %v2619_v0  ;;  %2231 = vmatprep.subr.bf16.mxu1 %v2619_v0  ;;  %v149_v1 = vor.u32 %v148_v55, %v144_v48  ;;  %v159_v2 = vshll.u32 %v2765_v56, 16  ;;  %v157_v15 = vor.u32 %v155_v54, %v153_v59  ;;  %v2803_v16 = vcombine.low %v2785_v4, %v2795_v11  ;;  %v2565_v48 = vld [vmem:[%s3344_s1 + $0xf8] sm:$0xff]   ;;  %v2592_v42 = vld [vmem:[%s3344_s1 + $0x1d0] sm:$0xff]   ;;  %v2596_v52 = vld [vmem:[%s3344_s1 + $0x1e0] sm:$0xff]  }
  0x19   :  { %v2787_v7 = vor.u32 %v798_v60, %v797_v62  ;;  %72 = vst [vmem:[#allocation2 + $0x24] sm:$0xf] %v61_v14  ;;  %v163_v20 = vshrl.u32 %v2765_v56, 16  ;;  %v625_v6 = vrot.slane %v2748_v46, 3  ;;  %v2597_v53 = vld [vmem:[%s3344_s1 + $0x1a8] sm:$0xff]   ;;  %vm1811_vm4 = vcmask 519168  }
  0x1a   :  { %v154_v8 = vsel %vm142_vm7, %v149_v1, %v153_v59  ;;  %v161_v10 = vrot.slane %v159_v2, 1  ;;  %v171_v33 = vshrl.u32 %v2803_v16, 16  ;;  %v802_v49 = vrot.slane %v159_v2, 4  ;;  %v2564_v59 = vld [vmem:[%s3344_s1 + $0xb8] sm:$0xff]  }
  0x1b   :  { %2196 = vmatpush3.bf16.msra.mxu0 %v2540_v21  ;;  %2232 = vmatpush3.bf16.msra.mxu1 %v2541_v30  ;;  %v167_v21 = vshll.u32 %v2803_v16, 16 }
  0x1c   :  { %2197 = vmatprep.subr.bf16.mxu0 %v2619_v0  ;;  %2233 = vmatprep.subr.bf16.mxu1 %v2619_v0  ;;  %v162_v18 = vsel %vm142_vm7, %v157_v15, %v161_v10  ;;  %v2824_v23 = vld [vmem:[#allocation2 + $0x20] sm:$0xf]  ;;  %v165_v25 = vor.u32 %v163_v20, %v161_v10  ;;  %v805_v55 = vrot.slane %v171_v33, 3 }
  0x1d   :  { %v169_v26 = vrot.slane %v167_v21, 1  ;;  %v1958_v30 = vcombine.low %v2795_v11, %v2824_v23  ;;  %v1854_v57 = vcombine.low %v2824_v23, %v2824_v23  ;;  %v806_v62 = vrot.slane %v167_v21, 4  ;;  %v2570_v15 = vld [vmem:[%s3344_s1 + $0x140] sm:$0xff]   ;;  %v2603_v11 = vld [vmem:[%s3344_s1 + $0x1f8] sm:$0xff]  }
  0x1e   :  { %v627_v21 = vrot.slane %v2765_v56, 3 }
  0x1f   :  { %2198 = vmatpush3.bf16.msra.mxu0 %v2542_v34  ;;  %2234 = vmatpush3.bf16.msra.mxu1 %v2543_v37  ;;  %v170_v32 = vsel %vm142_vm7, %v165_v25, %v169_v26  ;;  %v173_v36 = vor.u32 %v171_v33, %v169_v26  ;;  %v807_v1 = vor.u32 %v806_v62, %v805_v55  ;;  %v2574_v33 = vld [vmem:[%s3344_s1 + $0x150] sm:$0xff]   ;;  %v2579_v62 = vld [vmem:[%s3344_s1 + $0x128] sm:$0xff]  }
  0x20   :  { %2255 = vmatprep.subr.bf16.mxu0 %v2619_v0  ;;  %2291 = vmatprep.subr.bf16.mxu1 %v2619_v0  ;;  %v99_v24 = vld [vmem:[#allocation2 + $0x24] sm:$0x1] }
  0x21   :  { %v2834_v28 = vcombine.low %v2824_v23, %v99_v24  ;;  %v2910_v10 = vld [vmem:[#allocation2 + $0x24] sm:$0xf] }
  0x22   :  { %2236 = vmatmul.mubr.bf16.vlgmr.msra.gmra.mrb[0].mxu1 %v1841_v44  ;;  %2200 = vmatmul.mubr.bf16.vlgmr.msra.gmra.mrb[0].mxu0 %v154_v8  ;;  %v801_v44 = vrot.slane %v163_v20, 3 }
  0x23   :  { %2239 = vmatprep.mubr.msk.bf16.mxu1 %vm2620_vm0, %v2619_v0  ;;  %2292 = vmatpush3.bf16.msra.mxu1 %v2549_v50  ;;  %v175_v34 = vshll.u32 %v2834_v28, 16  ;;  %v598_v50 = vld [vmem:[#allocation2] sm:$0x8]  ;;  %v179_v51 = vshrl.u32 %v2834_v28, 16 }
  0x24   :  { %2293 = vmatprep.subr.bf16.mxu1 %v2619_v0  ;;  %2256 = vmatpush3.bf16.msra.mxu0 %v2546_v61  ;;  %v803_v54 = vor.u32 %v802_v49, %v801_v44  ;;  %v2890_v60 = vcombine.low %v598_v50, %v2739_v40 }
  0x25   :  { %2203 = vmatprep.mubr.msk.bf16.mxu0 %vm2620_vm0, %v2619_v0  ;;  %2257 = vmatprep.subr.bf16.mxu0 %v2619_v0  ;;  %v177_v37 = vrot.slane %v175_v34, 1 }
  0x26   :  { %v2894_v61 = vsel %vm788_vm12, %v2787_v7, %v803_v54  ;;  %v624_v5 = vrot.slane %v2890_v60, 3  ;;  %v2906_v8 = vsel %vm788_vm12, %v803_v54, %v807_v1  ;;  %v2580_v54 = vld [vmem:[%s3344_s1 + $0x168] sm:$0xff]  }
  0x27   :  { %2294 = vmatpush3.bf16.msra.mxu1 %v2551_v3  ;;  %v178_v45 = vsel %vm142_vm7, %v173_v36, %v177_v37  ;;  %v181_v2 = vor.u32 %v179_v51, %v177_v37  ;;  %v1879_v3 = vcombine.low %v433_v63, %v2739_v40  ;;  %v2576_v36 = vld [vmem:[%s3344_s1 + $0x158] sm:$0xff]   ;;  %v599_v37 = vld [vmem:[#allocation2 + $0x24] sm:$0x7]  ;;  %v2582_v63 = vld [vmem:[%s3344_s1 + $0x170] sm:$0xff]  }
  0x28   :  { %2295 = vmatprep.subr.bf16.mxu1 %v2619_v0  ;;  %2258 = vmatpush3.bf16.msra.mxu0 %v2547_v9  ;;  %v456_v9 = vrot.slane %v2748_v46, 1  ;;  %v626_v14 = vsel %vm623_vm13, %v624_v5, %v625_v6  ;;  %v1905_v44 = vcombine.low %v2824_v23, %v599_v37  ;;  %v790_v5 = vshrl.u32 %v2890_v60, 16  ;;  %v2587_v40 = vld [vmem:[%s3344_s1 + $0x188] sm:$0xff]  }
  0x29   :  { %2259 = vmatprep.subr.bf16.mxu0 %v2619_v0  ;;  %v455_v13 = vrot.slane %v1879_v3, 1  ;;  %v2583_v3 = vld [vmem:[%s3344_s1 + $0x138] sm:$0xff]  }
  0x2a   :  { %2240 = vmatmul.mubr.bf16.gmra.mrb[4].mxu1 %v2748_v46  ;;  %2204 = vmatmul.mubr.bf16.gmra.mrb[4].mxu0 %v162_v18  ;;  %v2568_v46 = vld [vmem:[%s3344_s1 + $0x100] sm:$0xff]   ;;  %v631_v51 = vrot.slane %v1905_v44, 3 }
  0x2b   :  { %2243 = vmatprep.mubr.msk.bf16.mxu1 %vm2620_vm0, %v2619_v0  ;;  %2296 = vmatpush3.bf16.msra.mxu1 %v2554_v17  ;;  %v1930_v17 = vcombine.low %v2824_v23, %v2910_v10  ;;  %v457_v20 = vsel %vm454_vm14, %v455_v13, %v456_v9  ;;  %v1959_v23 = vcombine.low %v2910_v10, %v2910_v10  ;;  %v2621_v10 = vmov 0  }
  0x2c   :  { %2297 = vmatprep.subr.bf16.mxu1 %v2619_v0  ;;  %2260 = vmatpush3.bf16.msra.mxu0 %v2550_v19 }
  0x2d   :  { %2207 = vmatprep.mubr.msk.bf16.mxu0 %vm2620_vm0, %v2619_v0  ;;  %2261 = vmatprep.subr.bf16.mxu0 %v2619_v0  ;;  %v810_v18 = vshrl.u32 %v1930_v17, 16  ;;  %v813_v19 = vshll.u32 %v1930_v17, 16  ;;  %v2586_v17 = vld [vmem:[%s3344_s1 + $0x180] sm:$0xff]  }
  0x2e   :  { %2526 = vset.pattern.permute.xlu0 %v2621_v10  ;;  %2527 = vset.pattern.permute.xlu1 %v2621_v10 }
  0x2f   :  { %2298 = vmatpush3.bf16.msra.mxu1 %v2556_v22  ;;  %v2572_v22 = vld [vmem:[%s3344_s1 + $0x148] sm:$0xff]   ;;  %v812_v24 = vrot.slane %v810_v18, 3  ;;  %v815_v25 = vrot.slane %v813_v19, 4  ;;  %v1108_v19 = vld [vmem:[#allocation2 + $0x4] sm:$0xc] }
  0x30   :  { %2299 = vmatprep.subr.bf16.mxu1 %v2619_v0  ;;  %2262 = vmatpush3.bf16.msra.mxu0 %v2553_v27  ;;  %v2569_v27 = vld [vmem:[%s3344_s1 + $0x108] sm:$0xff]  }
  0x31   :  { %2263 = vmatprep.subr.bf16.mxu0 %v2619_v0  ;;  %v2931_v26 = vor.u32 %v815_v25, %v812_v24  ;;  %v2590_v18 = vld [vmem:[%s3344_s1 + $0x1c8] sm:$0xff]  }
  0x32   :  { %2244 = vmatmul.mubr.bf16.gmra.mrb[8].mxu1 %v2765_v56  ;;  %2208 = vmatmul.mubr.bf16.gmra.mrb[8].mxu0 %v170_v32 }
  0x33   :  { %2247 = vmatprep.mubr.msk.bf16.mxu1 %vm2620_vm0, %v2619_v0  ;;  %2300 = vmatpush3.bf16.msra.mxu1 %v2558_v29  ;;  %v458_v29 = vrot.slane %v2765_v56, 1  ;;  %v2942_v32 = vsel %vm788_vm12, %v807_v1, %v2931_v26  ;;  %v2571_v56 = vld [vmem:[%s3344_s1 + $0x110] sm:$0xff]  }
  0x34   :  { %2301 = vmatprep.subr.bf16.mxu1 %v2619_v0  ;;  %2264 = vmatpush3.bf16.msra.mxu0 %v2555_v31  ;;  %v628_v31 = vsel %vm623_vm13, %v625_v6, %v627_v21  ;;  %v793_v6 = vshll.u32 %v2890_v60, 16  ;;  %v2588_v60 = vld [vmem:[%s3344_s1 + $0x1c0] sm:$0xff]  }
  0x35   :  { %2211 = vmatprep.mubr.msk.bf16.mxu0 %vm2620_vm0, %v2619_v0  ;;  %2265 = vmatprep.subr.bf16.mxu0 %v2619_v0  ;;  %v459_v34 = vsel %vm454_vm14, %v456_v9, %v458_v29  ;;  %v792_v9 = vrot.slane %v790_v5, 3 }
  0x36   :  { %v795_v13 = vrot.slane %v793_v6, 4 }
  0x37   :  { %2302 = vmatpush3.bf16.msra.mxu1 %v2560_v35  ;;  %v629_v35 = vrot.slane %v2803_v16, 3 }
  0x38   :  { %2303 = vmatprep.subr.bf16.mxu1 %v2619_v0  ;;  %2266 = vmatpush3.bf16.msra.mxu0 %v2559_v38  ;;  %v460_v38 = vrot.slane %v2803_v16, 1 }
  0x39   :  { %2267 = vmatprep.subr.bf16.mxu0 %v2619_v0 }
  0x3a   :  { %2248 = vmatmul.mubr.bf16.gmra.mrb[12].mxu1 %v2803_v16  ;;  %2212 = vmatmul.mubr.bf16.gmra.mrb[12].mxu0 %v178_v45  ;;  %v2578_v45 = vld [vmem:[%s3344_s1 + $0x160] sm:$0xff]   ;;  %v29_v16 = vld [vmem:[%s3345_s0 + $0x28] sm:$0x7]  ;;  %v461_v50 = vsel %vm454_vm14, %v458_v29, %v460_v38 }
  0x3b   :  { %2251 = vmatprep.mubr.msk.bf16.mxu1 %vm2620_vm0, %v2619_v0  ;;  %2304 = vmatpush3.bf16.msra.mxu1 %v2563_v39  ;;  %v630_v39 = vsel %vm623_vm13, %v627_v21, %v629_v35  ;;  %vm40_vm15 = vcmp.gt.bf16.partialorder %v29_v16, 0  ;;  %v51_v49 = vmul.bf16 1045249613, %v29_v16 }
  0x3c   :  { %2305 = vmatprep.subr.bf16.mxu1 %v2619_v0  ;;  %2215 = vmatprep.mubr.msk.bf16.mxu0 %vm2620_vm0, %v2619_v0 }
  0x3d   :  { %2268 = vmatpush3.bf16.msra.mxu0 %v2561_v41  ;;  %v2573_v41 = vld [vmem:[%s3344_s1 + $0x118] sm:$0xff]   ;;  %v62_v55 = vsel %vm40_vm15, %v29_v16, %v51_v49  ;;  %v2606_v16 = vld [vmem:[%s3344_s1 + $0x200] sm:$0xff]  }
  0x3e   :  { %2269 = vmatprep.subr.bf16.mxu0 %v2619_v0  ;;  %73 = vst [vmem:[#allocation2 + $0x28] sm:$0x7] %v62_v55 }
  0x3f   :  { %2306 = vmatpush3.bf16.msra.mxu1 %v2565_v48  ;;  %v2575_v48 = vld [vmem:[%s3344_s1 + $0x120] sm:$0xff]  }
  0x40   :  { %2363 = vmatprep.subr.bf16.mxu1 %v2619_v0 }
  0x41   :  { %2270 = vmatpush3.bf16.msra.mxu0 %v2564_v59  ;;  %v632_v59 = vsel %vm623_vm13, %v629_v35, %v631_v51 }
  0x42   :  { %2252 = vmatmul.mubr.bf16.gmra.mrb[16].mxu1 %v1854_v57  ;;  %2327 = vmatprep.subr.bf16.mxu0 %v2619_v0  ;;  %v462_v57 = vrot.slane %v2834_v28, 1  ;;  %v2581_v28 = vld [vmem:[%s3344_s1 + $0x130] sm:$0xff]  }
  0x43   :  { %2307 = vmatprep.mubr.msk.bf16.mxu1 %vm2620_vm0, %v2619_v0  ;;  %2216 = vmatmul.mubr.bf16.gmra.mrb[16].mxu0 %v181_v2  ;;  %v2584_v2 = vld [vmem:[%s3344_s1 + $0x178] sm:$0xff]  }
  0x44   :  { %2271 = vmatprep.mubr.msk.bf16.mxu0 %vm2620_vm0, %v2619_v0  ;;  %v463_v1 = vsel %vm454_vm14, %v460_v38, %v462_v57  ;;  %v1713_v38 = vld [vmem:[%s3346_s3 + $0x10] sm:$0xff] }
  0x45   :  { %1732 = vperm.xlu1 %2527, %v1713_v38  }
  0x4a   :  { %2308 = vmatmul.mubr.bf16.vlgmr.msra.gmra.mrb[20].mxu1 %v626_v14  ;;  %v796_v14 = vor.u32 %v795_v13, %v792_v9  ;;  %v1717_v13 = vld [vmem:[%s3346_s3 + $0x30] sm:$0xff] }
  0x4b   :  { %2311 = vmatprep.mubr.msk.bf16.mxu1 %vm2620_vm0, %v2619_v0  ;;  %2364 = vmatpush3.bf16.msra.mxu1 %v2570_v15 }
  0x4c   :  { %2365 = vmatprep.subr.bf16.mxu1 %v2619_v0  ;;  %2272 = vmatmul.mubr.bf16.vlgmr.msra.gmra.mrb[20].mxu0 %v457_v20  ;;  %v800_v15 = vsel %vm788_vm12, %v796_v14, %v2787_v7  ;;  %v2594_v7 = vld [vmem:[%s3344_s1 + $0x1d8] sm:$0xff]   ;;  %v2599_v20 = vld [vmem:[%s3344_s1 + $0x1b0] sm:$0xff]  }
  0x4d   :  { %2328 = vmatpush3.bf16.msra.mxu0 %v2568_v46  ;;  %2275 = vmatprep.mubr.msk.bf16.mxu0 %vm2620_vm0, %v2619_v0  ;;  %v3088_v46 = vld [vmem:[#allocation2 + $0x8] sm:$0xf]  ;;  %v2609_v14 = vld [vmem:[%s3344_s1 + $0x210] sm:$0xff]  }
  0x4e   :  { %2329 = vmatprep.subr.bf16.mxu0 %v2619_v0  ;;  %v3098_v4 = vcombine.low %v1108_v19, %v3088_v46  ;;  %v1117_v19 = vld [vmem:[#allocation2 + $0x28] sm:$0x3] }
  0x4f   :  { %2366 = vmatpush3.bf16.msra.mxu1 %v2572_v22 }
  0x50   :  { %2367 = vmatprep.subr.bf16.mxu1 %v2619_v0  ;;  %v1327_v21 = vshrl.u32 %v3098_v4, 16  ;;  %v1330_v22 = vshll.u32 %v3098_v4, 16 }
  0x51   :  { %2330 = vmatpush3.bf16.msra.mxu0 %v2569_v27 }
  0x52   :  { %2312 = vmatmul.mubr.bf16.gmra.mrb[24].mxu1 %v628_v31  ;;  %2331 = vmatprep.subr.bf16.mxu0 %v2619_v0  ;;  %v1329_v27 = vrot.slane %v1327_v21, 2  ;;  %v1332_v29 = vrot.slane %v1330_v22, 3 }
  0x53   :  { %2315 = vmatprep.mubr.msk.bf16.mxu1 %vm2620_vm0, %v2619_v0  ;;  %2368 = vmatpush3.bf16.msra.mxu1 %v2574_v33 }
  0x54   :  { %2369 = vmatprep.subr.bf16.mxu1 %v2619_v0  ;;  %2276 = vmatmul.mubr.bf16.gmra.mrb[24].mxu0 %v459_v34  ;;  %v3132_v34 = vld [vmem:[#allocation2 + $0x14] sm:$0xff]  }
  0x55   :  { %2332 = vmatpush3.bf16.msra.mxu0 %v2571_v56  ;;  %2279 = vmatprep.mubr.msk.bf16.mxu0 %vm2620_vm0, %v2619_v0  ;;  %v1333_v56 = vor.u32 %v1332_v29, %v1329_v27  ;;  %v1347_v37 = vshll.u32 %v3132_v34, 16 }
  0x56   :  { %2333 = vmatprep.subr.bf16.mxu0 %v2619_v0 }
  0x57   :  { %2370 = vmatpush3.bf16.msra.mxu1 %v2576_v36  ;;  %v1344_v36 = vshrl.u32 %v3132_v34, 16  ;;  %v1349_v49 = vrot.slane %v1347_v37, 3 }
  0x58   :  { %2371 = vmatprep.subr.bf16.mxu1 %v2619_v0 }
  0x59   :  { %2334 = vmatpush3.bf16.msra.mxu0 %v2573_v41  ;;  %v1161_v41 = vrot.slane %v3098_v4, 2 }
  0x5a   :  { %2316 = vmatmul.mubr.bf16.gmra.mrb[28].mxu1 %v630_v39  ;;  %2335 = vmatprep.subr.bf16.mxu0 %v2619_v0  ;;  %v1712_v39 = vld [vmem:[%s3346_s3 + $0x8] sm:$0xff] }
  0x5b   :  { %2319 = vmatprep.mubr.msk.bf16.mxu1 %vm2620_vm0, %v2619_v0  ;;  %2372 = vmatpush3.bf16.msra.mxu1 %v2578_v45 }
  0x5c   :  { %2373 = vmatprep.subr.bf16.mxu1 %v2619_v0  ;;  %2280 = vmatmul.mubr.bf16.gmra.mrb[28].mxu0 %v461_v50  ;;  %v3159_v50 = vld [vmem:[#allocation2 + $0x1c] sm:$0xff]  }
  0x5d   :  { %2336 = vmatpush3.bf16.msra.mxu0 %v2575_v48  ;;  %2283 = vmatprep.mubr.msk.bf16.mxu0 %vm2620_vm0, %v2619_v0  ;;  %v1346_v48 = vrot.slane %v1344_v36, 2  ;;  %v1530_v27 = vrot.slane %v3159_v50, 3 }
  0x5e   :  { %2337 = vmatprep.subr.bf16.mxu0 %v2619_v0 }
  0x5f   :  { %2374 = vmatpush3.bf16.msra.mxu1 %v2580_v54  ;;  %v1350_v55 = vor.u32 %v1349_v49, %v1346_v48 }
  0x60   :  { %2375 = vmatprep.subr.bf16.mxu1 %v2619_v0 }
  0x61   :  { %2338 = vmatpush3.bf16.msra.mxu0 %v2579_v62  ;;  %v2607_v62 = vld [vmem:[%s3344_s1 + $0x208] sm:$0xff]  }
  0x62   :  { %2320 = vmatmul.mubr.bf16.gmra.mrb[32].mxu1 %v632_v59  ;;  %2339 = vmatprep.subr.bf16.mxu0 %v2619_v0  ;;  %v1356_v59 = vshll.u32 %v3159_v50, 16 }
  0x63   :  { %2323 = vmatprep.mubr.msk.bf16.mxu1 %vm2620_vm0, %v2619_v0  ;;  %2376 = vmatpush3.bf16.msra.mxu1 %v2582_v63  ;;  %v1116_v63 = vld [vmem:[#allocation2 + $0x24] sm:$0xf] }
  0x64   :  { %2377 = vmatprep.subr.bf16.mxu1 %v2619_v0  ;;  %2284 = vmatmul.mubr.bf16.gmra.mrb[32].mxu0 %v463_v1  ;;  %v1304_v1 = vld [vmem:[#allocation2 + $0x28] sm:$0x7]  ;;  %v1358_v6 = vrot.slane %v1356_v59, 3  ;;  %v1988_v4 = vcombine.low %v1116_v63, %v1117_v19 }
  0x65   :  { %2287 = vmatprep.mubr.msk.bf16.mxu0 %vm2620_vm0, %v2619_v0  ;;  %2340 = vmatpush3.bf16.msra.mxu0 %v2581_v28  ;;  %v1164_v28 = vrot.slane %v3132_v34, 2  ;;  %v3183_v9 = vcombine.low %v1116_v63, %v1304_v1 }
  0x66   :  { %2341 = vmatprep.subr.bf16.mxu0 %v2619_v0  ;;  %v1168_v21 = vrot.slane %v1988_v4, 2 }
  0x67   :  { %2378 = vmatpush3.bf16.msra.mxu1 %v2584_v2  ;;  %v1716_v2 = vld [vmem:[%s3346_s3 + $0x28] sm:$0xff]  ;;  %v1532_v29 = vrot.slane %v3183_v9, 3 }
  0x68   :  { %2435 = vmatprep.subr.bf16.mxu1 %v2619_v0 }
  0x69   :  { %2342 = vmatpush3.bf16.msra.mxu0 %v2583_v3  ;;  %v1533_v10 = vsel %vm623_vm13, %v1530_v27, %v1532_v29 }
  0x6a   :  { %2324 = vmatmul.mubr.bf16.gmra.mrb[36].mxu1 %v631_v51  ;;  %2399 = vmatprep.subr.bf16.mxu0 %v2619_v0  ;;  %v1715_v51 = vld [vmem:[%s3346_s3 + $0x20] sm:$0xff] }
  0x6b   :  { %2379 = vmatprep.mubr.msk.bf16.mxu1 %vm2620_vm0, %v2619_v0 }
  0x6c   :  { %2288 = vmatmul.mubr.bf16.gmra.mrb[36].mxu0 %v462_v57  ;;  %v1353_v57 = vshrl.u32 %v3159_v50, 16 }
  0x6d   :  { %2343 = vmatprep.mubr.msk.bf16.mxu0 %vm2620_vm0, %v2619_v0 }
  0x6e   :  { %v1355_v5 = vrot.slane %v1353_v57, 2 }
  0x72   :  { %2380 = vmatmul.mubr.bf16.vlgmr.msra.gmra.mrb[40].mxu1 %v1955_v47  ;;  %v2589_v47 = vld [vmem:[%s3344_s1 + $0x190] sm:$0xff]  }
  0x73   :  { %2383 = vmatprep.mubr.msk.bf16.mxu1 %vm2620_vm0, %v2619_v0  ;;  %2436 = vmatpush3.bf16.msra.mxu1 %v2588_v60  ;;  %v1718_v60 = vld [vmem:[%s3346_s3 + $0x38] sm:$0xff] }
  0x74   :  { %2437 = vmatprep.subr.bf16.mxu1 %v2619_v0  ;;  %2344 = vmatmul.mubr.bf16.vlgmr.msra.gmra.mrb[40].mxu0 %v800_v15 }
  0x75   :  { %2400 = vmatpush3.bf16.msra.mxu0 %v2586_v17  ;;  %2347 = vmatprep.mubr.msk.bf16.mxu0 %vm2620_vm0, %v2619_v0  ;;  %v1359_v17 = vor.u32 %v1358_v6, %v1355_v5 }
  0x76   :  { %2401 = vmatprep.subr.bf16.mxu0 %v2619_v0 }
  0x77   :  { %2438 = vmatpush3.bf16.msra.mxu1 %v2590_v18  ;;  %v1362_v18 = vshrl.u32 %v3183_v9, 16 }
  0x78   :  { %2439 = vmatprep.subr.bf16.mxu1 %v2619_v0 }
  0x79   :  { %2402 = vmatpush3.bf16.msra.mxu0 %v2587_v40  ;;  %v1365_v40 = vshll.u32 %v3183_v9, 16 }
  0x7a   :  { %2384 = vmatmul.mubr.bf16.gmra.mrb[44].mxu1 %v1956_v58  ;;  %2403 = vmatprep.subr.bf16.mxu0 %v2619_v0  ;;  %v2593_v58 = vld [vmem:[%s3344_s1 + $0x1a0] sm:$0xff]  }
  0x7b   :  { %2387 = vmatprep.mubr.msk.bf16.mxu1 %vm2620_vm0, %v2619_v0  ;;  %2440 = vmatpush3.bf16.msra.mxu1 %v2592_v42  ;;  %v1719_v42 = vld [vmem:[%s3346_s3 + $0x40] sm:$0xff] }
  0x7c   :  { %2441 = vmatprep.subr.bf16.mxu1 %v2619_v0  ;;  %2348 = vmatmul.mubr.bf16.gmra.mrb[44].mxu0 %v2894_v61  ;;  %v2598_v61 = vld [vmem:[%s3344_s1 + $0x1e8] sm:$0xff]  }
  0x7d   :  { %2404 = vmatpush3.bf16.msra.mxu0 %v2589_v47  ;;  %2351 = vmatprep.mubr.msk.bf16.mxu0 %vm2620_vm0, %v2619_v0  ;;  %v2611_v47 = vld [vmem:[%s3344_s1 + $0x218] sm:$0xff]  }
  0x7e   :  { %2405 = vmatprep.subr.bf16.mxu0 %v2619_v0 }
  0x7f   :  { %2442 = vmatpush3.bf16.msra.mxu1 %v2594_v7  ;;  %v1166_v7 = vrot.slane %v3159_v50, 2 }
  0x80   :  { %2443 = vmatprep.subr.bf16.mxu1 %v2619_v0 }
  0x81   :  { %2406 = vmatpush3.bf16.msra.mxu0 %v2591_v43  ;;  %v1360_v43 = vsel %vm1325_vm1, %v1350_v55, %v1359_v17 }
  0x82   :  { %2388 = vmatmul.mubr.bf16.gmra.mrb[48].mxu1 %v1957_v12  ;;  %2407 = vmatprep.subr.bf16.mxu0 %v2619_v0  ;;  %v3100_v12 = vld [vmem:[#allocation2 + $0xc] sm:$0xff]  }
  0x83   :  { %2391 = vmatprep.mubr.msk.bf16.mxu1 %vm2620_vm0, %v2619_v0  ;;  %2444 = vmatpush3.bf16.msra.mxu1 %v2596_v52  ;;  %v1335_v24 = vshrl.u32 %v3100_v12, 16  ;;  %v1338_v25 = vshll.u32 %v3100_v12, 16  ;;  %v1162_v44 = vrot.slane %v3100_v12, 2  ;;  %v1364_v52 = vrot.slane %v1362_v18, 2 }
  0x84   :  { %2445 = vmatprep.subr.bf16.mxu1 %v2619_v0  ;;  %2352 = vmatmul.mubr.bf16.gmra.mrb[48].mxu0 %v2906_v8  ;;  %v2601_v8 = vld [vmem:[%s3344_s1 + $0x1f0] sm:$0xff]  }
  0x85   :  { %2408 = vmatpush3.bf16.msra.mxu0 %v2593_v58  ;;  %2355 = vmatprep.mubr.msk.bf16.mxu0 %vm2620_vm0, %v2619_v0  ;;  %v1337_v31 = vrot.slane %v1335_v24, 2  ;;  %v1340_v33 = vrot.slane %v1338_v25, 3  ;;  %v1163_v54 = vsel %vm1160_vm2, %v1161_v41, %v1162_v44  ;;  %v1165_v15 = vsel %vm1160_vm2, %v1162_v44, %v1164_v28  ;;  %v2616_v24 = vld [vmem:[%s3344_s1 + $0x230] sm:$0xff]  }
  0x86   :  { %2409 = vmatprep.subr.bf16.mxu0 %v2619_v0  ;;  %v1367_v58 = vrot.slane %v1365_v40, 3  ;;  %v1169_v25 = vsel %vm1160_vm2, %v1166_v7, %v1168_v21 }
  0x87   :  { %2446 = vmatpush3.bf16.msra.mxu1 %v2598_v61  ;;  %v1341_v35 = vor.u32 %v1340_v33, %v1337_v31  ;;  %v2612_v61 = vld [vmem:[%s3344_s1 + $0x220] sm:$0xff]   ;;  %v1526_v33 = vrot.slane %v3100_v12, 3 }
  0x88   :  { %2447 = vmatprep.subr.bf16.mxu1 %v2619_v0 }
  0x89   :  { %2410 = vmatpush3.bf16.msra.mxu0 %v2597_v53  ;;  %v1342_v45 = vsel %vm1325_vm1, %v1333_v56, %v1341_v35  ;;  %v1351_v3 = vsel %vm1325_vm1, %v1341_v35, %v1350_v55  ;;  %v1167_v53 = vsel %vm1160_vm2, %v1164_v28, %v1166_v7 }
  0x8a   :  { %2392 = vmatmul.mubr.bf16.gmra.mrb[52].mxu1 %v1958_v30  ;;  %2411 = vmatprep.subr.bf16.mxu0 %v2619_v0  ;;  %v2602_v30 = vld [vmem:[%s3344_s1 + $0x1b8] sm:$0xff]  }
  0x8b   :  { %2395 = vmatprep.mubr.msk.bf16.mxu1 %vm2620_vm0, %v2619_v0  ;;  %2448 = vmatpush3.bf16.msra.mxu1 %v2601_v8  ;;  %v1368_v8 = vor.u32 %v1367_v58, %v1364_v52 }
  0x8c   :  { %2449 = vmatprep.subr.bf16.mxu1 %v2619_v0  ;;  %2356 = vmatmul.mubr.bf16.gmra.mrb[52].mxu0 %v2942_v32  ;;  %v1711_v32 = vld [vmem:[%s3346_s3] sm:$0xff] }
  0x8d   :  { %2359 = vmatprep.mubr.msk.bf16.mxu0 %vm2620_vm0, %v2619_v0  ;;  %2412 = vmatpush3.bf16.msra.mxu0 %v2599_v20  ;;  %v2615_v20 = vld [vmem:[%s3344_s1 + $0x228] sm:$0xff]   ;;  %v1369_v22 = vsel %vm1325_vm1, %v1359_v17, %v1368_v8 }
  0x8e   :  { %2413 = vmatprep.subr.bf16.mxu0 %v2619_v0  ;;  %1722 = vperm.xlu0 %2526, %v1711_v32  }
  0x8f   :  { %2450 = vmatpush3.bf16.msra.mxu1 %v2603_v11  ;;  %v2617_v11 = vld [vmem:[%s3344_s1 + $0x238] sm:$0xff]  }
  0x90   :  { %2507 = vmatprep.subr.bf16.mxu1 %v2619_v0 }
  0x91   :  { %2414 = vmatpush3.bf16.msra.mxu0 %v2602_v30 }
  0x92   :  { %2396 = vmatmul.mubr.bf16.gmra.mrb[56].mxu1 %v1959_v23  ;;  %2471 = vmatprep.subr.bf16.mxu0 %v2619_v0  ;;  %v1504_v23 = vld [vmem:[#allocation2 + $0x4] sm:$0x8] }
  0x93   :  { %2451 = vmatprep.mubr.msk.bf16.mxu1 %vm2620_vm0, %v2619_v0  ;;  %1727 = vperm.xlu0 %2526, %v1712_v39   ;;  %v2038_v30 = vcombine.low %v1504_v23, %v3088_v46  ;;  %v1528_v46 = vrot.slane %v3132_v34, 3 }
  0x94   :  { %2360 = vmatmul.mubr.bf16.gmra.mrb[56].mxu0 %v2931_v26  ;;  %v1714_v26 = vld [vmem:[%s3346_s3 + $0x18] sm:$0xff] }
  0x95   :  { %2415 = vmatprep.mubr.msk.bf16.mxu0 %vm2620_vm0, %v2619_v0  ;;  %1737 = vperm.xlu1 %2527, %v1714_v26   ;;  %v1525_v31 = vrot.slane %v2038_v30, 3  ;;  %v1529_v56 = vsel %vm623_vm13, %v1526_v33, %v1528_v46  ;;  %v1531_v12 = vsel %vm623_vm13, %v1528_v46, %v1530_v27 }
  0x97   :  { %1742 = vperm.xlu0 %2526, %v1715_v51   ;;  %v1527_v32 = vsel %vm623_vm13, %v1525_v31, %v1526_v33 }
  0x99   :  { %1747 = vperm.xlu1 %2527, %v1716_v2  }
  0x9a   :  { %2452 = vmatmul.mubr.bf16.vlgmr.msra.gmra.mrb[60].mxu1 %v1342_v45 }
  0x9b   :  { %2455 = vmatprep.mubr.msk.bf16.mxu1 %vm2620_vm0, %v2619_v0  ;;  %2515 = vmatpush3.bf16.msra.mxu1 %v2606_v16 }
  0x9c   :  { %2508 = vmatprep.subr.bf16.mxu1 %v2619_v0  ;;  %2416 = vmatmul.mubr.bf16.vlgmr.msra.gmra.mrb[60].mxu0 %v1163_v54 }
  0x9d   :  { %2472 = vmatpush3.bf16.msra.mxu0 %v2606_v16  ;;  %2419 = vmatprep.mubr.msk.bf16.mxu0 %vm2620_vm0, %v2619_v0 }
  0x9e   :  { %2473 = vmatprep.subr.bf16.mxu0 %v2619_v0  ;;  %1752 = vperm.xlu0 %2526, %v1717_v13  }
  0x9f   :  { %2516 = vmatpush3.bf16.msra.mxu1 %v2607_v62  ;;  %1757 = vperm.xlu1 %2527, %v1718_v60  }
  0xa0   :  { %2509 = vmatprep.subr.bf16.mxu1 %v2619_v0 }
  0xa1   :  { %2474 = vmatpush3.bf16.msra.mxu0 %v2607_v62 }
  0xa2   :  { %2456 = vmatmul.mubr.bf16.gmra.mrb[64].mxu1 %v1351_v3  ;;  %2475 = vmatprep.subr.bf16.mxu0 %v2619_v0 }
  0xa3   :  { %2459 = vmatprep.mubr.msk.bf16.mxu1 %vm2620_vm0, %v2619_v0  ;;  %2517 = vmatpush3.bf16.msra.mxu1 %v2609_v14 }
  0xa4   :  { %2510 = vmatprep.subr.bf16.mxu1 %v2619_v0  ;;  %2420 = vmatmul.mubr.bf16.gmra.mrb[64].mxu0 %v1165_v15 }
  0xa5   :  { %1762 = vperm.xlu0 %2526, %v1719_v42   ;;  %2476 = vmatpush3.bf16.msra.mxu0 %v2609_v14 }
  0xa6   :  { %2423 = vmatprep.mubr.msk.bf16.mxu0 %vm2620_vm0, %v2619_v0  ;;  %2477 = vmatprep.subr.bf16.mxu0 %v2619_v0 }
  0xa7   :  { %2518 = vmatpush3.bf16.msra.mxu1 %v2611_v47 }
  0xa8   :  { %2511 = vmatprep.subr.bf16.mxu1 %v2619_v0 }
  0xa9   :  { %2478 = vmatpush3.bf16.msra.mxu0 %v2611_v47 }
  0xaa   :  { %2460 = vmatmul.mubr.bf16.gmra.mrb[68].mxu1 %v1360_v43  ;;  %2479 = vmatprep.subr.bf16.mxu0 %v2619_v0 }
  0xab   :  { %2463 = vmatprep.mubr.msk.bf16.mxu1 %vm2620_vm0, %v2619_v0  ;;  %2519 = vmatpush3.bf16.msra.mxu1 %v2612_v61 }
  0xac   :  { %2512 = vmatprep.subr.bf16.mxu1 %v2619_v0  ;;  %2424 = vmatmul.mubr.bf16.gmra.mrb[68].mxu0 %v1167_v53 }
  0xad   :  { %2480 = vmatpush3.bf16.msra.mxu0 %v2612_v61  ;;  %2427 = vmatprep.mubr.msk.bf16.mxu0 %vm2620_vm0, %v2619_v0 }
  0xae   :  { %2481 = vmatprep.subr.bf16.mxu0 %v2619_v0 }
  0xaf   :  { %2520 = vmatpush3.bf16.msra.mxu1 %v2615_v20 }
  0xb0   :  { %2513 = vmatprep.subr.bf16.mxu1 %v2619_v0 }
  0xb1   :  { %2482 = vmatpush3.bf16.msra.mxu0 %v2615_v20 }
  0xb2   :  { %2464 = vmatmul.mubr.bf16.gmra.mrb[72].mxu1 %v1369_v22  ;;  %2483 = vmatprep.subr.bf16.mxu0 %v2619_v0 }
  0xb3   :  { %2467 = vmatprep.mubr.msk.bf16.mxu1 %vm2620_vm0, %v2619_v0  ;;  %2521 = vmatpush3.bf16.msra.mxu1 %v2616_v24 }
  0xb4   :  { %2514 = vmatprep.subr.bf16.mxu1 %v2619_v0  ;;  %2428 = vmatmul.mubr.bf16.gmra.mrb[72].mxu0 %v1169_v25 }
  0xb5   :  { %2431 = vmatprep.mubr.msk.bf16.mxu0 %vm2620_vm0, %v2619_v0  ;;  %2484 = vmatpush3.bf16.msra.mxu0 %v2616_v24 }
  0xb6   :  { %2485 = vmatprep.subr.bf16.mxu0 %v2619_v0 }
  0xb7   :  { %2522 = vmatpush3.bf16.msra.mxu1 %v2617_v11 }
  0xb9   :  { %2486 = vmatpush3.bf16.msra.mxu0 %v2617_v11 }
  0xba   :  { %2468 = vmatmul.mubr.bf16.gmra.mrb[76].mxu1 %v1368_v8 }
  0xbb   :  { %2499 = vmatprep.mubr.msk.bf16.mxu1 %vm2620_vm0, %v2619_v0 }
  0xbc   :  { %2432 = vmatmul.mubr.bf16.gmra.mrb[76].mxu0 %v1168_v21 }
  0xbd   :  { %2487 = vmatprep.mubr.msk.bf16.mxu0 %vm2620_vm0, %v2619_v0 }
  0xc2   :  { %2500 = vmatmul.mubr.bf16.vlgmr.msra.gmra.mrb[80].mxu1 %v1533_v10 }
  0xc3   :  { %2503 = vmatprep.mubr.msk.bf16.mxu1 %vm2620_vm0, %v2619_v0 }
  0xc4   :  { %2488 = vmatmul.mubr.bf16.vlgmr.msra.gmra.mrb[80].mxu0 %v1527_v32 }
  0xc5   :  { %2491 = vmatprep.mubr.msk.bf16.mxu0 %vm2620_vm0, %v2619_v0 }
  0xca   :  { %2504 = vmatmul.mubr.bf16.gmra.mrb[84].mxu1 %v1532_v29 }
  0xcc   :  { %2492 = vmatmul.mubr.bf16.gmra.mrb[84].mxu0 %v1529_v56 }
  0xcd   :  { %2495 = vmatprep.mubr.msk.bf16.mxu0 %vm2620_vm0, %v2619_v0 }
  0xd4   :  { %2496 = vmatmul.mubr.bf16.gmra.mrb[88].mxu0 %v1531_v12 }
  0xf5   :  { %v395_v35 = vpop.f32.mrb[0].mxu1  ;;  %v269_v39 = vpop.f32.mrb[0].mxu0 }
  0xf6   :  { %v2237_v36 = vpop.f32.mrb[1].mxu1  ;;  %v396_v41 = vadd.f32 %v395_v35, %v269_v39  ;;  %v2201_v44 = vpop.f32.mrb[1].mxu0 }
  0xf7   :  { %v398_v37 = vpop.f32.mrb[2].mxu1  ;;  %v272_v45 = vpop.f32.mrb[2].mxu0 }
  0xf8   :  { %v2238_v38 = vpop.f32.mrb[3].mxu1  ;;  %v399_v16 = vadd.f32 %v398_v37, %v272_v45  ;;  %v2202_v34 = vpop.f32.mrb[3].mxu0 }
  0xfd   :  { %v403_v48 = vpop.f32.mrb[4].mxu1  ;;  %v277_v51 = vpop.f32.mrb[4].mxu0 }
  0xfe   :  { %v2241_v49 = vpop.f32.mrb[5].mxu1  ;;  %v404_v54 = vadd.f32 %v403_v48, %v277_v51  ;;  %v2205_v0 = vpop.f32.mrb[5].mxu0 }
  0xff   :  { %v406_v50 = vpop.f32.mrb[6].mxu1  ;;  %v280_v55 = vpop.f32.mrb[6].mxu0 }
 0x100   :  { %v2242_v26 = vpop.f32.mrb[7].mxu1  ;;  %v407_v57 = vadd.f32 %v406_v50, %v280_v55  ;;  %v2206_v59 = vpop.f32.mrb[7].mxu0 }
 0x105   :  { %v411_v62 = vpop.f32.mrb[8].mxu1  ;;  %v285_v2 = vpop.f32.mrb[8].mxu0 }
 0x106   :  { %v2245_v63 = vpop.f32.mrb[9].mxu1  ;;  %v412_v3 = vadd.f32 %v411_v62, %v285_v2  ;;  %v2209_v5 = vpop.f32.mrb[9].mxu0 }
 0x107   :  { %v414_v1 = vpop.f32.mrb[10].mxu1  ;;  %v288_v6 = vpop.f32.mrb[10].mxu0 }
 0x108   :  { %v2246_v28 = vpop.f32.mrb[11].mxu1  ;;  %v415_v9 = vadd.f32 %v414_v1, %v288_v6  ;;  %v2210_v13 = vpop.f32.mrb[11].mxu0 }
 0x10d   :  { %v419_v14 = vpop.f32.mrb[12].mxu1  ;;  %v293_v18 = vpop.f32.mrb[12].mxu0 }
 0x10e   :  { %v2249_v60 = vpop.f32.mrb[13].mxu1  ;;  %v420_v40 = vadd.f32 %v419_v14, %v293_v18  ;;  %v2213_v42 = vpop.f32.mrb[13].mxu0 }
 0x10f   :  { %v422_v15 = vpop.f32.mrb[14].mxu1  ;;  %v296_v47 = vpop.f32.mrb[14].mxu0 }
 0x110   :  { %v2250_v17 = vpop.f32.mrb[15].mxu1  ;;  %v423_v7 = vadd.f32 %v422_v15, %v296_v47  ;;  %v2214_v43 = vpop.f32.mrb[15].mxu0 }
 0x115   :  { %v427_v52 = vpop.f32.mrb[16].mxu1 }
 0x116   :  { %v2253_v58 = vpop.f32.mrb[17].mxu1  ;;  %v301_v53 = vpop.f32.mrb[16].mxu0 }
 0x117   :  { %v430_v61 = vpop.f32.mrb[18].mxu1  ;;  %v2217_v4 = vpop.f32.mrb[17].mxu0  ;;  %v428_v8 = vadd.f32 %v427_v52, %v301_v53 }
 0x118   :  { %v2254_v19 = vpop.f32.mrb[19].mxu1  ;;  %v304_v20 = vpop.f32.mrb[18].mxu0 }
 0x119   :  { %v2218_v21 = vpop.f32.mrb[19].mxu0 }
 0x11d   :  { %v720_v22 = vpop.f32.mrb[20].mxu1 }
 0x11e   :  { %v2309_v24 = vpop.f32.mrb[21].mxu1 }
 0x11f   :  { %v723_v25 = vpop.f32.mrb[22].mxu1  ;;  %v551_v23 = vpop.f32.mrb[20].mxu0 }
 0x120   :  { %v2310_v11 = vpop.f32.mrb[23].mxu1  ;;  %v589_v30 = vadd.f32 %v551_v23, %v396_v41  ;;  %v2273_v27 = vpop.f32.mrb[21].mxu0 }
 0x121   :  { %v554_v29 = vpop.f32.mrb[22].mxu0 }
 0x122   :  { %v590_v31 = vadd.f32 %v554_v29, %v399_v16  ;;  %v758_v33 = vadd.f32 %v720_v22, %v589_v30  ;;  %v2274_v10 = vpop.f32.mrb[23].mxu0 }
 0x124   :  { %v759_v46 = vadd.f32 %v723_v25, %v590_v31 }
 0x125   :  { %v728_v32 = vpop.f32.mrb[24].mxu1 }
 0x126   :  { %v2313_v56 = vpop.f32.mrb[25].mxu1 }
 0x127   :  { %v731_v12 = vpop.f32.mrb[26].mxu1  ;;  %v559_v36 = vpop.f32.mrb[24].mxu0 }
 0x128   :  { %v2314_v35 = vpop.f32.mrb[27].mxu1  ;;  %v591_v37 = vadd.f32 %v559_v36, %v404_v54  ;;  %v2277_v38 = vpop.f32.mrb[25].mxu0 }
 0x129   :  { %v562_v39 = vpop.f32.mrb[26].mxu0 }
 0x12a   :  { %v592_v44 = vadd.f32 %v562_v39, %v407_v57  ;;  %v760_v45 = vadd.f32 %v728_v32, %v591_v37  ;;  %v2278_v34 = vpop.f32.mrb[27].mxu0 }
 0x12c   :  { %v761_v49 = vadd.f32 %v731_v12, %v592_v44 }
 0x12d   :  { %v736_v48 = vpop.f32.mrb[28].mxu1 }
 0x12e   :  { %v2317_v41 = vpop.f32.mrb[29].mxu1 }
 0x12f   :  { %v739_v50 = vpop.f32.mrb[30].mxu1  ;;  %v567_v16 = vpop.f32.mrb[28].mxu0 }
 0x130   :  { %v2318_v26 = vpop.f32.mrb[31].mxu1  ;;  %v593_v51 = vadd.f32 %v567_v16, %v412_v3  ;;  %v2281_v0 = vpop.f32.mrb[29].mxu0 }
 0x131   :  { %v570_v55 = vpop.f32.mrb[30].mxu0 }
 0x132   :  { %v594_v59 = vadd.f32 %v570_v55, %v415_v9  ;;  %v762_v62 = vadd.f32 %v736_v48, %v593_v51  ;;  %v2282_v63 = vpop.f32.mrb[31].mxu0 }
 0x134   :  { %v763_v28 = vadd.f32 %v739_v50, %v594_v59 }
 0x135   :  { %v744_v1 = vpop.f32.mrb[32].mxu1 }
 0x136   :  { %v2321_v54 = vpop.f32.mrb[33].mxu1 }
 0x137   :  { %v747_v2 = vpop.f32.mrb[34].mxu1  ;;  %v575_v57 = vpop.f32.mrb[32].mxu0 }
 0x138   :  { %v2322_v5 = vpop.f32.mrb[35].mxu1  ;;  %v595_v6 = vadd.f32 %v575_v57, %v420_v40  ;;  %v2285_v13 = vpop.f32.mrb[33].mxu0 }
 0x139   :  { %v578_v14 = vpop.f32.mrb[34].mxu0 }
 0x13a   :  { %v596_v60 = vadd.f32 %v578_v14, %v423_v7  ;;  %v764_v15 = vadd.f32 %v744_v1, %v595_v6  ;;  %v2286_v17 = vpop.f32.mrb[35].mxu0 }
 0x13c   :  { %v765_v42 = vadd.f32 %v747_v2, %v596_v60 }
 0x13d   :  { %v752_v18 = vpop.f32.mrb[36].mxu1 }
 0x13e   :  { %v2325_v3 = vpop.f32.mrb[37].mxu1 }
 0x13f   :  { %v755_v47 = vpop.f32.mrb[38].mxu1  ;;  %v583_v9 = vpop.f32.mrb[36].mxu0 }
 0x140   :  { %v2326_v43 = vpop.f32.mrb[39].mxu1  ;;  %v597_v52 = vadd.f32 %v583_v9, %v428_v8  ;;  %v2289_v58 = vpop.f32.mrb[37].mxu0 }
 0x141   :  { %v586_v61 = vpop.f32.mrb[38].mxu0 }
 0x142   :  { %v766_v19 = vadd.f32 %v752_v18, %v597_v52  ;;  %v2290_v53 = vpop.f32.mrb[39].mxu0 }
 0x145   :  { %v1061_v4 = vpop.f32.mrb[40].mxu1 }
 0x146   :  { %v2381_v20 = vpop.f32.mrb[41].mxu1 }
 0x147   :  { %v1064_v21 = vpop.f32.mrb[42].mxu1  ;;  %v905_v22 = vpop.f32.mrb[40].mxu0 }
 0x148   :  { %v2382_v40 = vpop.f32.mrb[43].mxu1  ;;  %v943_v24 = vadd.f32 %v905_v22, %v758_v33  ;;  %v2345_v7 = vpop.f32.mrb[41].mxu0 }
 0x149   :  { %v908_v25 = vpop.f32.mrb[42].mxu0 }
 0x14a   :  { %v944_v11 = vadd.f32 %v908_v25, %v759_v46  ;;  %v1099_v23 = vadd.f32 %v1061_v4, %v943_v24  ;;  %v2346_v30 = vpop.f32.mrb[43].mxu0 }
 0x14c   :  { %v1100_v29 = vadd.f32 %v1064_v21, %v944_v11 }
 0x14d   :  { %v1069_v27 = vpop.f32.mrb[44].mxu1 }
 0x14e   :  { %v2385_v31 = vpop.f32.mrb[45].mxu1 }
 0x14f   :  { %v1072_v10 = vpop.f32.mrb[46].mxu1  ;;  %v913_v32 = vpop.f32.mrb[44].mxu0 }
 0x150   :  { %v2386_v8 = vpop.f32.mrb[47].mxu1  ;;  %v945_v56 = vadd.f32 %v913_v32, %v760_v45  ;;  %v2349_v12 = vpop.f32.mrb[45].mxu0 }
 0x151   :  { %v916_v35 = vpop.f32.mrb[46].mxu0 }
 0x152   :  { %v946_v36 = vadd.f32 %v916_v35, %v761_v49  ;;  %v1101_v37 = vadd.f32 %v1069_v27, %v945_v56  ;;  %v2350_v38 = vpop.f32.mrb[47].mxu0 }
 0x154   :  { %v1102_v44 = vadd.f32 %v1072_v10, %v946_v36 }
 0x155   :  { %v1077_v39 = vpop.f32.mrb[48].mxu1 }
 0x156   :  { %v2389_v33 = vpop.f32.mrb[49].mxu1 }
 0x157   :  { %v1080_v34 = vpop.f32.mrb[50].mxu1  ;;  %v921_v46 = vpop.f32.mrb[48].mxu0 }
 0x158   :  { %v2390_v48 = vpop.f32.mrb[51].mxu1  ;;  %v947_v41 = vadd.f32 %v921_v46, %v762_v62  ;;  %v2353_v50 = vpop.f32.mrb[49].mxu0 }
 0x159   :  { %v924_v26 = vpop.f32.mrb[50].mxu0 }
 0x15a   :  { %v948_v16 = vadd.f32 %v924_v26, %v763_v28  ;;  %v1103_v51 = vadd.f32 %v1077_v39, %v947_v41  ;;  %v2354_v0 = vpop.f32.mrb[51].mxu0 }
 0x15c   :  { %v1104_v59 = vadd.f32 %v1080_v34, %v948_v16 }
 0x15d   :  { %v1085_v55 = vpop.f32.mrb[52].mxu1 }
 0x15e   :  { %v2393_v45 = vpop.f32.mrb[53].mxu1 }
 0x15f   :  { %v1088_v63 = vpop.f32.mrb[54].mxu1  ;;  %v929_v49 = vpop.f32.mrb[52].mxu0 }
 0x160   :  { %v2394_v1 = vpop.f32.mrb[55].mxu1  ;;  %v949_v54 = vadd.f32 %v929_v49, %v764_v15  ;;  %v2357_v2 = vpop.f32.mrb[53].mxu0 }
 0x161   :  { %v932_v5 = vpop.f32.mrb[54].mxu0  ;;  %v1723_v1 = vpop.permute.xlu0 %1722 }
 0x162   :  { %v950_v57 = vadd.f32 %v932_v5, %v765_v42  ;;  %v1105_v6 = vadd.f32 %v1085_v55, %v949_v54  ;;  %v2358_v13 = vpop.f32.mrb[55].mxu0  ;;  %v3276_v5 = vpop.permute.xlu1 %1732 }
 0x164   :  { %v1106_v60 = vadd.f32 %v1088_v63, %v950_v57 }
 0x165   :  { %v1093_v14 = vpop.f32.mrb[56].mxu1 }
 0x166   :  { %v2397_v62 = vpop.f32.mrb[57].mxu1 }
 0x167   :  { %v1096_v17 = vpop.f32.mrb[58].mxu1  ;;  %v937_v28 = vpop.f32.mrb[56].mxu0 }
 0x168   :  { %v2398_v18 = vpop.f32.mrb[59].mxu1  ;;  %v951_v3 = vadd.f32 %v937_v28, %v766_v19  ;;  %v2361_v47 = vpop.f32.mrb[57].mxu0 }
 0x169   :  { %v940_v43 = vpop.f32.mrb[58].mxu0  ;;  %v1728_v62 = vpop.permute.xlu0 %1727 }
 0x16a   :  { %v1107_v9 = vadd.f32 %v1093_v14, %v951_v3  ;;  %v2362_v52 = vpop.f32.mrb[59].mxu0  ;;  %v3278_v47 = vpop.permute.xlu1 %1737 }
 0x16d   :  { %v1457_v58 = vpop.f32.mrb[60].mxu1 }
 0x16e   :  { %v2453_v61 = vpop.f32.mrb[61].mxu1 }
 0x16f   :  { %v1460_v53 = vpop.f32.mrb[62].mxu1  ;;  %v1257_v4 = vpop.f32.mrb[60].mxu0 }
 0x170   :  { %v2454_v15 = vpop.f32.mrb[63].mxu1  ;;  %v1295_v20 = vadd.f32 %v1257_v4, %v1099_v23  ;;  %v2417_v42 = vpop.f32.mrb[61].mxu0 }
 0x171   :  { %v1260_v21 = vpop.f32.mrb[62].mxu0  ;;  %v3285_v15 = vpop.permute.xlu0 %1742 }
 0x172   :  { %v1296_v40 = vadd.f32 %v1260_v21, %v1100_v29  ;;  %v3264_v22 = vadd.f32 %v1457_v58, %v1295_v20  ;;  %v2418_v24 = vpop.f32.mrb[63].mxu0  ;;  %v3288_v42 = vpop.permute.xlu1 %1747 }
 0x174   :  { %v3266_v25 = vadd.f32 %v1460_v53, %v1296_v40 }
 0x175   :  { %v1465_v7 = vpop.f32.mrb[64].mxu1 }
 0x176   :  { %v2457_v19 = vpop.f32.mrb[65].mxu1 }
 0x177   :  { %v1468_v11 = vpop.f32.mrb[66].mxu1  ;;  %v1265_v27 = vpop.f32.mrb[64].mxu0 }
 0x178   :  { %v2458_v30 = vpop.f32.mrb[67].mxu1  ;;  %v1297_v31 = vadd.f32 %v1265_v27, %v1101_v37  ;;  %v2421_v10 = vpop.f32.mrb[65].mxu0 }
 0x179   :  { %v1268_v8 = vpop.f32.mrb[66].mxu0 }
 0x17a   :  { %v1298_v32 = vadd.f32 %v1268_v8, %v1102_v44  ;;  %v3268_v56 = vadd.f32 %v1465_v7, %v1297_v31  ;;  %v2422_v23 = vpop.f32.mrb[67].mxu0  ;;  %v1753_v8 = vpop.permute.xlu0 %1752 }
 0x17c   :  { %v3270_v35 = vadd.f32 %v1468_v11, %v1298_v32 }
 0x17d   :  { %v1473_v12 = vpop.f32.mrb[68].mxu1 }
 0x17e   :  { %v2461_v29 = vpop.f32.mrb[69].mxu1 }
 0x17f   :  { %v1476_v36 = vpop.f32.mrb[70].mxu1  ;;  %v1273_v39 = vpop.f32.mrb[68].mxu0 }
 0x180   :  { %v2462_v38 = vpop.f32.mrb[71].mxu1  ;;  %v1299_v33 = vadd.f32 %v1273_v39, %v1103_v51  ;;  %v2425_v34 = vpop.f32.mrb[69].mxu0 }
 0x181   :  { %v1276_v48 = vpop.f32.mrb[70].mxu0  ;;  %v1758_v39 = vpop.permute.xlu1 %1757 }
 0x182   :  { %v1300_v46 = vadd.f32 %v1276_v48, %v1104_v59  ;;  %v3272_v41 = vadd.f32 %v1473_v12, %v1299_v33  ;;  %v2426_v37 = vpop.f32.mrb[71].mxu0 }
 0x184   :  { %v3274_v26 = vadd.f32 %v1476_v36, %v1300_v46 }
 0x185   :  { %v1481_v50 = vpop.f32.mrb[72].mxu1 }
 0x186   :  { %v2465_v44 = vpop.f32.mrb[73].mxu1 }
 0x187   :  { %v1484_v16 = vpop.f32.mrb[74].mxu1  ;;  %v1281_v55 = vpop.f32.mrb[72].mxu0 }
 0x188   :  { %v2466_v0 = vpop.f32.mrb[75].mxu1  ;;  %v1301_v45 = vadd.f32 %v1281_v55, %v1105_v6  ;;  %v2429_v63 = vpop.f32.mrb[73].mxu0 }
 0x189   :  { %v1284_v49 = vpop.f32.mrb[74].mxu0 }
 0x18a   :  { %v1302_v54 = vadd.f32 %v1284_v49, %v1106_v60  ;;  %v1501_v2 = vadd.f32 %v1481_v50, %v1301_v45  ;;  %v2430_v51 = vpop.f32.mrb[75].mxu0  ;;  %v3283_v60 = vld [vmem:[%s3347_s2] ss:$0 sm:$0xff] }
 0x18c   :  { %v1502_v57 = vadd.f32 %v1484_v16, %v1302_v54 }
 0x18d   :  { %v1489_v59 = vpop.f32.mrb[76].mxu1 }
 0x18e   :  { %v2469_v13 = vpop.f32.mrb[77].mxu1 }
 0x18f   :  { %v1492_v14 = vpop.f32.mrb[78].mxu1  ;;  %v1289_v18 = vpop.f32.mrb[76].mxu0 }
 0x190   :  { %v2470_v17 = vpop.f32.mrb[79].mxu1  ;;  %v1303_v28 = vadd.f32 %v1289_v18, %v1107_v9  ;;  %v2433_v3 = vpop.f32.mrb[77].mxu0 }
 0x191   :  { %v1292_v6 = vpop.f32.mrb[78].mxu0 }
 0x192   :  { %v1503_v43 = vadd.f32 %v1489_v59, %v1303_v28  ;;  %v2434_v52 = vpop.f32.mrb[79].mxu0 }
 0x195   :  { %v1645_v58 = vpop.f32.mrb[80].mxu1 }
 0x196   :  { %v1665_v61 = vadd.f32 %v1645_v58, %v1501_v2  ;;  %v2501_v53 = vpop.f32.mrb[81].mxu1 }
 0x197   :  { %v1648_v4 = vpop.f32.mrb[82].mxu1  ;;  %v1621_v40 = vpop.f32.mrb[80].mxu0 }
 0x198   :  { %v1681_v20 = vadd.f32 %v3283_v60, %v1665_v61  ;;  %v1666_v9 = vadd.f32 %v1648_v4, %v1502_v57  ;;  %v2502_v21 = vpop.f32.mrb[83].mxu1  ;;  %v1659_v24 = vadd.f32 %v1621_v40, %v3264_v22  ;;  %v2489_v7 = vpop.f32.mrb[81].mxu0 }
 0x199   :  { %v1624_v30 = vpop.f32.mrb[82].mxu0 }
 0x19a   :  { %v1682_v19 = vadd.f32 %v3283_v60, %v1666_v9  ;;  %vm1690_vm0 = vcmp.gt.f32.partialorder %v1681_v20, 0.0  ;;  %v1699_v11 = vmul.f32 0.2, %v1681_v20  ;;  %v1675_v27 = vadd.f32 %v3283_v60, %v1659_v24  ;;  %v2490_v10 = vpop.f32.mrb[83].mxu0 }
 0x19b   :  { %v1660_v31 = vadd.f32 %v1624_v30, %v3266_v25 }
 0x19c   :  { %v1708_v32 = vsel %vm1690_vm0, %v1681_v20, %v1699_v11  ;;  %vm1691_vm3 = vcmp.gt.f32.partialorder %v1682_v19, 0.0  ;;  %v1700_v29 = vmul.f32 0.2, %v1682_v19  ;;  %vm1684_vm5 = vcmp.gt.f32.partialorder %v1675_v27, 0.0 }
 0x19d   :  { %v1771_v23 = vmul.f32 %v1753_v8, %v1708_v32  ;;  %v1653_v12 = vpop.f32.mrb[84].mxu1  ;;  %v1693_v22 = vmul.f32 0.2, %v1675_v27  ;;  %v1676_v36 = vadd.f32 %v3283_v60, %v1660_v31 }
 0x19e   :  { %v1667_v38 = vadd.f32 %v1653_v12, %v1503_v43  ;;  %v2505_v33 = vpop.f32.mrb[85].mxu1  ;;  %v1709_v48 = vsel %vm1691_vm3, %v1682_v19, %v1700_v29 }
 0x19f   :  { %v2063_v34 = vpack.c.bf16 %v1771_v23, %v1771_v23  ;;  %v1656_v46 = vpop.f32.mrb[86].mxu1  ;;  %v1702_v37 = vsel %vm1684_vm5, %v1675_v27, %v1693_v22  ;;  %vm1685_vm6 = vcmp.gt.f32.partialorder %v1676_v36, 0.0  ;;  %v1694_v25 = vmul.f32 0.2, %v1676_v36  ;;  %v1629_v0 = vpop.f32.mrb[84].mxu0 }
 0x1a0   :  { %v1683_v50 = vadd.f32 %v3283_v60, %v1667_v38  ;;  %v2506_v44 = vpop.f32.mrb[87].mxu1  ;;  %v1765_v16 = vmul.f32 %v1723_v1, %v1702_v37  ;;  %v1772_v55 = vmul.f32 %v1758_v39, %v1709_v48  ;;  %v1661_v63 = vadd.f32 %v1629_v0, %v3268_v56  ;;  %v2493_v49 = vpop.f32.mrb[85].mxu0 }
 0x1a1   :  { %1818 = vst.msk [vmem:[%s3348_s4 + $0x18] sm:$0xf] %vm1811_vm4, %v2063_v34  ;;  %v1703_v45 = vsel %vm1685_vm6, %v1676_v36, %v1694_v25  ;;  %v1632_v57 = vpop.f32.mrb[86].mxu0  ;;  %v1763_v1 = vpop.permute.xlu0 %1762 }
 0x1a2   :  { %vm1692_vm7 = vcmp.gt.f32.partialorder %v1683_v50, 0.0  ;;  %v1701_v54 = vmul.f32 0.2, %v1683_v50  ;;  %v2057_v2 = vpack.c.bf16 %v1765_v16, %v1765_v16  ;;  %v1766_v51 = vmul.f32 %v1728_v62, %v1703_v45  ;;  %v2494_v18 = vpop.f32.mrb[87].mxu0 }
 0x1a3   :  { %v2064_v59 = vpack.c.bf16 %v1772_v55, %v1772_v55  ;;  %v1677_v13 = vadd.f32 %v3283_v60, %v1661_v63  ;;  %v1662_v17 = vadd.f32 %v1632_v57, %v3270_v35 }
 0x1a4   :  { %v1710_v14 = vsel %vm1692_vm7, %v1683_v50, %v1701_v54  ;;  %1812 = vst.msk [vmem:[%s3348_s4] sm:$0xf] %vm1811_vm4, %v2057_v2  ;;  %v2058_v56 = vpack.c.bf16 %v1766_v51, %v1766_v51 }
 0x1a5   :  { %1819 = vst.msk [vmem:[%s3348_s4 + $0x1c] sm:$0xf] %vm1811_vm4, %v2064_v59  ;;  %v1773_v62 = vmul.f32 %v1763_v1, %v1710_v14  ;;  %vm1686_vm8 = vcmp.gt.f32.partialorder %v1677_v13, 0.0  ;;  %v1695_v28 = vmul.f32 0.2, %v1677_v13  ;;  %v1678_v3 = vadd.f32 %v3283_v60, %v1662_v17 }
 0x1a6   :  { %1813 = vst.msk [vmem:[%s3348_s4 + $0x4] sm:$0xf] %vm1811_vm4, %v2058_v56 }
 0x1a7   :  { %v2065_v35 = vpack.c.bf16 %v1773_v62, %v1773_v62  ;;  %v1704_v6 = vsel %vm1686_vm8, %v1677_v13, %v1695_v28  ;;  %vm1687_vm9 = vcmp.gt.f32.partialorder %v1678_v3, 0.0  ;;  %v1696_v43 = vmul.f32 0.2, %v1678_v3  ;;  %v1637_v58 = vpop.f32.mrb[88].mxu0 }
 0x1a8   :  { %v1767_v52 = vmul.f32 %v3276_v5, %v1704_v6  ;;  %v1663_v53 = vadd.f32 %v1637_v58, %v3272_v41  ;;  %v2497_v4 = vpop.f32.mrb[89].mxu0 }
 0x1a9   :  { %1820 = vst.msk [vmem:[%s3348_s4 + $0x20] sm:$0xf] %vm1811_vm4, %v2065_v35  ;;  %v1705_v61 = vsel %vm1687_vm9, %v1678_v3, %v1696_v43  ;;  %v1640_v21 = vpop.f32.mrb[90].mxu0 }
 0x1aa   :  { %v2059_v20 = vpack.c.bf16 %v1767_v52, %v1767_v52  ;;  %v1768_v9 = vmul.f32 %v3278_v47, %v1705_v61  ;;  %v1679_v40 = vadd.f32 %v3283_v60, %v1663_v53  ;;  %v1664_v24 = vadd.f32 %v1640_v21, %v3274_v26  ;;  %v2498_v7 = vpop.f32.mrb[91].mxu0 }
 0x1ac   :  { %1814 = vst.msk [vmem:[%s3348_s4 + $0x8] sm:$0xf] %vm1811_vm4, %v2059_v20  ;;  %v2060_v5 = vpack.c.bf16 %v1768_v9, %v1768_v9  ;;  %vm1688_vm10 = vcmp.gt.f32.partialorder %v1679_v40, 0.0  ;;  %v1697_v19 = vmul.f32 0.2, %v1679_v40  ;;  %v1680_v41 = vadd.f32 %v3283_v60, %v1664_v24 }
 0x1ae   :  { %1815 = vst.msk [vmem:[%s3348_s4 + $0xc] sm:$0xf] %vm1811_vm4, %v2060_v5  ;;  %v1706_v47 = vsel %vm1688_vm10, %v1679_v40, %v1697_v19  ;;  %vm1689_vm11 = vcmp.gt.f32.partialorder %v1680_v41, 0.0  ;;  %v1698_v11 = vmul.f32 0.2, %v1680_v41 }
 0x1af   :  { %v1769_v26 = vmul.f32 %v3285_v15, %v1706_v47 }
 0x1b0   :  { %v1707_v30 = vsel %vm1689_vm11, %v1680_v41, %v1698_v11 }
 0x1b1   :  { %v2061_v27 = vpack.c.bf16 %v1769_v26, %v1769_v26  ;;  %v1770_v31 = vmul.f32 %v3288_v42, %v1707_v30 }
 0x1b3   :  { %1816 = vst.msk [vmem:[%s3348_s4 + $0x10] sm:$0xf] %vm1811_vm4, %v2061_v27  ;;  %v2062_v60 = vpack.c.bf16 %v1770_v31, %v1770_v31 }
 0x1b5   :  { %1817 = vst.msk [vmem:[%s3348_s4 + $0x14] sm:$0xf] %vm1811_vm4, %v2062_v60 }

// kernel: _lambda_.7
= control target key start
LH: loop header
LB: loop body
LE: loop exit
PB: predicated region body
PF: predicated region fallthrough
CT: control target
= control target key end

     0   :  { %v4465_v0 = vmov 0.0   ;;  %vm4466_vm0 = vmmov 0   ;;  %vm131_vm3 = vcmask 519168   ;;  %vm269_vm14 = vsmask.f32 7424  ;;  %s5963_s1 = inlined_call_operand.vmem [shape: bf16[9,64,32], index: 1, kind: input, shape index: {}]   ;;  %s5964_s0 = inlined_call_operand.vmem [shape: bf16[222,64], index: 0, kind: input, shape index: {}]   ;;  %s5965_s3 = inlined_call_operand.vmem [shape: f32[200,1], index: 3, kind: input, shape index: {}]   ;;  %s5966_s2 = inlined_call_operand.vmem [shape: f32[1,32], index: 2, kind: input, shape index: {}]   ;;  %s5967_s4 = inlined_call_operand.vmem [shape: bf16[200,32], index: 4, kind: output, shape index: {}]  }
   0x1   :  { %3835 = vmatprep.subr.bf16.mxu0 %v4465_v0  ;;  %4375 = vmatprep.subr.bf16.mxu1 %v4465_v0  ;;  %v4388_v1 = vld [vmem:[%s5963_s1 + $0x20] sm:$0xff]   ;;  %v4389_v2 = vld [vmem:[%s5963_s1 + $0x28] sm:$0xff]   ;;  %v4390_v6 = vld [vmem:[%s5963_s1 + $0x30] sm:$0xff]   ;;  %vm397_vm15 = vcmask 523264  }
   0x2   :  { %3843 = vmatprep.mubr.msk.bf16.mxu0 %vm4466_vm0, %v4465_v0  ;;  %3871 = vmatprep.mubr.msk.bf16.mxu1 %vm4466_vm0, %v4465_v0  ;;  %v19_v3 = vld [vmem:[%s5964_s0] sm:$0xf]  ;;  %v20_v4 = vld [vmem:[%s5964_s0 + $0x4] sm:$0xf]  ;;  %v21_v5 = vld [vmem:[%s5964_s0 + $0x8] sm:$0xf] }
   0x3   :  { %3836 = vmatpush3.bf16.msra.mxu0 %v4388_v1  ;;  %4379 = vmatpush3.bf16.msra.mxu1 %v4388_v1  ;;  %v22_v7 = vld [vmem:[%s5964_s0 + $0xc] sm:$0xf]  ;;  %vm47_vm1 = vcmp.gt.bf16.partialorder %v19_v3, 0  ;;  %vm48_vm2 = vcmp.gt.bf16.partialorder %v20_v4, 0  ;;  %vm49_vm4 = vcmp.gt.bf16.partialorder %v21_v5, 0  ;;  %v4391_v13 = vld [vmem:[%s5963_s1 + $0x38] sm:$0xff]  }
   0x4   :  { %3837 = vmatprep.subr.bf16.mxu0 %v4465_v0  ;;  %4376 = vmatprep.subr.bf16.mxu1 %v4465_v0  ;;  %vm50_vm5 = vcmp.gt.bf16.partialorder %v22_v7, 0  ;;  %v75_v8 = vmul.bf16 1045249613, %v19_v3  ;;  %v76_v9 = vmul.bf16 1045249613, %v20_v4  ;;  %v4396_v54 = vld [vmem:[%s5963_s1 + $0x40] sm:$0xff]  }
   0x5   :  { %v77_v10 = vmul.bf16 1045249613, %v21_v5  ;;  %v78_v11 = vmul.bf16 1045249613, %v22_v7  ;;  %v33_v12 = vld [vmem:[%s5964_s0 + $0x38] sm:$0xf] }
   0x6   :  { %v103_v14 = vsel %vm47_vm1, %v19_v3, %v75_v8  ;;  %v104_v15 = vsel %vm48_vm2, %v20_v4, %v76_v9  ;;  %v34_v16 = vld [vmem:[%s5964_s0 + $0x3c] sm:$0xf]  ;;  %v35_v17 = vld [vmem:[%s5964_s0 + $0x40] sm:$0xf]  ;;  %v36_v18 = vld [vmem:[%s5964_s0 + $0x44] sm:$0xf] }
   0x7   :  { %3838 = vmatpush3.bf16.msra.mxu0 %v4389_v2  ;;  %4380 = vmatpush3.bf16.msra.mxu1 %v4389_v2  ;;  %v105_v19 = vsel %vm49_vm4, %v21_v5, %v77_v10  ;;  %v106_v20 = vsel %vm50_vm5, %v22_v7, %v78_v11  ;;  %132 = vst.msk [vmem:[#allocation2] sm:$0xf] %vm131_vm3, %v103_v14  ;;  %133 = vst.msk [vmem:[#allocation2 + $0x4] sm:$0xf] %vm131_vm3, %v104_v15  ;;  %vm61_vm6 = vcmp.gt.bf16.partialorder %v33_v12, 0  ;;  %v4397_v9 = vld [vmem:[%s5963_s1] sm:$0xff]  }
   0x8   :  { %3839 = vmatprep.subr.bf16.mxu0 %v4465_v0  ;;  %4377 = vmatprep.subr.bf16.mxu1 %v4465_v0  ;;  %vm62_vm7 = vcmp.gt.bf16.partialorder %v34_v16, 0  ;;  %134 = vst.msk [vmem:[#allocation2 + $0x8] sm:$0xf] %vm131_vm3, %v105_v19  ;;  %135 = vst.msk [vmem:[#allocation2 + $0xc] sm:$0xf] %vm131_vm3, %v106_v20  ;;  %vm63_vm8 = vcmp.gt.bf16.partialorder %v35_v17, 0 }
   0x9   :  { %vm64_vm9 = vcmp.gt.bf16.partialorder %v36_v18, 0  ;;  %v89_v21 = vmul.bf16 1045249613, %v33_v12  ;;  %v90_v22 = vmul.bf16 1045249613, %v34_v16  ;;  %v4400_v14 = vld [vmem:[%s5963_s1 + $0x48] sm:$0xff]  }
   0xa   :  { %v91_v23 = vmul.bf16 1045249613, %v35_v17  ;;  %v92_v24 = vmul.bf16 1045249613, %v36_v18  ;;  %v23_v27 = vld [vmem:[%s5964_s0 + $0x10] sm:$0xf] }
   0xb   :  { %3840 = vmatpush3.bf16.msra.mxu0 %v4390_v6  ;;  %4381 = vmatpush3.bf16.msra.mxu1 %v4390_v6  ;;  %v117_v25 = vsel %vm61_vm6, %v33_v12, %v89_v21  ;;  %v118_v26 = vsel %vm62_vm7, %v34_v16, %v90_v22  ;;  %v24_v28 = vld [vmem:[%s5964_s0 + $0x14] sm:$0xf]  ;;  %vm51_vm10 = vcmp.gt.bf16.partialorder %v23_v27, 0  ;;  %v37_v31 = vld [vmem:[%s5964_s0 + $0x48] sm:$0xf] }
   0xc   :  { %3841 = vmatprep.subr.bf16.mxu0 %v4465_v0  ;;  %4378 = vmatprep.subr.bf16.mxu1 %v4465_v0  ;;  %v119_v29 = vsel %vm63_vm8, %v35_v17, %v91_v23  ;;  %v120_v30 = vsel %vm64_vm9, %v36_v18, %v92_v24  ;;  %146 = vst.msk [vmem:[#allocation2 + $0x38] sm:$0xf] %vm131_vm3, %v117_v25  ;;  %147 = vst.msk [vmem:[#allocation2 + $0x3c] sm:$0xf] %vm131_vm3, %v118_v26  ;;  %vm52_vm11 = vcmp.gt.bf16.partialorder %v24_v28, 0  ;;  %v4403_v24 = vld [vmem:[%s5963_s1 + $0x8] sm:$0xff]  }
   0xd   :  { %v38_v32 = vld [vmem:[%s5964_s0 + $0x4c] sm:$0xf]  ;;  %148 = vst.msk [vmem:[#allocation2 + $0x40] sm:$0xf] %vm131_vm3, %v119_v29  ;;  %149 = vst.msk [vmem:[#allocation2 + $0x44] sm:$0xf] %vm131_vm3, %v120_v30 }
   0xe   :  { %v79_v33 = vmul.bf16 1045249613, %v23_v27  ;;  %v80_v34 = vmul.bf16 1045249613, %v24_v28  ;;  %vm65_vm12 = vcmp.gt.bf16.partialorder %v37_v31, 0  ;;  %vm66_vm13 = vcmp.gt.bf16.partialorder %v38_v32, 0 }
   0xf   :  { %3842 = vmatpush3.bf16.msra.mxu0 %v4391_v13  ;;  %4382 = vmatpush3.bf16.msra.mxu1 %v4391_v13  ;;  %v93_v35 = vmul.bf16 1045249613, %v37_v31  ;;  %v94_v36 = vmul.bf16 1045249613, %v38_v32  ;;  %v161_v37 = vld [vmem:[#allocation2] sm:$0xf] }
  0x10   :  { %3955 = vmatprep.subr.bf16.mxu0 %v4465_v0  ;;  %3895 = vmatprep.subr.bf16.mxu1 %v4465_v0  ;;  %v4563_v38 = vld [vmem:[#allocation2 + $0x4] sm:$0xf]  ;;  %v107_v39 = vsel %vm51_vm10, %v23_v27, %v79_v33  ;;  %v108_v40 = vsel %vm52_vm11, %v24_v28, %v80_v34  ;;  %v4570_v42 = vld [vmem:[#allocation2 + $0x8] sm:$0xff]   ;;  %v25_v45 = vld [vmem:[%s5964_s0 + $0x18] sm:$0xf] }
  0x11   :  { %v4568_v41 = vcombine.low %v161_v37, %v4563_v38  ;;  %136 = vst.msk [vmem:[#allocation2 + $0x10] sm:$0xf] %vm131_vm3, %v107_v39  ;;  %137 = vst.msk [vmem:[#allocation2 + $0x14] sm:$0xf] %vm131_vm3, %v108_v40  ;;  %v121_v43 = vsel %vm65_vm12, %v37_v31, %v93_v35  ;;  %v122_v44 = vsel %vm66_vm13, %v38_v32, %v94_v36  ;;  %v26_v46 = vld [vmem:[%s5964_s0 + $0x1c] sm:$0xf] }
  0x12   :  { %150 = vst.msk [vmem:[#allocation2 + $0x48] sm:$0xf] %vm131_vm3, %v121_v43  ;;  %151 = vst.msk [vmem:[#allocation2 + $0x4c] sm:$0xf] %vm131_vm3, %v122_v44  ;;  %v278_v49 = vshll.u32 %v4570_v42, 16  ;;  %vm53_vm1 = vcmp.gt.bf16.partialorder %v25_v45, 0 }
  0x13   :  { %v271_v47 = vshrl.u32 %v4568_v41, 16  ;;  %v273_v48 = vshll.u32 %v4568_v41, 16  ;;  %v39_v50 = vld [vmem:[%s5964_s0 + $0x50] sm:$0xf]  ;;  %v4588_v51 = vld [vmem:[#allocation2 + $0x38] sm:$0xff]   ;;  %vm54_vm2 = vcmp.gt.bf16.partialorder %v26_v46, 0 }
  0x14   :  { %v280_v53 = vrot.slane %v278_v49, 1  ;;  %v4593_v55 = vld [vmem:[#allocation2 + $0x40] sm:$0xff]   ;;  %v326_v56 = vshll.u32 %v4588_v51, 16  ;;  %v330_v57 = vshrl.u32 %v4588_v51, 16  ;;  %v81_v58 = vmul.bf16 1045249613, %v25_v45 }
  0x15   :  { %v275_v52 = vrot.slane %v273_v48, 1  ;;  %v282_v60 = vshrl.u32 %v4570_v42, 16  ;;  %v82_v61 = vmul.bf16 1045249613, %v26_v46  ;;  %v40_v62 = vld [vmem:[%s5964_s0 + $0x54] sm:$0xf] }
  0x16   :  { %vm67_vm4 = vcmp.gt.bf16.partialorder %v39_v50, 0  ;;  %v4601_v63 = vrot.slane %v326_v56, 1  ;;  %v334_v1 = vshll.u32 %v4593_v55, 16  ;;  %v109_v2 = vsel %vm53_vm1, %v25_v45, %v81_v58  ;;  %v27_v20 = vld [vmem:[%s5964_s0 + $0x20] sm:$0xf]  ;;  %v4406_v26 = vld [vmem:[%s5963_s1 + $0x50] sm:$0xff]  }
  0x17   :  { %v276_v59 = vor.u32 %v275_v52, %v271_v47  ;;  %v338_v5 = vshrl.u32 %v4593_v55, 16  ;;  %v110_v6 = vsel %vm54_vm2, %v26_v46, %v82_v61  ;;  %138 = vst.msk [vmem:[#allocation2 + $0x18] sm:$0xf] %vm131_vm3, %v109_v2  ;;  %vm68_vm5 = vcmp.gt.bf16.partialorder %v40_v62, 0  ;;  %v28_v25 = vld [vmem:[%s5964_s0 + $0x24] sm:$0xf] }
  0x18   :  { %v4606_v4 = vld [vmem:[#allocation2 + $0x10] sm:$0xff]   ;;  %v332_v7 = vor.u32 %v330_v57, %v4601_v63  ;;  %v336_v8 = vrot.slane %v334_v1, 1  ;;  %139 = vst.msk [vmem:[#allocation2 + $0x1c] sm:$0xf] %vm131_vm3, %v110_v6  ;;  %v95_v11 = vmul.bf16 1045249613, %v39_v50  ;;  %v284_v12 = vor.u32 %v282_v60, %v280_v53 }
  0x19   :  { %v281_v3 = vsel %vm269_vm14, %v276_v59, %v280_v53  ;;  %v4615_v10 = vld [vmem:[#allocation2 + $0x48] sm:$0xff]   ;;  %v286_v13 = vshll.u32 %v4606_v4, 16  ;;  %v96_v15 = vmul.bf16 1045249613, %v40_v62  ;;  %v290_v18 = vshrl.u32 %v4606_v4, 16  ;;  %v4407_v35 = vld [vmem:[%s5963_s1 + $0x10] sm:$0xff]  }
  0x1a   :  { %3844 = vmatmul.mubr.msk.bf16.vlgmr.msra.gmra.mrb[0].mxu0 %vm397_vm15, %v281_v3  ;;  %v337_v16 = vsel %vm269_vm14, %v332_v7, %v336_v8  ;;  %v342_v17 = vshll.u32 %v4615_v10, 16  ;;  %v123_v19 = vsel %vm67_vm4, %v39_v50, %v95_v11  ;;  %v340_v22 = vor.u32 %v338_v5, %v336_v8  ;;  %v41_v31 = vld [vmem:[%s5964_s0 + $0x58] sm:$0xf]  ;;  %v42_v32 = vld [vmem:[%s5964_s0 + $0x5c] sm:$0xf] }
  0x1b   :  { %3956 = vmatpush3.bf16.msra.mxu0 %v4396_v54  ;;  %3847 = vmatprep.mubr.msk.bf16.mxu0 %vm4466_vm0, %v4465_v0  ;;  %v288_v21 = vrot.slane %v286_v13, 1  ;;  %v124_v23 = vsel %vm68_vm5, %v40_v62, %v96_v15  ;;  %152 = vst.msk [vmem:[#allocation2 + $0x50] sm:$0xf] %vm131_vm3, %v123_v19  ;;  %vm55_vm6 = vcmp.gt.bf16.partialorder %v27_v20, 0  ;;  %vm56_vm7 = vcmp.gt.bf16.partialorder %v28_v25, 0  ;;  %v4412_v48 = vld [vmem:[%s5963_s1 + $0x58] sm:$0xff]  }
  0x1c   :  { %3957 = vmatprep.subr.bf16.mxu0 %v4465_v0  ;;  %3872 = vmatmul.mubr.msk.bf16.vlgmr.msra.gmra.mrb[0].mxu1 %vm397_vm15, %v337_v16  ;;  %v344_v27 = vrot.slane %v342_v17, 1  ;;  %153 = vst.msk [vmem:[#allocation2 + $0x54] sm:$0xf] %vm131_vm3, %v124_v23  ;;  %v83_v28 = vmul.bf16 1045249613, %v27_v20  ;;  %v346_v37 = vshrl.u32 %v4615_v10, 16 }
  0x1d   :  { %3896 = vmatpush3.bf16.msra.mxu1 %v4397_v9  ;;  %3875 = vmatprep.mubr.msk.bf16.mxu1 %vm4466_vm0, %v4465_v0  ;;  %v84_v29 = vmul.bf16 1045249613, %v28_v25  ;;  %v289_v30 = vsel %vm269_vm14, %v284_v12, %v288_v21  ;;  %vm69_vm8 = vcmp.gt.bf16.partialorder %v41_v31, 0  ;;  %vm70_vm9 = vcmp.gt.bf16.partialorder %v42_v32, 0  ;;  %v29_v46 = vld [vmem:[%s5964_s0 + $0x28] sm:$0xf] }
  0x1e   :  { %3897 = vmatprep.subr.bf16.mxu1 %v4465_v0  ;;  %v111_v33 = vsel %vm55_vm6, %v27_v20, %v83_v28  ;;  %v345_v39 = vsel %vm269_vm14, %v340_v22, %v344_v27  ;;  %v97_v40 = vmul.bf16 1045249613, %v41_v31  ;;  %v98_v43 = vmul.bf16 1045249613, %v42_v32  ;;  %v30_v47 = vld [vmem:[%s5964_s0 + $0x2c] sm:$0xf] }
  0x1f   :  { %3958 = vmatpush3.bf16.msra.mxu0 %v4400_v14  ;;  %v112_v34 = vsel %vm56_vm7, %v28_v25, %v84_v29  ;;  %v4659_v36 = vld [vmem:[#allocation2 + $0x18] sm:$0xff]   ;;  %140 = vst.msk [vmem:[#allocation2 + $0x20] sm:$0xf] %vm131_vm3, %v111_v33  ;;  %v292_v44 = vor.u32 %v290_v18, %v288_v21  ;;  %vm57_vm10 = vcmp.gt.bf16.partialorder %v29_v46, 0  ;;  %vm58_vm11 = vcmp.gt.bf16.partialorder %v30_v47, 0 }
  0x20   :  { %3959 = vmatprep.subr.bf16.mxu0 %v4465_v0  ;;  %141 = vst.msk [vmem:[#allocation2 + $0x24] sm:$0xf] %vm131_vm3, %v112_v34  ;;  %v294_v45 = vshll.u32 %v4659_v36, 16  ;;  %v125_v49 = vsel %vm69_vm8, %v41_v31, %v97_v40  ;;  %v126_v50 = vsel %vm70_vm9, %v42_v32, %v98_v43  ;;  %v43_v52 = vld [vmem:[%s5964_s0 + $0x60] sm:$0xf]  ;;  %v298_v57 = vshrl.u32 %v4659_v36, 16 }
  0x21   :  { %3898 = vmatpush3.bf16.msra.mxu1 %v4403_v24  ;;  %154 = vst.msk [vmem:[#allocation2 + $0x58] sm:$0xf] %vm131_vm3, %v125_v49  ;;  %155 = vst.msk [vmem:[#allocation2 + $0x5c] sm:$0xf] %vm131_vm3, %v126_v50  ;;  %v85_v56 = vmul.bf16 1045249613, %v29_v46  ;;  %v348_v62 = vor.u32 %v346_v37, %v344_v27 }
  0x22   :  { %3848 = vmatmul.mubr.msk.bf16.gmra.mrb[4].mxu0 %vm397_vm15, %v289_v30  ;;  %3899 = vmatprep.subr.bf16.mxu1 %v4465_v0  ;;  %v296_v53 = vrot.slane %v294_v45, 1  ;;  %v86_v58 = vmul.bf16 1045249613, %v30_v47  ;;  %v44_v59 = vld [vmem:[%s5964_s0 + $0x64] sm:$0xf]  ;;  %v4411_v60 = vld [vmem:[%s5963_s1 + $0x18] sm:$0xff]  }
  0x23   :  { %3851 = vmatprep.mubr.msk.bf16.mxu0 %vm4466_vm0, %v4465_v0  ;;  %3960 = vmatpush3.bf16.msra.mxu0 %v4406_v26  ;;  %v4684_v54 = vld [vmem:[#allocation2 + $0x50] sm:$0xff]   ;;  %vm71_vm12 = vcmp.gt.bf16.partialorder %v43_v52, 0  ;;  %v113_v6 = vsel %vm57_vm10, %v29_v46, %v85_v56  ;;  %vm72_vm13 = vcmp.gt.bf16.partialorder %v44_v59, 0  ;;  %v99_v9 = vmul.bf16 1045249613, %v43_v52 }
  0x24   :  { %3961 = vmatprep.subr.bf16.mxu0 %v4465_v0  ;;  %3876 = vmatmul.mubr.msk.bf16.gmra.mrb[4].mxu1 %vm397_vm15, %v345_v39  ;;  %v297_v61 = vsel %vm269_vm14, %v292_v44, %v296_v53  ;;  %v350_v1 = vshll.u32 %v4684_v54, 16  ;;  %v31_v2 = vld [vmem:[%s5964_s0 + $0x30] sm:$0xf]  ;;  %v32_v3 = vld [vmem:[%s5964_s0 + $0x34] sm:$0xf]  ;;  %v114_v7 = vsel %vm58_vm11, %v30_v47, %v86_v58  ;;  %v354_v13 = vshrl.u32 %v4684_v54, 16 }
  0x25   :  { %3879 = vmatprep.mubr.msk.bf16.mxu1 %vm4466_vm0, %v4465_v0  ;;  %3900 = vmatpush3.bf16.msra.mxu1 %v4407_v35  ;;  %142 = vst.msk [vmem:[#allocation2 + $0x28] sm:$0xf] %vm131_vm3, %v113_v6  ;;  %143 = vst.msk [vmem:[#allocation2 + $0x2c] sm:$0xf] %vm131_vm3, %v114_v7  ;;  %v100_v11 = vmul.bf16 1045249613, %v44_v59  ;;  %v300_v16 = vor.u32 %v298_v57, %v296_v53  ;;  %v127_v17 = vsel %vm71_vm12, %v43_v52, %v99_v9 }
  0x26   :  { %3901 = vmatprep.subr.bf16.mxu1 %v4465_v0  ;;  %v352_v8 = vrot.slane %v350_v1, 1  ;;  %vm59_vm1 = vcmp.gt.bf16.partialorder %v31_v2, 0  ;;  %vm60_vm2 = vcmp.gt.bf16.partialorder %v32_v3, 0  ;;  %v87_v14 = vmul.bf16 1045249613, %v31_v2  ;;  %v4413_v1 = vld [vmem:[%s5963_s1 + $0x60] sm:$0xff]  }
  0x27   :  { %3962 = vmatpush3.bf16.msra.mxu0 %v4412_v48  ;;  %v4706_v5 = vld [vmem:[#allocation2 + $0x20] sm:$0xff]   ;;  %v128_v18 = vsel %vm72_vm13, %v44_v59, %v100_v11  ;;  %156 = vst.msk [vmem:[#allocation2 + $0x60] sm:$0xf] %vm131_vm3, %v127_v17  ;;  %v88_v22 = vmul.bf16 1045249613, %v32_v3  ;;  %vm774_vm4 = vcmask 1046528  }
  0x28   :  { %4075 = vmatprep.subr.bf16.mxu0 %v4465_v0  ;;  %v302_v12 = vshll.u32 %v4706_v5, 16  ;;  %v353_v15 = vsel %vm269_vm14, %v348_v62, %v352_v8  ;;  %v4721_v20 = vld [vmem:[#allocation2 + $0x58] sm:$0xff]   ;;  %157 = vst.msk [vmem:[#allocation2 + $0x64] sm:$0xf] %vm131_vm3, %v128_v18  ;;  %v115_v21 = vsel %vm59_vm1, %v31_v2, %v87_v14  ;;  %v356_v23 = vor.u32 %v354_v13, %v352_v8  ;;  %v761_v59 = vld [vmem:[#allocation2] sm:$0xe] }
  0x29   :  { %3902 = vmatpush3.bf16.msra.mxu1 %v4411_v60  ;;  %144 = vst.msk [vmem:[#allocation2 + $0x30] sm:$0xf] %vm131_vm3, %v115_v21  ;;  %v358_v24 = vshll.u32 %v4721_v20, 16  ;;  %v306_v26 = vshrl.u32 %v4706_v5, 16  ;;  %v116_v27 = vsel %vm60_vm2, %v32_v3, %v88_v22  ;;  %v362_v32 = vshrl.u32 %v4721_v20, 16  ;;  %v4414_v6 = vld [vmem:[%s5963_s1 + $0x80] sm:$0xff]  }
  0x2a   :  { %3852 = vmatmul.mubr.msk.bf16.gmra.mrb[8].mxu0 %vm397_vm15, %v297_v61  ;;  %v304_v19 = vrot.slane %v302_v12, 1  ;;  %4015 = vmatprep.subr.bf16.mxu1 %v4465_v0  ;;  %145 = vst.msk [vmem:[#allocation2 + $0x34] sm:$0xf] %vm131_vm3, %v116_v27  ;;  %v3433_v61 = vcombine.low %v761_v59, %v4563_v38  ;;  %v776_v3 = vrot.slane %v4570_v42, 1  ;;  %v4415_v38 = vld [vmem:[%s5963_s1 + $0x68] sm:$0xff]   ;;  %v778_v7 = vrot.slane %v4606_v4, 1 }
  0x2b   :  { %3855 = vmatprep.mubr.msk.bf16.mxu0 %vm4466_vm0, %v4465_v0  ;;  %v360_v28 = vrot.slane %v358_v24, 1  ;;  %v4417_v8 = vld [vmem:[%s5963_s1 + $0x70] sm:$0xff]   ;;  %v4419_v9 = vld [vmem:[%s5963_s1 + $0x78] sm:$0xff]   ;;  %v788_v18 = vrot.slane %v4588_v51, 1  ;;  %v790_v24 = vrot.slane %v4593_v55, 1  ;;  %v794_v27 = vrot.slane %v4684_v54, 1 }
  0x2c   :  { %3880 = vmatmul.mubr.msk.bf16.gmra.mrb[8].mxu1 %vm397_vm15, %v353_v15  ;;  %v305_v25 = vsel %vm269_vm14, %v300_v16, %v304_v19  ;;  %v4735_v29 = vld [vmem:[#allocation2 + $0x28] sm:$0xff]   ;;  %v308_v33 = vor.u32 %v306_v26, %v304_v19  ;;  %v775_v2 = vrot.slane %v3433_v61, 1  ;;  %v779_v11 = vsel %vm774_vm4, %v776_v3, %v778_v7  ;;  %v4418_v12 = vld [vmem:[%s5963_s1 + $0x90] sm:$0xff]   ;;  %v4420_v13 = vld [vmem:[%s5963_s1 + $0x98] sm:$0xff]  }
  0x2d   :  { %3883 = vmatprep.mubr.msk.bf16.mxu1 %vm4466_vm0, %v4465_v0  ;;  %v361_v30 = vsel %vm269_vm14, %v356_v23, %v360_v28  ;;  %v310_v31 = vshll.u32 %v4735_v29, 16  ;;  %v364_v40 = vor.u32 %v362_v32, %v360_v28  ;;  %v314_v46 = vshrl.u32 %v4735_v29, 16  ;;  %v45_v19 = vld [vmem:[%s5964_s0 + $0x68] sm:$0xf]  ;;  %v4425_v61 = vld [vmem:[%s5963_s1 + $0xc0] sm:$0xff]  }
  0x2e   :  { %v4744_v34 = vld [vmem:[#allocation2 + $0x60] sm:$0xf]  ;;  %v782_v15 = vrot.slane %v4706_v5, 1  ;;  %v784_v16 = vrot.slane %v4735_v29, 1  ;;  %v101_v21 = vmul.bf16 1045249613, %v45_v19 }
  0x2f   :  { %v194_v35 = vld [vmem:[#allocation2 + $0x64] sm:$0x1]  ;;  %v312_v37 = vrot.slane %v310_v31, 1  ;;  %v792_v26 = vrot.slane %v4615_v10, 1  ;;  %v796_v28 = vrot.slane %v4721_v20, 1  ;;  %v3407_v32 = vcombine.low %v4744_v34, %v4744_v34  ;;  %v4429_v59 = vld [vmem:[%s5963_s1 + $0xa8] sm:$0xff]  }
  0x30   :  { %v4747_v39 = vcombine.low %v4744_v34, %v194_v35  ;;  %v4926_v35 = vld [vmem:[#allocation2 + $0xc] sm:$0xff]   ;;  %vm159_vm6 = vcmask 518144   ;;  %vm1740_vm7 = vcmask 1045504   ;;  %vm2352_vm8 = vsmask.f32 5376 }
  0x31   :  { %v313_v44 = vsel %vm269_vm14, %v308_v33, %v312_v37  ;;  %v4754_v45 = vld [vmem:[#allocation2 + $0x30] sm:$0xff]   ;;  %v316_v50 = vor.u32 %v314_v46, %v312_v37  ;;  %vm2706_vm9 = vcmask 1044480   ;;  %vm3339_vm10 = vcmask 257024  }
  0x32   :  { %3856 = vmatmul.mubr.msk.bf16.gmra.mrb[12].mxu0 %vm397_vm15, %v305_v25  ;;  %v366_v43 = vshll.u32 %v4747_v39, 16  ;;  %v318_v48 = vshll.u32 %v4754_v45, 16  ;;  %v370_v53 = vshrl.u32 %v4747_v39, 16  ;;  %v322_v57 = vshrl.u32 %v4754_v45, 16 }
  0x33   :  { %3859 = vmatprep.mubr.msk.bf16.mxu0 %vm4466_vm0, %v4465_v0  ;;  %v786_v17 = vrot.slane %v4754_v45, 1  ;;  %v791_v25 = vsel %vm774_vm4, %v788_v18, %v790_v24 }
  0x34   :  { %3884 = vmatmul.mubr.msk.bf16.gmra.mrb[12].mxu1 %vm397_vm15, %v361_v30  ;;  %v368_v47 = vrot.slane %v366_v43, 1  ;;  %v320_v52 = vrot.slane %v318_v48, 1  ;;  %v1024_v30 = vld [vmem:[#allocation2 + $0x4] sm:$0xe]  ;;  %v1125_v43 = vrot.slane %v4926_v35, 1  ;;  %v4937_v48 = vld [vmem:[#allocation2 + $0x14] sm:$0xff]  }
  0x35   :  { %3887 = vmatprep.mubr.msk.bf16.mxu1 %vm4466_vm0, %v4465_v0  ;;  %v789_v22 = vsel %vm774_vm4, %v786_v17, %v788_v18 }
  0x36   :  { %v369_v49 = vsel %vm269_vm14, %v364_v40, %v368_v47  ;;  %v321_v56 = vsel %vm269_vm14, %v316_v50, %v320_v52  ;;  %v372_v58 = vor.u32 %v370_v53, %v368_v47  ;;  %v324_v60 = vor.u32 %v322_v57, %v320_v52  ;;  %v4423_v50 = vld [vmem:[%s5963_s1 + $0xa0] sm:$0xff]  }
  0x37   :  { %v1399_v40 = vshll.u32 %v4926_v35, 16  ;;  %v1408_v57 = vshll.u32 %v4937_v48, 16 }
  0x38   :  { %v329_v62 = vsel %vm269_vm14, %v324_v60, %v4601_v63  ;;  %v777_v63 = vsel %vm774_vm4, %v775_v2, %v776_v3  ;;  %vm73_vm14 = vcmp.gt.bf16.partialorder %v45_v19, 0  ;;  %v4960_v2 = vld [vmem:[#allocation2 + $0x1c] sm:$0xff]  }
  0x39   :  { %v129_v23 = vsel %vm73_vm14, %v45_v19, %v101_v21  ;;  %v1401_v47 = vrot.slane %v1399_v40, 2  ;;  %v5034_v40 = vld [vmem:[#allocation2 + $0x3c] sm:$0xff]  }
  0x3a   :  { %3860 = vmatmul.mubr.msk.bf16.gmra.mrb[16].mxu0 %vm397_vm15, %v313_v44  ;;  %158 = vst.msk [vmem:[#allocation2 + $0x68] sm:$0xf] %vm131_vm3, %v129_v23  ;;  %vm1386_vm3 = vsmask.f32 6400 }
  0x3b   :  { %3863 = vmatprep.mubr.msk.bf16.mxu0 %vm4466_vm0, %v4465_v0 }
  0x3c   :  { %3888 = vmatmul.mubr.msk.bf16.gmra.mrb[16].mxu1 %vm397_vm15, %v369_v49 }
  0x3d   :  { %3891 = vmatprep.mubr.msk.bf16.mxu1 %vm4466_vm0, %v4465_v0 }
  0x42   :  { %3864 = vmatmul.mubr.msk.bf16.gmra.mrb[20].mxu0 %vm397_vm15, %v321_v56  ;;  %v1405_v56 = vshrl.u32 %v4937_v48, 16 }
  0x43   :  { %3867 = vmatprep.mubr.msk.bf16.mxu0 %vm4466_vm0, %v4465_v0 }
  0x44   :  { %3892 = vmatmul.mubr.msk.bf16.gmra.mrb[20].mxu1 %vm397_vm15, %v372_v58  ;;  %v1127_v58 = vrot.slane %v4937_v48, 1 }
  0x45   :  { %3903 = vmatprep.mubr.msk.bf16.mxu1 %vm4466_vm0, %v4465_v0 }
  0x46   :  { %v1128_v3 = vsel %vm774_vm4, %v1125_v43, %v1127_v58 }
  0x4a   :  { %3868 = vmatmul.mubr.msk.bf16.gmra.mrb[24].mxu0 %vm397_vm15, %v329_v62  ;;  %v1407_v62 = vrot.slane %v1405_v56, 1 }
  0x4b   :  { %3963 = vmatprep.mubr.msk.bf16.mxu0 %vm4466_vm0, %v4465_v0 }
  0x4c   :  { %3904 = vmatmul.mubr.msk.bf16.vlgmr.msra.gmra.mrb[24].mxu1 %vm397_vm15, %v4568_v41  ;;  %v4416_v41 = vld [vmem:[%s5963_s1 + $0x88] sm:$0xff]  }
  0x4d   :  { %4016 = vmatpush3.bf16.msra.mxu1 %v4413_v1  ;;  %3907 = vmatprep.mubr.msk.bf16.mxu1 %vm4466_vm0, %v4465_v0  ;;  %v1410_v1 = vrot.slane %v1408_v57, 2 }
  0x4e   :  { %4017 = vmatprep.subr.bf16.mxu1 %v4465_v0 }
  0x51   :  { %4018 = vmatpush3.bf16.msra.mxu1 %v4415_v38  ;;  %v4434_v38 = vld [vmem:[%s5963_s1 + $0xb0] sm:$0xff]  }
  0x52   :  { %3964 = vmatmul.mubr.msk.bf16.vlgmr.msra.gmra.mrb[28].mxu0 %vm397_vm15, %v777_v63  ;;  %4019 = vmatprep.subr.bf16.mxu1 %v4465_v0  ;;  %v1411_v63 = vor.u32 %v1410_v1, %v1407_v62  ;;  %v5060_v1 = vld [vmem:[#allocation2 + $0x4c] sm:$0xff]  }
  0x53   :  { %4076 = vmatpush3.bf16.msra.mxu0 %v4414_v6  ;;  %3967 = vmatprep.mubr.msk.bf16.mxu0 %vm4466_vm0, %v4465_v0  ;;  %v1414_v6 = vshrl.u32 %v4960_v2, 16 }
  0x54   :  { %4077 = vmatprep.subr.bf16.mxu0 %v4465_v0  ;;  %3908 = vmatmul.mubr.msk.bf16.gmra.mrb[28].mxu1 %vm397_vm15, %v4570_v42  ;;  %v780_v42 = vrot.slane %v4659_v36, 1 }
  0x55   :  { %3911 = vmatprep.mubr.msk.bf16.mxu1 %vm4466_vm0, %v4465_v0  ;;  %4020 = vmatpush3.bf16.msra.mxu1 %v4417_v8  ;;  %v1129_v8 = vrot.slane %v4960_v2, 1 }
  0x56   :  { %4021 = vmatprep.subr.bf16.mxu1 %v4465_v0  ;;  %v781_v14 = vsel %vm774_vm4, %v778_v7, %v780_v42  ;;  %v1417_v7 = vshll.u32 %v4960_v2, 16 }
  0x57   :  { %4078 = vmatpush3.bf16.msra.mxu0 %v4416_v41  ;;  %v4430_v41 = vld [vmem:[%s5963_s1 + $0xc8] sm:$0xff]  }
  0x58   :  { %4079 = vmatprep.subr.bf16.mxu0 %v4465_v0 }
  0x59   :  { %4022 = vmatpush3.bf16.msra.mxu1 %v4419_v9  ;;  %v4439_v9 = vld [vmem:[%s5963_s1 + $0xb8] sm:$0xff]  }
  0x5a   :  { %3968 = vmatmul.mubr.msk.bf16.gmra.mrb[32].mxu0 %vm397_vm15, %v779_v11  ;;  %4135 = vmatprep.subr.bf16.mxu1 %v4465_v0 }
  0x5b   :  { %3971 = vmatprep.mubr.msk.bf16.mxu0 %vm4466_vm0, %v4465_v0  ;;  %4080 = vmatpush3.bf16.msra.mxu0 %v4418_v12  ;;  %v1416_v12 = vrot.slane %v1414_v6, 1  ;;  %v1471_v6 = vshll.u32 %v5060_v1, 16 }
  0x5c   :  { %4081 = vmatprep.subr.bf16.mxu0 %v4465_v0  ;;  %3912 = vmatmul.mubr.msk.bf16.gmra.mrb[32].mxu1 %vm397_vm15, %v4606_v4  ;;  %v783_v4 = vsel %vm774_vm4, %v780_v42, %v782_v15  ;;  %v1419_v42 = vrot.slane %v1417_v7, 2 }
  0x5d   :  { %3915 = vmatprep.mubr.msk.bf16.mxu1 %vm4466_vm0, %v4465_v0 }
  0x5f   :  { %4082 = vmatpush3.bf16.msra.mxu0 %v4420_v13  ;;  %v4435_v13 = vld [vmem:[%s5963_s1 + $0xd0] sm:$0xff]  }
  0x60   :  { %4195 = vmatprep.subr.bf16.mxu0 %v4465_v0 }
  0x62   :  { %3972 = vmatmul.mubr.msk.bf16.gmra.mrb[36].mxu0 %vm397_vm15, %v781_v14  ;;  %v4989_v14 = vld [vmem:[#allocation2 + $0x24] sm:$0xff]  }
  0x63   :  { %3975 = vmatprep.mubr.msk.bf16.mxu0 %vm4466_vm0, %v4465_v0 }
  0x64   :  { %3916 = vmatmul.mubr.msk.bf16.gmra.mrb[36].mxu1 %vm397_vm15, %v4659_v36  ;;  %v785_v36 = vsel %vm774_vm4, %v782_v15, %v784_v16  ;;  %v1130_v15 = vsel %vm774_vm4, %v1127_v58, %v1129_v8 }
  0x65   :  { %3919 = vmatprep.mubr.msk.bf16.mxu1 %vm4466_vm0, %v4465_v0 }
  0x6a   :  { %3976 = vmatmul.mubr.msk.bf16.gmra.mrb[40].mxu0 %vm397_vm15, %v783_v4  ;;  %v1420_v4 = vor.u32 %v1419_v42, %v1416_v12 }
  0x6b   :  { %3979 = vmatprep.mubr.msk.bf16.mxu0 %vm4466_vm0, %v4465_v0 }
  0x6c   :  { %3920 = vmatmul.mubr.msk.bf16.gmra.mrb[40].mxu1 %vm397_vm15, %v4706_v5  ;;  %v787_v5 = vsel %vm774_vm4, %v784_v16, %v786_v17  ;;  %v1423_v16 = vshrl.u32 %v4989_v14, 16  ;;  %v4440_v17 = vld [vmem:[%s5963_s1 + $0xd8] sm:$0xff]   ;;  %v1421_v18 = vsel %vm1386_vm3, %v1411_v63, %v1420_v4 }
  0x6d   :  { %3923 = vmatprep.mubr.msk.bf16.mxu1 %vm4466_vm0, %v4465_v0 }
  0x6e   :  { %v1425_v19 = vrot.slane %v1423_v16, 1 }
  0x72   :  { %3980 = vmatmul.mubr.msk.bf16.gmra.mrb[44].mxu0 %vm397_vm15, %v785_v36  ;;  %v1426_v36 = vshll.u32 %v4989_v14, 16 }
  0x73   :  { %3983 = vmatprep.mubr.msk.bf16.mxu0 %vm4466_vm0, %v4465_v0 }
  0x74   :  { %3924 = vmatmul.mubr.msk.bf16.gmra.mrb[44].mxu1 %vm397_vm15, %v4735_v29  ;;  %v798_v29 = vrot.slane %v4747_v39, 1  ;;  %v1396_v39 = vshrl.u32 %v4926_v35, 16  ;;  %v1428_v21 = vrot.slane %v1426_v36, 2 }
  0x75   :  { %3927 = vmatprep.mubr.msk.bf16.mxu1 %vm4466_vm0, %v4465_v0 }
  0x76   :  { %v799_v31 = vsel %vm774_vm4, %v796_v28, %v798_v29  ;;  %v1398_v46 = vrot.slane %v1396_v39, 1 }
  0x78   :  { %v1402_v53 = vor.u32 %v1401_v47, %v1398_v46  ;;  %v1137_v46 = vrot.slane %v5034_v40, 1 }
  0x7a   :  { %3984 = vmatmul.mubr.msk.bf16.gmra.mrb[48].mxu0 %vm397_vm15, %v787_v5  ;;  %v1412_v11 = vsel %vm1386_vm3, %v1402_v53, %v1411_v63  ;;  %v1131_v5 = vrot.slane %v4989_v14, 1  ;;  %v1468_v63 = vshrl.u32 %v5060_v1, 16 }
  0x7b   :  { %3987 = vmatprep.mubr.msk.bf16.mxu0 %vm4466_vm0, %v4465_v0 }
  0x7c   :  { %3928 = vmatmul.mubr.msk.bf16.gmra.mrb[48].mxu1 %vm397_vm15, %v4754_v45  ;;  %v1132_v23 = vsel %vm774_vm4, %v1129_v8, %v1131_v5 }
  0x7d   :  { %3931 = vmatprep.mubr.msk.bf16.mxu1 %vm4466_vm0, %v4465_v0 }
  0x82   :  { %3988 = vmatmul.mubr.msk.bf16.gmra.mrb[52].mxu0 %vm397_vm15, %v789_v22  ;;  %v5008_v22 = vld [vmem:[#allocation2 + $0x2c] sm:$0xff]  }
  0x83   :  { %3991 = vmatprep.mubr.msk.bf16.mxu0 %vm4466_vm0, %v4465_v0 }
  0x84   :  { %3932 = vmatmul.mubr.msk.bf16.gmra.mrb[52].mxu1 %vm397_vm15, %v4588_v51  ;;  %v793_v51 = vsel %vm774_vm4, %v790_v24, %v792_v26  ;;  %v1429_v24 = vor.u32 %v1428_v21, %v1425_v19 }
  0x85   :  { %3935 = vmatprep.mubr.msk.bf16.mxu1 %vm4466_vm0, %v4465_v0 }
  0x8a   :  { %3992 = vmatmul.mubr.msk.bf16.gmra.mrb[56].mxu0 %vm397_vm15, %v791_v25  ;;  %v1432_v25 = vshrl.u32 %v5008_v22, 16 }
  0x8b   :  { %3995 = vmatprep.mubr.msk.bf16.mxu0 %vm4466_vm0, %v4465_v0 }
  0x8c   :  { %3936 = vmatmul.mubr.msk.bf16.gmra.mrb[56].mxu1 %vm397_vm15, %v4593_v55  ;;  %v795_v55 = vsel %vm774_vm4, %v792_v26, %v794_v27  ;;  %v1435_v26 = vshll.u32 %v5008_v22, 16 }
  0x8d   :  { %3939 = vmatprep.mubr.msk.bf16.mxu1 %vm4466_vm0, %v4465_v0 }
  0x92   :  { %3996 = vmatmul.mubr.msk.bf16.gmra.mrb[60].mxu0 %vm397_vm15, %v793_v51  ;;  %v1133_v51 = vrot.slane %v5008_v22, 1 }
  0x93   :  { %3999 = vmatprep.mubr.msk.bf16.mxu0 %vm4466_vm0, %v4465_v0 }
  0x94   :  { %3940 = vmatmul.mubr.msk.bf16.gmra.mrb[60].mxu1 %vm397_vm15, %v4615_v10  ;;  %v797_v10 = vsel %vm774_vm4, %v794_v27, %v796_v28  ;;  %v1430_v27 = vsel %vm1386_vm3, %v1420_v4, %v1429_v24  ;;  %v1437_v28 = vrot.slane %v1435_v26, 2 }
  0x95   :  { %3943 = vmatprep.mubr.msk.bf16.mxu1 %vm4466_vm0, %v4465_v0 }
  0x9a   :  { %4000 = vmatmul.mubr.msk.bf16.gmra.mrb[64].mxu0 %vm397_vm15, %v795_v55  ;;  %v1434_v55 = vrot.slane %v1432_v25, 1 }
  0x9b   :  { %4003 = vmatprep.mubr.msk.bf16.mxu0 %vm4466_vm0, %v4465_v0 }
  0x9c   :  { %3944 = vmatmul.mubr.msk.bf16.gmra.mrb[64].mxu1 %vm397_vm15, %v4684_v54  ;;  %v4920_v54 = vld [vmem:[#allocation2 + $0x8] sm:$0xf] }
  0x9d   :  { %3947 = vmatprep.mubr.msk.bf16.mxu1 %vm4466_vm0, %v4465_v0  ;;  %v3459_v33 = vcombine.low %v1024_v30, %v4920_v54  ;;  %v1438_v30 = vor.u32 %v1437_v28, %v1434_v55 }
  0x9f   :  { %v1391_v37 = vshll.u32 %v3459_v33, 16  ;;  %v1124_v34 = vrot.slane %v3459_v33, 1 }
  0xa1   :  { %v1393_v45 = vrot.slane %v1391_v37, 2  ;;  %v1126_v49 = vsel %vm774_vm4, %v1124_v34, %v1125_v43 }
  0xa2   :  { %4004 = vmatmul.mubr.msk.bf16.gmra.mrb[68].mxu0 %vm397_vm15, %v797_v10  ;;  %v5021_v10 = vld [vmem:[#allocation2 + $0x34] sm:$0xff]  }
  0xa3   :  { %4007 = vmatprep.mubr.msk.bf16.mxu0 %vm4466_vm0, %v4465_v0 }
  0xa4   :  { %3948 = vmatmul.mubr.msk.bf16.gmra.mrb[68].mxu1 %vm397_vm15, %v4721_v20  ;;  %v1388_v20 = vshrl.u32 %v3459_v33, 16  ;;  %v1135_v33 = vrot.slane %v5021_v10, 1 }
  0xa5   :  { %3951 = vmatprep.mubr.msk.bf16.mxu1 %vm4466_vm0, %v4465_v0 }
  0xa6   :  { %v1390_v44 = vrot.slane %v1388_v20, 1  ;;  %v1439_v20 = vsel %vm1386_vm3, %v1429_v24, %v1438_v30  ;;  %v1136_v34 = vsel %vm774_vm4, %v1133_v51, %v1135_v33 }
  0xa8   :  { %v1394_v52 = vor.u32 %v1393_v45, %v1390_v44  ;;  %v1450_v44 = vshrl.u32 %v5034_v40, 16  ;;  %v1453_v45 = vshll.u32 %v5034_v40, 16 }
  0xaa   :  { %4008 = vmatmul.mubr.msk.bf16.gmra.mrb[72].mxu0 %vm397_vm15, %v799_v31  ;;  %v1403_v60 = vsel %vm1386_vm3, %v1394_v52, %v1402_v53  ;;  %v1441_v31 = vshrl.u32 %v5021_v10, 16  ;;  %v5047_v52 = vld [vmem:[#allocation2 + $0x44] sm:$0xff]   ;;  %v1138_v53 = vsel %vm774_vm4, %v1135_v33, %v1137_v46 }
  0xab   :  { %4011 = vmatprep.mubr.msk.bf16.mxu0 %vm4466_vm0, %v4465_v0  ;;  %v1459_v57 = vshrl.u32 %v5047_v52, 16  ;;  %v1462_v58 = vshll.u32 %v5047_v52, 16 }
  0xac   :  { %3952 = vmatmul.mubr.msk.bf16.gmra.mrb[72].mxu1 %vm397_vm15, %v3407_v32  ;;  %v1444_v32 = vshll.u32 %v5021_v10, 16  ;;  %v1443_v37 = vrot.slane %v1441_v31, 1 }
  0xad   :  { %4023 = vmatprep.mubr.msk.bf16.mxu1 %vm4466_vm0, %v4465_v0  ;;  %v1464_v62 = vrot.slane %v1462_v58, 2  ;;  %v1049_v58 = vld [vmem:[#allocation2 + $0x68] sm:$0x1] }
  0xae   :  { %v1446_v39 = vrot.slane %v1444_v32, 2 }
  0xb0   :  { %v1447_v43 = vor.u32 %v1446_v39, %v1443_v37 }
  0xb2   :  { %4012 = vmatmul.mubr.msk.bf16.gmra.mrb[76].mxu0 %vm397_vm15, %v798_v29  ;;  %v1134_v29 = vsel %vm774_vm4, %v1131_v5, %v1133_v51  ;;  %v1448_v47 = vsel %vm1386_vm3, %v1438_v30, %v1447_v43  ;;  %v5082_v5 = vld [vmem:[#allocation2 + $0x54] sm:$0xff]  }
  0xb3   :  { %4083 = vmatprep.mubr.msk.bf16.mxu0 %vm4466_vm0, %v4465_v0  ;;  %v1477_v24 = vshrl.u32 %v5082_v5, 16  ;;  %v1480_v25 = vshll.u32 %v5082_v5, 16 }
  0xb4   :  { %4024 = vmatmul.mubr.msk.bf16.vlgmr.msra.gmra.mrb[76].mxu1 %vm397_vm15, %v1126_v49  ;;  %v1452_v49 = vrot.slane %v1450_v44, 1 }
  0xb5   :  { %4136 = vmatpush3.bf16.msra.mxu1 %v4423_v50  ;;  %4027 = vmatprep.mubr.msk.bf16.mxu1 %vm4466_vm0, %v4465_v0  ;;  %v1455_v50 = vrot.slane %v1453_v45, 2  ;;  %v1482_v30 = vrot.slane %v1480_v25, 2 }
  0xb6   :  { %4137 = vmatprep.subr.bf16.mxu1 %v4465_v0 }
  0xb7   :  { %v1456_v56 = vor.u32 %v1455_v50, %v1452_v49 }
  0xb9   :  { %4138 = vmatpush3.bf16.msra.mxu1 %v4429_v59  ;;  %v1139_v59 = vrot.slane %v5047_v52, 1 }
  0xba   :  { %4084 = vmatmul.mubr.msk.bf16.vlgmr.msra.gmra.mrb[80].mxu0 %vm397_vm15, %v1403_v60  ;;  %4139 = vmatprep.subr.bf16.mxu1 %v4465_v0  ;;  %v1457_v60 = vsel %vm1386_vm3, %v1447_v43, %v1456_v56 }
  0xbb   :  { %4196 = vmatpush3.bf16.msra.mxu0 %v4425_v61  ;;  %4087 = vmatprep.mubr.msk.bf16.mxu0 %vm4466_vm0, %v4465_v0  ;;  %v1461_v61 = vrot.slane %v1459_v57, 1 }
  0xbc   :  { %4197 = vmatprep.subr.bf16.mxu0 %v4465_v0  ;;  %4028 = vmatmul.mubr.msk.bf16.gmra.mrb[80].mxu1 %vm397_vm15, %v1128_v3  ;;  %v1140_v3 = vsel %vm774_vm4, %v1137_v46, %v1139_v59  ;;  %v1373_v46 = vld [vmem:[#allocation2 + $0x68] sm:$0x3] }
  0xbd   :  { %4031 = vmatprep.mubr.msk.bf16.mxu1 %vm4466_vm0, %v4465_v0  ;;  %4140 = vmatpush3.bf16.msra.mxu1 %v4434_v38  ;;  %v1465_v38 = vor.u32 %v1464_v62, %v1461_v61 }
  0xbe   :  { %4141 = vmatprep.subr.bf16.mxu1 %v4465_v0 }
  0xbf   :  { %4198 = vmatpush3.bf16.msra.mxu0 %v4430_v41  ;;  %v46_v41 = vld [vmem:[%s5964_s0 + $0x6c] sm:$0x7]  ;;  %v1466_v42 = vsel %vm1386_vm3, %v1456_v56, %v1465_v38 }
  0xc0   :  { %4199 = vmatprep.subr.bf16.mxu0 %v4465_v0  ;;  %vm74_vm5 = vcmp.gt.bf16.partialorder %v46_v41, 0 }
  0xc1   :  { %4142 = vmatpush3.bf16.msra.mxu1 %v4439_v9  ;;  %v1141_v9 = vrot.slane %v5060_v1, 1 }
  0xc2   :  { %4088 = vmatmul.mubr.msk.bf16.gmra.mrb[84].mxu0 %vm397_vm15, %v1412_v11  ;;  %4255 = vmatprep.subr.bf16.mxu1 %v4465_v0  ;;  %v102_v11 = vmul.bf16 1045249613, %v46_v41 }
  0xc3   :  { %4091 = vmatprep.mubr.msk.bf16.mxu0 %vm4466_vm0, %v4465_v0  ;;  %4200 = vmatpush3.bf16.msra.mxu0 %v4435_v13  ;;  %v1470_v13 = vrot.slane %v1468_v63, 1  ;;  %v1142_v19 = vsel %vm774_vm4, %v1139_v59, %v1141_v9 }
  0xc4   :  { %4201 = vmatprep.subr.bf16.mxu0 %v4465_v0  ;;  %4032 = vmatmul.mubr.msk.bf16.gmra.mrb[84].mxu1 %vm397_vm15, %v1130_v15  ;;  %v1473_v15 = vrot.slane %v1471_v6, 2  ;;  %v130_v36 = vsel %vm74_vm5, %v46_v41, %v102_v11 }
  0xc5   :  { %4035 = vmatprep.mubr.msk.bf16.mxu1 %vm4466_vm0, %v4465_v0  ;;  %160 = vst.msk [vmem:[#allocation2 + $0x6c] sm:$0x7] %vm159_vm6, %v130_v36 }
  0xc7   :  { %4202 = vmatpush3.bf16.msra.mxu0 %v4440_v17 }
  0xc8   :  { %4315 = vmatprep.subr.bf16.mxu0 %v4465_v0 }
  0xca   :  { %4092 = vmatmul.mubr.msk.bf16.gmra.mrb[88].mxu0 %vm397_vm15, %v1421_v18 }
  0xcb   :  { %4095 = vmatprep.mubr.msk.bf16.mxu0 %vm4466_vm0, %v4465_v0 }
  0xcc   :  { %4036 = vmatmul.mubr.msk.bf16.gmra.mrb[88].mxu1 %vm397_vm15, %v1132_v23  ;;  %v1474_v23 = vor.u32 %v1473_v15, %v1470_v13 }
  0xcd   :  { %4039 = vmatprep.mubr.msk.bf16.mxu1 %vm4466_vm0, %v4465_v0 }
  0xce   :  { %v1475_v28 = vsel %vm1386_vm3, %v1465_v38, %v1474_v23 }
  0xd2   :  { %4096 = vmatmul.mubr.msk.bf16.gmra.mrb[92].mxu0 %vm397_vm15, %v1430_v27  ;;  %v1143_v27 = vrot.slane %v5082_v5, 1 }
  0xd3   :  { %4099 = vmatprep.mubr.msk.bf16.mxu0 %vm4466_vm0, %v4465_v0 }
  0xd4   :  { %4040 = vmatmul.mubr.msk.bf16.gmra.mrb[92].mxu1 %vm397_vm15, %v1134_v29  ;;  %v1479_v29 = vrot.slane %v1477_v24, 1  ;;  %v1144_v39 = vsel %vm774_vm4, %v1141_v9, %v1143_v27 }
  0xd5   :  { %4043 = vmatprep.mubr.msk.bf16.mxu1 %vm4466_vm0, %v4465_v0 }
  0xd6   :  { %v1483_v43 = vor.u32 %v1482_v30, %v1479_v29 }
  0xd8   :  { %v1484_v57 = vsel %vm1386_vm3, %v1474_v23, %v1483_v43 }
  0xda   :  { %4100 = vmatmul.mubr.msk.bf16.gmra.mrb[96].mxu0 %vm397_vm15, %v1439_v20  ;;  %v5103_v20 = vld [vmem:[#allocation2 + $0x5c] sm:$0xff]  }
  0xdb   :  { %4103 = vmatprep.mubr.msk.bf16.mxu0 %vm4466_vm0, %v4465_v0  ;;  %v1486_v44 = vshrl.u32 %v5103_v20, 16  ;;  %v1489_v45 = vshll.u32 %v5103_v20, 16  ;;  %v1145_v50 = vrot.slane %v5103_v20, 1 }
  0xdc   :  { %4044 = vmatmul.mubr.msk.bf16.gmra.mrb[96].mxu1 %vm397_vm15, %v1136_v34 }
  0xdd   :  { %4047 = vmatprep.mubr.msk.bf16.mxu1 %vm4466_vm0, %v4465_v0  ;;  %v1491_v61 = vrot.slane %v1489_v45, 2  ;;  %v1146_v6 = vsel %vm774_vm4, %v1143_v27, %v1145_v50 }
  0xe2   :  { %4104 = vmatmul.mubr.msk.bf16.gmra.mrb[100].mxu0 %vm397_vm15, %v1448_v47 }
  0xe3   :  { %4107 = vmatprep.mubr.msk.bf16.mxu0 %vm4466_vm0, %v4465_v0 }
  0xe4   :  { %4048 = vmatmul.mubr.msk.bf16.gmra.mrb[100].mxu1 %vm397_vm15, %v1138_v53  ;;  %v1048_v53 = vld [vmem:[#allocation2 + $0x64] sm:$0xf] }
  0xe5   :  { %4051 = vmatprep.mubr.msk.bf16.mxu1 %vm4466_vm0, %v4465_v0  ;;  %v5122_v59 = vcombine.low %v1048_v53, %v1373_v46  ;;  %v3471_v41 = vcombine.low %v1048_v53, %v1049_v58  ;;  %v1990_v53 = vld [vmem:[#allocation2 + $0x8] sm:$0xc] }
  0xe7   :  { %v1495_v11 = vshrl.u32 %v5122_v59, 16 }
  0xea   :  { %4108 = vmatmul.mubr.msk.bf16.gmra.mrb[104].mxu0 %vm397_vm15, %v1457_v60  ;;  %v1488_v60 = vrot.slane %v1486_v44, 1 }
  0xeb   :  { %4111 = vmatprep.mubr.msk.bf16.mxu0 %vm4466_vm0, %v4465_v0 }
  0xec   :  { %4052 = vmatmul.mubr.msk.bf16.gmra.mrb[104].mxu1 %vm397_vm15, %v1140_v3  ;;  %v1492_v9 = vor.u32 %v1491_v61, %v1488_v60 }
  0xed   :  { %v5069_v7 = vpop.f32.mrb[0].mxu0  ;;  %4055 = vmatprep.mubr.msk.bf16.mxu1 %vm4466_vm0, %v4465_v0 }
  0xee   :  { %v3845_v8 = vpop.f32.mrb[1].mxu0 }
  0xef   :  { %v5077_v12 = vpop.f32.mrb[2].mxu0  ;;  %v5080_v16 = vpop.f32.mrb[0].mxu1 }
  0xf0   :  { %v3846_v4 = vpop.f32.mrb[3].mxu0  ;;  %v3873_v17 = vpop.f32.mrb[1].mxu1 }
  0xf1   :  { %v5084_v18 = vpop.f32.mrb[2].mxu1  ;;  %v1147_v4 = vrot.slane %v3471_v41, 1  ;;  %v1493_v17 = vsel %vm1386_vm3, %v1483_v43, %v1492_v9 }
  0xf2   :  { %4112 = vmatmul.mubr.msk.bf16.gmra.mrb[108].mxu0 %vm397_vm15, %v1466_v42  ;;  %v3874_v21 = vpop.f32.mrb[3].mxu1  ;;  %v1498_v42 = vshll.u32 %v5122_v59, 16 }
  0xf3   :  { %4115 = vmatprep.mubr.msk.bf16.mxu0 %vm4466_vm0, %v4465_v0  ;;  %v1148_v27 = vsel %vm774_vm4, %v1145_v50, %v1147_v4 }
  0xf4   :  { %4056 = vmatmul.mubr.msk.bf16.gmra.mrb[108].mxu1 %vm397_vm15, %v1142_v19  ;;  %v1497_v19 = vrot.slane %v1495_v11, 1  ;;  %v1500_v21 = vrot.slane %v1498_v42, 2 }
  0xf5   :  { %v5093_v26 = vpop.f32.mrb[4].mxu0  ;;  %4059 = vmatprep.mubr.msk.bf16.mxu1 %vm4466_vm0, %v4465_v0 }
  0xf6   :  { %v3849_v51 = vpop.f32.mrb[5].mxu0  ;;  %v1501_v29 = vor.u32 %v1500_v21, %v1497_v19 }
  0xf7   :  { %v5098_v55 = vpop.f32.mrb[6].mxu0  ;;  %v5101_v32 = vpop.f32.mrb[4].mxu1 }
  0xf8   :  { %v3850_v31 = vpop.f32.mrb[7].mxu0  ;;  %v3877_v33 = vpop.f32.mrb[5].mxu1 }
  0xf9   :  { %v5105_v37 = vpop.f32.mrb[6].mxu1 }
  0xfa   :  { %4116 = vmatmul.mubr.msk.bf16.gmra.mrb[112].mxu0 %vm397_vm15, %v1475_v28  ;;  %v3878_v34 = vpop.f32.mrb[7].mxu1 }
  0xfb   :  { %4119 = vmatprep.mubr.msk.bf16.mxu0 %vm4466_vm0, %v4465_v0  ;;  %v1727_v34 = vld [vmem:[#allocation2 + $0x4] sm:$0xc] }
  0xfc   :  { %4060 = vmatmul.mubr.msk.bf16.gmra.mrb[112].mxu1 %vm397_vm15, %v1144_v39  ;;  %v1502_v39 = vsel %vm1386_vm3, %v1492_v9, %v1501_v29 }
  0xfd   :  { %v5114_v47 = vpop.f32.mrb[8].mxu0  ;;  %4063 = vmatprep.mubr.msk.bf16.mxu1 %vm4466_vm0, %v4465_v0 }
  0xfe   :  { %v3853_v49 = vpop.f32.mrb[9].mxu0 }
  0xff   :  { %v5119_v56 = vpop.f32.mrb[10].mxu0  ;;  %v5124_v3 = vpop.f32.mrb[8].mxu1  ;;  %v3523_v49 = vcombine.low %v1727_v34, %v4920_v54 }
 0x100   :  { %v3854_v62 = vpop.f32.mrb[11].mxu0  ;;  %v3881_v38 = vpop.f32.mrb[9].mxu1 }
 0x101   :  { %v5126_v63 = vpop.f32.mrb[10].mxu1  ;;  %v1741_v61 = vrot.slane %v3523_v49, 2  ;;  %v1742_v62 = vrot.slane %v4926_v35, 2  ;;  %v4443_v35 = vld [vmem:[%s5963_s1 + $0xe0] sm:$0xff]  }
 0x102   :  { %4120 = vmatmul.mubr.msk.bf16.gmra.mrb[116].mxu0 %vm397_vm15, %v1484_v57  ;;  %v3882_v8 = vpop.f32.mrb[11].mxu1  ;;  %v5166_v57 = vld [vmem:[#allocation2 + $0xc] sm:$0xf] }
 0x103   :  { %4123 = vmatprep.mubr.msk.bf16.mxu0 %vm4466_vm0, %v4465_v0  ;;  %v5177_v54 = vcombine.low %v1990_v53, %v5166_v57  ;;  %v1743_v42 = vsel %vm1740_vm7, %v1741_v61, %v1742_v62  ;;  %v4451_v61 = vld [vmem:[%s5963_s1 + $0x108] sm:$0xff]  }
 0x104   :  { %4064 = vmatmul.mubr.msk.bf16.gmra.mrb[116].mxu1 %vm397_vm15, %v1146_v6  ;;  %v5179_v6 = vld [vmem:[#allocation2 + $0x10] sm:$0xff]  }
 0x105   :  { %v5135_v13 = vpop.f32.mrb[12].mxu0  ;;  %4067 = vmatprep.mubr.msk.bf16.mxu1 %vm4466_vm0, %v4465_v0 }
 0x106   :  { %v3857_v15 = vpop.f32.mrb[13].mxu0 }
 0x107   :  { %v5139_v36 = vpop.f32.mrb[14].mxu0  ;;  %v5142_v24 = vpop.f32.mrb[12].mxu1 }
 0x108   :  { %v3858_v23 = vpop.f32.mrb[15].mxu0  ;;  %v3885_v25 = vpop.f32.mrb[13].mxu1 }
 0x109   :  { %v5144_v51 = vpop.f32.mrb[14].mxu1  ;;  %v1744_v23 = vrot.slane %v4937_v48, 2  ;;  %v4450_v25 = vld [vmem:[%s5963_s1 + $0xe8] sm:$0xff]  }
 0x10a   :  { %4124 = vmatmul.mubr.msk.bf16.gmra.mrb[120].mxu0 %vm397_vm15, %v1493_v17  ;;  %v3886_v28 = vpop.f32.mrb[15].mxu1  ;;  %v2091_v17 = vrot.slane %v5179_v6, 2 }
 0x10b   :  { %4127 = vmatprep.mubr.msk.bf16.mxu0 %vm4466_vm0, %v4465_v0  ;;  %v1745_v49 = vsel %vm1740_vm7, %v1742_v62, %v1744_v23 }
 0x10c   :  { %4068 = vmatmul.mubr.msk.bf16.gmra.mrb[120].mxu1 %vm397_vm15, %v1148_v27 }
 0x10d   :  { %v5151_v30 = vpop.f32.mrb[16].mxu0  ;;  %4071 = vmatprep.mubr.msk.bf16.mxu1 %vm4466_vm0, %v4465_v0 }
 0x10e   :  { %v3861_v31 = vpop.f32.mrb[17].mxu0 }
 0x10f   :  { %v5155_v33 = vpop.f32.mrb[18].mxu0  ;;  %v5158_v44 = vpop.f32.mrb[16].mxu1  ;;  %v5207_v31 = vld [vmem:[#allocation2 + $0x18] sm:$0xff]  }
 0x110   :  { %v3862_v43 = vpop.f32.mrb[19].mxu0  ;;  %v3889_v45 = vpop.f32.mrb[17].mxu1 }
 0x111   :  { %v5160_v46 = vpop.f32.mrb[18].mxu1 }
 0x112   :  { %4128 = vmatmul.mubr.msk.bf16.gmra.mrb[124].mxu0 %vm397_vm15, %v1502_v39  ;;  %v3890_v50 = vpop.f32.mrb[19].mxu1 }
 0x113   :  { %4131 = vmatprep.mubr.msk.bf16.mxu0 %vm4466_vm0, %v4465_v0  ;;  %v4455_v50 = vld [vmem:[%s5963_s1 + $0xf0] sm:$0xff]  }
 0x114   :  { %4072 = vmatmul.mubr.msk.bf16.gmra.mrb[124].mxu1 %vm397_vm15, %v1147_v4  ;;  %v2090_v4 = vrot.slane %v5177_v54, 2 }
 0x115   :  { %v5169_v58 = vpop.f32.mrb[20].mxu0  ;;  %4143 = vmatprep.mubr.msk.bf16.mxu1 %vm4466_vm0, %v4465_v0 }
 0x116   :  { %v3865_v60 = vpop.f32.mrb[21].mxu0  ;;  %v2092_v28 = vsel %vm1740_vm7, %v2090_v4, %v2091_v17  ;;  %v4456_v4 = vld [vmem:[%s5963_s1 + $0x110] sm:$0xff]  }
 0x117   :  { %v5174_v38 = vpop.f32.mrb[22].mxu0  ;;  %v5181_v8 = vpop.f32.mrb[20].mxu1 }
 0x118   :  { %v3866_v41 = vpop.f32.mrb[23].mxu0  ;;  %v3893_v9 = vpop.f32.mrb[21].mxu1 }
 0x119   :  { %v570_v11 = vpop.f32.mrb[22].mxu1  ;;  %v1746_v9 = vrot.slane %v4960_v2, 2 }
 0x11a   :  { %4132 = vmatmul.mubr.msk.bf16.gmra.mrb[128].mxu0 %vm397_vm15, %v1501_v29  ;;  %v3894_v15 = vpop.f32.mrb[23].mxu1  ;;  %v4446_v29 = vld [vmem:[%s5963_s1 + $0x100] sm:$0xff]   ;;  %v4460_v11 = vld [vmem:[%s5963_s1 + $0xf8] sm:$0xff]  }
 0x11b   :  { %4203 = vmatprep.mubr.msk.bf16.mxu0 %vm4466_vm0, %v4465_v0  ;;  %v5235_v15 = vld [vmem:[#allocation2 + $0x20] sm:$0xff]  }
 0x11c   :  { %4144 = vmatmul.mubr.msk.bf16.vlgmr.msra.gmra.mrb[128].mxu1 %vm397_vm15, %v1743_v42 }
 0x11d   :  { %v5193_v19 = vpop.f32.mrb[24].mxu0  ;;  %4256 = vmatpush3.bf16.msra.mxu1 %v4443_v35  ;;  %4147 = vmatprep.mubr.msk.bf16.mxu1 %vm4466_vm0, %v4465_v0 }
 0x11e   :  { %v3869_v21 = vpop.f32.mrb[25].mxu0  ;;  %4257 = vmatprep.subr.bf16.mxu1 %v4465_v0 }
 0x11f   :  { %v5201_v27 = vpop.f32.mrb[26].mxu0  ;;  %v659_v39 = vpop.f32.mrb[24].mxu1 }
 0x120   :  { %v3870_v34 = vpop.f32.mrb[27].mxu0  ;;  %v660_v48 = vadd.f32 %v659_v39, %v5069_v7  ;;  %v3905_v43 = vpop.f32.mrb[25].mxu1  ;;  %v2093_v7 = vrot.slane %v5207_v31, 2 }
 0x121   :  { %v662_v45 = vpop.f32.mrb[26].mxu1  ;;  %4258 = vmatpush3.bf16.msra.mxu1 %v4450_v25  ;;  %v2095_v43 = vrot.slane %v5235_v15, 2 }
 0x122   :  { %4204 = vmatmul.mubr.msk.bf16.vlgmr.msra.gmra.mrb[132].mxu0 %vm397_vm15, %v2092_v28  ;;  %v663_v53 = vadd.f32 %v662_v45, %v5077_v12  ;;  %v3906_v60 = vpop.f32.mrb[27].mxu1  ;;  %4259 = vmatprep.subr.bf16.mxu1 %v4465_v0  ;;  %v2094_v35 = vsel %vm1740_vm7, %v2091_v17, %v2093_v7  ;;  %v1747_v17 = vsel %vm1740_vm7, %v1744_v23, %v1746_v9 }
 0x123   :  { %4316 = vmatpush3.bf16.msra.mxu0 %v4446_v29  ;;  %4207 = vmatprep.mubr.msk.bf16.mxu0 %vm4466_vm0, %v4465_v0  ;;  %v5262_v60 = vld [vmem:[#allocation2 + $0x28] sm:$0xff]  }
 0x124   :  { %4317 = vmatprep.subr.bf16.mxu0 %v4465_v0  ;;  %4148 = vmatmul.mubr.msk.bf16.gmra.mrb[132].mxu1 %vm397_vm15, %v1745_v49 }
 0x125   :  { %v897_v62 = vpop.f32.mrb[28].mxu0  ;;  %4151 = vmatprep.mubr.msk.bf16.mxu1 %vm4466_vm0, %v4465_v0  ;;  %4260 = vmatpush3.bf16.msra.mxu1 %v4455_v50 }
 0x126   :  { %v5226_v41 = vadd.f32 %v897_v62, %v660_v48  ;;  %v3965_v12 = vpop.f32.mrb[29].mxu0  ;;  %4261 = vmatprep.subr.bf16.mxu1 %v4465_v0 }
 0x127   :  { %v900_v42 = vpop.f32.mrb[30].mxu0  ;;  %4318 = vmatpush3.bf16.msra.mxu0 %v4451_v61  ;;  %v667_v21 = vpop.f32.mrb[28].mxu1 }
 0x128   :  { %v5241_v25 = vadd.f32 %v900_v42, %v663_v53  ;;  %v3966_v2 = vpop.f32.mrb[31].mxu0  ;;  %4319 = vmatprep.subr.bf16.mxu0 %v4465_v0  ;;  %v668_v28 = vadd.f32 %v667_v21, %v5093_v26  ;;  %v3909_v29 = vpop.f32.mrb[29].mxu1  ;;  %v4461_v26 = vld [vmem:[%s5963_s1 + $0x118] sm:$0xff]   ;;  %v2096_v53 = vsel %vm1740_vm7, %v2093_v7, %v2095_v43  ;;  %v2097_v7 = vrot.slane %v5262_v60, 2 }
 0x129   :  { %v670_v39 = vpop.f32.mrb[30].mxu1  ;;  %4262 = vmatpush3.bf16.msra.mxu1 %v4460_v11 }
 0x12a   :  { %4208 = vmatmul.mubr.msk.bf16.gmra.mrb[136].mxu0 %vm397_vm15, %v2094_v35  ;;  %v671_v34 = vadd.f32 %v670_v39, %v5098_v55  ;;  %v3910_v48 = vpop.f32.mrb[31].mxu1  ;;  %v1748_v55 = vrot.slane %v4989_v14, 2  ;;  %v5280_v39 = vld [vmem:[#allocation2 + $0x30] sm:$0xff]  }
 0x12b   :  { %4211 = vmatprep.mubr.msk.bf16.mxu0 %vm4466_vm0, %v4465_v0  ;;  %4320 = vmatpush3.bf16.msra.mxu0 %v4456_v4 }
 0x12c   :  { %4321 = vmatprep.subr.bf16.mxu0 %v4465_v0  ;;  %4152 = vmatmul.mubr.msk.bf16.gmra.mrb[136].mxu1 %vm397_vm15, %v1747_v17  ;;  %v1749_v4 = vsel %vm1740_vm7, %v1746_v9, %v1748_v55  ;;  %v1750_v9 = vrot.slane %v5008_v22, 2 }
 0x12d   :  { %v905_v23 = vpop.f32.mrb[32].mxu0  ;;  %4155 = vmatprep.mubr.msk.bf16.mxu1 %vm4466_vm0, %v4465_v0 }
 0x12e   :  { %v5256_v45 = vadd.f32 %v905_v23, %v668_v28  ;;  %v3969_v49 = vpop.f32.mrb[33].mxu0 }
 0x12f   :  { %v908_v50 = vpop.f32.mrb[34].mxu0  ;;  %4322 = vmatpush3.bf16.msra.mxu0 %v4461_v26  ;;  %v675_v61 = vpop.f32.mrb[32].mxu1 }
 0x130   :  { %v5264_v62 = vadd.f32 %v908_v50, %v671_v34  ;;  %v3970_v12 = vpop.f32.mrb[35].mxu0  ;;  %v676_v11 = vadd.f32 %v675_v61, %v5114_v47  ;;  %v3913_v42 = vpop.f32.mrb[33].mxu1  ;;  %v1751_v50 = vsel %vm1740_vm7, %v1748_v55, %v1750_v9  ;;  %v1752_v55 = vrot.slane %v5021_v10, 2 }
 0x131   :  { %v678_v35 = vpop.f32.mrb[34].mxu1  ;;  %v5298_v42 = vld [vmem:[#allocation2 + $0x38] sm:$0xff]  }
 0x132   :  { %4212 = vmatmul.mubr.msk.bf16.gmra.mrb[140].mxu0 %vm397_vm15, %v2096_v53  ;;  %v679_v14 = vadd.f32 %v678_v35, %v5119_v56  ;;  %v3914_v21 = vpop.f32.mrb[35].mxu1  ;;  %v2098_v56 = vsel %vm1740_vm7, %v2095_v43, %v2097_v7  ;;  %v2099_v43 = vrot.slane %v5280_v39, 2 }
 0x133   :  { %4215 = vmatprep.mubr.msk.bf16.mxu0 %vm4466_vm0, %v4465_v0 }
 0x134   :  { %4156 = vmatmul.mubr.msk.bf16.gmra.mrb[140].mxu1 %vm397_vm15, %v1749_v4 }
 0x135   :  { %v913_v2 = vpop.f32.mrb[36].mxu0  ;;  %4159 = vmatprep.mubr.msk.bf16.mxu1 %vm4466_vm0, %v4465_v0 }
 0x136   :  { %v5274_v28 = vadd.f32 %v913_v2, %v676_v11  ;;  %v3973_v47 = vpop.f32.mrb[37].mxu0 }
 0x137   :  { %v916_v29 = vpop.f32.mrb[38].mxu0  ;;  %v683_v17 = vpop.f32.mrb[36].mxu1 }
 0x138   :  { %v5282_v34 = vadd.f32 %v916_v29, %v679_v14  ;;  %v3974_v48 = vpop.f32.mrb[39].mxu0  ;;  %v684_v26 = vadd.f32 %v683_v17, %v5135_v13  ;;  %v3917_v23 = vpop.f32.mrb[37].mxu1  ;;  %v1753_v29 = vsel %vm1740_vm7, %v1750_v9, %v1752_v55  ;;  %v1754_v9 = vrot.slane %v5034_v40, 2 }
 0x139   :  { %v686_v49 = vpop.f32.mrb[38].mxu1  ;;  %v5316_v23 = vld [vmem:[#allocation2 + $0x40] sm:$0xff]  }
 0x13a   :  { %4216 = vmatmul.mubr.msk.bf16.gmra.mrb[144].mxu0 %vm397_vm15, %v2098_v56  ;;  %v687_v53 = vadd.f32 %v686_v49, %v5139_v36  ;;  %v3918_v22 = vpop.f32.mrb[39].mxu1  ;;  %v2100_v36 = vsel %vm1740_vm7, %v2097_v7, %v2099_v43  ;;  %v2101_v7 = vrot.slane %v5298_v42, 2 }
 0x13b   :  { %4219 = vmatprep.mubr.msk.bf16.mxu0 %vm4466_vm0, %v4465_v0 }
 0x13c   :  { %4160 = vmatmul.mubr.msk.bf16.gmra.mrb[144].mxu1 %vm397_vm15, %v1751_v50 }
 0x13d   :  { %v921_v61 = vpop.f32.mrb[40].mxu0  ;;  %4163 = vmatprep.mubr.msk.bf16.mxu1 %vm4466_vm0, %v4465_v0 }
 0x13e   :  { %v5292_v12 = vadd.f32 %v921_v61, %v684_v26  ;;  %v3977_v13 = vpop.f32.mrb[41].mxu0 }
 0x13f   :  { %v924_v11 = vpop.f32.mrb[42].mxu0  ;;  %v691_v35 = vpop.f32.mrb[40].mxu1 }
 0x140   :  { %v5300_v4 = vadd.f32 %v924_v11, %v687_v53  ;;  %v3978_v14 = vpop.f32.mrb[43].mxu0  ;;  %v692_v21 = vadd.f32 %v691_v35, %v5151_v30  ;;  %v3921_v2 = vpop.f32.mrb[41].mxu1  ;;  %v1755_v11 = vsel %vm1740_vm7, %v1752_v55, %v1754_v9  ;;  %v1756_v55 = vrot.slane %v5047_v52, 2 }
 0x141   :  { %v694_v47 = vpop.f32.mrb[42].mxu1  ;;  %v5334_v2 = vld [vmem:[#allocation2 + $0x48] sm:$0xff]  }
 0x142   :  { %4220 = vmatmul.mubr.msk.bf16.gmra.mrb[148].mxu0 %vm397_vm15, %v2100_v36  ;;  %v695_v56 = vadd.f32 %v694_v47, %v5155_v33  ;;  %v3922_v10 = vpop.f32.mrb[43].mxu1  ;;  %v2102_v33 = vsel %vm1740_vm7, %v2099_v43, %v2101_v7  ;;  %v2103_v43 = vrot.slane %v5316_v23, 2 }
 0x143   :  { %4223 = vmatprep.mubr.msk.bf16.mxu0 %vm4466_vm0, %v4465_v0 }
 0x144   :  { %4164 = vmatmul.mubr.msk.bf16.gmra.mrb[148].mxu1 %vm397_vm15, %v1753_v29 }
 0x145   :  { %v929_v17 = vpop.f32.mrb[44].mxu0  ;;  %4167 = vmatprep.mubr.msk.bf16.mxu1 %vm4466_vm0, %v4465_v0 }
 0x146   :  { %v5310_v48 = vadd.f32 %v929_v17, %v692_v21  ;;  %v3981_v30 = vpop.f32.mrb[45].mxu0 }
 0x147   :  { %v932_v26 = vpop.f32.mrb[46].mxu0  ;;  %v699_v49 = vpop.f32.mrb[44].mxu1 }
 0x148   :  { %v5318_v50 = vadd.f32 %v932_v26, %v695_v56  ;;  %v3982_v53 = vpop.f32.mrb[47].mxu0  ;;  %v700_v22 = vadd.f32 %v699_v49, %v5169_v58  ;;  %v3925_v61 = vpop.f32.mrb[45].mxu1  ;;  %v1757_v26 = vsel %vm1740_vm7, %v1754_v9, %v1756_v55  ;;  %v1758_v9 = vrot.slane %v5060_v1, 2 }
 0x149   :  { %v702_v13 = vpop.f32.mrb[46].mxu1  ;;  %v5352_v61 = vld [vmem:[#allocation2 + $0x50] sm:$0xff]  }
 0x14a   :  { %4224 = vmatmul.mubr.msk.bf16.gmra.mrb[152].mxu0 %vm397_vm15, %v2102_v33  ;;  %v703_v36 = vadd.f32 %v702_v13, %v5174_v38  ;;  %v3926_v40 = vpop.f32.mrb[47].mxu1  ;;  %v2104_v38 = vsel %vm1740_vm7, %v2101_v7, %v2103_v43  ;;  %v2105_v7 = vrot.slane %v5334_v2, 2 }
 0x14b   :  { %4227 = vmatprep.mubr.msk.bf16.mxu0 %vm4466_vm0, %v4465_v0 }
 0x14c   :  { %4168 = vmatmul.mubr.msk.bf16.gmra.mrb[152].mxu1 %vm397_vm15, %v1755_v11 }
 0x14d   :  { %v937_v35 = vpop.f32.mrb[48].mxu0  ;;  %4171 = vmatprep.mubr.msk.bf16.mxu1 %vm4466_vm0, %v4465_v0 }
 0x14e   :  { %v5328_v14 = vadd.f32 %v937_v35, %v700_v22  ;;  %v3985_v58 = vpop.f32.mrb[49].mxu0 }
 0x14f   :  { %v940_v21 = vpop.f32.mrb[50].mxu0  ;;  %v707_v47 = vpop.f32.mrb[48].mxu1 }
 0x150   :  { %v5336_v29 = vadd.f32 %v940_v21, %v703_v36  ;;  %v3986_v56 = vpop.f32.mrb[51].mxu0  ;;  %v708_v10 = vadd.f32 %v707_v47, %v5193_v19  ;;  %v3929_v17 = vpop.f32.mrb[49].mxu1  ;;  %v1759_v21 = vsel %vm1740_vm7, %v1756_v55, %v1758_v9  ;;  %v1760_v55 = vrot.slane %v5082_v5, 2 }
 0x151   :  { %v710_v30 = vpop.f32.mrb[50].mxu1  ;;  %v5370_v17 = vld [vmem:[#allocation2 + $0x58] sm:$0xff]  }
 0x152   :  { %4228 = vmatmul.mubr.msk.bf16.gmra.mrb[156].mxu0 %vm397_vm15, %v2104_v38  ;;  %v711_v33 = vadd.f32 %v710_v30, %v5201_v27  ;;  %v3930_v52 = vpop.f32.mrb[51].mxu1  ;;  %v2106_v27 = vsel %vm1740_vm7, %v2103_v43, %v2105_v7  ;;  %v2107_v43 = vrot.slane %v5352_v61, 2 }
 0x153   :  { %4231 = vmatprep.mubr.msk.bf16.mxu0 %vm4466_vm0, %v4465_v0 }
 0x154   :  { %4172 = vmatmul.mubr.msk.bf16.gmra.mrb[156].mxu1 %vm397_vm15, %v1757_v26 }
 0x155   :  { %v945_v49 = vpop.f32.mrb[52].mxu0  ;;  %4175 = vmatprep.mubr.msk.bf16.mxu1 %vm4466_vm0, %v4465_v0 }
 0x156   :  { %v5346_v53 = vadd.f32 %v945_v49, %v708_v10  ;;  %v3989_v19 = vpop.f32.mrb[53].mxu0 }
 0x157   :  { %v948_v22 = vpop.f32.mrb[54].mxu0  ;;  %v715_v13 = vpop.f32.mrb[52].mxu1 }
 0x158   :  { %v5354_v11 = vadd.f32 %v948_v22, %v711_v33  ;;  %v3990_v36 = vpop.f32.mrb[55].mxu0  ;;  %v716_v40 = vadd.f32 %v715_v13, %v5080_v16  ;;  %v3933_v35 = vpop.f32.mrb[53].mxu1  ;;  %v1761_v22 = vsel %vm1740_vm7, %v1758_v9, %v1760_v55  ;;  %v4467_v13 = vmov 0   ;;  %v3063_v9 = vld [vmem:[%s5965_s3] sm:$0xff] }
 0x159   :  { %v718_v58 = vpop.f32.mrb[54].mxu1  ;;  %4386 = vset.pattern.permute.xlu0 %v4467_v13  ;;  %4387 = vset.pattern.permute.xlu1 %v4467_v13 }
 0x15a   :  { %4232 = vmatmul.mubr.msk.bf16.gmra.mrb[160].mxu0 %vm397_vm15, %v2106_v27  ;;  %v719_v38 = vadd.f32 %v718_v58, %v5084_v18  ;;  %v3934_v1 = vpop.f32.mrb[55].mxu1  ;;  %v2108_v18 = vsel %vm1740_vm7, %v2105_v7, %v2107_v43  ;;  %v2109_v7 = vrot.slane %v5370_v17, 2  ;;  %3090 = vperm.xlu0 %4386, %v3063_v9  }
 0x15b   :  { %4235 = vmatprep.mubr.msk.bf16.mxu0 %vm4466_vm0, %v4465_v0 }
 0x15c   :  { %4176 = vmatmul.mubr.msk.bf16.gmra.mrb[160].mxu1 %vm397_vm15, %v1759_v21  ;;  %v2110_v58 = vsel %vm1740_vm7, %v2107_v43, %v2109_v7  ;;  %v5391_v21 = vld [vmem:[#allocation2 + $0x60] sm:$0xff]   ;;  %v3065_v43 = vld [vmem:[%s5965_s3 + $0x10] sm:$0xff] }
 0x15d   :  { %v953_v47 = vpop.f32.mrb[56].mxu0  ;;  %4179 = vmatprep.mubr.msk.bf16.mxu1 %vm4466_vm0, %v4465_v0  ;;  %3100 = vperm.xlu1 %4387, %v3065_v43   ;;  %v2354_v43 = vshrl.u32 %v5177_v54, 16 }
 0x15e   :  { %v5364_v56 = vadd.f32 %v953_v47, %v716_v40  ;;  %v3993_v16 = vpop.f32.mrb[57].mxu0 }
 0x15f   :  { %v956_v10 = vpop.f32.mrb[58].mxu0  ;;  %v723_v30 = vpop.f32.mrb[56].mxu1 }
 0x160   :  { %v5372_v26 = vadd.f32 %v956_v10, %v719_v38  ;;  %v3994_v33 = vpop.f32.mrb[59].mxu0  ;;  %v724_v52 = vadd.f32 %v723_v30, %v5101_v32  ;;  %v3937_v49 = vpop.f32.mrb[57].mxu1 }
 0x161   :  { %v726_v19 = vpop.f32.mrb[58].mxu1  ;;  %v5408_v49 = vld [vmem:[#allocation2 + $0x68] sm:$0xf] }
 0x162   :  { %4236 = vmatmul.mubr.msk.bf16.gmra.mrb[164].mxu0 %vm397_vm15, %v2108_v18  ;;  %v727_v27 = vadd.f32 %v726_v19, %v5105_v37  ;;  %v3938_v5 = vpop.f32.mrb[59].mxu1  ;;  %v1762_v37 = vrot.slane %v5103_v20, 2  ;;  %v3064_v20 = vld [vmem:[%s5965_s3 + $0x8] sm:$0xff] }
 0x163   :  { %4239 = vmatprep.mubr.msk.bf16.mxu0 %vm4466_vm0, %v4465_v0  ;;  %3095 = vperm.xlu0 %4386, %v3064_v20   ;;  %v2015_v19 = vld [vmem:[#allocation2 + $0x6c] sm:$0x3]  ;;  %v1764_v5 = vrot.slane %v5122_v59, 2 }
 0x164   :  { %4180 = vmatmul.mubr.msk.bf16.gmra.mrb[164].mxu1 %vm397_vm15, %v1761_v22  ;;  %v1763_v30 = vsel %vm1740_vm7, %v1760_v55, %v1762_v37  ;;  %v3067_v55 = vld [vmem:[%s5965_s3 + $0x20] sm:$0xff] }
 0x165   :  { %v961_v32 = vpop.f32.mrb[60].mxu0  ;;  %4183 = vmatprep.mubr.msk.bf16.mxu1 %vm4466_vm0, %v4465_v0  ;;  %v1765_v59 = vsel %vm1740_vm7, %v1762_v37, %v1764_v5 }
 0x166   :  { %v5382_v36 = vadd.f32 %v961_v32, %v724_v52  ;;  %v3997_v40 = vpop.f32.mrb[61].mxu0 }
 0x167   :  { %v964_v35 = vpop.f32.mrb[62].mxu0  ;;  %v731_v38 = vpop.f32.mrb[60].mxu1  ;;  %v3561_v40 = vcombine.low %v5408_v49, %v2015_v19  ;;  %3110 = vperm.xlu0 %4386, %v3067_v55   ;;  %v2362_v55 = vshrl.u32 %v5179_v6, 16 }
 0x168   :  { %v5393_v1 = vadd.f32 %v964_v35, %v727_v27  ;;  %v3998_v47 = vpop.f32.mrb[63].mxu0  ;;  %v732_v16 = vadd.f32 %v731_v38, %v5124_v3  ;;  %v3941_v10 = vpop.f32.mrb[61].mxu1  ;;  %v2111_v3 = vrot.slane %v5391_v21, 2 }
 0x169   :  { %v734_v18 = vpop.f32.mrb[62].mxu1 }
 0x16a   :  { %4240 = vmatmul.mubr.msk.bf16.gmra.mrb[168].mxu0 %vm397_vm15, %v2110_v58  ;;  %v735_v33 = vadd.f32 %v734_v18, %v5126_v63  ;;  %v3942_v52 = vpop.f32.mrb[63].mxu1  ;;  %v2112_v32 = vsel %vm1740_vm7, %v2109_v7, %v2111_v3  ;;  %v2113_v18 = vrot.slane %v3561_v40, 2 }
 0x16b   :  { %4243 = vmatprep.mubr.msk.bf16.mxu0 %vm4466_vm0, %v4465_v0 }
 0x16c   :  { %4184 = vmatmul.mubr.msk.bf16.gmra.mrb[168].mxu1 %vm397_vm15, %v1763_v30  ;;  %v3068_v30 = vld [vmem:[%s5965_s3 + $0x28] sm:$0xff] }
 0x16d   :  { %v969_v22 = vpop.f32.mrb[64].mxu0  ;;  %4187 = vmatprep.mubr.msk.bf16.mxu1 %vm4466_vm0, %v4465_v0 }
 0x16e   :  { %v5414_v27 = vadd.f32 %v969_v22, %v732_v16  ;;  %v4001_v63 = vpop.f32.mrb[65].mxu0  ;;  %v3066_v16 = vld [vmem:[%s5965_s3 + $0x18] sm:$0xff]  ;;  %v2365_v22 = vshll.u32 %v5179_v6, 16 }
 0x16f   :  { %v972_v13 = vpop.f32.mrb[66].mxu0  ;;  %v739_v9 = vpop.f32.mrb[64].mxu1  ;;  %3105 = vperm.xlu1 %4387, %v3066_v16  }
 0x170   :  { %v5421_v35 = vadd.f32 %v972_v13, %v735_v33  ;;  %v4002_v58 = vpop.f32.mrb[67].mxu0  ;;  %v740_v38 = vadd.f32 %v739_v9, %v5142_v24  ;;  %v3945_v47 = vpop.f32.mrb[65].mxu1  ;;  %v3069_v24 = vld [vmem:[%s5965_s3 + $0x30] sm:$0xff]  ;;  %v3071_v33 = vld [vmem:[%s5965_s3 + $0x40] sm:$0xff]  ;;  %v2114_v13 = vsel %vm1740_vm7, %v2111_v3, %v2113_v18  ;;  %v3070_v3 = vld [vmem:[%s5965_s3 + $0x38] sm:$0xff] }
 0x171   :  { %v742_v10 = vpop.f32.mrb[66].mxu1  ;;  %3120 = vperm.xlu0 %4386, %v3069_v24  }
 0x172   :  { %4244 = vmatmul.mubr.msk.bf16.gmra.mrb[172].mxu0 %vm397_vm15, %v2112_v32  ;;  %v743_v7 = vadd.f32 %v742_v10, %v5144_v51  ;;  %v3946_v20 = vpop.f32.mrb[67].mxu1  ;;  %v2357_v51 = vshll.u32 %v5177_v54, 16  ;;  %v2364_v10 = vrot.slane %v2362_v55, 2  ;;  %v2371_v55 = vshrl.u32 %v5207_v31, 16 }
 0x173   :  { %4247 = vmatprep.mubr.msk.bf16.mxu0 %vm4466_vm0, %v4465_v0  ;;  %3115 = vperm.xlu1 %4387, %v3068_v30  }
 0x174   :  { %4188 = vmatmul.mubr.msk.bf16.gmra.mrb[172].mxu1 %vm397_vm15, %v1765_v59  ;;  %v2359_v47 = vrot.slane %v2357_v51, 3  ;;  %v2367_v59 = vrot.slane %v2365_v22, 3 }
 0x175   :  { %v977_v37 = vpop.f32.mrb[68].mxu0  ;;  %4191 = vmatprep.mubr.msk.bf16.mxu1 %vm4466_vm0, %v4465_v0  ;;  %3130 = vperm.xlu0 %4386, %v3071_v33  }
 0x176   :  { %v5444_v52 = vadd.f32 %v977_v37, %v740_v38  ;;  %v4005_v19 = vpop.f32.mrb[69].mxu0  ;;  %v2356_v38 = vrot.slane %v2354_v43, 2  ;;  %v3075_v43 = vld [vmem:[%s5965_s3 + $0x60] sm:$0xff] }
 0x177   :  { %v980_v63 = vpop.f32.mrb[70].mxu0  ;;  %v747_v32 = vpop.f32.mrb[68].mxu1  ;;  %3125 = vperm.xlu1 %4387, %v3070_v3   ;;  %v2368_v19 = vor.u32 %v2367_v59, %v2364_v10  ;;  %v3076_v3 = vld [vmem:[%s5965_s3 + $0x68] sm:$0xff] }
 0x178   :  { %v5451_v54 = vadd.f32 %v980_v63, %v743_v7  ;;  %v4006_v40 = vpop.f32.mrb[71].mxu0  ;;  %v748_v9 = vadd.f32 %v747_v32, %v5158_v44  ;;  %v3949_v58 = vpop.f32.mrb[69].mxu1  ;;  %v3073_v44 = vld [vmem:[%s5965_s3 + $0x50] sm:$0xff]  ;;  %v2693_v7 = vld [vmem:[#allocation2 + $0x8] sm:$0x8]  ;;  %v2360_v37 = vor.u32 %v2359_v47, %v2356_v38 }
 0x179   :  { %v750_v16 = vpop.f32.mrb[70].mxu1  ;;  %3140 = vperm.xlu0 %4386, %v3073_v44   ;;  %v3613_v63 = vcombine.low %v2693_v7, %v5166_v57 }
 0x17a   :  { %4248 = vmatmul.mubr.msk.bf16.gmra.mrb[176].mxu0 %vm397_vm15, %v2114_v13  ;;  %v751_v20 = vadd.f32 %v750_v16, %v5160_v46  ;;  %v3950_v24 = vpop.f32.mrb[71].mxu1  ;;  %v3072_v46 = vld [vmem:[%s5965_s3 + $0x48] sm:$0xff]  ;;  %v2369_v47 = vsel %vm2352_vm8, %v2360_v37, %v2368_v19  ;;  %v2373_v16 = vrot.slane %v2371_v55, 2  ;;  %v2380_v37 = vshrl.u32 %v5235_v15, 16 }
 0x17b   :  { %4251 = vmatprep.mubr.msk.bf16.mxu0 %vm4466_vm0, %v4465_v0  ;;  %3135 = vperm.xlu1 %4387, %v3072_v46   ;;  %v2707_v57 = vrot.slane %v3613_v63, 3  ;;  %v3074_v24 = vld [vmem:[%s5965_s3 + $0x58] sm:$0xff]  ;;  %v2383_v46 = vshll.u32 %v5235_v15, 16 }
 0x17c   :  { %4192 = vmatmul.mubr.msk.bf16.gmra.mrb[176].mxu1 %vm397_vm15, %v1764_v5  ;;  %v2374_v5 = vshll.u32 %v5207_v31, 16 }
 0x17d   :  { %v985_v30 = vpop.f32.mrb[72].mxu0  ;;  %4263 = vmatprep.mubr.msk.bf16.mxu1 %vm4466_vm0, %v4465_v0  ;;  %3150 = vperm.xlu0 %4386, %v3075_v43  }
 0x17e   :  { %v5471_v51 = vadd.f32 %v985_v30, %v748_v9  ;;  %v4009_v33 = vpop.f32.mrb[73].mxu0  ;;  %v2376_v10 = vrot.slane %v2374_v5, 3 }
 0x17f   :  { %v988_v22 = vpop.f32.mrb[74].mxu0  ;;  %v755_v13 = vpop.f32.mrb[72].mxu1  ;;  %3145 = vperm.xlu1 %4387, %v3074_v24  }
 0x180   :  { %v5478_v32 = vadd.f32 %v988_v22, %v751_v20  ;;  %v4010_v40 = vpop.f32.mrb[75].mxu0  ;;  %v756_v9 = vadd.f32 %v755_v13, %v5181_v8  ;;  %v3953_v58 = vpop.f32.mrb[73].mxu1  ;;  %v2708_v20 = vrot.slane %v5179_v6, 3  ;;  %v3077_v8 = vld [vmem:[%s5965_s3 + $0x70] sm:$0xff]  ;;  %v3079_v6 = vld [vmem:[%s5965_s3 + $0x80] sm:$0xff]  ;;  %v2377_v30 = vor.u32 %v2376_v10, %v2373_v16 }
 0x181   :  { %v758_v38 = vpop.f32.mrb[74].mxu1  ;;  %3160 = vperm.xlu0 %4386, %v3077_v8   ;;  %v2385_v58 = vrot.slane %v2383_v46, 3  ;;  %v2710_v16 = vrot.slane %v5207_v31, 3  ;;  %v3083_v31 = vld [vmem:[%s5965_s3 + $0xa0] sm:$0xff]  ;;  %v2389_v8 = vshrl.u32 %v5262_v60, 16 }
 0x182   :  { %4252 = vmatmul.mubr.msk.bf16.gmra.mrb[180].mxu0 %vm397_vm15, %v2113_v18  ;;  %v3954_v59 = vpop.f32.mrb[75].mxu1  ;;  %v2709_v33 = vsel %vm2706_vm9, %v2707_v57, %v2708_v20  ;;  %v2378_v40 = vsel %vm2352_vm8, %v2368_v19, %v2377_v30  ;;  %v3081_v19 = vld [vmem:[%s5965_s3 + $0x90] sm:$0xff] }
 0x183   :  { %4323 = vmatprep.mubr.msk.bf16.mxu0 %vm4466_vm0, %v4465_v0  ;;  %3155 = vperm.xlu1 %4387, %v3076_v3  }
 0x184   :  { %4264 = vmatmul.mubr.msk.bf16.vlgmr.msra.gmra.mrb[180].mxu1 %vm397_vm15, %v2369_v47 }
 0x185   :  { %v993_v18 = vpop.f32.mrb[76].mxu0  ;;  %4267 = vmatprep.mubr.msk.bf16.mxu1 %vm4466_vm0, %v4465_v0  ;;  %3170 = vperm.xlu0 %4386, %v3079_v6   ;;  %v2711_v6 = vsel %vm2706_vm9, %v2708_v20, %v2710_v16  ;;  %v2712_v20 = vrot.slane %v5235_v15, 3  ;;  %v3087_v15 = vld [vmem:[%s5965_s3 + $0xc0] sm:$0xff] }
 0x186   :  { %v5499_v44 = vadd.f32 %v993_v18, %v756_v9  ;;  %v4013_v7 = vpop.f32.mrb[77].mxu0  ;;  %v2382_v9 = vrot.slane %v2380_v37, 2  ;;  %v2392_v18 = vshll.u32 %v5262_v60, 16 }
 0x187   :  { %v996_v43 = vpop.f32.mrb[78].mxu0  ;;  %v1246_v55 = vpop.f32.mrb[76].mxu1 }
 0x188   :  { %v4014_v5 = vpop.f32.mrb[79].mxu0  ;;  %v1348_v22 = vadd.f32 %v1246_v55, %v5226_v41  ;;  %v4025_v63 = vpop.f32.mrb[77].mxu1  ;;  %v3078_v41 = vld [vmem:[%s5965_s3 + $0x78] sm:$0xff]  ;;  %v2386_v24 = vor.u32 %v2385_v58, %v2382_v9 }
 0x189   :  { %v1249_v13 = vpop.f32.mrb[78].mxu1  ;;  %3165 = vperm.xlu1 %4387, %v3078_v41   ;;  %3180 = vperm.xlu0 %4386, %v3081_v19   ;;  %v2394_v63 = vrot.slane %v2392_v18, 3  ;;  %v2398_v41 = vshrl.u32 %v5280_v39, 16  ;;  %v2401_v19 = vshll.u32 %v5280_v39, 16 }
 0x18a   :  { %4324 = vmatmul.mubr.msk.bf16.vlgmr.msra.gmra.mrb[184].mxu0 %vm397_vm15, %v2709_v33  ;;  %v1349_v38 = vadd.f32 %v1249_v13, %v5241_v25  ;;  %v4026_v47 = vpop.f32.mrb[79].mxu1  ;;  %v3080_v25 = vld [vmem:[%s5965_s3 + $0x88] sm:$0xff]  ;;  %v2387_v5 = vsel %vm2352_vm8, %v2377_v30, %v2386_v24  ;;  %v3085_v30 = vld [vmem:[%s5965_s3 + $0xb0] sm:$0xff] }
 0x18b   :  { %4327 = vmatprep.mubr.msk.bf16.mxu0 %vm4466_vm0, %v4465_v0 }
 0x18c   :  { %4268 = vmatmul.mubr.msk.bf16.gmra.mrb[184].mxu1 %vm397_vm15, %v2378_v40 }
 0x18d   :  { %v1600_v10 = vpop.f32.mrb[80].mxu0  ;;  %4271 = vmatprep.mubr.msk.bf16.mxu1 %vm4466_vm0, %v4465_v0  ;;  %3175 = vperm.xlu1 %4387, %v3080_v25   ;;  %v2713_v25 = vsel %vm2706_vm9, %v2710_v16, %v2712_v20  ;;  %v2714_v16 = vrot.slane %v5262_v60, 3 }
 0x18e   :  { %v5526_v59 = vadd.f32 %v1600_v10, %v1348_v22  ;;  %v4085_v57 = vpop.f32.mrb[81].mxu0  ;;  %3190 = vperm.xlu0 %4386, %v3083_v31   ;;  %v2391_v22 = vrot.slane %v2389_v8, 2 }
 0x18f   :  { %v1603_v3 = vpop.f32.mrb[82].mxu0  ;;  %v1254_v7 = vpop.f32.mrb[80].mxu1 }
 0x190   :  { %v5533_v37 = vadd.f32 %v1603_v3, %v1349_v38  ;;  %v4086_v46 = vpop.f32.mrb[83].mxu0  ;;  %v1350_v43 = vadd.f32 %v1254_v7, %v5256_v45  ;;  %v4029_v33 = vpop.f32.mrb[81].mxu1  ;;  %v3082_v45 = vld [vmem:[%s5965_s3 + $0x98] sm:$0xff]  ;;  %v2395_v47 = vor.u32 %v2394_v63, %v2391_v22  ;;  %v2407_v63 = vshrl.u32 %v5298_v42, 16 }
 0x191   :  { %v1257_v55 = vpop.f32.mrb[82].mxu1  ;;  %3185 = vperm.xlu1 %4387, %v3082_v45   ;;  %v2400_v46 = vrot.slane %v2398_v41, 2 }
 0x192   :  { %4328 = vmatmul.mubr.msk.bf16.gmra.mrb[188].mxu0 %vm397_vm15, %v2711_v6  ;;  %v1351_v13 = vadd.f32 %v1257_v55, %v5264_v62  ;;  %v4030_v40 = vpop.f32.mrb[83].mxu1  ;;  %3200 = vperm.xlu0 %4386, %v3085_v30   ;;  %v3084_v62 = vld [vmem:[%s5965_s3 + $0xa8] sm:$0xff]  ;;  %v2396_v7 = vsel %vm2352_vm8, %v2386_v24, %v2395_v47 }
 0x193   :  { %4331 = vmatprep.mubr.msk.bf16.mxu0 %vm4466_vm0, %v4465_v0  ;;  %v2715_v40 = vsel %vm2706_vm9, %v2712_v20, %v2714_v16  ;;  %v2716_v20 = vrot.slane %v5280_v39, 3 }
 0x194   :  { %4272 = vmatmul.mubr.msk.bf16.gmra.mrb[188].mxu1 %vm397_vm15, %v2387_v5 }
 0x195   :  { %v1608_v9 = vpop.f32.mrb[84].mxu0  ;;  %4275 = vmatprep.mubr.msk.bf16.mxu1 %vm4466_vm0, %v4465_v0  ;;  %3195 = vperm.xlu1 %4387, %v3084_v62  }
 0x196   :  { %v5555_v58 = vadd.f32 %v1608_v9, %v1350_v43  ;;  %v4089_v38 = vpop.f32.mrb[85].mxu0  ;;  %3210 = vperm.xlu0 %4386, %v3087_v15   ;;  %v2403_v43 = vrot.slane %v2401_v19, 3  ;;  %v2409_v19 = vrot.slane %v2407_v63, 2 }
 0x197   :  { %v1611_v10 = vpop.f32.mrb[86].mxu0  ;;  %v1262_v31 = vpop.f32.mrb[84].mxu1 }
 0x198   :  { %v5562_v57 = vadd.f32 %v1611_v10, %v1351_v13  ;;  %v4090_v8 = vpop.f32.mrb[87].mxu0  ;;  %v1352_v18 = vadd.f32 %v1262_v31, %v5274_v28  ;;  %v4033_v3 = vpop.f32.mrb[85].mxu1  ;;  %v3086_v28 = vld [vmem:[%s5965_s3 + $0xb8] sm:$0xff]  ;;  %v2410_v13 = vshll.u32 %v5298_v42, 16 }
 0x199   :  { %v1265_v6 = vpop.f32.mrb[86].mxu1  ;;  %3205 = vperm.xlu1 %4387, %v3086_v28   ;;  %v2416_v3 = vshrl.u32 %v5316_v23, 16 }
 0x19a   :  { %4332 = vmatmul.mubr.msk.bf16.gmra.mrb[192].mxu0 %vm397_vm15, %v2713_v25  ;;  %v1353_v33 = vadd.f32 %v1265_v6, %v5282_v34  ;;  %v4034_v55 = vpop.f32.mrb[87].mxu1  ;;  %v2404_v34 = vor.u32 %v2403_v43, %v2400_v46  ;;  %v2412_v10 = vrot.slane %v2410_v13, 3 }
 0x19b   :  { %4335 = vmatprep.mubr.msk.bf16.mxu0 %vm4466_vm0, %v4465_v0 }
 0x19c   :  { %4276 = vmatmul.mubr.msk.bf16.gmra.mrb[192].mxu1 %vm397_vm15, %v2396_v7  ;;  %v2405_v41 = vsel %vm2352_vm8, %v2395_v47, %v2404_v34  ;;  %v2413_v47 = vor.u32 %v2412_v10, %v2409_v19  ;;  %v2717_v7 = vsel %vm2706_vm9, %v2714_v16, %v2716_v20  ;;  %v2718_v16 = vrot.slane %v5298_v42, 3 }
 0x19d   :  { %v1616_v24 = vpop.f32.mrb[88].mxu0  ;;  %4279 = vmatprep.mubr.msk.bf16.mxu1 %vm4466_vm0, %v4465_v0 }
 0x19e   :  { %v5575_v5 = vadd.f32 %v1616_v24, %v1352_v18  ;;  %v4093_v22 = vpop.f32.mrb[89].mxu0  ;;  %v2414_v24 = vsel %vm2352_vm8, %v2404_v34, %v2413_v47 }
 0x19f   :  { %v1619_v60 = vpop.f32.mrb[90].mxu0  ;;  %v1270_v45 = vpop.f32.mrb[88].mxu1  ;;  %v2418_v22 = vrot.slane %v2416_v3, 2 }
 0x1a0   :  { %v5582_v30 = vadd.f32 %v1619_v60, %v1353_v33  ;;  %v4094_v9 = vpop.f32.mrb[91].mxu0  ;;  %v1354_v62 = vadd.f32 %v1270_v45, %v5292_v12  ;;  %v4037_v15 = vpop.f32.mrb[89].mxu1 }
 0x1a1   :  { %v1273_v38 = vpop.f32.mrb[90].mxu1  ;;  %v2425_v9 = vshrl.u32 %v5334_v2, 16  ;;  %v2719_v15 = vsel %vm2706_vm9, %v2716_v20, %v2718_v16  ;;  %v2720_v20 = vrot.slane %v5316_v23, 3 }
 0x1a2   :  { %4336 = vmatmul.mubr.msk.bf16.gmra.mrb[196].mxu0 %vm397_vm15, %v2715_v40  ;;  %v1355_v25 = vadd.f32 %v1273_v38, %v5300_v4  ;;  %v4038_v31 = vpop.f32.mrb[91].mxu1  ;;  %v2419_v4 = vshll.u32 %v5316_v23, 16 }
 0x1a3   :  { %4339 = vmatprep.mubr.msk.bf16.mxu0 %vm4466_vm0, %v4465_v0 }
 0x1a4   :  { %4280 = vmatmul.mubr.msk.bf16.gmra.mrb[196].mxu1 %vm397_vm15, %v2405_v41  ;;  %v2421_v63 = vrot.slane %v2419_v4, 3 }
 0x1a5   :  { %v1624_v8 = vpop.f32.mrb[92].mxu0  ;;  %4283 = vmatprep.mubr.msk.bf16.mxu1 %vm4466_vm0, %v4465_v0 }
 0x1a6   :  { %v5592_v12 = vadd.f32 %v1624_v8, %v1354_v62  ;;  %v4097_v18 = vpop.f32.mrb[93].mxu0  ;;  %v2422_v34 = vor.u32 %v2421_v63, %v2418_v22  ;;  %v2427_v8 = vrot.slane %v2425_v9, 2 }
 0x1a7   :  { %v1627_v6 = vpop.f32.mrb[94].mxu0  ;;  %v1278_v46 = vpop.f32.mrb[92].mxu1 }
 0x1a8   :  { %v5599_v43 = vadd.f32 %v1627_v6, %v1355_v25  ;;  %v4098_v39 = vpop.f32.mrb[95].mxu0  ;;  %v1356_v33 = vadd.f32 %v1278_v46, %v5310_v48  ;;  %v4041_v55 = vpop.f32.mrb[93].mxu1  ;;  %v2423_v31 = vsel %vm2352_vm8, %v2413_v47, %v2422_v34  ;;  %v2434_v46 = vshrl.u32 %v5352_v61, 16 }
 0x1a9   :  { %v1281_v28 = vpop.f32.mrb[94].mxu1 }
 0x1aa   :  { %4340 = vmatmul.mubr.msk.bf16.gmra.mrb[200].mxu0 %vm397_vm15, %v2717_v7  ;;  %v1357_v13 = vadd.f32 %v1281_v28, %v5318_v50  ;;  %v4042_v60 = vpop.f32.mrb[95].mxu1  ;;  %v2428_v50 = vshll.u32 %v5334_v2, 16 }
 0x1ab   :  { %4343 = vmatprep.mubr.msk.bf16.mxu0 %vm4466_vm0, %v4465_v0  ;;  %v2436_v60 = vrot.slane %v2434_v46, 2 }
 0x1ac   :  { %4284 = vmatmul.mubr.msk.bf16.gmra.mrb[200].mxu1 %vm397_vm15, %v2414_v24  ;;  %v2430_v18 = vrot.slane %v2428_v50, 3 }
 0x1ad   :  { %v1632_v40 = vpop.f32.mrb[96].mxu0  ;;  %4287 = vmatprep.mubr.msk.bf16.mxu1 %vm4466_vm0, %v4465_v0 }
 0x1ae   :  { %v5609_v48 = vadd.f32 %v1632_v40, %v1356_v33  ;;  %v4101_v45 = vpop.f32.mrb[97].mxu0  ;;  %v2431_v47 = vor.u32 %v2430_v18, %v2427_v8  ;;  %v2721_v33 = vsel %vm2706_vm9, %v2718_v16, %v2720_v20  ;;  %v2722_v16 = vrot.slane %v5334_v2, 3 }
 0x1af   :  { %v1635_v62 = vpop.f32.mrb[98].mxu0  ;;  %v1286_v38 = vpop.f32.mrb[96].mxu1 }
 0x1b0   :  { %v5616_v41 = vadd.f32 %v1635_v62, %v1357_v13  ;;  %v4102_v42 = vpop.f32.mrb[99].mxu0  ;;  %v1358_v19 = vadd.f32 %v1286_v38, %v5328_v14  ;;  %v4045_v10 = vpop.f32.mrb[97].mxu1  ;;  %v2432_v13 = vsel %vm2352_vm8, %v2422_v34, %v2431_v47 }
 0x1b1   :  { %v1289_v25 = vpop.f32.mrb[98].mxu1  ;;  %v2723_v42 = vsel %vm2706_vm9, %v2720_v20, %v2722_v16  ;;  %v2724_v20 = vrot.slane %v5352_v61, 3 }
 0x1b2   :  { %4344 = vmatmul.mubr.msk.bf16.gmra.mrb[204].mxu0 %vm397_vm15, %v2719_v15  ;;  %v1359_v3 = vadd.f32 %v1289_v25, %v5336_v29  ;;  %v4046_v4 = vpop.f32.mrb[99].mxu1  ;;  %v2437_v29 = vshll.u32 %v5352_v61, 16  ;;  %v2443_v15 = vshrl.u32 %v5370_v17, 16 }
 0x1b3   :  { %4347 = vmatprep.mubr.msk.bf16.mxu0 %vm4466_vm0, %v4465_v0 }
 0x1b4   :  { %4288 = vmatmul.mubr.msk.bf16.gmra.mrb[204].mxu1 %vm397_vm15, %v2423_v31  ;;  %v2439_v40 = vrot.slane %v2437_v29, 3 }
 0x1b5   :  { %v1640_v6 = vpop.f32.mrb[100].mxu0  ;;  %4291 = vmatprep.mubr.msk.bf16.mxu1 %vm4466_vm0, %v4465_v0 }
 0x1b6   :  { %v5626_v14 = vadd.f32 %v1640_v6, %v1358_v19  ;;  %v4105_v7 = vpop.f32.mrb[101].mxu0  ;;  %v2440_v34 = vor.u32 %v2439_v40, %v2436_v60 }
 0x1b7   :  { %v1643_v39 = vpop.f32.mrb[102].mxu0  ;;  %v1294_v55 = vpop.f32.mrb[100].mxu1 }
 0x1b8   :  { %v5633_v28 = vadd.f32 %v1643_v39, %v1359_v3  ;;  %v4106_v23 = vpop.f32.mrb[103].mxu0  ;;  %v1360_v24 = vadd.f32 %v1294_v55, %v5346_v53  ;;  %v4049_v22 = vpop.f32.mrb[101].mxu1  ;;  %v2441_v18 = vsel %vm2352_vm8, %v2431_v47, %v2440_v34  ;;  %v2445_v3 = vrot.slane %v2443_v15, 2 }
 0x1b9   :  { %v1297_v63 = vpop.f32.mrb[102].mxu1  ;;  %v2452_v39 = vshrl.u32 %v5391_v21, 16  ;;  %v2725_v23 = vsel %vm2706_vm9, %v2722_v16, %v2724_v20  ;;  %v2726_v15 = vrot.slane %v5370_v17, 3 }
 0x1ba   :  { %4348 = vmatmul.mubr.msk.bf16.gmra.mrb[208].mxu0 %vm397_vm15, %v2721_v33  ;;  %v1361_v45 = vadd.f32 %v1297_v63, %v5354_v11  ;;  %v4050_v9 = vpop.f32.mrb[103].mxu1  ;;  %v2446_v11 = vshll.u32 %v5370_v17, 16  ;;  %v2339_v33 = vld [vmem:[#allocation2 + $0x6c] sm:$0x7] }
 0x1bb   :  { %4351 = vmatprep.mubr.msk.bf16.mxu0 %vm4466_vm0, %v4465_v0  ;;  %v5671_v60 = vcombine.low %v5408_v49, %v2339_v33  ;;  %v2454_v9 = vrot.slane %v2452_v39, 2 }
 0x1bc   :  { %4292 = vmatmul.mubr.msk.bf16.gmra.mrb[208].mxu1 %vm397_vm15, %v2432_v13  ;;  %v2448_v4 = vrot.slane %v2446_v11, 3 }
 0x1bd   :  { %v1648_v50 = vpop.f32.mrb[104].mxu0  ;;  %4295 = vmatprep.mubr.msk.bf16.mxu1 %vm4466_vm0, %v4465_v0 }
 0x1be   :  { %v5643_v53 = vadd.f32 %v1648_v50, %v1360_v24  ;;  %v4109_v62 = vpop.f32.mrb[105].mxu0  ;;  %v2449_v47 = vor.u32 %v2448_v4, %v2445_v3 }
 0x1bf   :  { %v1651_v38 = vpop.f32.mrb[106].mxu0  ;;  %v1302_v19 = vpop.f32.mrb[104].mxu1 }
 0x1c0   :  { %v5650_v10 = vadd.f32 %v1651_v38, %v1361_v45  ;;  %v4110_v2 = vpop.f32.mrb[107].mxu0  ;;  %v1362_v25 = vadd.f32 %v1302_v19, %v5364_v56  ;;  %v4053_v31 = vpop.f32.mrb[105].mxu1  ;;  %v2450_v45 = vsel %vm2352_vm8, %v2440_v34, %v2449_v47  ;;  %v2461_v38 = vshrl.u32 %v5671_v60, 16 }
 0x1c1   :  { %v1305_v8 = vpop.f32.mrb[106].mxu1  ;;  %v2727_v19 = vsel %vm2706_vm9, %v2724_v20, %v2726_v15  ;;  %v2728_v20 = vrot.slane %v5391_v21, 3 }
 0x1c2   :  { %4352 = vmatmul.mubr.msk.bf16.gmra.mrb[212].mxu0 %vm397_vm15, %v2723_v42  ;;  %v1363_v6 = vadd.f32 %v1305_v8, %v5372_v26  ;;  %v4054_v7 = vpop.f32.mrb[107].mxu1  ;;  %v2455_v26 = vshll.u32 %v5391_v21, 16  ;;  %v2463_v4 = vrot.slane %v2461_v38, 2 }
 0x1c3   :  { %4355 = vmatprep.mubr.msk.bf16.mxu0 %vm4466_vm0, %v4465_v0  ;;  %v2729_v33 = vsel %vm2706_vm9, %v2726_v15, %v2728_v20 }
 0x1c4   :  { %4296 = vmatmul.mubr.msk.bf16.gmra.mrb[212].mxu1 %vm397_vm15, %v2441_v18  ;;  %v2457_v50 = vrot.slane %v2455_v26, 3 }
 0x1c5   :  { %v1656_v46 = vpop.f32.mrb[108].mxu0  ;;  %4299 = vmatprep.mubr.msk.bf16.mxu1 %vm4466_vm0, %v4465_v0 }
 0x1c6   :  { %v5660_v56 = vadd.f32 %v1656_v46, %v1362_v25  ;;  %v4113_v29 = vpop.f32.mrb[109].mxu0  ;;  %v2458_v34 = vor.u32 %v2457_v50, %v2454_v9 }
 0x1c7   :  { %v1659_v55 = vpop.f32.mrb[110].mxu0  ;;  %v1310_v24 = vpop.f32.mrb[108].mxu1 }
 0x1c8   :  { %v5667_v61 = vadd.f32 %v1659_v55, %v1363_v6  ;;  %v4114_v22 = vpop.f32.mrb[111].mxu0  ;;  %v1364_v63 = vadd.f32 %v1310_v24, %v5382_v36  ;;  %v4057_v13 = vpop.f32.mrb[109].mxu1  ;;  %v2459_v3 = vsel %vm2352_vm8, %v2449_v47, %v2458_v34 }
 0x1c9   :  { %v1313_v40 = vpop.f32.mrb[110].mxu1 }
 0x1ca   :  { %4356 = vmatmul.mubr.msk.bf16.gmra.mrb[216].mxu0 %vm397_vm15, %v2725_v23  ;;  %v1365_v62 = vadd.f32 %v1313_v40, %v5393_v1  ;;  %v4058_v16 = vpop.f32.mrb[111].mxu1  ;;  %v2464_v1 = vshll.u32 %v5671_v60, 16 }
 0x1cb   :  { %4359 = vmatprep.mubr.msk.bf16.mxu0 %vm4466_vm0, %v4465_v0 }
 0x1cc   :  { %4300 = vmatmul.mubr.msk.bf16.gmra.mrb[216].mxu1 %vm397_vm15, %v2450_v45  ;;  %v2466_v6 = vrot.slane %v2464_v1, 3  ;;  %v2730_v45 = vrot.slane %v5671_v60, 3 }
 0x1cd   :  { %v1664_v36 = vpop.f32.mrb[112].mxu0  ;;  %4303 = vmatprep.mubr.msk.bf16.mxu1 %vm4466_vm0, %v4465_v0 }
 0x1ce   :  { %v5680_v49 = vadd.f32 %v1664_v36, %v1364_v63  ;;  %v4117_v11 = vpop.f32.mrb[113].mxu0  ;;  %v2467_v47 = vor.u32 %v2466_v6, %v2463_v4  ;;  %v2731_v16 = vsel %vm2706_vm9, %v2728_v20, %v2730_v45 }
 0x1cf   :  { %v1667_v42 = vpop.f32.mrb[114].mxu0  ;;  %v1318_v2 = vpop.f32.mrb[112].mxu1 }
 0x1d0   :  { %v5687_v25 = vadd.f32 %v1667_v42, %v1365_v62  ;;  %v4118_v17 = vpop.f32.mrb[115].mxu0  ;;  %v1366_v31 = vadd.f32 %v1318_v2, %v5414_v27  ;;  %v4061_v8 = vpop.f32.mrb[113].mxu1  ;;  %v2468_v63 = vsel %vm2352_vm8, %v2458_v34, %v2467_v47 }
 0x1d1   :  { %v1321_v18 = vpop.f32.mrb[114].mxu1 }
 0x1d2   :  { %4360 = vmatmul.mubr.msk.bf16.gmra.mrb[220].mxu0 %vm397_vm15, %v2727_v19  ;;  %v1367_v7 = vadd.f32 %v1321_v18, %v5421_v35  ;;  %v4062_v46 = vpop.f32.mrb[115].mxu1 }
 0x1d3   :  { %4363 = vmatprep.mubr.msk.bf16.mxu0 %vm4466_vm0, %v4465_v0 }
 0x1d4   :  { %4304 = vmatmul.mubr.msk.bf16.gmra.mrb[220].mxu1 %vm397_vm15, %v2459_v3 }
 0x1d5   :  { %v1672_v29 = vpop.f32.mrb[116].mxu0  ;;  %4307 = vmatprep.mubr.msk.bf16.mxu1 %vm4466_vm0, %v4465_v0 }
 0x1d6   :  { %v5697_v27 = vadd.f32 %v1672_v29, %v1366_v31  ;;  %v4121_v39 = vpop.f32.mrb[117].mxu0 }
 0x1d7   :  { %v1675_v26 = vpop.f32.mrb[118].mxu0  ;;  %v1326_v35 = vpop.f32.mrb[116].mxu1 }
 0x1d8   :  { %v5702_v55 = vadd.f32 %v1675_v26, %v1367_v7  ;;  %v4122_v23 = vpop.f32.mrb[119].mxu0  ;;  %v1368_v24 = vadd.f32 %v1326_v35, %v5444_v52  ;;  %v4065_v21 = vpop.f32.mrb[117].mxu1 }
 0x1d9   :  { %v1329_v22 = vpop.f32.mrb[118].mxu1 }
 0x1da   :  { %4364 = vmatmul.mubr.msk.bf16.gmra.mrb[224].mxu0 %vm397_vm15, %v2729_v33  ;;  %v1369_v13 = vadd.f32 %v1329_v22, %v5451_v54  ;;  %v4066_v40 = vpop.f32.mrb[119].mxu1 }
 0x1db   :  { %4367 = vmatprep.mubr.msk.bf16.mxu0 %vm4466_vm0, %v4465_v0 }
 0x1dc   :  { %4308 = vmatmul.mubr.msk.bf16.gmra.mrb[224].mxu1 %vm397_vm15, %v2468_v63 }
 0x1dd   :  { %v1680_v9 = vpop.f32.mrb[120].mxu0  ;;  %4311 = vmatprep.mubr.msk.bf16.mxu1 %vm4466_vm0, %v4465_v0 }
 0x1de   :  { %v5712_v50 = vadd.f32 %v1680_v9, %v1368_v24  ;;  %v4125_v52 = vpop.f32.mrb[121].mxu0 }
 0x1df   :  { %v1683_v62 = vpop.f32.mrb[122].mxu0  ;;  %v1334_v15 = vpop.f32.mrb[120].mxu1 }
 0x1e0   :  { %v5717_v54 = vadd.f32 %v1683_v62, %v1369_v13  ;;  %v4126_v36 = vpop.f32.mrb[123].mxu0  ;;  %v1370_v11 = vadd.f32 %v1334_v15, %v5471_v51  ;;  %v4069_v34 = vpop.f32.mrb[121].mxu1 }
 0x1e1   :  { %v1337_v60 = vpop.f32.mrb[122].mxu1 }
 0x1e2   :  { %4368 = vmatmul.mubr.msk.bf16.gmra.mrb[228].mxu0 %vm397_vm15, %v2731_v16  ;;  %v1371_v38 = vadd.f32 %v1337_v60, %v5478_v32  ;;  %v4070_v1 = vpop.f32.mrb[123].mxu1 }
 0x1e3   :  { %4371 = vmatprep.mubr.msk.bf16.mxu0 %vm4466_vm0, %v4465_v0 }
 0x1e4   :  { %4312 = vmatmul.mubr.msk.bf16.gmra.mrb[228].mxu1 %vm397_vm15, %v2467_v47 }
 0x1e5   :  { %v1688_v42 = vpop.f32.mrb[124].mxu0 }
 0x1e6   :  { %v5725_v19 = vadd.f32 %v1688_v42, %v1370_v11  ;;  %v4129_v2 = vpop.f32.mrb[125].mxu0 }
 0x1e7   :  { %v1691_v17 = vpop.f32.mrb[126].mxu0  ;;  %v1342_v31 = vpop.f32.mrb[124].mxu1 }
 0x1e8   :  { %v5727_v8 = vadd.f32 %v1691_v17, %v1371_v38  ;;  %v4130_v51 = vpop.f32.mrb[127].mxu0  ;;  %v1372_v18 = vadd.f32 %v1342_v31, %v5499_v44  ;;  %v4073_v3 = vpop.f32.mrb[125].mxu1 }
 0x1e9   :  { %v1345_v4 = vpop.f32.mrb[126].mxu1 }
 0x1ea   :  { %4372 = vmatmul.mubr.msk.bf16.gmra.mrb[232].mxu0 %vm397_vm15, %v2730_v45  ;;  %v4074_v32 = vpop.f32.mrb[127].mxu1 }
 0x1ed   :  { %v1696_v6 = vpop.f32.mrb[128].mxu0 }
 0x1ee   :  { %v5731_v0 = vadd.f32 %v1696_v6, %v1372_v18  ;;  %v4133_v7 = vpop.f32.mrb[129].mxu0 }
 0x1ef   :  { %v1699_v46 = vpop.f32.mrb[130].mxu0  ;;  %v1863_v20 = vpop.f32.mrb[128].mxu1 }
 0x1f0   :  { %v4134_v29 = vpop.f32.mrb[131].mxu0  ;;  %v1965_v39 = vadd.f32 %v1863_v20, %v5526_v59  ;;  %v4145_v47 = vpop.f32.mrb[129].mxu1 }
 0x1f1   :  { %v1866_v26 = vpop.f32.mrb[130].mxu1 }
 0x1f2   :  { %v1966_v33 = vadd.f32 %v1866_v26, %v5533_v37  ;;  %v4146_v35 = vpop.f32.mrb[131].mxu1 }
 0x1f5   :  { %v2212_v44 = vpop.f32.mrb[132].mxu0 }
 0x1f6   :  { %v5735_v23 = vadd.f32 %v2212_v44, %v1965_v39  ;;  %v4205_v24 = vpop.f32.mrb[133].mxu0 }
 0x1f7   :  { %v2215_v21 = vpop.f32.mrb[134].mxu0  ;;  %v1871_v22 = vpop.f32.mrb[132].mxu1 }
 0x1f8   :  { %v5737_v63 = vadd.f32 %v2215_v21, %v1966_v33  ;;  %v4206_v13 = vpop.f32.mrb[135].mxu0  ;;  %v1967_v40 = vadd.f32 %v1871_v22, %v5555_v58  ;;  %v4149_v45 = vpop.f32.mrb[133].mxu1 }
 0x1f9   :  { %v1874_v9 = vpop.f32.mrb[134].mxu1 }
 0x1fa   :  { %v1968_v59 = vadd.f32 %v1874_v9, %v5562_v57  ;;  %v4150_v52 = vpop.f32.mrb[135].mxu1 }
 0x1fd   :  { %v2220_v62 = vpop.f32.mrb[136].mxu0 }
 0x1fe   :  { %v5741_v16 = vadd.f32 %v2220_v62, %v1967_v40  ;;  %v4209_v37 = vpop.f32.mrb[137].mxu0 }
 0x1ff   :  { %v2223_v15 = vpop.f32.mrb[138].mxu0  ;;  %v1879_v36 = vpop.f32.mrb[136].mxu1 }
 0x200   :  { %v5743_v11 = vadd.f32 %v2223_v15, %v1968_v59  ;;  %v4210_v34 = vpop.f32.mrb[139].mxu0  ;;  %v1969_v60 = vadd.f32 %v1879_v36, %v5575_v5  ;;  %v4153_v38 = vpop.f32.mrb[137].mxu1 }
 0x201   :  { %v1882_v1 = vpop.f32.mrb[138].mxu1 }
 0x202   :  { %v1970_v58 = vadd.f32 %v1882_v1, %v5582_v30  ;;  %v4154_v42 = vpop.f32.mrb[139].mxu1 }
 0x205   :  { %v2228_v2 = vpop.f32.mrb[140].mxu0 }
 0x206   :  { %v5747_v17 = vadd.f32 %v2228_v2, %v1969_v60  ;;  %v4213_v57 = vpop.f32.mrb[141].mxu0 }
 0x207   :  { %v2231_v31 = vpop.f32.mrb[142].mxu0  ;;  %v1887_v51 = vpop.f32.mrb[140].mxu1 }
 0x208   :  { %v5749_v18 = vadd.f32 %v2231_v31, %v1970_v58  ;;  %v4214_v3 = vpop.f32.mrb[143].mxu0  ;;  %v1971_v4 = vadd.f32 %v1887_v51, %v5592_v12  ;;  %v4157_v32 = vpop.f32.mrb[141].mxu1 }
 0x209   :  { %v1890_v6 = vpop.f32.mrb[142].mxu1 }
 0x20a   :  { %v1972_v5 = vadd.f32 %v1890_v6, %v5599_v43  ;;  %v4158_v7 = vpop.f32.mrb[143].mxu1 }
 0x20d   :  { %v2236_v46 = vpop.f32.mrb[144].mxu0 }
 0x20e   :  { %v5753_v20 = vadd.f32 %v2236_v46, %v1971_v4  ;;  %v4217_v30 = vpop.f32.mrb[145].mxu0 }
 0x20f   :  { %v2239_v29 = vpop.f32.mrb[146].mxu0  ;;  %v1895_v39 = vpop.f32.mrb[144].mxu1 }
 0x210   :  { %v5755_v47 = vadd.f32 %v2239_v29, %v1972_v5  ;;  %v4218_v26 = vpop.f32.mrb[147].mxu0  ;;  %v1973_v33 = vadd.f32 %v1895_v39, %v5609_v48  ;;  %v4161_v35 = vpop.f32.mrb[145].mxu1 }
 0x211   :  { %v1898_v44 = vpop.f32.mrb[146].mxu1 }
 0x212   :  { %v1974_v12 = vadd.f32 %v1898_v44, %v5616_v41  ;;  %v4162_v24 = vpop.f32.mrb[147].mxu1 }
 0x215   :  { %v2244_v21 = vpop.f32.mrb[148].mxu0 }
 0x216   :  { %v5759_v22 = vadd.f32 %v2244_v21, %v1973_v33  ;;  %v4221_v43 = vpop.f32.mrb[149].mxu0 }
 0x217   :  { %v2247_v13 = vpop.f32.mrb[150].mxu0  ;;  %v1903_v40 = vpop.f32.mrb[148].mxu1 }
 0x218   :  { %v5761_v45 = vadd.f32 %v2247_v13, %v1974_v12  ;;  %v4222_v9 = vpop.f32.mrb[151].mxu0  ;;  %v1975_v59 = vadd.f32 %v1903_v40, %v5626_v14  ;;  %v4165_v52 = vpop.f32.mrb[149].mxu1 }
 0x219   :  { %v1906_v62 = vpop.f32.mrb[150].mxu1 }
 0x21a   :  { %v1976_v48 = vadd.f32 %v1906_v62, %v5633_v28  ;;  %v4166_v37 = vpop.f32.mrb[151].mxu1 }
 0x21d   :  { %v2252_v15 = vpop.f32.mrb[152].mxu0 }
 0x21e   :  { %v5765_v36 = vadd.f32 %v2252_v15, %v1975_v59  ;;  %v4225_v41 = vpop.f32.mrb[153].mxu0 }
 0x21f   :  { %v2255_v34 = vpop.f32.mrb[154].mxu0  ;;  %v1911_v60 = vpop.f32.mrb[152].mxu1 }
 0x220   :  { %v5767_v38 = vadd.f32 %v2255_v34, %v1976_v48  ;;  %v4226_v1 = vpop.f32.mrb[155].mxu0  ;;  %v1977_v58 = vadd.f32 %v1911_v60, %v5643_v53  ;;  %v4169_v42 = vpop.f32.mrb[153].mxu1 }
 0x221   :  { %v1914_v2 = vpop.f32.mrb[154].mxu1 }
 0x222   :  { %v1978_v14 = vadd.f32 %v1914_v2, %v5650_v10  ;;  %v4170_v57 = vpop.f32.mrb[155].mxu1 }
 0x225   :  { %v2260_v31 = vpop.f32.mrb[156].mxu0 }
 0x226   :  { %v5771_v51 = vadd.f32 %v2260_v31, %v1977_v58  ;;  %v4229_v28 = vpop.f32.mrb[157].mxu0 }
 0x227   :  { %v2263_v3 = vpop.f32.mrb[158].mxu0  ;;  %v1919_v4 = vpop.f32.mrb[156].mxu1 }
 0x228   :  { %v5773_v32 = vadd.f32 %v2263_v3, %v1978_v14  ;;  %v4230_v6 = vpop.f32.mrb[159].mxu0  ;;  %v1979_v5 = vadd.f32 %v1919_v4, %v5660_v56  ;;  %v4173_v7 = vpop.f32.mrb[157].mxu1 }
 0x229   :  { %v1922_v46 = vpop.f32.mrb[158].mxu1 }
 0x22a   :  { %v1980_v53 = vadd.f32 %v1922_v46, %v5667_v61  ;;  %v4174_v30 = vpop.f32.mrb[159].mxu1 }
 0x22d   :  { %v2268_v29 = vpop.f32.mrb[160].mxu0 }
 0x22e   :  { %v5777_v39 = vadd.f32 %v2268_v29, %v1979_v5  ;;  %v4233_v10 = vpop.f32.mrb[161].mxu0 }
 0x22f   :  { %v2271_v26 = vpop.f32.mrb[162].mxu0  ;;  %v1927_v33 = vpop.f32.mrb[160].mxu1 }
 0x230   :  { %v5779_v35 = vadd.f32 %v2271_v26, %v1980_v53  ;;  %v4234_v44 = vpop.f32.mrb[163].mxu0  ;;  %v1981_v12 = vadd.f32 %v1927_v33, %v5680_v49  ;;  %v4177_v24 = vpop.f32.mrb[161].mxu1 }
 0x231   :  { %v1930_v21 = vpop.f32.mrb[162].mxu1 }
 0x232   :  { %v1982_v56 = vadd.f32 %v1930_v21, %v5687_v25  ;;  %v4178_v43 = vpop.f32.mrb[163].mxu1 }
 0x235   :  { %v2276_v13 = vpop.f32.mrb[164].mxu0 }
 0x236   :  { %v5783_v40 = vadd.f32 %v2276_v13, %v1981_v12  ;;  %v4237_v61 = vpop.f32.mrb[165].mxu0 }
 0x237   :  { %v2279_v9 = vpop.f32.mrb[166].mxu0  ;;  %v1935_v59 = vpop.f32.mrb[164].mxu1 }
 0x238   :  { %v5785_v52 = vadd.f32 %v2279_v9, %v1982_v56  ;;  %v4238_v62 = vpop.f32.mrb[167].mxu0  ;;  %v1983_v48 = vadd.f32 %v1935_v59, %v5697_v27  ;;  %v4181_v37 = vpop.f32.mrb[165].mxu1 }
 0x239   :  { %v1938_v15 = vpop.f32.mrb[166].mxu1 }
 0x23a   :  { %v1984_v49 = vadd.f32 %v1938_v15, %v5702_v55  ;;  %v4182_v41 = vpop.f32.mrb[167].mxu1 }
 0x23d   :  { %v2284_v34 = vpop.f32.mrb[168].mxu0 }
 0x23e   :  { %v5789_v60 = vadd.f32 %v2284_v34, %v1983_v48  ;;  %v4241_v25 = vpop.f32.mrb[169].mxu0 }
 0x23f   :  { %v2287_v1 = vpop.f32.mrb[170].mxu0  ;;  %v1943_v58 = vpop.f32.mrb[168].mxu1 }
 0x240   :  { %v5791_v42 = vadd.f32 %v2287_v1, %v1984_v49  ;;  %v4242_v2 = vpop.f32.mrb[171].mxu0  ;;  %v1985_v14 = vadd.f32 %v1943_v58, %v5712_v50  ;;  %v4185_v57 = vpop.f32.mrb[169].mxu1 }
 0x241   :  { %v1946_v31 = vpop.f32.mrb[170].mxu1  ;;  %v3091_v2 = vpop.permute.xlu0 %3090 }
 0x242   :  { %v1986_v27 = vadd.f32 %v1946_v31, %v5717_v54  ;;  %v4186_v28 = vpop.f32.mrb[171].mxu1 }
 0x245   :  { %v2292_v3 = vpop.f32.mrb[172].mxu0 }
 0x246   :  { %v5795_v4 = vadd.f32 %v2292_v3, %v1985_v14  ;;  %v4245_v55 = vpop.f32.mrb[173].mxu0 }
 0x247   :  { %v2295_v6 = vpop.f32.mrb[174].mxu0  ;;  %v1951_v5 = vpop.f32.mrb[172].mxu1 }
 0x248   :  { %v5797_v7 = vadd.f32 %v2295_v6, %v1986_v27  ;;  %v4246_v46 = vpop.f32.mrb[175].mxu0  ;;  %v1987_v53 = vadd.f32 %v1951_v5, %v5725_v19  ;;  %v4189_v30 = vpop.f32.mrb[173].mxu1 }
 0x249   :  { %v1954_v29 = vpop.f32.mrb[174].mxu1  ;;  %v3096_v30 = vpop.permute.xlu0 %3095 }
 0x24a   :  { %v1988_v50 = vadd.f32 %v1954_v29, %v5727_v8  ;;  %v4190_v10 = vpop.f32.mrb[175].mxu1 }
 0x24d   :  { %v2300_v26 = vpop.f32.mrb[176].mxu0 }
 0x24e   :  { %v5801_v33 = vadd.f32 %v2300_v26, %v1987_v53  ;;  %v4249_v54 = vpop.f32.mrb[177].mxu0 }
 0x24f   :  { %v2303_v44 = vpop.f32.mrb[178].mxu0  ;;  %v1959_v12 = vpop.f32.mrb[176].mxu1 }
 0x250   :  { %v5803_v24 = vadd.f32 %v2303_v44, %v1988_v50  ;;  %v4250_v21 = vpop.f32.mrb[179].mxu0  ;;  %v1989_v56 = vadd.f32 %v1959_v12, %v5731_v0  ;;  %v4193_v43 = vpop.f32.mrb[177].mxu1  ;;  %v5813_v0 = vld [vmem:[%s5966_s2] ss:$0 sm:$0xff] }
 0x251   :  { %v1962_v13 = vpop.f32.mrb[178].mxu1 }
 0x252   :  { %v4194_v61 = vpop.f32.mrb[179].mxu1 }
 0x255   :  { %v2308_v19 = vpop.f32.mrb[180].mxu0 }
 0x256   :  { %v5806_v9 = vadd.f32 %v2308_v19, %v1989_v56  ;;  %v4253_v59 = vpop.f32.mrb[181].mxu0 }
 0x257   :  { %v2311_v8 = vpop.f32.mrb[182].mxu0  ;;  %v2566_v62 = vpop.f32.mrb[180].mxu1 }
 0x258   :  { %v4254_v48 = vpop.f32.mrb[183].mxu0  ;;  %v2668_v37 = vadd.f32 %v2566_v62, %v5735_v23  ;;  %v4265_v15 = vpop.f32.mrb[181].mxu1 }
 0x259   :  { %v2569_v49 = vpop.f32.mrb[182].mxu1 }
 0x25a   :  { %v2669_v41 = vadd.f32 %v2569_v49, %v5737_v63  ;;  %v4266_v34 = vpop.f32.mrb[183].mxu1 }
 0x25d   :  { %v2829_v25 = vpop.f32.mrb[184].mxu0 }
 0x25e   :  { %v2931_v1 = vadd.f32 %v2829_v25, %v2668_v37  ;;  %v4325_v58 = vpop.f32.mrb[185].mxu0 }
 0x25f   :  { %v2832_v14 = vpop.f32.mrb[186].mxu0  ;;  %v2574_v57 = vpop.f32.mrb[184].mxu1 }
 0x260   :  { %v2963_v31 = vadd.f32 %v5813_v0, %v2931_v1  ;;  %v2932_v27 = vadd.f32 %v2832_v14, %v2669_v41  ;;  %v4326_v23 = vpop.f32.mrb[187].mxu0  ;;  %v2670_v28 = vadd.f32 %v2574_v57, %v5741_v16  ;;  %v4269_v3 = vpop.f32.mrb[185].mxu1 }
 0x261   :  { %v2577_v63 = vpop.f32.mrb[186].mxu1  ;;  %v3101_v16 = vpop.permute.xlu1 %3100 }
 0x262   :  { %v2964_v55 = vadd.f32 %v5813_v0, %v2932_v27  ;;  %vm2988_vm0 = vcmp.gt.f32.partialorder %v2963_v31, 0.0  ;;  %v3013_v6 = vmul.f32 0.2, %v2963_v31  ;;  %v2671_v5 = vadd.f32 %v2577_v63, %v5743_v11  ;;  %v4270_v46 = vpop.f32.mrb[187].mxu1 }
 0x264   :  { %v3038_v53 = vsel %vm2988_vm0, %v2963_v31, %v3013_v6  ;;  %vm2989_vm15 = vcmp.gt.f32.partialorder %v2964_v55, 0.0  ;;  %v3014_v29 = vmul.f32 0.2, %v2964_v55 }
 0x265   :  { %v3213_v50 = vmul.f32 %v3091_v2, %v3038_v53  ;;  %v2837_v10 = vpop.f32.mrb[188].mxu0  ;;  %v3106_v34 = vpop.permute.xlu1 %3105 }
 0x266   :  { %v2933_v26 = vadd.f32 %v2837_v10, %v2670_v28  ;;  %v3039_v54 = vsel %vm2989_vm15, %v2964_v55, %v3014_v29  ;;  %v4329_v44 = vpop.f32.mrb[189].mxu0 }
 0x267   :  { %v3657_v12 = vpack.c.bf16 %v3213_v50, %v3213_v50  ;;  %v3214_v21 = vmul.f32 %v3096_v30, %v3039_v54  ;;  %v2840_v56 = vpop.f32.mrb[190].mxu0  ;;  %v2582_v43 = vpop.f32.mrb[188].mxu1 }
 0x268   :  { %v2965_v13 = vadd.f32 %v5813_v0, %v2933_v26  ;;  %v2934_v61 = vadd.f32 %v2840_v56, %v2671_v5  ;;  %v4330_v11 = vpop.f32.mrb[191].mxu0  ;;  %v2672_v19 = vadd.f32 %v2582_v43, %v5747_v17  ;;  %v4273_v8 = vpop.f32.mrb[189].mxu1 }
 0x269   :  { %3340 = vst.msk [vmem:[%s5967_s4] sm:$0xf] %vm3339_vm10, %v3657_v12  ;;  %v3658_v59 = vpack.c.bf16 %v3214_v21, %v3214_v21  ;;  %v2585_v62 = vpop.f32.mrb[190].mxu1  ;;  %v3111_v50 = vpop.permute.xlu0 %3110 }
 0x26a   :  { %v2966_v48 = vadd.f32 %v5813_v0, %v2934_v61  ;;  %vm2990_vm11 = vcmp.gt.f32.partialorder %v2965_v13, 0.0  ;;  %v3015_v37 = vmul.f32 0.2, %v2965_v13  ;;  %v2673_v15 = vadd.f32 %v2585_v62, %v5749_v18  ;;  %v4274_v49 = vpop.f32.mrb[191].mxu1  ;;  %v3116_v44 = vpop.permute.xlu1 %3115 }
 0x26b   :  { %3341 = vst.msk [vmem:[%s5967_s4 + $0x4] sm:$0xf] %vm3339_vm10, %v3658_v59 }
 0x26c   :  { %v3040_v41 = vsel %vm2990_vm11, %v2965_v13, %v3015_v37  ;;  %vm2991_vm12 = vcmp.gt.f32.partialorder %v2966_v48, 0.0  ;;  %v3016_v25 = vmul.f32 0.2, %v2966_v48 }
 0x26d   :  { %v3215_v17 = vmul.f32 %v3101_v16, %v3040_v41  ;;  %v2845_v1 = vpop.f32.mrb[192].mxu0 }
 0x26e   :  { %v2935_v58 = vadd.f32 %v2845_v1, %v2672_v19  ;;  %v3041_v2 = vsel %vm2991_vm12, %v2966_v48, %v3016_v25  ;;  %v4333_v14 = vpop.f32.mrb[193].mxu0 }
 0x26f   :  { %v3659_v57 = vpack.c.bf16 %v3215_v17, %v3215_v17  ;;  %v3216_v31 = vmul.f32 %v3106_v34, %v3041_v2  ;;  %v2848_v27 = vpop.f32.mrb[194].mxu0  ;;  %v2590_v23 = vpop.f32.mrb[192].mxu1 }
 0x270   :  { %v2967_v28 = vadd.f32 %v5813_v0, %v2935_v58  ;;  %v2936_v3 = vadd.f32 %v2848_v27, %v2673_v15  ;;  %v4334_v63 = vpop.f32.mrb[195].mxu0  ;;  %v2674_v18 = vadd.f32 %v2590_v23, %v5753_v20  ;;  %v4277_v6 = vpop.f32.mrb[193].mxu1 }
 0x271   :  { %3342 = vst.msk [vmem:[%s5967_s4 + $0x8] sm:$0xf] %vm3339_vm10, %v3659_v57  ;;  %v3660_v55 = vpack.c.bf16 %v3216_v31, %v3216_v31  ;;  %v2593_v46 = vpop.f32.mrb[194].mxu1  ;;  %v3121_v34 = vpop.permute.xlu0 %3120 }
 0x272   :  { %vm2992_vm13 = vcmp.gt.f32.partialorder %v2967_v28, 0.0  ;;  %v3017_v5 = vmul.f32 0.2, %v2967_v28  ;;  %v2968_v53 = vadd.f32 %v5813_v0, %v2936_v3  ;;  %v2675_v30 = vadd.f32 %v2593_v46, %v5755_v47  ;;  %v4278_v29 = vpop.f32.mrb[195].mxu1  ;;  %v3126_v58 = vpop.permute.xlu1 %3125 }
 0x273   :  { %3343 = vst.msk [vmem:[%s5967_s4 + $0xc] sm:$0xf] %vm3339_vm10, %v3660_v55 }
 0x274   :  { %v3042_v10 = vsel %vm2992_vm13, %v2967_v28, %v3017_v5  ;;  %vm2993_vm1 = vcmp.gt.f32.partialorder %v2968_v53, 0.0  ;;  %v3018_v26 = vmul.f32 0.2, %v2968_v53 }
 0x275   :  { %v3217_v20 = vmul.f32 %v3111_v50, %v3042_v10  ;;  %v2853_v54 = vpop.f32.mrb[196].mxu0  ;;  %v3131_v50 = vpop.permute.xlu0 %3130 }
 0x276   :  { %v3043_v16 = vsel %vm2993_vm1, %v2968_v53, %v3018_v26  ;;  %v2937_v12 = vadd.f32 %v2853_v54, %v2674_v18  ;;  %v4337_v21 = vpop.f32.mrb[197].mxu0  ;;  %v3136_v54 = vpop.permute.xlu1 %3135 }
 0x277   :  { %v3661_v56 = vpack.c.bf16 %v3217_v20, %v3217_v20  ;;  %v3218_v43 = vmul.f32 %v3116_v44, %v3043_v16  ;;  %v2856_v13 = vpop.f32.mrb[198].mxu0  ;;  %v2598_v61 = vpop.f32.mrb[196].mxu1 }
 0x278   :  { %v2969_v11 = vadd.f32 %v5813_v0, %v2937_v12  ;;  %v2938_v19 = vadd.f32 %v2856_v13, %v2675_v30  ;;  %v4338_v59 = vpop.f32.mrb[199].mxu0  ;;  %v2676_v8 = vadd.f32 %v2598_v61, %v5759_v22  ;;  %v4281_v62 = vpop.f32.mrb[197].mxu1 }
 0x279   :  { %3344 = vst.msk [vmem:[%s5967_s4 + $0x10] sm:$0xf] %vm3339_vm10, %v3661_v56  ;;  %v3662_v47 = vpack.c.bf16 %v3218_v43, %v3218_v43  ;;  %v2601_v37 = vpop.f32.mrb[198].mxu1 }
 0x27a   :  { %vm2994_vm2 = vcmp.gt.f32.partialorder %v2969_v11, 0.0  ;;  %v3019_v48 = vmul.f32 0.2, %v2969_v11  ;;  %v2970_v15 = vadd.f32 %v5813_v0, %v2938_v19  ;;  %v2677_v49 = vadd.f32 %v2601_v37, %v5761_v45  ;;  %v4282_v41 = vpop.f32.mrb[199].mxu1 }
 0x27b   :  { %3345 = vst.msk [vmem:[%s5967_s4 + $0x14] sm:$0xf] %vm3339_vm10, %v3662_v47 }
 0x27c   :  { %v3044_v25 = vsel %vm2994_vm2, %v2969_v11, %v3019_v48  ;;  %vm2995_vm4 = vcmp.gt.f32.partialorder %v2970_v15, 0.0  ;;  %v3020_v17 = vmul.f32 0.2, %v2970_v15 }
 0x27d   :  { %v3219_v1 = vmul.f32 %v3121_v34, %v3044_v25  ;;  %v2861_v22 = vpop.f32.mrb[200].mxu0 }
 0x27e   :  { %v3045_v2 = vsel %vm2995_vm4, %v2970_v15, %v3020_v17  ;;  %v2939_v14 = vadd.f32 %v2861_v22, %v2676_v8  ;;  %v4341_v57 = vpop.f32.mrb[201].mxu0  ;;  %v3146_v17 = vpop.permute.xlu1 %3145 }
 0x27f   :  { %v3663_v31 = vpack.c.bf16 %v3219_v1, %v3219_v1  ;;  %v3220_v27 = vmul.f32 %v3126_v58, %v3045_v2  ;;  %v2864_v23 = vpop.f32.mrb[202].mxu0  ;;  %v2606_v28 = vpop.f32.mrb[200].mxu1 }
 0x280   :  { %v2971_v3 = vadd.f32 %v5813_v0, %v2939_v14  ;;  %v2940_v63 = vadd.f32 %v2864_v23, %v2677_v49  ;;  %v4342_v18 = vpop.f32.mrb[203].mxu0  ;;  %v2678_v55 = vadd.f32 %v2606_v28, %v5765_v36  ;;  %v4285_v6 = vpop.f32.mrb[201].mxu1 }
 0x281   :  { %3346 = vst.msk [vmem:[%s5967_s4 + $0x18] sm:$0xf] %vm3339_vm10, %v3663_v31  ;;  %v3664_v45 = vpack.c.bf16 %v3220_v27, %v3220_v27  ;;  %v2609_v46 = vpop.f32.mrb[202].mxu1  ;;  %v3141_v49 = vpop.permute.xlu0 %3140 }
 0x282   :  { %vm2996_vm14 = vcmp.gt.f32.partialorder %v2971_v3, 0.0  ;;  %v3021_v5 = vmul.f32 0.2, %v2971_v3  ;;  %v2972_v53 = vadd.f32 %v5813_v0, %v2940_v63  ;;  %v2679_v30 = vadd.f32 %v2609_v46, %v5767_v38  ;;  %v4286_v29 = vpop.f32.mrb[203].mxu1 }
 0x283   :  { %3347 = vst.msk [vmem:[%s5967_s4 + $0x1c] sm:$0xf] %vm3339_vm10, %v3664_v45 }
 0x284   :  { %v3046_v10 = vsel %vm2996_vm14, %v2971_v3, %v3021_v5  ;;  %vm2997_vm3 = vcmp.gt.f32.partialorder %v2972_v53, 0.0  ;;  %v3022_v26 = vmul.f32 0.2, %v2972_v53 }
 0x285   :  { %v3221_v20 = vmul.f32 %v3131_v50, %v3046_v10  ;;  %v2869_v36 = vpop.f32.mrb[204].mxu0  ;;  %v3151_v46 = vpop.permute.xlu0 %3150 }
 0x286   :  { %v3047_v44 = vsel %vm2997_vm3, %v2972_v53, %v3022_v26  ;;  %v2941_v16 = vadd.f32 %v2869_v36, %v2678_v55  ;;  %v4345_v12 = vpop.f32.mrb[205].mxu0  ;;  %v3156_v50 = vpop.permute.xlu1 %3155 }
 0x287   :  { %v3665_v21 = vpack.c.bf16 %v3221_v20, %v3221_v20  ;;  %v3222_v56 = vmul.f32 %v3136_v54, %v3047_v44  ;;  %v2872_v43 = vpop.f32.mrb[206].mxu0  ;;  %v2614_v13 = vpop.f32.mrb[204].mxu1 }
 0x288   :  { %v2973_v61 = vadd.f32 %v5813_v0, %v2941_v16  ;;  %v2942_v11 = vadd.f32 %v2872_v43, %v2679_v30  ;;  %v4346_v19 = vpop.f32.mrb[207].mxu0  ;;  %v2680_v59 = vadd.f32 %v2614_v13, %v5771_v51  ;;  %v4289_v47 = vpop.f32.mrb[205].mxu1 }
 0x289   :  { %3348 = vst.msk [vmem:[%s5967_s4 + $0x20] sm:$0xf] %vm3339_vm10, %v3665_v21  ;;  %v3666_v38 = vpack.c.bf16 %v3222_v56, %v3222_v56  ;;  %v2617_v62 = vpop.f32.mrb[206].mxu1  ;;  %v3161_v47 = vpop.permute.xlu0 %3160 }
 0x28a   :  { %vm2998_vm5 = vcmp.gt.f32.partialorder %v2973_v61, 0.0  ;;  %v3023_v8 = vmul.f32 0.2, %v2973_v61  ;;  %v2974_v48 = vadd.f32 %v5813_v0, %v2942_v11  ;;  %v2681_v37 = vadd.f32 %v2617_v62, %v5773_v32  ;;  %v4290_v15 = vpop.f32.mrb[207].mxu1 }
 0x28b   :  { %3349 = vst.msk [vmem:[%s5967_s4 + $0x24] sm:$0xf] %vm3339_vm10, %v3666_v38 }
 0x28c   :  { %v3048_v41 = vsel %vm2998_vm5, %v2973_v61, %v3023_v8  ;;  %vm2999_vm6 = vcmp.gt.f32.partialorder %v2974_v48, 0.0  ;;  %v3024_v34 = vmul.f32 0.2, %v2974_v48 }
 0x28d   :  { %v3223_v25 = vmul.f32 %v3141_v49, %v3048_v41  ;;  %v2877_v51 = vpop.f32.mrb[208].mxu0 }
 0x28e   :  { %v3049_v1 = vsel %vm2999_vm6, %v2974_v48, %v3024_v34  ;;  %v2943_v22 = vadd.f32 %v2877_v51, %v2680_v59  ;;  %v4349_v58 = vpop.f32.mrb[209].mxu0 }
 0x28f   :  { %v3667_v2 = vpack.c.bf16 %v3223_v25, %v3223_v25  ;;  %v3224_v14 = vmul.f32 %v3146_v17, %v3049_v1  ;;  %v2880_v57 = vpop.f32.mrb[210].mxu0  ;;  %v2622_v31 = vpop.f32.mrb[208].mxu1 }
 0x290   :  { %v2975_v27 = vadd.f32 %v5813_v0, %v2943_v22  ;;  %v2944_v23 = vadd.f32 %v2880_v57, %v2681_v37  ;;  %v4350_v28 = vpop.f32.mrb[211].mxu0  ;;  %v2682_v3 = vadd.f32 %v2622_v31, %v5777_v39  ;;  %v4293_v63 = vpop.f32.mrb[209].mxu1 }
 0x291   :  { %3350 = vst.msk [vmem:[%s5967_s4 + $0x28] sm:$0xf] %vm3339_vm10, %v3667_v2  ;;  %v3668_v32 = vpack.c.bf16 %v3224_v14, %v3224_v14  ;;  %v2625_v45 = vpop.f32.mrb[210].mxu1  ;;  %v3166_v37 = vpop.permute.xlu1 %3165 }
 0x292   :  { %vm3000_vm7 = vcmp.gt.f32.partialorder %v2975_v27, 0.0  ;;  %v3025_v18 = vmul.f32 0.2, %v2975_v27  ;;  %v2976_v55 = vadd.f32 %v5813_v0, %v2944_v23  ;;  %v2683_v6 = vadd.f32 %v2625_v45, %v5779_v35  ;;  %v4294_v5 = vpop.f32.mrb[211].mxu1 }
 0x293   :  { %3351 = vst.msk [vmem:[%s5967_s4 + $0x2c] sm:$0xf] %vm3339_vm10, %v3668_v32  ;;  %v3171_v32 = vpop.permute.xlu0 %3170 }
 0x294   :  { %v3050_v53 = vsel %vm3000_vm7, %v2975_v27, %v3025_v18  ;;  %vm3001_vm8 = vcmp.gt.f32.partialorder %v2976_v55, 0.0  ;;  %v3026_v30 = vmul.f32 0.2, %v2976_v55 }
 0x295   :  { %v3225_v29 = vmul.f32 %v3151_v46, %v3050_v53  ;;  %v2885_v39 = vpop.f32.mrb[212].mxu0  ;;  %v3176_v45 = vpop.permute.xlu1 %3175 }
 0x296   :  { %v3051_v10 = vsel %vm3001_vm8, %v2976_v55, %v3026_v30  ;;  %v2945_v26 = vadd.f32 %v2885_v39, %v2682_v3  ;;  %v4353_v20 = vpop.f32.mrb[213].mxu0 }
 0x297   :  { %v3669_v36 = vpack.c.bf16 %v3225_v29, %v3225_v29  ;;  %v3226_v54 = vmul.f32 %v3156_v50, %v3051_v10  ;;  %v2888_v44 = vpop.f32.mrb[214].mxu0  ;;  %v2630_v16 = vpop.f32.mrb[212].mxu1 }
 0x298   :  { %v2977_v12 = vadd.f32 %v5813_v0, %v2945_v26  ;;  %v2946_v21 = vadd.f32 %v2888_v44, %v2683_v6  ;;  %v4354_v56 = vpop.f32.mrb[215].mxu0  ;;  %v2684_v43 = vadd.f32 %v2630_v16, %v5783_v40  ;;  %v4297_v13 = vpop.f32.mrb[213].mxu1 }
 0x299   :  { %3352 = vst.msk [vmem:[%s5967_s4 + $0x30] sm:$0xf] %vm3339_vm10, %v3669_v36  ;;  %v3670_v35 = vpack.c.bf16 %v3226_v54, %v3226_v54  ;;  %v2633_v11 = vpop.f32.mrb[214].mxu1  ;;  %v3186_v13 = vpop.permute.xlu1 %3185 }
 0x29a   :  { %vm3002_vm9 = vcmp.gt.f32.partialorder %v2977_v12, 0.0  ;;  %v3027_v61 = vmul.f32 0.2, %v2977_v12  ;;  %v2978_v19 = vadd.f32 %v5813_v0, %v2946_v21  ;;  %v2685_v38 = vadd.f32 %v2633_v11, %v5785_v52  ;;  %v4298_v59 = vpop.f32.mrb[215].mxu1  ;;  %v3181_v21 = vpop.permute.xlu0 %3180 }
 0x29b   :  { %3353 = vst.msk [vmem:[%s5967_s4 + $0x34] sm:$0xf] %vm3339_vm10, %v3670_v35 }
 0x29c   :  { %v3052_v8 = vsel %vm3002_vm9, %v2977_v12, %v3027_v61  ;;  %vm3003_vm0 = vcmp.gt.f32.partialorder %v2978_v19, 0.0  ;;  %v3028_v62 = vmul.f32 0.2, %v2978_v19 }
 0x29d   :  { %v3227_v48 = vmul.f32 %v3161_v47, %v3052_v8  ;;  %v2893_v40 = vpop.f32.mrb[216].mxu0 }
 0x29e   :  { %v3053_v15 = vsel %vm3003_vm0, %v2978_v19, %v3028_v62  ;;  %v2947_v49 = vadd.f32 %v2893_v40, %v2684_v43  ;;  %v4357_v41 = vpop.f32.mrb[217].mxu0 }
 0x29f   :  { %v3671_v34 = vpack.c.bf16 %v3227_v48, %v3227_v48  ;;  %v3228_v25 = vmul.f32 %v3166_v37, %v3053_v15  ;;  %v2896_v51 = vpop.f32.mrb[218].mxu0  ;;  %v2638_v17 = vpop.f32.mrb[216].mxu1 }
 0x2a0   :  { %v2979_v1 = vadd.f32 %v5813_v0, %v2947_v49  ;;  %v2948_v22 = vadd.f32 %v2896_v51, %v2685_v38  ;;  %v4358_v58 = vpop.f32.mrb[219].mxu0  ;;  %v2686_v2 = vadd.f32 %v2638_v17, %v5789_v60  ;;  %v4301_v14 = vpop.f32.mrb[217].mxu1 }
 0x2a1   :  { %3354 = vst.msk [vmem:[%s5967_s4 + $0x38] sm:$0xf] %vm3339_vm10, %v3671_v34  ;;  %v3672_v52 = vpack.c.bf16 %v3228_v25, %v3228_v25  ;;  %v2641_v31 = vpop.f32.mrb[218].mxu1  ;;  %v3191_v17 = vpop.permute.xlu0 %3190 }
 0x2a2   :  { %vm3004_vm15 = vcmp.gt.f32.partialorder %v2979_v1, 0.0  ;;  %v3029_v57 = vmul.f32 0.2, %v2979_v1  ;;  %v2980_v27 = vadd.f32 %v5813_v0, %v2948_v22  ;;  %v2687_v23 = vadd.f32 %v2641_v31, %v5791_v42  ;;  %v4302_v28 = vpop.f32.mrb[219].mxu1 }
 0x2a3   :  { %3355 = vst.msk [vmem:[%s5967_s4 + $0x3c] sm:$0xf] %vm3339_vm10, %v3672_v52  ;;  %v3196_v52 = vpop.permute.xlu1 %3195 }
 0x2a4   :  { %v3054_v3 = vsel %vm3004_vm15, %v2979_v1, %v3029_v57  ;;  %vm3005_vm11 = vcmp.gt.f32.partialorder %v2980_v27, 0.0  ;;  %v3030_v63 = vmul.f32 0.2, %v2980_v27 }
 0x2a5   :  { %v3229_v18 = vmul.f32 %v3171_v32, %v3054_v3  ;;  %v2901_v60 = vpop.f32.mrb[220].mxu0 }
 0x2a6   :  { %v3055_v55 = vsel %vm3005_vm11, %v2980_v27, %v3030_v63  ;;  %v2949_v6 = vadd.f32 %v2901_v60, %v2686_v2  ;;  %v4361_v5 = vpop.f32.mrb[221].mxu0 }
 0x2a7   :  { %v3673_v46 = vpack.c.bf16 %v3229_v18, %v3229_v18  ;;  %v3230_v53 = vmul.f32 %v3176_v45, %v3055_v55  ;;  %v2904_v30 = vpop.f32.mrb[222].mxu0  ;;  %v2646_v29 = vpop.f32.mrb[220].mxu1 }
 0x2a8   :  { %v2981_v39 = vadd.f32 %v5813_v0, %v2949_v6  ;;  %v2950_v50 = vadd.f32 %v2904_v30, %v2687_v23  ;;  %v4362_v10 = vpop.f32.mrb[223].mxu0  ;;  %v2688_v26 = vadd.f32 %v2646_v29, %v5795_v4  ;;  %v4305_v20 = vpop.f32.mrb[221].mxu1 }
 0x2a9   :  { %3356 = vst.msk [vmem:[%s5967_s4 + $0x40] sm:$0xf] %vm3339_vm10, %v3673_v46  ;;  %v3674_v42 = vpack.c.bf16 %v3230_v53, %v3230_v53  ;;  %v2649_v54 = vpop.f32.mrb[222].mxu1  ;;  %v3201_v46 = vpop.permute.xlu0 %3200 }
 0x2aa   :  { %vm3006_vm12 = vcmp.gt.f32.partialorder %v2981_v39, 0.0  ;;  %v3031_v36 = vmul.f32 0.2, %v2981_v39  ;;  %v2982_v44 = vadd.f32 %v5813_v0, %v2950_v50  ;;  %v2689_v16 = vadd.f32 %v2649_v54, %v5797_v7  ;;  %v4306_v12 = vpop.f32.mrb[223].mxu1  ;;  %v3206_v50 = vpop.permute.xlu1 %3205 }
 0x2ab   :  { %3357 = vst.msk [vmem:[%s5967_s4 + $0x44] sm:$0xf] %vm3339_vm10, %v3674_v42 }
 0x2ac   :  { %v3056_v56 = vsel %vm3006_vm12, %v2981_v39, %v3031_v36  ;;  %vm3007_vm13 = vcmp.gt.f32.partialorder %v2982_v44, 0.0  ;;  %v3032_v35 = vmul.f32 0.2, %v2982_v44 }
 0x2ad   :  { %v3231_v43 = vmul.f32 %v3181_v21, %v3056_v56  ;;  %v2909_v4 = vpop.f32.mrb[224].mxu0  ;;  %v3211_v21 = vpop.permute.xlu0 %3210 }
 0x2ae   :  { %v3057_v61 = vsel %vm3007_vm13, %v2982_v44, %v3032_v35  ;;  %v2951_v11 = vadd.f32 %v2909_v4, %v2688_v26  ;;  %v4365_v19 = vpop.f32.mrb[225].mxu0 }
 0x2af   :  { %v3675_v38 = vpack.c.bf16 %v3231_v43, %v3231_v43  ;;  %v3232_v59 = vmul.f32 %v3186_v13, %v3057_v61  ;;  %v2912_v47 = vpop.f32.mrb[226].mxu0  ;;  %v2654_v8 = vpop.f32.mrb[224].mxu1 }
 0x2b0   :  { %v2983_v62 = vadd.f32 %v5813_v0, %v2951_v11  ;;  %v2952_v48 = vadd.f32 %v2912_v47, %v2689_v16  ;;  %v4366_v40 = vpop.f32.mrb[227].mxu0  ;;  %v2690_v37 = vadd.f32 %v2654_v8, %v5801_v33  ;;  %v4309_v15 = vpop.f32.mrb[225].mxu1 }
 0x2b1   :  { %3358 = vst.msk [vmem:[%s5967_s4 + $0x48] sm:$0xf] %vm3339_vm10, %v3675_v38  ;;  %v3676_v7 = vpack.c.bf16 %v3232_v59, %v3232_v59  ;;  %v2657_v41 = vpop.f32.mrb[226].mxu1 }
 0x2b2   :  { %vm3008_vm1 = vcmp.gt.f32.partialorder %v2983_v62, 0.0  ;;  %v3033_v49 = vmul.f32 0.2, %v2983_v62  ;;  %v2984_v34 = vadd.f32 %v5813_v0, %v2952_v48  ;;  %v2691_v25 = vadd.f32 %v2657_v41, %v5803_v24  ;;  %v4310_v51 = vpop.f32.mrb[227].mxu1 }
 0x2b3   :  { %3359 = vst.msk [vmem:[%s5967_s4 + $0x4c] sm:$0xf] %vm3339_vm10, %v3676_v7 }
 0x2b4   :  { %v3058_v1 = vsel %vm3008_vm1, %v2983_v62, %v3033_v49  ;;  %vm3009_vm2 = vcmp.gt.f32.partialorder %v2984_v34, 0.0  ;;  %v3034_v22 = vmul.f32 0.2, %v2984_v34 }
 0x2b5   :  { %v3233_v58 = vmul.f32 %v3191_v17, %v3058_v1  ;;  %v2917_v33 = vpop.f32.mrb[228].mxu0 }
 0x2b6   :  { %v3059_v2 = vsel %vm3009_vm2, %v2984_v34, %v3034_v22  ;;  %v2953_v14 = vadd.f32 %v2917_v33, %v2690_v37  ;;  %v4369_v57 = vpop.f32.mrb[229].mxu0 }
 0x2b7   :  { %v3677_v31 = vpack.c.bf16 %v3233_v58, %v3233_v58  ;;  %v3234_v27 = vmul.f32 %v3196_v52, %v3059_v2  ;;  %v2920_v23 = vpop.f32.mrb[230].mxu0  ;;  %v2662_v28 = vpop.f32.mrb[228].mxu1 }
 0x2b8   :  { %v2985_v32 = vadd.f32 %v5813_v0, %v2953_v14  ;;  %v2954_v3 = vadd.f32 %v2920_v23, %v2691_v25  ;;  %v4370_v63 = vpop.f32.mrb[231].mxu0  ;;  %v2692_v18 = vadd.f32 %v2662_v28, %v5806_v9  ;;  %v4313_v60 = vpop.f32.mrb[229].mxu1 }
 0x2b9   :  { %3360 = vst.msk [vmem:[%s5967_s4 + $0x50] sm:$0xf] %vm3339_vm10, %v3677_v31  ;;  %v3678_v24 = vpack.c.bf16 %v3234_v27, %v3234_v27  ;;  %v2665_v6 = vpop.f32.mrb[230].mxu1 }
 0x2ba   :  { %vm3010_vm4 = vcmp.gt.f32.partialorder %v2985_v32, 0.0  ;;  %v3035_v45 = vmul.f32 0.2, %v2985_v32  ;;  %v2986_v55 = vadd.f32 %v5813_v0, %v2954_v3  ;;  %v4314_v5 = vpop.f32.mrb[231].mxu1 }
 0x2bb   :  { %3361 = vst.msk [vmem:[%s5967_s4 + $0x54] sm:$0xf] %vm3339_vm10, %v3678_v24 }
 0x2bc   :  { %v3060_v53 = vsel %vm3010_vm4, %v2985_v32, %v3035_v45  ;;  %vm3011_vm14 = vcmp.gt.f32.partialorder %v2986_v55, 0.0  ;;  %v3036_v30 = vmul.f32 0.2, %v2986_v55 }
 0x2bd   :  { %v3235_v29 = vmul.f32 %v3201_v46, %v3060_v53  ;;  %v2925_v39 = vpop.f32.mrb[232].mxu0 }
 0x2be   :  { %v3061_v9 = vsel %vm3011_vm14, %v2986_v55, %v3036_v30  ;;  %v2955_v10 = vadd.f32 %v2925_v39, %v2692_v18  ;;  %v4373_v42 = vpop.f32.mrb[233].mxu0 }
 0x2bf   :  { %v3679_v26 = vpack.c.bf16 %v3235_v29, %v3235_v29  ;;  %v3236_v20 = vmul.f32 %v3206_v50, %v3061_v9  ;;  %v2928_v36 = vpop.f32.mrb[234].mxu0 }
 0x2c0   :  { %v2987_v54 = vadd.f32 %v5813_v0, %v2955_v10  ;;  %v4374_v44 = vpop.f32.mrb[235].mxu0 }
 0x2c1   :  { %3362 = vst.msk [vmem:[%s5967_s4 + $0x58] sm:$0xf] %vm3339_vm10, %v3679_v26  ;;  %v3680_v16 = vpack.c.bf16 %v3236_v20, %v3236_v20 }
 0x2c2   :  { %vm3012_vm3 = vcmp.gt.f32.partialorder %v2987_v54, 0.0  ;;  %v3037_v12 = vmul.f32 0.2, %v2987_v54 }
 0x2c3   :  { %3363 = vst.msk [vmem:[%s5967_s4 + $0x5c] sm:$0xf] %vm3339_vm10, %v3680_v16 }
 0x2c4   :  { %v3062_v56 = vsel %vm3012_vm3, %v2987_v54, %v3037_v12 }
 0x2c5   :  { %v3237_v35 = vmul.f32 %v3211_v21, %v3062_v56 }
 0x2c7   :  { %v3681_v43 = vpack.c.bf16 %v3237_v35, %v3237_v35 }
 0x2c9   :  { %3364 = vst.msk [vmem:[%s5967_s4 + $0x60] sm:$0xf] %vm3339_vm10, %v3681_v43 }

// kernel: _lambda_.8
= control target key start
LH: loop header
LB: loop body
LE: loop exit
PB: predicated region body
PF: predicated region fallthrough
CT: control target
= control target key end

     0   :  { %v4428_v0 = vmov 0.0   ;;  %vm4429_vm0 = vmmov 0   ;;  %vm124_vm1 = vsmask.f32 7424  ;;  %vm240_vm2 = vcmask 261120   ;;  %s5974_s2 = inlined_call_operand.vmem [shape: bf16[9,32,32], index: 2, kind: input, shape index: {}]   ;;  %s5975_s0 = inlined_call_operand.vmem [shape: bf16[222,32], index: 0, kind: input, shape index: {}]   ;;  %s5976_s3 = inlined_call_operand.vmem [shape: bf16[64,32], index: 3, kind: input, shape index: {}]   ;;  %s5977_s1 = inlined_call_operand.vmem [shape: bf16[200,64], index: 1, kind: input, shape index: {}]   ;;  %s5978_s5 = inlined_call_operand.vmem [shape: f32[200,1], index: 5, kind: input, shape index: {}]   ;;  %s5979_s4 = inlined_call_operand.vmem [shape: f32[1,32], index: 4, kind: input, shape index: {}]   ;;  %s5980_s6 = inlined_call_operand.vmem [shape: bf16[200,32], index: 6, kind: output, shape index: {}]  }
   0x1   :  { %3779 = vmatprep.subr.bf16.mxu0 %v4428_v0  ;;  %3835 = vmatprep.subr.bf16.mxu1 %v4428_v0  ;;  %v4348_v1 = vld [vmem:[%s5974_s2 + $0x10] sm:$0xff]   ;;  %v4349_v2 = vld [vmem:[%s5974_s2] sm:$0xff]   ;;  %v4350_v3 = vld [vmem:[%s5974_s2 + $0x18] sm:$0xff]   ;;  %vm601_vm3 = vcmask 1046528   ;;  %vm1181_vm4 = vsmask.f32 6400 }
   0x2   :  { %3783 = vmatprep.mubr.msk.bf16.mxu0 %vm4429_vm0, %v4428_v0  ;;  %3839 = vmatprep.mubr.msk.bf16.mxu1 %vm4429_vm0, %v4428_v0  ;;  %v4351_v4 = vld [vmem:[%s5974_s2 + $0x8] sm:$0xff]   ;;  %v24_v5 = vld [vmem:[%s5975_s0] sm:$0xf]  ;;  %v25_v6 = vld [vmem:[%s5975_s0 + $0x4] sm:$0xf]  ;;  %vm1519_vm5 = vcmask 1045504  }
   0x3   :  { %3780 = vmatpush3.bf16.msra.mxu0 %v4348_v1  ;;  %3836 = vmatpush3.bf16.msra.mxu1 %v4349_v2  ;;  %v3338_v7 = vcombine.low %v24_v5, %v25_v6  ;;  %v4353_v8 = vld [vmem:[%s5975_s0 + $0x8] sm:$0xff]   ;;  %v4355_v12 = vld [vmem:[%s5974_s2 + $0x30] sm:$0xff]   ;;  %v4354_v16 = vld [vmem:[%s5974_s2 + $0x20] sm:$0xff]   ;;  %vm2099_vm6 = vsmask.f32 5376  ;;  %vm2795_vm7 = vcmask 523264  }
   0x4   :  { %3781 = vmatprep.subr.bf16.mxu0 %v4428_v0  ;;  %3837 = vmatprep.subr.bf16.mxu1 %v4428_v0  ;;  %v133_v11 = vshll.u32 %v4353_v8, 16  ;;  %v4356_v13 = vld [vmem:[%s5975_s0 + $0x10] sm:$0xff]   ;;  %v137_v17 = vshrl.u32 %v4353_v8, 16  ;;  %v4357_v23 = vld [vmem:[%s5975_s0 + $0x18] sm:$0xff]   ;;  %v4362_v24 = vld [vmem:[%s5974_s2 + $0x28] sm:$0xff]   ;;  %v603_v34 = vrot.slane %v4353_v8, 1 }
   0x5   :  { %v126_v9 = vshrl.u32 %v3338_v7, 16  ;;  %v128_v10 = vshll.u32 %v3338_v7, 16  ;;  %v141_v18 = vshll.u32 %v4356_v13, 16  ;;  %v4363_v25 = vld [vmem:[%s5974_s2 + $0x38] sm:$0xff]   ;;  %v145_v27 = vshrl.u32 %v4356_v13, 16  ;;  %v4358_v31 = vld [vmem:[%s5975_s0 + $0x20] sm:$0xff]  }
   0x6   :  { %v135_v15 = vrot.slane %v133_v11, 1  ;;  %v149_v28 = vshll.u32 %v4357_v23, 16  ;;  %v592_v32 = vld [vmem:[%s5975_s0] sm:$0xe]  ;;  %v153_v35 = vshrl.u32 %v4357_v23, 16  ;;  %v157_v37 = vshll.u32 %v4358_v31, 16 }
   0x7   :  { %3782 = vmatpush3.bf16.msra.mxu0 %v4350_v3  ;;  %3838 = vmatpush3.bf16.msra.mxu1 %v4351_v4  ;;  %v130_v14 = vrot.slane %v128_v10, 1  ;;  %v143_v22 = vrot.slane %v141_v18, 1  ;;  %v3386_v33 = vcombine.low %v592_v32, %v25_v6  ;;  %v605_v39 = vrot.slane %v4356_v13, 1  ;;  %v4359_v40 = vld [vmem:[%s5975_s0 + $0x28] sm:$0xff]   ;;  %v4360_v42 = vld [vmem:[%s5975_s0 + $0x30] sm:$0xff]   ;;  %v4361_v48 = vld [vmem:[%s5975_s0 + $0x38] sm:$0xff]  }
   0x8   :  { %3891 = vmatprep.subr.bf16.mxu0 %v4428_v0  ;;  %3947 = vmatprep.subr.bf16.mxu1 %v4428_v0  ;;  %v139_v21 = vor.u32 %v137_v17, %v135_v15  ;;  %v151_v30 = vrot.slane %v149_v28, 1  ;;  %v607_v44 = vrot.slane %v4357_v23, 1  ;;  %v159_v46 = vrot.slane %v157_v37, 1  ;;  %v4364_v59 = vld [vmem:[%s5975_s0 + $0x40] sm:$0xff]   ;;  %v4365_v5 = vld [vmem:[%s5975_s0 + $0x48] sm:$0xff]   ;;  %v4642_v28 = vld [vmem:[%s5975_s0 + $0x58] sm:$0xff]  }
   0x9   :  { %v131_v19 = vor.u32 %v130_v14, %v126_v9  ;;  %v147_v29 = vor.u32 %v145_v27, %v143_v22  ;;  %v602_v38 = vrot.slane %v3386_v33, 1  ;;  %v4554_v43 = vsel %vm601_vm3, %v603_v34, %v605_v39 }
   0xa   :  { %3840 = vmatmul.mubr.msk.bf16.vlgmr.msra.gmra.mrb[0].mxu1 %vm240_vm2, %v3338_v7  ;;  %v144_v26 = vsel %vm124_vm1, %v139_v21, %v143_v22  ;;  %v155_v45 = vor.u32 %v153_v35, %v151_v30  ;;  %v609_v47 = vrot.slane %v4358_v31, 1  ;;  %v4562_v49 = vsel %vm601_vm3, %v605_v39, %v607_v44 }
   0xb   :  { %3948 = vmatpush3.bf16.msra.mxu1 %v4355_v12  ;;  %3843 = vmatprep.mubr.msk.bf16.mxu1 %vm4429_vm0, %v4428_v0  ;;  %v136_v20 = vsel %vm124_vm1, %v131_v19, %v135_v15  ;;  %v152_v36 = vsel %vm124_vm1, %v147_v29, %v151_v30  ;;  %v4547_v41 = vsel %vm601_vm3, %v602_v38, %v603_v34  ;;  %v611_v50 = vrot.slane %v4359_v40, 1 }
   0xc   :  { %3949 = vmatprep.subr.bf16.mxu1 %v4428_v0  ;;  %3784 = vmatmul.mubr.msk.bf16.vlgmr.msra.gmra.mrb[0].mxu0 %vm240_vm2, %v136_v20  ;;  %v4565_v51 = vsel %vm601_vm3, %v607_v44, %v609_v47  ;;  %v613_v52 = vrot.slane %v4360_v42, 1  ;;  %v615_v54 = vrot.slane %v4361_v48, 1  ;;  %v160_v55 = vsel %vm124_vm1, %v155_v45, %v159_v46  ;;  %v839_v44 = vld [vmem:[%s5975_s0 + $0x4] sm:$0xe]  ;;  %v840_v45 = vld [vmem:[%s5975_s0 + $0x8] sm:$0xf] }
   0xd   :  { %3892 = vmatpush3.bf16.msra.mxu0 %v4354_v16  ;;  %3787 = vmatprep.mubr.msk.bf16.mxu0 %vm4429_vm0, %v4428_v0  ;;  %v4569_v53 = vsel %vm601_vm3, %v609_v47, %v611_v50  ;;  %v161_v56 = vshrl.u32 %v4358_v31, 16  ;;  %v165_v57 = vshll.u32 %v4359_v40, 16  ;;  %v617_v63 = vrot.slane %v4364_v59, 1 }
   0xe   :  { %3893 = vmatprep.subr.bf16.mxu0 %v4428_v0  ;;  %v4575_v58 = vsel %vm601_vm3, %v611_v50, %v613_v52  ;;  %v4581_v60 = vsel %vm601_vm3, %v613_v52, %v615_v54  ;;  %v169_v2 = vshrl.u32 %v4359_v40, 16  ;;  %v173_v3 = vshll.u32 %v4360_v42, 16 }
   0xf   :  { %3950 = vmatpush3.bf16.msra.mxu1 %v4363_v25  ;;  %v163_v61 = vor.u32 %v161_v56, %v159_v46  ;;  %v167_v62 = vrot.slane %v165_v57, 1  ;;  %v4587_v1 = vsel %vm601_vm3, %v615_v54, %v617_v63  ;;  %v177_v10 = vshrl.u32 %v4360_v42, 16 }
  0x10   :  { %4059 = vmatprep.subr.bf16.mxu1 %v4428_v0  ;;  %v175_v7 = vrot.slane %v173_v3, 1  ;;  %v181_v11 = vshll.u32 %v4361_v48, 16  ;;  %v185_v19 = vshrl.u32 %v4361_v48, 16  ;;  %v189_v20 = vshll.u32 %v4364_v59, 16 }
  0x11   :  { %3894 = vmatpush3.bf16.msra.mxu0 %v4362_v24  ;;  %v168_v4 = vsel %vm124_vm1, %v163_v61, %v167_v62  ;;  %v171_v6 = vor.u32 %v169_v2, %v167_v62  ;;  %v53_v24 = vld [vmem:[%s5975_s0 + $0x64] sm:$0x1]  ;;  %v197_v27 = vshll.u32 %v4365_v5, 16  ;;  %v623_v32 = vrot.slane %v4642_v28, 1  ;;  %v1510_v61 = vld [vmem:[%s5975_s0 + $0x4] sm:$0xc] }
  0x12   :  { %3844 = vmatmul.mubr.msk.bf16.gmra.mrb[4].mxu1 %vm240_vm2, %v4353_v8  ;;  %4003 = vmatprep.subr.bf16.mxu0 %v4428_v0  ;;  %v619_v8 = vrot.slane %v4365_v5, 1  ;;  %v179_v14 = vor.u32 %v177_v10, %v175_v7  ;;  %v183_v15 = vrot.slane %v181_v11, 1  ;;  %v191_v22 = vrot.slane %v189_v20, 1 }
  0x13   :  { %3847 = vmatprep.mubr.msk.bf16.mxu1 %vm4429_vm0, %v4428_v0  ;;  %v176_v12 = vsel %vm124_vm1, %v171_v6, %v175_v7  ;;  %v3406_v47 = vcombine.low %v839_v44, %v840_v45  ;;  %v217_v57 = vshrl.u32 %v4642_v28, 16  ;;  %v3458_v3 = vcombine.low %v1510_v61, %v840_v45  ;;  %v4794_v44 = vld [vmem:[%s5975_s0 + $0x2c] sm:$0xff]  }
  0x14   :  { %3788 = vmatmul.mubr.msk.bf16.gmra.mrb[4].mxu0 %vm240_vm2, %v144_v26  ;;  %v4600_v9 = vsel %vm601_vm3, %v617_v63, %v619_v8  ;;  %v184_v18 = vsel %vm124_vm1, %v179_v14, %v183_v15  ;;  %v187_v21 = vor.u32 %v185_v19, %v183_v15  ;;  %v193_v26 = vshrl.u32 %v4364_v59, 16 }
  0x15   :  { %3791 = vmatprep.mubr.msk.bf16.mxu0 %vm4429_vm0, %v4428_v0  ;;  %v1183_v54 = vshrl.u32 %v3406_v47, 16  ;;  %v1520_v10 = vrot.slane %v3458_v3, 2  ;;  %v944_v45 = vrot.slane %v4794_v44, 1  ;;  %vm2437_vm8 = vcmask 1044480  }
  0x16   :  { %v192_v25 = vsel %vm124_vm1, %v187_v21, %v191_v22  ;;  %v195_v30 = vor.u32 %v193_v26, %v191_v22  ;;  %vm3304_vm9 = vcmask 257024  }
  0x17   :  { %v1185_v62 = vrot.slane %v1183_v54, 1  ;;  %v4836_v54 = vld [vmem:[%s5975_s0 + $0x44] sm:$0xff]  }
  0x1a   :  { %3848 = vmatmul.mubr.msk.bf16.gmra.mrb[8].mxu1 %vm240_vm2, %v4356_v13  ;;  %v4609_v13 = vld [vmem:[%s5975_s0 + $0x50] sm:$0xff]  }
  0x1b   :  { %3851 = vmatprep.mubr.msk.bf16.mxu1 %vm4429_vm0, %v4428_v0  ;;  %v621_v16 = vrot.slane %v4609_v13, 1  ;;  %v205_v37 = vshll.u32 %v4609_v13, 16 }
  0x1c   :  { %3792 = vmatmul.mubr.msk.bf16.gmra.mrb[8].mxu0 %vm240_vm2, %v152_v36  ;;  %v201_v36 = vshrl.u32 %v4365_v5, 16 }
  0x1d   :  { %3795 = vmatprep.mubr.msk.bf16.mxu0 %vm4429_vm0, %v4428_v0  ;;  %v4618_v17 = vsel %vm601_vm3, %v619_v8, %v621_v16  ;;  %v207_v39 = vrot.slane %v205_v37, 1  ;;  %v4760_v37 = vld [vmem:[%s5975_s0 + $0x1c] sm:$0xff]  }
  0x22   :  { %3852 = vmatmul.mubr.msk.bf16.gmra.mrb[12].mxu1 %vm240_vm2, %v4357_v23  ;;  %v4631_v23 = vld [vmem:[%s5975_s0 + $0x60] sm:$0xf] }
  0x23   :  { %3855 = vmatprep.mubr.msk.bf16.mxu1 %vm4429_vm0, %v4428_v0  ;;  %v4645_v29 = vcombine.low %v4631_v23, %v53_v24  ;;  %v3366_v21 = vcombine.low %v4631_v23, %v4631_v23  ;;  %v935_v24 = vrot.slane %v3406_v47, 1  ;;  %v4374_v23 = vld [vmem:[%s5974_s2 + $0x50] sm:$0xff]  }
  0x24   :  { %3796 = vmatmul.mubr.msk.bf16.gmra.mrb[12].mxu0 %vm240_vm2, %v160_v55  ;;  %v1186_v55 = vshll.u32 %v3406_v47, 16 }
  0x25   :  { %3799 = vmatprep.mubr.msk.bf16.mxu0 %vm4429_vm0, %v4428_v0  ;;  %v625_v33 = vrot.slane %v4645_v29, 1  ;;  %v225_v20 = vshrl.u32 %v4645_v29, 16 }
  0x26   :  { %v1188_v63 = vrot.slane %v1186_v55, 2  ;;  %v950_v55 = vrot.slane %v4836_v54, 1 }
  0x27   :  { %v4657_v34 = vsel %vm601_vm3, %v623_v32, %v625_v33 }
  0x28   :  { %v1189_v8 = vor.u32 %v1188_v63, %v1185_v62  ;;  %v4878_v62 = vld [vmem:[%s5975_s0 + $0x5c] sm:$0xff]  }
  0x29   :  { %v956_v63 = vrot.slane %v4878_v62, 1 }
  0x2a   :  { %3856 = vmatmul.mubr.msk.bf16.gmra.mrb[16].mxu1 %vm240_vm2, %v4358_v31  ;;  %v199_v31 = vrot.slane %v197_v27, 1  ;;  %v4739_v27 = vld [vmem:[%s5975_s0 + $0x14] sm:$0xff]  }
  0x2b   :  { %3859 = vmatprep.mubr.msk.bf16.mxu1 %vm4429_vm0, %v4428_v0 }
  0x2c   :  { %3800 = vmatmul.mubr.msk.bf16.gmra.mrb[16].mxu0 %vm240_vm2, %v168_v4  ;;  %v200_v35 = vsel %vm124_vm1, %v195_v30, %v199_v31  ;;  %v203_v38 = vor.u32 %v201_v36, %v199_v31  ;;  %v4373_v30 = vld [vmem:[%s5974_s2 + $0x40] sm:$0xff]   ;;  %v938_v31 = vrot.slane %v4739_v27, 1 }
  0x2d   :  { %3803 = vmatprep.mubr.msk.bf16.mxu0 %vm4429_vm0, %v4428_v0 }
  0x2e   :  { %v208_v46 = vsel %vm124_vm1, %v203_v38, %v207_v39  ;;  %v4381_v38 = vld [vmem:[%s5974_s2 + $0x48] sm:$0xff]  }
  0x32   :  { %3860 = vmatmul.mubr.msk.bf16.gmra.mrb[20].mxu1 %vm240_vm2, %v4359_v40  ;;  %v209_v40 = vshrl.u32 %v4609_v13, 16 }
  0x33   :  { %3863 = vmatprep.mubr.msk.bf16.mxu1 %vm4429_vm0, %v4428_v0 }
  0x34   :  { %3804 = vmatmul.mubr.msk.bf16.gmra.mrb[20].mxu0 %vm240_vm2, %v176_v12  ;;  %v211_v50 = vor.u32 %v209_v40, %v207_v39  ;;  %v4780_v40 = vld [vmem:[%s5975_s0 + $0x24] sm:$0xff]  }
  0x35   :  { %3807 = vmatprep.mubr.msk.bf16.mxu0 %vm4429_vm0, %v4428_v0 }
  0x3a   :  { %3864 = vmatmul.mubr.msk.bf16.gmra.mrb[24].mxu1 %vm240_vm2, %v4360_v42  ;;  %v213_v42 = vshll.u32 %v4642_v28, 16 }
  0x3b   :  { %3867 = vmatprep.mubr.msk.bf16.mxu1 %vm4429_vm0, %v4428_v0 }
  0x3c   :  { %3808 = vmatmul.mubr.msk.bf16.gmra.mrb[24].mxu0 %vm240_vm2, %v184_v18  ;;  %v215_v52 = vrot.slane %v213_v42, 1  ;;  %v942_v42 = vrot.slane %v4780_v40, 1 }
  0x3d   :  { %3811 = vmatprep.mubr.msk.bf16.mxu0 %vm4429_vm0, %v4428_v0 }
  0x3e   :  { %v216_v4 = vsel %vm124_vm1, %v211_v50, %v215_v52  ;;  %v219_v15 = vor.u32 %v217_v57, %v215_v52  ;;  %v4822_v50 = vld [vmem:[%s5975_s0 + $0x3c] sm:$0xff]  }
  0x3f   :  { %v948_v52 = vrot.slane %v4822_v50, 1 }
  0x42   :  { %3868 = vmatmul.mubr.msk.bf16.gmra.mrb[28].mxu1 %vm240_vm2, %v4361_v48  ;;  %v4682_v48 = vld [vmem:[%s5975_s0 + $0xc] sm:$0xff]  }
  0x43   :  { %3871 = vmatprep.mubr.msk.bf16.mxu1 %vm4429_vm0, %v4428_v0  ;;  %v1191_v56 = vshrl.u32 %v4682_v48, 16  ;;  %v1521_v7 = vrot.slane %v4682_v48, 2 }
  0x44   :  { %3812 = vmatmul.mubr.msk.bf16.gmra.mrb[28].mxu0 %vm240_vm2, %v192_v25  ;;  %v936_v25 = vrot.slane %v4682_v48, 1 }
  0x45   :  { %3815 = vmatprep.mubr.msk.bf16.mxu0 %vm4429_vm0, %v4428_v0  ;;  %v1193_v2 = vrot.slane %v1191_v56, 1  ;;  %v4705_v12 = vsel %vm1519_vm5, %v1520_v10, %v1521_v7  ;;  %v4850_v56 = vld [vmem:[%s5975_s0 + $0x4c] sm:$0xff]  }
  0x46   :  { %v937_v26 = vsel %vm601_vm3, %v935_v24, %v936_v25  ;;  %v939_v36 = vsel %vm601_vm3, %v936_v25, %v938_v31  ;;  %v952_v57 = vrot.slane %v4850_v56, 1 }
  0x4a   :  { %3872 = vmatmul.mubr.msk.bf16.gmra.mrb[32].mxu1 %vm240_vm2, %v4364_v59  ;;  %v1194_v59 = vshll.u32 %v4682_v48, 16 }
  0x4b   :  { %3875 = vmatprep.mubr.msk.bf16.mxu1 %vm4429_vm0, %v4428_v0 }
  0x4c   :  { %3816 = vmatmul.mubr.msk.bf16.gmra.mrb[32].mxu0 %vm240_vm2, %v200_v35  ;;  %v1196_v6 = vrot.slane %v1194_v59, 2  ;;  %v4382_v35 = vld [vmem:[%s5974_s2 + $0x58] sm:$0xff]  }
  0x4d   :  { %3819 = vmatprep.mubr.msk.bf16.mxu0 %vm4429_vm0, %v4428_v0  ;;  %v4864_v59 = vld [vmem:[%s5975_s0 + $0x54] sm:$0xff]  }
  0x4e   :  { %v4700_v11 = vor.u32 %v1196_v6, %v1193_v2  ;;  %v954_v61 = vrot.slane %v4864_v59, 1  ;;  %v864_v2 = vld [vmem:[%s5975_s0 + $0x68] sm:$0x1] }
  0x50   :  { %v4710_v14 = vsel %vm1181_vm4, %v1189_v8, %v4700_v11  ;;  %v957_v3 = vsel %vm601_vm3, %v954_v61, %v956_v63  ;;  %v4393_v8 = vld [vmem:[%s5974_s2 + $0x78] sm:$0xff]  }
  0x52   :  { %3876 = vmatmul.mubr.msk.bf16.gmra.mrb[36].mxu1 %vm240_vm2, %v4365_v5  ;;  %v221_v5 = vshll.u32 %v4645_v29, 16  ;;  %v4390_v29 = vld [vmem:[%s5974_s2 + $0x60] sm:$0xff]  }
  0x53   :  { %3879 = vmatprep.mubr.msk.bf16.mxu1 %vm4429_vm0, %v4428_v0 }
  0x54   :  { %3820 = vmatmul.mubr.msk.bf16.gmra.mrb[36].mxu0 %vm240_vm2, %v208_v46  ;;  %v223_v18 = vrot.slane %v221_v5, 1  ;;  %v4808_v46 = vld [vmem:[%s5975_s0 + $0x34] sm:$0xff]   ;;  %v624_v5 = vsel %vm601_vm3, %v621_v16, %v623_v32  ;;  %v1200_v16 = vshrl.u32 %v4739_v27, 16 }
  0x55   :  { %3823 = vmatprep.mubr.msk.bf16.mxu0 %vm4429_vm0, %v4428_v0  ;;  %v946_v47 = vrot.slane %v4808_v46, 1 }
  0x56   :  { %v224_v19 = vsel %vm124_vm1, %v219_v15, %v223_v18  ;;  %v227_v22 = vor.u32 %v225_v20, %v223_v18  ;;  %v1202_v32 = vrot.slane %v1200_v16, 1  ;;  %v1209_v20 = vshrl.u32 %v4760_v37, 16 }
  0x5a   :  { %3880 = vmatmul.mubr.msk.bf16.gmra.mrb[40].mxu1 %vm240_vm2, %v4609_v13  ;;  %v4391_v13 = vld [vmem:[%s5974_s2 + $0x70] sm:$0xff]  }
  0x5b   :  { %3883 = vmatprep.mubr.msk.bf16.mxu1 %vm4429_vm0, %v4428_v0 }
  0x5c   :  { %3824 = vmatmul.mubr.msk.bf16.gmra.mrb[40].mxu0 %vm240_vm2, %v216_v4 }
  0x5d   :  { %3827 = vmatprep.mubr.msk.bf16.mxu0 %vm4429_vm0, %v4428_v0 }
  0x62   :  { %3884 = vmatmul.mubr.msk.bf16.gmra.mrb[44].mxu1 %vm240_vm2, %v4642_v28  ;;  %v1203_v28 = vshll.u32 %v4739_v27, 16 }
  0x63   :  { %3887 = vmatprep.mubr.msk.bf16.mxu1 %vm4429_vm0, %v4428_v0 }
  0x64   :  { %3828 = vmatmul.mubr.msk.bf16.gmra.mrb[44].mxu0 %vm240_vm2, %v224_v19 }
  0x65   :  { %3831 = vmatprep.mubr.msk.bf16.mxu0 %vm4429_vm0, %v4428_v0 }
  0x6a   :  { %3888 = vmatmul.mubr.msk.bf16.gmra.mrb[48].mxu1 %vm240_vm2, %v3366_v21  ;;  %v1212_v21 = vshll.u32 %v4760_v37, 16 }
  0x6b   :  { %3951 = vmatprep.mubr.msk.bf16.mxu1 %vm4429_vm0, %v4428_v0 }
  0x6c   :  { %3832 = vmatmul.mubr.msk.bf16.gmra.mrb[48].mxu0 %vm240_vm2, %v227_v22  ;;  %v4392_v22 = vld [vmem:[%s5974_s2 + $0x68] sm:$0xff]  }
  0x6d   :  { %3895 = vmatprep.mubr.msk.bf16.mxu0 %vm4429_vm0, %v4428_v0 }
  0x72   :  { %3952 = vmatmul.mubr.msk.bf16.vlgmr.msra.gmra.mrb[52].mxu1 %vm240_vm2, %v937_v26 }
  0x73   :  { %4060 = vmatpush3.bf16.msra.mxu1 %v4374_v23  ;;  %3955 = vmatprep.mubr.msk.bf16.mxu1 %vm4429_vm0, %v4428_v0  ;;  %v1211_v23 = vrot.slane %v1209_v20, 1  ;;  %v1236_v20 = vshrl.u32 %v4808_v46, 16 }
  0x74   :  { %4061 = vmatprep.subr.bf16.mxu1 %v4428_v0  ;;  %3896 = vmatmul.mubr.msk.bf16.vlgmr.msra.gmra.mrb[52].mxu0 %vm240_vm2, %v4547_v41  ;;  %v940_v41 = vrot.slane %v4760_v37, 1 }
  0x75   :  { %4004 = vmatpush3.bf16.msra.mxu0 %v4373_v30  ;;  %3899 = vmatprep.mubr.msk.bf16.mxu0 %vm4429_vm0, %v4428_v0  ;;  %v1525_v30 = vrot.slane %v4760_v37, 2  ;;  %v1221_v37 = vshll.u32 %v4780_v40, 16 }
  0x76   :  { %4005 = vmatprep.subr.bf16.mxu0 %v4428_v0  ;;  %v941_v39 = vsel %vm601_vm3, %v938_v31, %v940_v41 }
  0x77   :  { %4062 = vmatpush3.bf16.msra.mxu1 %v4382_v35 }
  0x78   :  { %4171 = vmatprep.subr.bf16.mxu1 %v4428_v0 }
  0x79   :  { %4006 = vmatpush3.bf16.msra.mxu0 %v4381_v38 }
  0x7a   :  { %3956 = vmatmul.mubr.msk.bf16.gmra.mrb[56].mxu1 %vm240_vm2, %v939_v36  ;;  %4115 = vmatprep.subr.bf16.mxu0 %v4428_v0 }
  0x7b   :  { %3959 = vmatprep.mubr.msk.bf16.mxu1 %vm4429_vm0, %v4428_v0 }
  0x7c   :  { %3900 = vmatmul.mubr.msk.bf16.gmra.mrb[56].mxu0 %vm240_vm2, %v4554_v43  ;;  %v943_v43 = vsel %vm601_vm3, %v940_v41, %v942_v42 }
  0x7d   :  { %3903 = vmatprep.mubr.msk.bf16.mxu0 %vm4429_vm0, %v4428_v0 }
  0x82   :  { %3960 = vmatmul.mubr.msk.bf16.gmra.mrb[60].mxu1 %vm240_vm2, %v941_v39 }
  0x83   :  { %3963 = vmatprep.mubr.msk.bf16.mxu1 %vm4429_vm0, %v4428_v0 }
  0x84   :  { %3904 = vmatmul.mubr.msk.bf16.gmra.mrb[60].mxu0 %vm240_vm2, %v4562_v49  ;;  %v945_v49 = vsel %vm601_vm3, %v942_v42, %v944_v45  ;;  %v1218_v42 = vshrl.u32 %v4780_v40, 16 }
  0x85   :  { %3907 = vmatprep.mubr.msk.bf16.mxu0 %vm4429_vm0, %v4428_v0 }
  0x8a   :  { %3964 = vmatmul.mubr.msk.bf16.gmra.mrb[64].mxu1 %vm240_vm2, %v943_v43 }
  0x8b   :  { %3967 = vmatprep.mubr.msk.bf16.mxu1 %vm4429_vm0, %v4428_v0 }
  0x8c   :  { %3908 = vmatmul.mubr.msk.bf16.gmra.mrb[64].mxu0 %vm240_vm2, %v4565_v51  ;;  %v947_v51 = vsel %vm601_vm3, %v944_v45, %v946_v47 }
  0x8d   :  { %3911 = vmatprep.mubr.msk.bf16.mxu0 %vm4429_vm0, %v4428_v0 }
  0x92   :  { %3968 = vmatmul.mubr.msk.bf16.gmra.mrb[68].mxu1 %vm240_vm2, %v945_v49 }
  0x93   :  { %3971 = vmatprep.mubr.msk.bf16.mxu1 %vm4429_vm0, %v4428_v0 }
  0x94   :  { %3912 = vmatmul.mubr.msk.bf16.gmra.mrb[68].mxu0 %vm240_vm2, %v4569_v53  ;;  %v949_v53 = vsel %vm601_vm3, %v946_v47, %v948_v52 }
  0x95   :  { %3915 = vmatprep.mubr.msk.bf16.mxu0 %vm4429_vm0, %v4428_v0 }
  0x9a   :  { %3972 = vmatmul.mubr.msk.bf16.gmra.mrb[72].mxu1 %vm240_vm2, %v947_v51 }
  0x9b   :  { %3975 = vmatprep.mubr.msk.bf16.mxu1 %vm4429_vm0, %v4428_v0 }
  0x9c   :  { %3916 = vmatmul.mubr.msk.bf16.gmra.mrb[72].mxu0 %vm240_vm2, %v4575_v58  ;;  %v951_v58 = vsel %vm601_vm3, %v948_v52, %v950_v55 }
  0x9d   :  { %3919 = vmatprep.mubr.msk.bf16.mxu0 %vm4429_vm0, %v4428_v0 }
  0xa2   :  { %3976 = vmatmul.mubr.msk.bf16.gmra.mrb[76].mxu1 %vm240_vm2, %v949_v53  ;;  %v1220_v53 = vrot.slane %v1218_v42, 1  ;;  %v1245_v42 = vshrl.u32 %v4822_v50, 16 }
  0xa3   :  { %3979 = vmatprep.mubr.msk.bf16.mxu1 %vm4429_vm0, %v4428_v0 }
  0xa4   :  { %3920 = vmatmul.mubr.msk.bf16.gmra.mrb[76].mxu0 %vm240_vm2, %v4581_v60  ;;  %v953_v60 = vsel %vm601_vm3, %v950_v55, %v952_v57  ;;  %v1223_v55 = vrot.slane %v1221_v37, 2  ;;  %v1248_v37 = vshll.u32 %v4822_v50, 16 }
  0xa5   :  { %3923 = vmatprep.mubr.msk.bf16.mxu0 %vm4429_vm0, %v4428_v0 }
  0xaa   :  { %3980 = vmatmul.mubr.msk.bf16.gmra.mrb[80].mxu1 %vm240_vm2, %v951_v58  ;;  %v1527_v58 = vrot.slane %v4780_v40, 2 }
  0xab   :  { %3983 = vmatprep.mubr.msk.bf16.mxu1 %vm4429_vm0, %v4428_v0 }
  0xac   :  { %3924 = vmatmul.mubr.msk.bf16.gmra.mrb[80].mxu0 %vm240_vm2, %v4587_v1  ;;  %v955_v1 = vsel %vm601_vm3, %v952_v57, %v954_v61 }
  0xad   :  { %3927 = vmatprep.mubr.msk.bf16.mxu0 %vm4429_vm0, %v4428_v0 }
  0xb2   :  { %3984 = vmatmul.mubr.msk.bf16.gmra.mrb[84].mxu1 %vm240_vm2, %v953_v60 }
  0xb3   :  { %3987 = vmatprep.mubr.msk.bf16.mxu1 %vm4429_vm0, %v4428_v0 }
  0xb4   :  { %3928 = vmatmul.mubr.msk.bf16.gmra.mrb[84].mxu0 %vm240_vm2, %v4600_v9  ;;  %v4887_v9 = vld [vmem:[%s5975_s0 + $0x64] sm:$0xf] }
  0xb5   :  { %3931 = vmatprep.mubr.msk.bf16.mxu0 %vm4429_vm0, %v4428_v0  ;;  %v3418_v4 = vcombine.low %v4887_v9, %v864_v2  ;;  %v1224_v2 = vor.u32 %v1223_v55, %v1220_v53  ;;  %v1247_v53 = vrot.slane %v1245_v42, 1  ;;  %v1250_v55 = vrot.slane %v1248_v37, 2 }
  0xb7   :  { %v958_v6 = vrot.slane %v3418_v4, 1  ;;  %v1227_v4 = vshrl.u32 %v4794_v44, 16 }
  0xba   :  { %3988 = vmatmul.mubr.msk.bf16.gmra.mrb[88].mxu1 %vm240_vm2, %v955_v1 }
  0xbb   :  { %3991 = vmatprep.mubr.msk.bf16.mxu1 %vm4429_vm0, %v4428_v0 }
  0xbc   :  { %3932 = vmatmul.mubr.msk.bf16.gmra.mrb[88].mxu0 %vm240_vm2, %v4618_v17  ;;  %v959_v17 = vsel %vm601_vm3, %v956_v63, %v958_v6 }
  0xbd   :  { %3935 = vmatprep.mubr.msk.bf16.mxu0 %vm4429_vm0, %v4428_v0 }
  0xc2   :  { %3992 = vmatmul.mubr.msk.bf16.gmra.mrb[92].mxu1 %vm240_vm2, %v957_v3  ;;  %v1528_v3 = vsel %vm1519_vm5, %v1525_v30, %v1527_v58 }
  0xc3   :  { %3995 = vmatprep.mubr.msk.bf16.mxu1 %vm4429_vm0, %v4428_v0 }
  0xc4   :  { %3936 = vmatmul.mubr.msk.bf16.gmra.mrb[92].mxu0 %vm240_vm2, %v624_v5  ;;  %v1230_v5 = vshll.u32 %v4794_v44, 16 }
  0xc5   :  { %3939 = vmatprep.mubr.msk.bf16.mxu0 %vm4429_vm0, %v4428_v0 }
  0xca   :  { %3996 = vmatmul.mubr.msk.bf16.gmra.mrb[96].mxu1 %vm240_vm2, %v959_v17 }
  0xcb   :  { %3999 = vmatprep.mubr.msk.bf16.mxu1 %vm4429_vm0, %v4428_v0 }
  0xcc   :  { %3940 = vmatmul.mubr.msk.bf16.gmra.mrb[96].mxu0 %vm240_vm2, %v4657_v34  ;;  %v1523_v34 = vrot.slane %v4739_v27, 2  ;;  %v1214_v27 = vrot.slane %v1212_v21, 2  ;;  %v1239_v21 = vshll.u32 %v4808_v46, 16 }
  0xcd   :  { %3943 = vmatprep.mubr.msk.bf16.mxu0 %vm4429_vm0, %v4428_v0 }
  0xce   :  { %v1524_v19 = vsel %vm1519_vm5, %v1521_v7, %v1523_v34  ;;  %v1526_v39 = vsel %vm1519_vm5, %v1523_v34, %v1525_v30 }
  0xd2   :  { %4000 = vmatmul.mubr.msk.bf16.gmra.mrb[100].mxu1 %vm240_vm2, %v958_v6 }
  0xd3   :  { %4063 = vmatprep.mubr.msk.bf16.mxu1 %vm4429_vm0, %v4428_v0 }
  0xd4   :  { %3944 = vmatmul.mubr.msk.bf16.gmra.mrb[100].mxu0 %vm240_vm2, %v625_v33  ;;  %v1205_v33 = vrot.slane %v1203_v28, 2 }
  0xd5   :  { %4007 = vmatprep.mubr.msk.bf16.mxu0 %vm4429_vm0, %v4428_v0 }
  0xd6   :  { %v1206_v18 = vor.u32 %v1205_v33, %v1202_v32  ;;  %v1232_v32 = vrot.slane %v1230_v5, 2  ;;  %v1529_v33 = vrot.slane %v4794_v44, 2  ;;  %v1254_v5 = vshrl.u32 %v4836_v54, 16 }
  0xd8   :  { %v1207_v26 = vsel %vm1181_vm4, %v4700_v11, %v1206_v18  ;;  %v1215_v11 = vor.u32 %v1214_v27, %v1211_v23  ;;  %v1241_v23 = vrot.slane %v1239_v21, 2  ;;  %v1531_v27 = vrot.slane %v4808_v46, 2 }
  0xda   :  { %4064 = vmatmul.mubr.msk.bf16.vlgmr.msra.gmra.mrb[104].mxu1 %vm240_vm2, %v4705_v12  ;;  %v1216_v52 = vsel %vm1181_vm4, %v1206_v18, %v1215_v11  ;;  %v1225_v28 = vsel %vm1181_vm4, %v1215_v11, %v1224_v2 }
  0xdb   :  { %4172 = vmatpush3.bf16.msra.mxu1 %v4391_v13  ;;  %4067 = vmatprep.mubr.msk.bf16.mxu1 %vm4429_vm0, %v4428_v0 }
  0xdc   :  { %4173 = vmatprep.subr.bf16.mxu1 %v4428_v0  ;;  %4008 = vmatmul.mubr.msk.bf16.vlgmr.msra.gmra.mrb[104].mxu0 %vm240_vm2, %v4710_v14 }
  0xdd   :  { %v490_v10 = vpop.f32.mrb[0].mxu1  ;;  %4116 = vmatpush3.bf16.msra.mxu0 %v4390_v29  ;;  %4011 = vmatprep.mubr.msk.bf16.mxu0 %vm4429_vm0, %v4428_v0  ;;  %v1229_v29 = vrot.slane %v1227_v4, 1 }
  0xde   :  { %v3841_v12 = vpop.f32.mrb[1].mxu1  ;;  %4117 = vmatprep.subr.bf16.mxu0 %v4428_v0 }
  0xdf   :  { %v493_v15 = vpop.f32.mrb[2].mxu1  ;;  %4174 = vmatpush3.bf16.msra.mxu1 %v4393_v8  ;;  %v314_v24 = vpop.f32.mrb[0].mxu0  ;;  %v1233_v18 = vor.u32 %v1232_v32, %v1229_v29  ;;  %v1256_v32 = vrot.slane %v1254_v5, 1 }
  0xe0   :  { %v3842_v14 = vpop.f32.mrb[3].mxu1  ;;  %4283 = vmatprep.subr.bf16.mxu1 %v4428_v0  ;;  %v3785_v25 = vpop.f32.mrb[1].mxu0  ;;  %v4957_v48 = vadd.f32 %v490_v10, %v314_v24 }
  0xe1   :  { %v317_v7 = vpop.f32.mrb[2].mxu0  ;;  %4118 = vmatpush3.bf16.msra.mxu0 %v4392_v22 }
  0xe2   :  { %4068 = vmatmul.mubr.msk.bf16.gmra.mrb[108].mxu1 %vm240_vm2, %v1524_v19  ;;  %v3786_v31 = vpop.f32.mrb[3].mxu0  ;;  %4227 = vmatprep.subr.bf16.mxu0 %v4428_v0  ;;  %v4965_v35 = vadd.f32 %v493_v15, %v317_v7  ;;  %v1530_v19 = vsel %vm1519_vm5, %v1527_v58, %v1529_v33  ;;  %v1234_v7 = vsel %vm1181_vm4, %v1224_v2, %v1233_v18  ;;  %v1533_v58 = vrot.slane %v4822_v50, 2 }
  0xe3   :  { %4071 = vmatprep.mubr.msk.bf16.mxu1 %vm4429_vm0, %v4428_v0 }
  0xe4   :  { %4012 = vmatmul.mubr.msk.bf16.gmra.mrb[108].mxu0 %vm240_vm2, %v1207_v26  ;;  %v1238_v26 = vrot.slane %v1236_v20, 1  ;;  %v1534_v4 = vsel %vm1519_vm5, %v1531_v27, %v1533_v58 }
  0xe5   :  { %v498_v36 = vpop.f32.mrb[4].mxu1  ;;  %4015 = vmatprep.mubr.msk.bf16.mxu0 %vm4429_vm0, %v4428_v0 }
  0xe6   :  { %v3845_v38 = vpop.f32.mrb[5].mxu1  ;;  %v1242_v11 = vor.u32 %v1241_v23, %v1238_v26 }
  0xe7   :  { %v501_v41 = vpop.f32.mrb[6].mxu1  ;;  %v322_v45 = vpop.f32.mrb[4].mxu0 }
  0xe8   :  { %v3846_v43 = vpop.f32.mrb[7].mxu1  ;;  %v4973_v49 = vadd.f32 %v498_v36, %v322_v45  ;;  %v3789_v47 = vpop.f32.mrb[5].mxu0 }
  0xe9   :  { %v325_v51 = vpop.f32.mrb[6].mxu0 }
  0xea   :  { %4072 = vmatmul.mubr.msk.bf16.gmra.mrb[112].mxu1 %vm240_vm2, %v1526_v39  ;;  %v4980_v57 = vadd.f32 %v501_v41, %v325_v51  ;;  %v3790_v60 = vpop.f32.mrb[7].mxu0  ;;  %v1532_v39 = vsel %vm1519_vm5, %v1529_v33, %v1531_v27 }
  0xeb   :  { %4075 = vmatprep.mubr.msk.bf16.mxu1 %vm4429_vm0, %v4428_v0 }
  0xec   :  { %4016 = vmatmul.mubr.msk.bf16.gmra.mrb[112].mxu0 %vm240_vm2, %v1216_v52  ;;  %v1243_v52 = vsel %vm1181_vm4, %v1233_v18, %v1242_v11 }
  0xed   :  { %v506_v61 = vpop.f32.mrb[8].mxu1  ;;  %4019 = vmatprep.mubr.msk.bf16.mxu0 %vm4429_vm0, %v4428_v0 }
  0xee   :  { %v3849_v1 = vpop.f32.mrb[9].mxu1 }
  0xef   :  { %v509_v63 = vpop.f32.mrb[10].mxu1  ;;  %v330_v40 = vpop.f32.mrb[8].mxu0 }
  0xf0   :  { %v3850_v6 = vpop.f32.mrb[11].mxu1  ;;  %v4988_v17 = vadd.f32 %v506_v61, %v330_v40  ;;  %v3793_v13 = vpop.f32.mrb[9].mxu0 }
  0xf1   :  { %v333_v16 = vpop.f32.mrb[10].mxu0  ;;  %v1257_v6 = vshll.u32 %v4836_v54, 16 }
  0xf2   :  { %4076 = vmatmul.mubr.msk.bf16.gmra.mrb[116].mxu1 %vm240_vm2, %v1528_v3  ;;  %v4995_v34 = vadd.f32 %v509_v63, %v333_v16  ;;  %v3794_v8 = vpop.f32.mrb[11].mxu0  ;;  %v1251_v3 = vor.u32 %v1250_v55, %v1247_v53 }
  0xf3   :  { %4079 = vmatprep.mubr.msk.bf16.mxu1 %vm4429_vm0, %v4428_v0  ;;  %v1259_v33 = vrot.slane %v1257_v6, 2  ;;  %v1535_v8 = vrot.slane %v4836_v54, 2  ;;  %v1281_v6 = vshrl.u32 %v4878_v62, 16 }
  0xf4   :  { %4020 = vmatmul.mubr.msk.bf16.gmra.mrb[116].mxu0 %vm240_vm2, %v1225_v28  ;;  %v1252_v29 = vsel %vm1181_vm4, %v1242_v11, %v1251_v3 }
  0xf5   :  { %v514_v10 = vpop.f32.mrb[12].mxu1  ;;  %4023 = vmatprep.mubr.msk.bf16.mxu0 %vm4429_vm0, %v4428_v0  ;;  %v1260_v20 = vor.u32 %v1259_v33, %v1256_v32  ;;  %v1536_v21 = vsel %vm1519_vm5, %v1533_v58, %v1535_v8 }
  0xf6   :  { %v3853_v12 = vpop.f32.mrb[13].mxu1 }
  0xf7   :  { %v517_v15 = vpop.f32.mrb[14].mxu1  ;;  %v338_v44 = vpop.f32.mrb[12].mxu0  ;;  %v1261_v23 = vsel %vm1181_vm4, %v1251_v3, %v1260_v20 }
  0xf8   :  { %v3854_v22 = vpop.f32.mrb[15].mxu1  ;;  %v5003_v14 = vadd.f32 %v514_v10, %v338_v44  ;;  %v3797_v24 = vpop.f32.mrb[13].mxu0  ;;  %v1266_v44 = vshll.u32 %v4850_v56, 16 }
  0xf9   :  { %v341_v25 = vpop.f32.mrb[14].mxu0  ;;  %v1263_v22 = vshrl.u32 %v4850_v56, 16 }
  0xfa   :  { %4080 = vmatmul.mubr.msk.bf16.gmra.mrb[120].mxu1 %vm240_vm2, %v1530_v19  ;;  %v5010_v30 = vadd.f32 %v517_v15, %v341_v25  ;;  %v3798_v31 = vpop.f32.mrb[15].mxu0 }
  0xfb   :  { %4083 = vmatprep.mubr.msk.bf16.mxu1 %vm4429_vm0, %v4428_v0  ;;  %v1265_v27 = vrot.slane %v1263_v22, 1  ;;  %v1268_v31 = vrot.slane %v1266_v44, 2 }
  0xfc   :  { %4024 = vmatmul.mubr.msk.bf16.gmra.mrb[120].mxu0 %vm240_vm2, %v1234_v7 }
  0xfd   :  { %v522_v36 = vpop.f32.mrb[16].mxu1  ;;  %4027 = vmatprep.mubr.msk.bf16.mxu0 %vm4429_vm0, %v4428_v0  ;;  %v1269_v37 = vor.u32 %v1268_v31, %v1265_v27 }
  0xfe   :  { %v3857_v38 = vpop.f32.mrb[17].mxu1 }
  0xff   :  { %v525_v41 = vpop.f32.mrb[18].mxu1  ;;  %v346_v46 = vpop.f32.mrb[16].mxu0  ;;  %v1270_v58 = vsel %vm1181_vm4, %v1260_v20, %v1269_v37 }
 0x100   :  { %v3858_v43 = vpop.f32.mrb[19].mxu1  ;;  %v5018_v45 = vadd.f32 %v522_v36, %v346_v46  ;;  %v3801_v47 = vpop.f32.mrb[17].mxu0  ;;  %v1537_v36 = vrot.slane %v4850_v56, 2  ;;  %v1272_v46 = vshrl.u32 %v4864_v59, 16 }
 0x101   :  { %v349_v51 = vpop.f32.mrb[18].mxu0  ;;  %v1275_v47 = vshll.u32 %v4864_v59, 16 }
 0x102   :  { %4084 = vmatmul.mubr.msk.bf16.gmra.mrb[124].mxu1 %vm240_vm2, %v1532_v39  ;;  %v5025_v60 = vadd.f32 %v525_v41, %v349_v51  ;;  %v3802_v61 = vpop.f32.mrb[19].mxu0  ;;  %v1538_v43 = vsel %vm1519_vm5, %v1535_v8, %v1537_v36 }
 0x103   :  { %4087 = vmatprep.mubr.msk.bf16.mxu1 %vm4429_vm0, %v4428_v0  ;;  %v1274_v61 = vrot.slane %v1272_v46, 1 }
 0x104   :  { %4028 = vmatmul.mubr.msk.bf16.gmra.mrb[124].mxu0 %vm240_vm2, %v1243_v52 }
 0x105   :  { %v530_v1 = vpop.f32.mrb[20].mxu1  ;;  %4031 = vmatprep.mubr.msk.bf16.mxu0 %vm4429_vm0, %v4428_v0 }
 0x106   :  { %v3861_v63 = vpop.f32.mrb[21].mxu1 }
 0x107   :  { %v533_v2 = vpop.f32.mrb[22].mxu1  ;;  %v354_v50 = vpop.f32.mrb[20].mxu0  ;;  %v1539_v63 = vrot.slane %v4864_v59, 2  ;;  %v1172_v59 = vld [vmem:[%s5975_s0 + $0x68] sm:$0x3] }
 0x108   :  { %v3862_v40 = vpop.f32.mrb[23].mxu1  ;;  %v5033_v13 = vadd.f32 %v530_v1, %v354_v50  ;;  %v3805_v16 = vpop.f32.mrb[21].mxu0  ;;  %v1277_v1 = vrot.slane %v1275_v47, 2 }
 0x109   :  { %v357_v28 = vpop.f32.mrb[22].mxu0  ;;  %v1284_v40 = vshll.u32 %v4878_v62, 16 }
 0x10a   :  { %4088 = vmatmul.mubr.msk.bf16.gmra.mrb[128].mxu1 %vm240_vm2, %v1534_v4  ;;  %v5040_v10 = vadd.f32 %v533_v2, %v357_v28  ;;  %v3806_v12 = vpop.f32.mrb[23].mxu0  ;;  %v1278_v16 = vor.u32 %v1277_v1, %v1274_v61  ;;  %v1540_v28 = vsel %vm1519_vm5, %v1537_v36, %v1539_v63  ;;  %v5105_v36 = vld [vmem:[%s5975_s0 + $0xc] sm:$0xf] }
 0x10b   :  { %4091 = vmatprep.mubr.msk.bf16.mxu1 %vm4429_vm0, %v4428_v0  ;;  %v1283_v12 = vrot.slane %v1281_v6, 1 }
 0x10c   :  { %4032 = vmatmul.mubr.msk.bf16.gmra.mrb[128].mxu0 %vm240_vm2, %v1252_v29  ;;  %v1279_v20 = vsel %vm1181_vm4, %v1269_v37, %v1278_v16 }
 0x10d   :  { %v538_v15 = vpop.f32.mrb[24].mxu1  ;;  %4035 = vmatprep.mubr.msk.bf16.mxu0 %vm4429_vm0, %v4428_v0 }
 0x10e   :  { %v3865_v18 = vpop.f32.mrb[25].mxu1 }
 0x10f   :  { %v541_v19 = vpop.f32.mrb[26].mxu1  ;;  %v362_v54 = vpop.f32.mrb[24].mxu0  ;;  %v5085_v18 = vcombine.low %v4887_v9, %v1172_v59 }
 0x110   :  { %v3866_v24 = vpop.f32.mrb[27].mxu1  ;;  %v5048_v25 = vadd.f32 %v538_v15, %v362_v54  ;;  %v3809_v7 = vpop.f32.mrb[25].mxu0  ;;  %v1286_v15 = vrot.slane %v1284_v40, 2 }
 0x111   :  { %v365_v26 = vpop.f32.mrb[26].mxu0  ;;  %v1293_v27 = vshll.u32 %v5085_v18, 16  ;;  %v1543_v47 = vrot.slane %v5085_v18, 2 }
 0x112   :  { %4092 = vmatmul.mubr.msk.bf16.gmra.mrb[132].mxu1 %vm240_vm2, %v1536_v21  ;;  %v5055_v38 = vadd.f32 %v541_v19, %v365_v26  ;;  %v3810_v41 = vpop.f32.mrb[27].mxu0  ;;  %v1541_v21 = vrot.slane %v4878_v62, 2  ;;  %v1287_v7 = vor.u32 %v1286_v15, %v1283_v12  ;;  %v1757_v62 = vld [vmem:[%s5975_s0 + $0x8] sm:$0xc] }
 0x113   :  { %4095 = vmatprep.mubr.msk.bf16.mxu1 %vm4429_vm0, %v4428_v0  ;;  %v1295_v46 = vrot.slane %v1293_v27, 2 }
 0x114   :  { %4036 = vmatmul.mubr.msk.bf16.gmra.mrb[132].mxu0 %vm240_vm2, %v1261_v23  ;;  %v1542_v9 = vsel %vm1519_vm5, %v1539_v63, %v1541_v21  ;;  %v1290_v23 = vshrl.u32 %v5085_v18, 16 }
 0x115   :  { %v546_v11 = vpop.f32.mrb[28].mxu1  ;;  %4039 = vmatprep.mubr.msk.bf16.mxu0 %vm4429_vm0, %v4428_v0 }
 0x116   :  { %v3869_v39 = vpop.f32.mrb[29].mxu1 }
 0x117   :  { %v549_v42 = vpop.f32.mrb[30].mxu1  ;;  %v370_v56 = vpop.f32.mrb[28].mxu0 }
 0x118   :  { %v3870_v51 = vpop.f32.mrb[31].mxu1  ;;  %v5063_v52 = vadd.f32 %v546_v11, %v370_v56  ;;  %v3813_v53 = vpop.f32.mrb[29].mxu0 }
 0x119   :  { %v373_v55 = vpop.f32.mrb[30].mxu0  ;;  %v5115_v51 = vcombine.low %v1757_v62, %v5105_v36 }
 0x11a   :  { %4096 = vmatmul.mubr.msk.bf16.gmra.mrb[136].mxu1 %vm240_vm2, %v1538_v43  ;;  %v5070_v2 = vadd.f32 %v549_v42, %v373_v55  ;;  %v3814_v3 = vpop.f32.mrb[31].mxu0  ;;  %v1288_v42 = vsel %vm1181_vm4, %v1278_v16, %v1287_v7  ;;  %v1292_v43 = vrot.slane %v1290_v23, 1 }
 0x11b   :  { %4099 = vmatprep.mubr.msk.bf16.mxu1 %vm4429_vm0, %v4428_v0  ;;  %v1544_v3 = vsel %vm1519_vm5, %v1541_v21, %v1543_v47  ;;  %v2104_v6 = vshll.u32 %v5115_v51, 16 }
 0x11c   :  { %4040 = vmatmul.mubr.msk.bf16.gmra.mrb[136].mxu0 %vm240_vm2, %v1270_v58  ;;  %v5122_v58 = vld [vmem:[%s5975_s0 + $0x10] sm:$0xff]   ;;  %v1296_v63 = vor.u32 %v1295_v46, %v1292_v43 }
 0x11d   :  { %v554_v4 = vpop.f32.mrb[32].mxu1  ;;  %4043 = vmatprep.mubr.msk.bf16.mxu0 %vm4429_vm0, %v4428_v0  ;;  %v2112_v59 = vshll.u32 %v5122_v58, 16  ;;  %v2106_v18 = vrot.slane %v2104_v6, 3 }
 0x11e   :  { %v3873_v5 = vpop.f32.mrb[33].mxu1 }
 0x11f   :  { %v557_v50 = vpop.f32.mrb[34].mxu1  ;;  %v378_v32 = vpop.f32.mrb[32].mxu0 }
 0x120   :  { %v3874_v29 = vpop.f32.mrb[35].mxu1  ;;  %v5081_v33 = vadd.f32 %v554_v4, %v378_v32  ;;  %v3817_v8 = vpop.f32.mrb[33].mxu0  ;;  %v2101_v4 = vshrl.u32 %v5115_v51, 16  ;;  %v1297_v32 = vsel %vm1181_vm4, %v1287_v7, %v1296_v63 }
 0x121   :  { %v381_v19 = vpop.f32.mrb[34].mxu0 }
 0x122   :  { %4100 = vmatmul.mubr.msk.bf16.gmra.mrb[140].mxu1 %vm240_vm2, %v1540_v28  ;;  %v5091_v22 = vadd.f32 %v557_v50, %v381_v19  ;;  %v3818_v44 = vpop.f32.mrb[35].mxu0  ;;  %v2109_v50 = vshrl.u32 %v5122_v58, 16  ;;  %v2103_v8 = vrot.slane %v2101_v4, 2 }
 0x123   :  { %4103 = vmatprep.mubr.msk.bf16.mxu1 %vm4429_vm0, %v4428_v0  ;;  %v2114_v44 = vrot.slane %v2112_v59, 3  ;;  %v4396_v59 = vld [vmem:[%s5974_s2 + $0x80] sm:$0xff]  }
 0x124   :  { %4044 = vmatmul.mubr.msk.bf16.gmra.mrb[140].mxu0 %vm240_vm2, %v1279_v20  ;;  %v2111_v20 = vrot.slane %v2109_v50, 2 }
 0x125   :  { %v562_v24 = vpop.f32.mrb[36].mxu1  ;;  %4047 = vmatprep.mubr.msk.bf16.mxu0 %vm4429_vm0, %v4428_v0 }
 0x126   :  { %v3877_v54 = vpop.f32.mrb[37].mxu1  ;;  %v2115_v62 = vor.u32 %v2114_v44, %v2111_v20 }
 0x127   :  { %v565_v26 = vpop.f32.mrb[38].mxu1  ;;  %v386_v41 = vpop.f32.mrb[36].mxu0  ;;  %v5146_v54 = vld [vmem:[%s5975_s0 + $0x18] sm:$0xff]  }
 0x128   :  { %v3878_v31 = vpop.f32.mrb[39].mxu1  ;;  %v5107_v11 = vadd.f32 %v562_v24, %v386_v41  ;;  %v3821_v39 = vpop.f32.mrb[37].mxu0  ;;  %v2118_v41 = vshrl.u32 %v5146_v54, 16  ;;  %v1856_v44 = vrot.slane %v5146_v54, 2 }
 0x129   :  { %v389_v37 = vpop.f32.mrb[38].mxu0  ;;  %v2107_v31 = vor.u32 %v2106_v18, %v2103_v8  ;;  %v2121_v39 = vshll.u32 %v5146_v54, 16  ;;  %v4401_v18 = vld [vmem:[%s5976_s3 + $0x8] sm:$0xff]  }
 0x12a   :  { %4104 = vmatmul.mubr.msk.bf16.gmra.mrb[144].mxu1 %vm240_vm2, %v1542_v9  ;;  %v5117_v56 = vadd.f32 %v565_v26, %v389_v37  ;;  %v3822_v53 = vpop.f32.mrb[39].mxu0 }
 0x12b   :  { %4107 = vmatprep.mubr.msk.bf16.mxu1 %vm4429_vm0, %v4428_v0  ;;  %v2123_v4 = vrot.slane %v2121_v39, 3 }
 0x12c   :  { %4048 = vmatmul.mubr.msk.bf16.gmra.mrb[144].mxu0 %vm240_vm2, %v1288_v42 }
 0x12d   :  { %v570_v55 = vpop.f32.mrb[40].mxu1  ;;  %4051 = vmatprep.mubr.msk.bf16.mxu0 %vm4429_vm0, %v4428_v0 }
 0x12e   :  { %v3881_v61 = vpop.f32.mrb[41].mxu1 }
 0x12f   :  { %v573_v1 = vpop.f32.mrb[42].mxu1  ;;  %v394_v40 = vpop.f32.mrb[40].mxu0  ;;  %v2116_v61 = vsel %vm2099_vm6, %v2107_v31, %v2115_v62 }
 0x130   :  { %v3882_v5 = vpop.f32.mrb[43].mxu1  ;;  %v5131_v16 = vadd.f32 %v570_v55, %v394_v40  ;;  %v3825_v28 = vpop.f32.mrb[41].mxu0  ;;  %v1854_v55 = vrot.slane %v5122_v58, 2 }
 0x131   :  { %v397_v29 = vpop.f32.mrb[42].mxu0 }
 0x132   :  { %4108 = vmatmul.mubr.msk.bf16.gmra.mrb[148].mxu1 %vm240_vm2, %v1544_v3  ;;  %v5138_v12 = vadd.f32 %v573_v1, %v397_v29  ;;  %v3826_v15 = vpop.f32.mrb[43].mxu0  ;;  %v4397_v1 = vld [vmem:[%s5976_s3] sm:$0xff]   ;;  %v2120_v3 = vrot.slane %v2118_v41, 2  ;;  %v4406_v41 = vld [vmem:[%s5976_s3 + $0x10] sm:$0xff]  }
 0x133   :  { %4111 = vmatprep.mubr.msk.bf16.mxu1 %vm4429_vm0, %v4428_v0 }
 0x134   :  { %4052 = vmatmul.mubr.msk.bf16.gmra.mrb[148].mxu0 %vm240_vm2, %v1297_v32  ;;  %v2124_v29 = vor.u32 %v2123_v4, %v2120_v3  ;;  %v4411_v4 = vld [vmem:[%s5976_s3 + $0x18] sm:$0xff]  }
 0x135   :  { %v578_v19 = vpop.f32.mrb[44].mxu1  ;;  %4055 = vmatprep.mubr.msk.bf16.mxu0 %vm4429_vm0, %v4428_v0 }
 0x136   :  { %v3885_v21 = vpop.f32.mrb[45].mxu1 }
 0x137   :  { %v581_v24 = vpop.f32.mrb[46].mxu1  ;;  %v402_v26 = vpop.f32.mrb[44].mxu0 }
 0x138   :  { %v3886_v7 = vpop.f32.mrb[47].mxu1  ;;  %v5148_v9 = vadd.f32 %v578_v19, %v402_v26  ;;  %v3829_v23 = vpop.f32.mrb[45].mxu0 }
 0x139   :  { %v405_v27 = vpop.f32.mrb[46].mxu0  ;;  %v5194_v23 = vld [vmem:[%s5975_s0 + $0x28] sm:$0xff]  }
 0x13a   :  { %4112 = vmatmul.mubr.msk.bf16.gmra.mrb[152].mxu1 %vm240_vm2, %v1543_v47  ;;  %v5155_v42 = vadd.f32 %v581_v24, %v405_v27  ;;  %v3830_v37 = vpop.f32.mrb[47].mxu0  ;;  %v1853_v47 = vrot.slane %v5115_v51, 2  ;;  %v2125_v24 = vsel %vm2099_vm6, %v2115_v62, %v2124_v29  ;;  %v4405_v27 = vld [vmem:[%s5974_s2 + $0x88] sm:$0xff]  }
 0x13b   :  { %4175 = vmatprep.mubr.msk.bf16.mxu1 %vm4429_vm0, %v4428_v0 }
 0x13c   :  { %4056 = vmatmul.mubr.msk.bf16.gmra.mrb[152].mxu0 %vm240_vm2, %v1296_v63  ;;  %v5169_v63 = vld [vmem:[%s5975_s0 + $0x20] sm:$0xff]   ;;  %v1855_v28 = vsel %vm1519_vm5, %v1853_v47, %v1854_v55 }
 0x13d   :  { %v586_v43 = vpop.f32.mrb[48].mxu1  ;;  %4119 = vmatprep.mubr.msk.bf16.mxu0 %vm4429_vm0, %v4428_v0  ;;  %v2127_v32 = vshrl.u32 %v5169_v63, 16  ;;  %v2130_v8 = vshll.u32 %v5169_v63, 16 }
 0x13e   :  { %v3889_v46 = vpop.f32.mrb[49].mxu1 }
 0x13f   :  { %v589_v53 = vpop.f32.mrb[50].mxu1  ;;  %v410_v5 = vpop.f32.mrb[48].mxu0  ;;  %v2129_v7 = vrot.slane %v2127_v32, 2  ;;  %v2132_v26 = vrot.slane %v2130_v8, 3  ;;  %v1857_v46 = vsel %vm1519_vm5, %v1854_v55, %v1856_v44  ;;  %v5228_v32 = vld [vmem:[%s5975_s0 + $0x30] sm:$0xff]  }
 0x140   :  { %v3890_v51 = vpop.f32.mrb[51].mxu1  ;;  %v5171_v6 = vadd.f32 %v586_v43, %v410_v5  ;;  %v3833_v40 = vpop.f32.mrb[49].mxu0  ;;  %v2136_v53 = vshrl.u32 %v5194_v23, 16 }
 0x141   :  { %v413_v50 = vpop.f32.mrb[50].mxu0  ;;  %v2133_v47 = vor.u32 %v2132_v26, %v2129_v7  ;;  %v2148_v7 = vshll.u32 %v5228_v32, 16 }
 0x142   :  { %4176 = vmatmul.mubr.msk.bf16.vlgmr.msra.gmra.mrb[156].mxu1 %vm240_vm2, %v2116_v61  ;;  %v3834_v15 = vpop.f32.mrb[51].mxu0  ;;  %v2139_v61 = vshll.u32 %v5194_v23, 16 }
 0x143   :  { %4284 = vmatpush3.bf16.msra.mxu1 %v4397_v1  ;;  %4179 = vmatprep.mubr.msk.bf16.mxu1 %vm4429_vm0, %v4428_v0  ;;  %v2134_v50 = vsel %vm2099_vm6, %v2124_v29, %v2133_v47 }
 0x144   :  { %4285 = vmatprep.subr.bf16.mxu1 %v4428_v0  ;;  %4120 = vmatmul.mubr.msk.bf16.vlgmr.msra.gmra.mrb[156].mxu0 %vm240_vm2, %v1855_v28  ;;  %v2138_v28 = vrot.slane %v2136_v53, 2 }
 0x145   :  { %v1045_v19 = vpop.f32.mrb[52].mxu1  ;;  %4228 = vmatpush3.bf16.msra.mxu0 %v4396_v59  ;;  %4123 = vmatprep.mubr.msk.bf16.mxu0 %vm4429_vm0, %v4428_v0  ;;  %v2141_v59 = vrot.slane %v2139_v61, 3 }
 0x146   :  { %v3953_v20 = vpop.f32.mrb[53].mxu1  ;;  %4229 = vmatprep.subr.bf16.mxu0 %v4428_v0 }
 0x147   :  { %v1048_v21 = vpop.f32.mrb[54].mxu1  ;;  %4286 = vmatpush3.bf16.msra.mxu1 %v4401_v18  ;;  %v712_v62 = vpop.f32.mrb[52].mxu0  ;;  %v2142_v29 = vor.u32 %v2141_v59, %v2138_v28 }
 0x148   :  { %v3954_v31 = vpop.f32.mrb[55].mxu1  ;;  %4287 = vmatprep.subr.bf16.mxu1 %v4428_v0  ;;  %v814_v39 = vadd.f32 %v712_v62, %v4957_v48  ;;  %v3897_v37 = vpop.f32.mrb[53].mxu0 }
 0x149   :  { %v715_v43 = vpop.f32.mrb[54].mxu0  ;;  %4230 = vmatpush3.bf16.msra.mxu0 %v4405_v27  ;;  %v2143_v37 = vsel %vm2099_vm6, %v2133_v47, %v2142_v29 }
 0x14a   :  { %4180 = vmatmul.mubr.msk.bf16.gmra.mrb[160].mxu1 %vm240_vm2, %v2125_v24  ;;  %v5211_v1 = vadd.f32 %v1045_v19, %v814_v39  ;;  %v815_v3 = vadd.f32 %v715_v43, %v4965_v35  ;;  %v3898_v48 = vpop.f32.mrb[55].mxu0  ;;  %v1858_v35 = vrot.slane %v5169_v63, 2  ;;  %v2145_v24 = vshrl.u32 %v5228_v32, 16 }
 0x14b   :  { %4183 = vmatprep.mubr.msk.bf16.mxu1 %vm4429_vm0, %v4428_v0  ;;  %4288 = vmatpush3.bf16.msra.mxu1 %v4406_v41  ;;  %v1860_v39 = vrot.slane %v5194_v23, 2 }
 0x14c   :  { %4289 = vmatprep.subr.bf16.mxu1 %v4428_v0  ;;  %v5218_v51 = vadd.f32 %v1048_v21, %v815_v3  ;;  %4124 = vmatmul.mubr.msk.bf16.gmra.mrb[160].mxu0 %vm240_vm2, %v1857_v46  ;;  %v1859_v21 = vsel %vm1519_vm5, %v1856_v44, %v1858_v35  ;;  %v2147_v43 = vrot.slane %v2145_v24, 2  ;;  %v2150_v46 = vrot.slane %v2148_v7, 3 }
 0x14d   :  { %v1053_v55 = vpop.f32.mrb[56].mxu1  ;;  %4127 = vmatprep.mubr.msk.bf16.mxu0 %vm4429_vm0, %v4428_v0 }
 0x14e   :  { %v3957_v5 = vpop.f32.mrb[57].mxu1  ;;  %v2151_v47 = vor.u32 %v2150_v46, %v2147_v43 }
 0x14f   :  { %v1056_v40 = vpop.f32.mrb[58].mxu1  ;;  %4290 = vmatpush3.bf16.msra.mxu1 %v4411_v4  ;;  %v720_v15 = vpop.f32.mrb[56].mxu0 }
 0x150   :  { %v3958_v8 = vpop.f32.mrb[59].mxu1  ;;  %v816_v18 = vadd.f32 %v720_v15, %v4973_v49  ;;  %v3901_v19 = vpop.f32.mrb[57].mxu0 }
 0x151   :  { %v723_v20 = vpop.f32.mrb[58].mxu0  ;;  %v2152_v19 = vsel %vm2099_vm6, %v2142_v29, %v2151_v47 }
 0x152   :  { %4184 = vmatmul.mubr.msk.bf16.gmra.mrb[164].mxu1 %vm240_vm2, %v2134_v50  ;;  %v5237_v26 = vadd.f32 %v1053_v55, %v816_v18  ;;  %v817_v27 = vadd.f32 %v723_v20, %v4980_v57  ;;  %v3902_v31 = vpop.f32.mrb[59].mxu0  ;;  %v5250_v57 = vld [vmem:[%s5975_s0 + $0x38] sm:$0xff]   ;;  %v1861_v55 = vsel %vm1519_vm5, %v1858_v35, %v1860_v39  ;;  %v1862_v18 = vrot.slane %v5228_v32, 2 }
 0x153   :  { %4187 = vmatprep.mubr.msk.bf16.mxu1 %vm4429_vm0, %v4428_v0  ;;  %v2154_v5 = vshrl.u32 %v5250_v57, 16 }
 0x154   :  { %v5240_v41 = vadd.f32 %v1056_v40, %v817_v27  ;;  %4128 = vmatmul.mubr.msk.bf16.gmra.mrb[164].mxu0 %vm240_vm2, %v1859_v21  ;;  %v2157_v40 = vshll.u32 %v5250_v57, 16 }
 0x155   :  { %v1061_v49 = vpop.f32.mrb[60].mxu1  ;;  %4131 = vmatprep.mubr.msk.bf16.mxu0 %vm4429_vm0, %v4428_v0  ;;  %v2156_v20 = vrot.slane %v2154_v5, 2 }
 0x156   :  { %v3961_v62 = vpop.f32.mrb[61].mxu1  ;;  %v2159_v21 = vrot.slane %v2157_v40, 3 }
 0x157   :  { %v1064_v44 = vpop.f32.mrb[62].mxu1  ;;  %v728_v61 = vpop.f32.mrb[60].mxu0  ;;  %v1863_v62 = vsel %vm1519_vm5, %v1860_v39, %v1862_v18 }
 0x158   :  { %v3962_v53 = vpop.f32.mrb[63].mxu1  ;;  %v818_v3 = vadd.f32 %v728_v61, %v4988_v17  ;;  %v3905_v48 = vpop.f32.mrb[61].mxu0  ;;  %v2160_v29 = vor.u32 %v2159_v21, %v2156_v20 }
 0x159   :  { %v731_v4 = vpop.f32.mrb[62].mxu0  ;;  %v1864_v48 = vrot.slane %v5250_v57, 2 }
 0x15a   :  { %4188 = vmatmul.mubr.msk.bf16.gmra.mrb[168].mxu1 %vm240_vm2, %v2143_v37  ;;  %v5259_v50 = vadd.f32 %v1061_v49, %v818_v3  ;;  %v819_v28 = vadd.f32 %v731_v4, %v4995_v34  ;;  %v3906_v59 = vpop.f32.mrb[63].mxu0  ;;  %v5272_v34 = vld [vmem:[%s5975_s0 + $0x40] sm:$0xff]   ;;  %v2161_v4 = vsel %vm2099_vm6, %v2151_v47, %v2160_v29 }
 0x15b   :  { %4191 = vmatprep.mubr.msk.bf16.mxu1 %vm4429_vm0, %v4428_v0  ;;  %v2166_v37 = vshll.u32 %v5272_v34, 16 }
 0x15c   :  { %v5262_v8 = vadd.f32 %v1064_v44, %v819_v28  ;;  %4132 = vmatmul.mubr.msk.bf16.gmra.mrb[168].mxu0 %vm240_vm2, %v1861_v55  ;;  %v2163_v44 = vshrl.u32 %v5272_v34, 16 }
 0x15d   :  { %v1069_v17 = vpop.f32.mrb[64].mxu1  ;;  %4135 = vmatprep.mubr.msk.bf16.mxu0 %vm4429_vm0, %v4428_v0  ;;  %v2168_v5 = vrot.slane %v2166_v37, 3 }
 0x15e   :  { %v3965_v15 = vpop.f32.mrb[65].mxu1  ;;  %v2165_v55 = vrot.slane %v2163_v44, 2 }
 0x15f   :  { %v1072_v35 = vpop.f32.mrb[66].mxu1  ;;  %v736_v7 = vpop.f32.mrb[64].mxu0 }
 0x160   :  { %v3966_v24 = vpop.f32.mrb[67].mxu1  ;;  %v820_v27 = vadd.f32 %v736_v7, %v5003_v14  ;;  %v3909_v31 = vpop.f32.mrb[65].mxu0  ;;  %v2169_v47 = vor.u32 %v2168_v5, %v2165_v55 }
 0x161   :  { %v739_v49 = vpop.f32.mrb[66].mxu0 }
 0x162   :  { %4192 = vmatmul.mubr.msk.bf16.gmra.mrb[172].mxu1 %vm240_vm2, %v2152_v19  ;;  %v5281_v43 = vadd.f32 %v1069_v17, %v820_v27  ;;  %v821_v46 = vadd.f32 %v739_v49, %v5010_v30  ;;  %v3910_v53 = vpop.f32.mrb[67].mxu0  ;;  %v5294_v30 = vld [vmem:[%s5975_s0 + $0x48] sm:$0xff]   ;;  %v1866_v49 = vrot.slane %v5272_v34, 2 }
 0x163   :  { %4195 = vmatprep.mubr.msk.bf16.mxu1 %vm4429_vm0, %v4428_v0  ;;  %v2172_v19 = vshrl.u32 %v5294_v30, 16  ;;  %v2175_v20 = vshll.u32 %v5294_v30, 16 }
 0x164   :  { %v5284_v61 = vadd.f32 %v1072_v35, %v821_v46  ;;  %4136 = vmatmul.mubr.msk.bf16.gmra.mrb[172].mxu0 %vm240_vm2, %v1863_v62  ;;  %v1865_v35 = vsel %vm1519_vm5, %v1862_v18, %v1864_v48  ;;  %v2170_v62 = vsel %vm2099_vm6, %v2160_v29, %v2169_v47 }
 0x165   :  { %v1077_v14 = vpop.f32.mrb[68].mxu1  ;;  %4139 = vmatprep.mubr.msk.bf16.mxu0 %vm4429_vm0, %v4428_v0  ;;  %v2174_v44 = vrot.slane %v2172_v19, 2  ;;  %v2177_v37 = vrot.slane %v2175_v20, 3 }
 0x166   :  { %v3969_v3 = vpop.f32.mrb[69].mxu1 }
 0x167   :  { %v1080_v39 = vpop.f32.mrb[70].mxu1  ;;  %v744_v28 = vpop.f32.mrb[68].mxu0  ;;  %v2178_v29 = vor.u32 %v2177_v37, %v2174_v44 }
 0x168   :  { %v3970_v40 = vpop.f32.mrb[71].mxu1  ;;  %v822_v59 = vadd.f32 %v744_v28, %v5018_v45  ;;  %v3913_v17 = vpop.f32.mrb[69].mxu0 }
 0x169   :  { %v747_v15 = vpop.f32.mrb[70].mxu0  ;;  %v2179_v19 = vsel %vm2099_vm6, %v2169_v47, %v2178_v29 }
 0x16a   :  { %4196 = vmatmul.mubr.msk.bf16.gmra.mrb[176].mxu1 %vm240_vm2, %v2161_v4  ;;  %v5303_v21 = vadd.f32 %v1077_v14, %v822_v59  ;;  %v823_v24 = vadd.f32 %v747_v15, %v5025_v60  ;;  %v3914_v7 = vpop.f32.mrb[71].mxu0  ;;  %v5316_v60 = vld [vmem:[%s5975_s0 + $0x50] sm:$0xff]   ;;  %v1867_v4 = vsel %vm1519_vm5, %v1864_v48, %v1866_v49 }
 0x16b   :  { %4199 = vmatprep.mubr.msk.bf16.mxu1 %vm4429_vm0, %v4428_v0  ;;  %v2181_v55 = vshrl.u32 %v5316_v60, 16  ;;  %v2184_v5 = vshll.u32 %v5316_v60, 16 }
 0x16c   :  { %v5306_v27 = vadd.f32 %v1080_v39, %v823_v24  ;;  %4140 = vmatmul.mubr.msk.bf16.gmra.mrb[176].mxu0 %vm240_vm2, %v1865_v35  ;;  %v1868_v35 = vrot.slane %v5294_v30, 2 }
 0x16d   :  { %v1085_v45 = vpop.f32.mrb[72].mxu1  ;;  %4143 = vmatprep.mubr.msk.bf16.mxu0 %vm4429_vm0, %v4428_v0  ;;  %v2183_v20 = vrot.slane %v2181_v55, 2  ;;  %v2186_v24 = vrot.slane %v2184_v5, 3  ;;  %v1870_v55 = vrot.slane %v5316_v60, 2 }
 0x16e   :  { %v3973_v31 = vpop.f32.mrb[73].mxu1  ;;  %v1869_v44 = vsel %vm1519_vm5, %v1866_v49, %v1868_v35 }
 0x16f   :  { %v1088_v18 = vpop.f32.mrb[74].mxu1  ;;  %v752_v53 = vpop.f32.mrb[72].mxu0  ;;  %v2187_v47 = vor.u32 %v2186_v24, %v2183_v20  ;;  %v1871_v24 = vsel %vm1519_vm5, %v1868_v35, %v1870_v55  ;;  %v2090_v35 = vld [vmem:[%s5975_s0 + $0x6c] sm:$0x7] }
 0x170   :  { %v3974_v46 = vpop.f32.mrb[75].mxu1  ;;  %v824_v14 = vadd.f32 %v752_v53, %v5033_v13  ;;  %v3917_v3 = vpop.f32.mrb[73].mxu0 }
 0x171   :  { %v755_v39 = vpop.f32.mrb[74].mxu0  ;;  %v2188_v5 = vsel %vm2099_vm6, %v2178_v29, %v2187_v47 }
 0x172   :  { %4200 = vmatmul.mubr.msk.bf16.gmra.mrb[180].mxu1 %vm240_vm2, %v2170_v62  ;;  %v5325_v40 = vadd.f32 %v1085_v45, %v824_v14  ;;  %v825_v28 = vadd.f32 %v755_v39, %v5040_v10  ;;  %v3918_v59 = vpop.f32.mrb[75].mxu0  ;;  %v5338_v10 = vld [vmem:[%s5975_s0 + $0x58] sm:$0xff]  }
 0x173   :  { %4203 = vmatprep.mubr.msk.bf16.mxu1 %vm4429_vm0, %v4428_v0  ;;  %v2190_v37 = vshrl.u32 %v5338_v10, 16  ;;  %v2193_v46 = vshll.u32 %v5338_v10, 16 }
 0x174   :  { %v5328_v17 = vadd.f32 %v1088_v18, %v825_v28  ;;  %4144 = vmatmul.mubr.msk.bf16.gmra.mrb[180].mxu0 %vm240_vm2, %v1867_v4 }
 0x175   :  { %v1093_v13 = vpop.f32.mrb[76].mxu1  ;;  %4147 = vmatprep.mubr.msk.bf16.mxu0 %vm4429_vm0, %v4428_v0  ;;  %v2192_v28 = vrot.slane %v2190_v37, 2  ;;  %v2195_v59 = vrot.slane %v2193_v46, 3  ;;  %v4430_v37 = vmov 0   ;;  %v3028_v46 = vld [vmem:[%s5978_s5] sm:$0xff] }
 0x176   :  { %v3977_v15 = vpop.f32.mrb[77].mxu1  ;;  %4346 = vset.pattern.permute.xlu0 %v4430_v37  ;;  %4347 = vset.pattern.permute.xlu1 %v4430_v37  ;;  %v3030_v37 = vld [vmem:[%s5978_s5 + $0x10] sm:$0xff] }
 0x177   :  { %v1096_v48 = vpop.f32.mrb[78].mxu1  ;;  %v760_v45 = vpop.f32.mrb[76].mxu0  ;;  %v2196_v29 = vor.u32 %v2195_v59, %v2192_v28  ;;  %3055 = vperm.xlu0 %4346, %v3028_v46   ;;  %3065 = vperm.xlu1 %4347, %v3030_v37  }
 0x178   :  { %v3978_v7 = vpop.f32.mrb[79].mxu1  ;;  %v826_v31 = vadd.f32 %v760_v45, %v5048_v25  ;;  %v3921_v18 = vpop.f32.mrb[77].mxu0 }
 0x179   :  { %v763_v62 = vpop.f32.mrb[78].mxu0 }
 0x17a   :  { %4204 = vmatmul.mubr.msk.bf16.gmra.mrb[184].mxu1 %vm240_vm2, %v2179_v19  ;;  %v5347_v53 = vadd.f32 %v1093_v13, %v826_v31  ;;  %v827_v14 = vadd.f32 %v763_v62, %v5055_v38  ;;  %v3922_v3 = vpop.f32.mrb[79].mxu0  ;;  %v5360_v38 = vld [vmem:[%s5975_s0 + $0x60] sm:$0xff]  }
 0x17b   :  { %4207 = vmatprep.mubr.msk.bf16.mxu1 %vm4429_vm0, %v4428_v0  ;;  %v2199_v7 = vshrl.u32 %v5360_v38, 16  ;;  %v2202_v45 = vshll.u32 %v5360_v38, 16  ;;  %v1872_v3 = vrot.slane %v5338_v10, 2 }
 0x17c   :  { %v5350_v39 = vadd.f32 %v1096_v48, %v827_v14  ;;  %4148 = vmatmul.mubr.msk.bf16.gmra.mrb[184].mxu0 %vm240_vm2, %v1869_v44 }
 0x17d   :  { %v1101_v25 = vpop.f32.mrb[80].mxu1  ;;  %4151 = vmatprep.mubr.msk.bf16.mxu0 %vm4429_vm0, %v4428_v0  ;;  %v2204_v28 = vrot.slane %v2202_v45, 3 }
 0x17e   :  { %v3981_v4 = vpop.f32.mrb[81].mxu1 }
 0x17f   :  { %v1104_v49 = vpop.f32.mrb[82].mxu1  ;;  %v768_v15 = vpop.f32.mrb[80].mxu0  ;;  %v2197_v4 = vsel %vm2099_vm6, %v2187_v47, %v2196_v29  ;;  %v1873_v47 = vsel %vm1519_vm5, %v1870_v55, %v1872_v3 }
 0x180   :  { %v3982_v13 = vpop.f32.mrb[83].mxu1  ;;  %v828_v48 = vadd.f32 %v768_v15, %v5063_v52  ;;  %v3925_v19 = vpop.f32.mrb[81].mxu0  ;;  %v5375_v52 = vld [vmem:[%s5975_s0 + $0x68] sm:$0xf] }
 0x181   :  { %v771_v20 = vpop.f32.mrb[82].mxu0  ;;  %v5391_v59 = vcombine.low %v5375_v52, %v2090_v35  ;;  %v3029_v15 = vld [vmem:[%s5978_s5 + $0x8] sm:$0xff] }
 0x182   :  { %4208 = vmatmul.mubr.msk.bf16.gmra.mrb[188].mxu1 %vm240_vm2, %v2188_v5  ;;  %v5369_v31 = vadd.f32 %v1101_v25, %v828_v48  ;;  %v829_v18 = vadd.f32 %v771_v20, %v5070_v2  ;;  %v3926_v62 = vpop.f32.mrb[83].mxu0  ;;  %v2201_v5 = vrot.slane %v2199_v7, 2  ;;  %3060 = vperm.xlu0 %4346, %v3029_v15   ;;  %v3031_v15 = vld [vmem:[%s5978_s5 + $0x18] sm:$0xff] }
 0x183   :  { %4211 = vmatprep.mubr.msk.bf16.mxu1 %vm4429_vm0, %v4428_v0  ;;  %v2208_v7 = vshrl.u32 %v5391_v59, 16  ;;  %v2211_v45 = vshll.u32 %v5391_v59, 16  ;;  %3070 = vperm.xlu1 %4347, %v3031_v15   ;;  %v3035_v15 = vld [vmem:[%s5978_s5 + $0x38] sm:$0xff] }
 0x184   :  { %v5383_v14 = vadd.f32 %v1104_v49, %v829_v18  ;;  %4152 = vmatmul.mubr.msk.bf16.gmra.mrb[188].mxu0 %vm240_vm2, %v1871_v24  ;;  %v2205_v24 = vor.u32 %v2204_v28, %v2201_v5 }
 0x185   :  { %v1109_v44 = vpop.f32.mrb[84].mxu1  ;;  %4155 = vmatprep.mubr.msk.bf16.mxu0 %vm4429_vm0, %v4428_v0  ;;  %v2210_v5 = vrot.slane %v2208_v7, 2  ;;  %v2213_v28 = vrot.slane %v2211_v45, 3  ;;  %v3034_v45 = vld [vmem:[%s5978_s5 + $0x30] sm:$0xff] }
 0x186   :  { %v3985_v2 = vpop.f32.mrb[85].mxu1 }
 0x187   :  { %v1112_v25 = vpop.f32.mrb[86].mxu1  ;;  %v776_v49 = vpop.f32.mrb[84].mxu0  ;;  %v3032_v2 = vld [vmem:[%s5978_s5 + $0x20] sm:$0xff]  ;;  %v2214_v7 = vor.u32 %v2213_v28, %v2210_v5 }
 0x188   :  { %v3986_v13 = vpop.f32.mrb[87].mxu1  ;;  %v830_v48 = vadd.f32 %v776_v49, %v5081_v33  ;;  %v3929_v19 = vpop.f32.mrb[85].mxu0  ;;  %3075 = vperm.xlu0 %4346, %v3032_v2  }
 0x189   :  { %v779_v20 = vpop.f32.mrb[86].mxu0  ;;  %v1782_v13 = vld [vmem:[%s5975_s0 + $0x6c] sm:$0x3] }
 0x18a   :  { %4212 = vmatmul.mubr.msk.bf16.gmra.mrb[192].mxu1 %vm240_vm2, %v2197_v4  ;;  %v5403_v18 = vadd.f32 %v1109_v44, %v830_v48  ;;  %v831_v62 = vadd.f32 %v779_v20, %v5091_v22  ;;  %v3930_v33 = vpop.f32.mrb[87].mxu0  ;;  %v1874_v22 = vrot.slane %v5360_v38, 2  ;;  %v2206_v4 = vsel %vm2099_vm6, %v2196_v29, %v2205_v24 }
 0x18b   :  { %4215 = vmatprep.mubr.msk.bf16.mxu1 %vm4429_vm0, %v4428_v0 }
 0x18c   :  { %v5409_v46 = vadd.f32 %v1112_v25, %v831_v62  ;;  %4156 = vmatmul.mubr.msk.bf16.gmra.mrb[192].mxu0 %vm240_vm2, %v1873_v47  ;;  %v1875_v20 = vsel %vm1519_vm5, %v1872_v3, %v1874_v22  ;;  %v3490_v47 = vcombine.low %v5375_v52, %v1782_v13  ;;  %3085 = vperm.xlu0 %4346, %v3034_v45   ;;  %v3033_v3 = vld [vmem:[%s5978_s5 + $0x28] sm:$0xff]  ;;  %v3036_v52 = vld [vmem:[%s5978_s5 + $0x40] sm:$0xff] }
 0x18d   :  { %v1117_v35 = vpop.f32.mrb[88].mxu1  ;;  %4159 = vmatprep.mubr.msk.bf16.mxu0 %vm4429_vm0, %v4428_v0  ;;  %3080 = vperm.xlu1 %4347, %v3033_v3   ;;  %v3040_v45 = vld [vmem:[%s5978_s5 + $0x60] sm:$0xff] }
 0x18e   :  { %v3989_v55 = vpop.f32.mrb[89].mxu1 }
 0x18f   :  { %v1120_v44 = vpop.f32.mrb[90].mxu1  ;;  %v784_v49 = vpop.f32.mrb[88].mxu0 }
 0x190   :  { %v3990_v25 = vpop.f32.mrb[91].mxu1  ;;  %v832_v48 = vadd.f32 %v784_v49, %v5107_v11  ;;  %v3933_v19 = vpop.f32.mrb[89].mxu0  ;;  %3095 = vperm.xlu0 %4346, %v3036_v52  }
 0x191   :  { %v787_v29 = vpop.f32.mrb[90].mxu0  ;;  %3090 = vperm.xlu1 %4347, %v3035_v15  }
 0x192   :  { %4216 = vmatmul.mubr.msk.bf16.gmra.mrb[196].mxu1 %vm240_vm2, %v2206_v4  ;;  %v5434_v62 = vadd.f32 %v1117_v35, %v832_v48  ;;  %v833_v11 = vadd.f32 %v787_v29, %v5117_v56  ;;  %v3934_v33 = vpop.f32.mrb[91].mxu0  ;;  %v1876_v56 = vrot.slane %v3490_v47, 2  ;;  %v2215_v4 = vsel %vm2099_vm6, %v2205_v24, %v2214_v7  ;;  %v3038_v24 = vld [vmem:[%s5978_s5 + $0x50] sm:$0xff]  ;;  %v3037_v47 = vld [vmem:[%s5978_s5 + $0x48] sm:$0xff] }
 0x193   :  { %4219 = vmatprep.mubr.msk.bf16.mxu1 %vm4429_vm0, %v4428_v0  ;;  %v2428_v33 = vld [vmem:[%s5975_s0 + $0x8] sm:$0x8] }
 0x194   :  { %v5443_v55 = vadd.f32 %v1120_v44, %v833_v11  ;;  %4160 = vmatmul.mubr.msk.bf16.gmra.mrb[196].mxu0 %vm240_vm2, %v1875_v20  ;;  %v1877_v49 = vsel %vm1519_vm5, %v1874_v22, %v1876_v56  ;;  %3105 = vperm.xlu0 %4346, %v3038_v24  }
 0x195   :  { %v1125_v37 = vpop.f32.mrb[92].mxu1  ;;  %4163 = vmatprep.mubr.msk.bf16.mxu0 %vm4429_vm0, %v4428_v0  ;;  %3100 = vperm.xlu1 %4347, %v3037_v47  }
 0x196   :  { %v3993_v2 = vpop.f32.mrb[93].mxu1 }
 0x197   :  { %v1128_v35 = vpop.f32.mrb[94].mxu1  ;;  %v792_v28 = vpop.f32.mrb[92].mxu0 }
 0x198   :  { %v3994_v5 = vpop.f32.mrb[95].mxu1  ;;  %v834_v25 = vadd.f32 %v792_v28, %v5131_v16  ;;  %v3937_v13 = vpop.f32.mrb[93].mxu0  ;;  %3115 = vperm.xlu0 %4346, %v3040_v45  }
 0x199   :  { %v795_v44 = vpop.f32.mrb[94].mxu0  ;;  %v3042_v5 = vld [vmem:[%s5978_s5 + $0x70] sm:$0xff] }
 0x19a   :  { %4220 = vmatmul.mubr.msk.bf16.gmra.mrb[200].mxu1 %vm240_vm2, %v2215_v4  ;;  %v5460_v48 = vadd.f32 %v1125_v37, %v834_v25  ;;  %v835_v16 = vadd.f32 %v795_v44, %v5138_v12  ;;  %v3938_v19 = vpop.f32.mrb[95].mxu0  ;;  %v3039_v4 = vld [vmem:[%s5978_s5 + $0x58] sm:$0xff]  ;;  %v4415_v44 = vld [vmem:[%s5977_s1] sm:$0xff]  }
 0x19b   :  { %4223 = vmatprep.mubr.msk.bf16.mxu1 %vm4429_vm0, %v4428_v0  ;;  %3110 = vperm.xlu1 %4347, %v3039_v4   ;;  %v2441_v4 = vrot.slane %v5146_v54, 3  ;;  %v3050_v54 = vld [vmem:[%s5978_s5 + $0xb0] sm:$0xff] }
 0x19c   :  { %v5463_v22 = vadd.f32 %v1128_v35, %v835_v16  ;;  %4164 = vmatmul.mubr.msk.bf16.gmra.mrb[200].mxu0 %vm240_vm2, %v1877_v49  ;;  %v3530_v35 = vcombine.low %v2428_v33, %v5105_v36  ;;  %3125 = vperm.xlu0 %4346, %v3042_v5   ;;  %v3041_v49 = vld [vmem:[%s5978_s5 + $0x68] sm:$0xff] }
 0x19d   :  { %v1133_v29 = vpop.f32.mrb[96].mxu1  ;;  %4167 = vmatprep.mubr.msk.bf16.mxu0 %vm4429_vm0, %v4428_v0 }
 0x19e   :  { %v3997_v20 = vpop.f32.mrb[97].mxu1  ;;  %v2438_v24 = vrot.slane %v3530_v35, 3 }
 0x19f   :  { %v1136_v11 = vpop.f32.mrb[98].mxu1  ;;  %v800_v3 = vpop.f32.mrb[96].mxu0  ;;  %3120 = vperm.xlu1 %4347, %v3041_v49   ;;  %v3047_v49 = vld [vmem:[%s5978_s5 + $0x98] sm:$0xff] }
 0x1a0   :  { %v3998_v12 = vpop.f32.mrb[99].mxu1  ;;  %v836_v37 = vadd.f32 %v800_v3, %v5148_v9  ;;  %v3941_v52 = vpop.f32.mrb[97].mxu0 }
 0x1a1   :  { %v803_v2 = vpop.f32.mrb[98].mxu0  ;;  %v3045_v52 = vld [vmem:[%s5978_s5 + $0x88] sm:$0xff] }
 0x1a2   :  { %4224 = vmatmul.mubr.msk.bf16.gmra.mrb[204].mxu1 %vm240_vm2, %v2214_v7  ;;  %v5488_v28 = vadd.f32 %v1133_v29, %v836_v37  ;;  %v837_v9 = vadd.f32 %v803_v2, %v5155_v42  ;;  %v3942_v25 = vpop.f32.mrb[99].mxu0  ;;  %v3044_v42 = vld [vmem:[%s5978_s5 + $0x80] sm:$0xff]  ;;  %v4416_v37 = vld [vmem:[%s5977_s1 + $0x8] sm:$0xff]  }
 0x1a3   :  { %4291 = vmatprep.mubr.msk.bf16.mxu1 %vm4429_vm0, %v4428_v0  ;;  %3135 = vperm.xlu0 %4346, %v3044_v42   ;;  %v3048_v2 = vld [vmem:[%s5978_s5 + $0xa0] sm:$0xff] }
 0x1a4   :  { %v5491_v13 = vadd.f32 %v1136_v11, %v837_v9  ;;  %4168 = vmatmul.mubr.msk.bf16.gmra.mrb[204].mxu0 %vm240_vm2, %v1876_v56  ;;  %v2439_v56 = vrot.slane %v5122_v58, 3  ;;  %v3043_v58 = vld [vmem:[%s5978_s5 + $0x78] sm:$0xff]  ;;  %v3046_v11 = vld [vmem:[%s5978_s5 + $0x90] sm:$0xff] }
 0x1a5   :  { %v1141_v7 = vpop.f32.mrb[100].mxu1  ;;  %4231 = vmatprep.mubr.msk.bf16.mxu0 %vm4429_vm0, %v4428_v0  ;;  %3130 = vperm.xlu1 %4347, %v3043_v58  }
 0x1a6   :  { %v4001_v36 = vpop.f32.mrb[101].mxu1  ;;  %v2440_v45 = vsel %vm2437_vm8, %v2438_v24, %v2439_v56 }
 0x1a7   :  { %v1144_v15 = vpop.f32.mrb[102].mxu1  ;;  %v808_v19 = vpop.f32.mrb[100].mxu0  ;;  %3145 = vperm.xlu0 %4346, %v3046_v11  }
 0x1a8   :  { %v4002_v16 = vpop.f32.mrb[103].mxu1  ;;  %v838_v29 = vadd.f32 %v808_v19, %v5171_v6  ;;  %v3945_v20 = vpop.f32.mrb[101].mxu0  ;;  %v4417_v19 = vld [vmem:[%s5977_s1 + $0x10] sm:$0xff]  }
 0x1a9   :  { %v811_v47 = vpop.f32.mrb[102].mxu0  ;;  %3140 = vperm.xlu1 %4347, %v3045_v52  }
 0x1aa   :  { %4292 = vmatmul.mubr.msk.bf16.vlgmr.msra.gmra.mrb[208].mxu1 %vm2795_vm7, %v4415_v44  ;;  %v5517_v12 = vadd.f32 %v1141_v7, %v838_v29  ;;  %v3946_v6 = vpop.f32.mrb[103].mxu0  ;;  %v2442_v44 = vsel %vm2437_vm8, %v2439_v56, %v2441_v4  ;;  %v3049_v29 = vld [vmem:[%s5978_s5 + $0xa8] sm:$0xff]  ;;  %v2443_v47 = vrot.slane %v5169_v63, 3 }
 0x1ab   :  { %4295 = vmatprep.mubr.msk.bf16.mxu1 %vm4429_vm0, %v4428_v0  ;;  %3155 = vperm.xlu0 %4346, %v3048_v2  }
 0x1ac   :  { %4232 = vmatmul.mubr.msk.bf16.vlgmr.msra.gmra.mrb[208].mxu0 %vm240_vm2, %v2440_v45 }
 0x1ad   :  { %v1630_v33 = vpop.f32.mrb[104].mxu1  ;;  %4235 = vmatprep.mubr.msk.bf16.mxu0 %vm4429_vm0, %v4428_v0  ;;  %3150 = vperm.xlu1 %4347, %v3047_v49  }
 0x1ae   :  { %v4065_v3 = vpop.f32.mrb[105].mxu1 }
 0x1af   :  { %v1633_v35 = vpop.f32.mrb[106].mxu1  ;;  %v1383_v9 = vpop.f32.mrb[104].mxu0  ;;  %3165 = vperm.xlu0 %4346, %v3050_v54   ;;  %v2444_v3 = vsel %vm2437_vm8, %v2441_v4, %v2443_v47  ;;  %v4418_v4 = vld [vmem:[%s5977_s1 + $0x18] sm:$0xff]  }
 0x1b0   :  { %v4066_v5 = vpop.f32.mrb[107].mxu1  ;;  %v1485_v25 = vadd.f32 %v1383_v9, %v5211_v1  ;;  %v4009_v7 = vpop.f32.mrb[105].mxu0 }
 0x1b1   :  { %v1386_v36 = vpop.f32.mrb[106].mxu0  ;;  %3160 = vperm.xlu1 %4347, %v3049_v29  }
 0x1b2   :  { %4296 = vmatmul.mubr.msk.bf16.gmra.mrb[212].mxu1 %vm2795_vm7, %v4416_v37  ;;  %v5543_v42 = vadd.f32 %v1630_v33, %v1485_v25  ;;  %v1486_v1 = vadd.f32 %v1386_v36, %v5218_v51  ;;  %v4010_v15 = vpop.f32.mrb[107].mxu0  ;;  %v3052_v51 = vld [vmem:[%s5978_s5 + $0xc0] sm:$0xff]  ;;  %v3051_v37 = vld [vmem:[%s5978_s5 + $0xb8] sm:$0xff]  ;;  %v2445_v25 = vrot.slane %v5194_v23, 3 }
 0x1b3   :  { %4299 = vmatprep.mubr.msk.bf16.mxu1 %vm4429_vm0, %v4428_v0  ;;  %3175 = vperm.xlu0 %4346, %v3052_v51   ;;  %v2447_v51 = vrot.slane %v5228_v32, 3 }
 0x1b4   :  { %v5546_v56 = vadd.f32 %v1633_v35, %v1486_v1  ;;  %4236 = vmatmul.mubr.msk.bf16.gmra.mrb[212].mxu0 %vm240_vm2, %v2442_v44  ;;  %v2446_v54 = vsel %vm2437_vm8, %v2443_v47, %v2445_v25 }
 0x1b5   :  { %v1638_v24 = vpop.f32.mrb[108].mxu1  ;;  %4239 = vmatprep.mubr.msk.bf16.mxu0 %vm4429_vm0, %v4428_v0  ;;  %3170 = vperm.xlu1 %4347, %v3051_v37  }
 0x1b6   :  { %v4069_v16 = vpop.f32.mrb[109].mxu1 }
 0x1b7   :  { %v1641_v20 = vpop.f32.mrb[110].mxu1  ;;  %v1391_v58 = vpop.f32.mrb[108].mxu0 }
 0x1b8   :  { %v4070_v45 = vpop.f32.mrb[111].mxu1  ;;  %v1487_v11 = vadd.f32 %v1391_v58, %v5237_v26  ;;  %v4013_v6 = vpop.f32.mrb[109].mxu0 }
 0x1b9   :  { %v1394_v33 = vpop.f32.mrb[110].mxu0 }
 0x1ba   :  { %4300 = vmatmul.mubr.msk.bf16.gmra.mrb[216].mxu1 %vm2795_vm7, %v4417_v19  ;;  %v5569_v63 = vadd.f32 %v1638_v24, %v1487_v11  ;;  %v1488_v52 = vadd.f32 %v1394_v33, %v5240_v41  ;;  %v4014_v2 = vpop.f32.mrb[111].mxu0  ;;  %v4419_v19 = vld [vmem:[%s5977_s1 + $0x20] sm:$0xff]   ;;  %v2448_v11 = vsel %vm2437_vm8, %v2445_v25, %v2447_v51 }
 0x1bb   :  { %4303 = vmatprep.mubr.msk.bf16.mxu1 %vm4429_vm0, %v4428_v0 }
 0x1bc   :  { %v5572_v35 = vadd.f32 %v1641_v20, %v1488_v52  ;;  %4240 = vmatmul.mubr.msk.bf16.gmra.mrb[216].mxu0 %vm240_vm2, %v2444_v3  ;;  %v4420_v52 = vld [vmem:[%s5977_s1 + $0x28] sm:$0xff]  }
 0x1bd   :  { %v1646_v26 = vpop.f32.mrb[112].mxu1  ;;  %4243 = vmatprep.mubr.msk.bf16.mxu0 %vm4429_vm0, %v4428_v0 }
 0x1be   :  { %v4073_v5 = vpop.f32.mrb[113].mxu1 }
 0x1bf   :  { %v1649_v9 = vpop.f32.mrb[114].mxu1  ;;  %v1399_v41 = vpop.f32.mrb[112].mxu0 }
 0x1c0   :  { %v4074_v7 = vpop.f32.mrb[115].mxu1  ;;  %v1489_v36 = vadd.f32 %v1399_v41, %v5259_v50  ;;  %v4017_v44 = vpop.f32.mrb[113].mxu0 }
 0x1c1   :  { %v1402_v49 = vpop.f32.mrb[114].mxu0 }
 0x1c2   :  { %4304 = vmatmul.mubr.msk.bf16.gmra.mrb[220].mxu1 %vm2795_vm7, %v4418_v4  ;;  %v5586_v1 = vadd.f32 %v1646_v26, %v1489_v36  ;;  %v1490_v15 = vadd.f32 %v1402_v49, %v5262_v8  ;;  %v4018_v24 = vpop.f32.mrb[115].mxu0  ;;  %v2449_v26 = vrot.slane %v5250_v57, 3 }
 0x1c3   :  { %4307 = vmatprep.mubr.msk.bf16.mxu1 %vm4429_vm0, %v4428_v0  ;;  %v2451_v24 = vrot.slane %v5272_v34, 3 }
 0x1c4   :  { %v5589_v23 = vadd.f32 %v1649_v9, %v1490_v15  ;;  %4244 = vmatmul.mubr.msk.bf16.gmra.mrb[220].mxu0 %vm240_vm2, %v2446_v54  ;;  %v2450_v7 = vsel %vm2437_vm8, %v2447_v51, %v2449_v26  ;;  %v4421_v54 = vld [vmem:[%s5977_s1 + $0x30] sm:$0xff]  }
 0x1c5   :  { %v1654_v16 = vpop.f32.mrb[116].mxu1  ;;  %4247 = vmatprep.mubr.msk.bf16.mxu0 %vm4429_vm0, %v4428_v0  ;;  %v2452_v51 = vsel %vm2437_vm8, %v2449_v26, %v2451_v24 }
 0x1c6   :  { %v4077_v50 = vpop.f32.mrb[117].mxu1 }
 0x1c7   :  { %v1657_v29 = vpop.f32.mrb[118].mxu1  ;;  %v1407_v47 = vpop.f32.mrb[116].mxu0 }
 0x1c8   :  { %v4078_v20 = vpop.f32.mrb[119].mxu1  ;;  %v1491_v8 = vadd.f32 %v1407_v47, %v5281_v43  ;;  %v4021_v45 = vpop.f32.mrb[117].mxu0 }
 0x1c9   :  { %v1410_v58 = vpop.f32.mrb[118].mxu0 }
 0x1ca   :  { %4308 = vmatmul.mubr.msk.bf16.gmra.mrb[224].mxu1 %vm2795_vm7, %v4419_v19  ;;  %v5603_v6 = vadd.f32 %v1654_v16, %v1491_v8  ;;  %v1492_v33 = vadd.f32 %v1410_v58, %v5284_v61  ;;  %v4022_v3 = vpop.f32.mrb[119].mxu0  ;;  %v4422_v58 = vld [vmem:[%s5977_s1 + $0x38] sm:$0xff]  }
 0x1cb   :  { %4311 = vmatprep.mubr.msk.bf16.mxu1 %vm4429_vm0, %v4428_v0 }
 0x1cc   :  { %v5606_v32 = vadd.f32 %v1657_v29, %v1492_v33  ;;  %4248 = vmatmul.mubr.msk.bf16.gmra.mrb[224].mxu0 %vm240_vm2, %v2448_v11  ;;  %v2453_v33 = vrot.slane %v5294_v30, 3 }
 0x1cd   :  { %v1662_v37 = vpop.f32.mrb[120].mxu1  ;;  %4251 = vmatprep.mubr.msk.bf16.mxu0 %vm4429_vm0, %v4428_v0 }
 0x1ce   :  { %v4081_v43 = vpop.f32.mrb[121].mxu1 }
 0x1cf   :  { %v1665_v2 = vpop.f32.mrb[122].mxu1  ;;  %v1415_v4 = vpop.f32.mrb[120].mxu0 }
 0x1d0   :  { %v4082_v5 = vpop.f32.mrb[123].mxu1  ;;  %v1493_v61 = vadd.f32 %v1415_v4, %v5303_v21  ;;  %v4025_v9 = vpop.f32.mrb[121].mxu0 }
 0x1d1   :  { %v1418_v25 = vpop.f32.mrb[122].mxu0  ;;  %v4423_v9 = vld [vmem:[%s5977_s1 + $0x40] sm:$0xff]  }
 0x1d2   :  { %4312 = vmatmul.mubr.msk.bf16.gmra.mrb[228].mxu1 %vm2795_vm7, %v4420_v52  ;;  %v5620_v41 = vadd.f32 %v1662_v37, %v1493_v61  ;;  %v1494_v36 = vadd.f32 %v1418_v25, %v5306_v27  ;;  %v4026_v44 = vpop.f32.mrb[123].mxu0 }
 0x1d3   :  { %4315 = vmatprep.mubr.msk.bf16.mxu1 %vm4429_vm0, %v4428_v0 }
 0x1d4   :  { %v5623_v57 = vadd.f32 %v1665_v2, %v1494_v36  ;;  %4252 = vmatmul.mubr.msk.bf16.gmra.mrb[228].mxu0 %vm240_vm2, %v2450_v7  ;;  %v2454_v2 = vsel %vm2437_vm8, %v2451_v24, %v2453_v33  ;;  %v2455_v7 = vrot.slane %v5316_v60, 3 }
 0x1d5   :  { %v1670_v49 = vpop.f32.mrb[124].mxu1  ;;  %4255 = vmatprep.mubr.msk.bf16.mxu0 %vm4429_vm0, %v4428_v0 }
 0x1d6   :  { %v4085_v21 = vpop.f32.mrb[125].mxu1 }
 0x1d7   :  { %v1673_v15 = vpop.f32.mrb[126].mxu1  ;;  %v1423_v50 = vpop.f32.mrb[124].mxu0 }
 0x1d8   :  { %v4086_v16 = vpop.f32.mrb[127].mxu1  ;;  %v1495_v27 = vadd.f32 %v1423_v50, %v5325_v40  ;;  %v4029_v19 = vpop.f32.mrb[125].mxu0 }
 0x1d9   :  { %v1426_v29 = vpop.f32.mrb[126].mxu0 }
 0x1da   :  { %4316 = vmatmul.mubr.msk.bf16.gmra.mrb[232].mxu1 %vm2795_vm7, %v4421_v54  ;;  %v5637_v20 = vadd.f32 %v1670_v49, %v1495_v27  ;;  %v1496_v47 = vadd.f32 %v1426_v29, %v5328_v17  ;;  %v4030_v8 = vpop.f32.mrb[127].mxu0  ;;  %v2456_v54 = vsel %vm2437_vm8, %v2453_v33, %v2455_v7  ;;  %v4424_v27 = vld [vmem:[%s5977_s1 + $0x48] sm:$0xff]   ;;  %v2457_v29 = vrot.slane %v5338_v10, 3 }
 0x1db   :  { %4319 = vmatprep.mubr.msk.bf16.mxu1 %vm4429_vm0, %v4428_v0 }
 0x1dc   :  { %v5640_v34 = vadd.f32 %v1673_v15, %v1496_v47  ;;  %4256 = vmatmul.mubr.msk.bf16.gmra.mrb[232].mxu0 %vm240_vm2, %v2452_v51 }
 0x1dd   :  { %v1678_v45 = vpop.f32.mrb[128].mxu1  ;;  %4259 = vmatprep.mubr.msk.bf16.mxu0 %vm4429_vm0, %v4428_v0 }
 0x1de   :  { %v4089_v40 = vpop.f32.mrb[129].mxu1 }
 0x1df   :  { %v1681_v11 = vpop.f32.mrb[130].mxu1  ;;  %v1431_v37 = vpop.f32.mrb[128].mxu0  ;;  %v2458_v40 = vsel %vm2437_vm8, %v2455_v7, %v2457_v29 }
 0x1e0   :  { %v4090_v3 = vpop.f32.mrb[131].mxu1  ;;  %v1497_v17 = vadd.f32 %v1431_v37, %v5347_v53  ;;  %v4033_v43 = vpop.f32.mrb[129].mxu0  ;;  %v4425_v37 = vld [vmem:[%s5977_s1 + $0x50] sm:$0xff]  }
 0x1e1   :  { %v1434_v52 = vpop.f32.mrb[130].mxu0  ;;  %v2459_v43 = vrot.slane %v5360_v38, 3 }
 0x1e2   :  { %4320 = vmatmul.mubr.msk.bf16.gmra.mrb[236].mxu1 %vm2795_vm7, %v4422_v58  ;;  %v5654_v26 = vadd.f32 %v1678_v45, %v1497_v17  ;;  %v1498_v5 = vadd.f32 %v1434_v52, %v5350_v39  ;;  %v4034_v4 = vpop.f32.mrb[131].mxu0 }
 0x1e3   :  { %4323 = vmatprep.mubr.msk.bf16.mxu1 %vm4429_vm0, %v4428_v0 }
 0x1e4   :  { %v5657_v30 = vadd.f32 %v1681_v11, %v1498_v5  ;;  %4260 = vmatmul.mubr.msk.bf16.gmra.mrb[236].mxu0 %vm240_vm2, %v2454_v2 }
 0x1e5   :  { %v1686_v61 = vpop.f32.mrb[132].mxu1  ;;  %4263 = vmatprep.mubr.msk.bf16.mxu0 %vm4429_vm0, %v4428_v0 }
 0x1e6   :  { %v4093_v53 = vpop.f32.mrb[133].mxu1 }
 0x1e7   :  { %v1689_v25 = vpop.f32.mrb[134].mxu1  ;;  %v1439_v44 = vpop.f32.mrb[132].mxu0 }
 0x1e8   :  { %v4094_v36 = vpop.f32.mrb[135].mxu1  ;;  %v1499_v39 = vadd.f32 %v1439_v44, %v5369_v31  ;;  %v4037_v49 = vpop.f32.mrb[133].mxu0 }
 0x1e9   :  { %v1442_v21 = vpop.f32.mrb[134].mxu0  ;;  %v4426_v36 = vld [vmem:[%s5977_s1 + $0x58] sm:$0xff]  }
 0x1ea   :  { %4324 = vmatmul.mubr.msk.bf16.gmra.mrb[240].mxu1 %vm2795_vm7, %v4423_v9  ;;  %v5671_v15 = vadd.f32 %v1686_v61, %v1499_v39  ;;  %v1500_v24 = vadd.f32 %v1442_v21, %v5383_v14  ;;  %v4038_v16 = vpop.f32.mrb[135].mxu0  ;;  %v2460_v61 = vsel %vm2437_vm8, %v2457_v29, %v2459_v43  ;;  %v2461_v39 = vrot.slane %v5391_v59, 3  ;;  %v4427_v29 = vld [vmem:[%s5977_s1 + $0x60] ss:$0 sps:$4 sm:$0xff]  }
 0x1eb   :  { %4327 = vmatprep.mubr.msk.bf16.mxu1 %vm4429_vm0, %v4428_v0 }
 0x1ec   :  { %v5674_v60 = vadd.f32 %v1689_v25, %v1500_v24  ;;  %4264 = vmatmul.mubr.msk.bf16.gmra.mrb[240].mxu0 %vm240_vm2, %v2456_v54  ;;  %v2462_v16 = vsel %vm2437_vm8, %v2459_v43, %v2461_v39 }
 0x1ed   :  { %v1694_v50 = vpop.f32.mrb[136].mxu1  ;;  %4267 = vmatprep.mubr.msk.bf16.mxu0 %vm4429_vm0, %v4428_v0 }
 0x1ee   :  { %v4097_v31 = vpop.f32.mrb[137].mxu1 }
 0x1ef   :  { %v1697_v19 = vpop.f32.mrb[138].mxu1  ;;  %v1447_v47 = vpop.f32.mrb[136].mxu0 }
 0x1f0   :  { %v4098_v51 = vpop.f32.mrb[139].mxu1  ;;  %v1501_v14 = vadd.f32 %v1447_v47, %v5403_v18  ;;  %v4041_v8 = vpop.f32.mrb[137].mxu0 }
 0x1f1   :  { %v1450_v45 = vpop.f32.mrb[138].mxu0 }
 0x1f2   :  { %4328 = vmatmul.mubr.msk.bf16.gmra.mrb[244].mxu1 %vm2795_vm7, %v4424_v27  ;;  %v5688_v58 = vadd.f32 %v1694_v50, %v1501_v14  ;;  %v1502_v11 = vadd.f32 %v1450_v45, %v5409_v46  ;;  %v4042_v33 = vpop.f32.mrb[139].mxu0 }
 0x1f3   :  { %4331 = vmatprep.mubr.msk.bf16.mxu1 %vm4429_vm0, %v4428_v0 }
 0x1f4   :  { %v5691_v10 = vadd.f32 %v1697_v19, %v1502_v11  ;;  %4268 = vmatmul.mubr.msk.bf16.gmra.mrb[244].mxu0 %vm240_vm2, %v2458_v40 }
 0x1f5   :  { %v1702_v3 = vpop.f32.mrb[140].mxu1  ;;  %4271 = vmatprep.mubr.msk.bf16.mxu0 %vm4429_vm0, %v4428_v0 }
 0x1f6   :  { %v4101_v18 = vpop.f32.mrb[141].mxu1 }
 0x1f7   :  { %v1705_v17 = vpop.f32.mrb[142].mxu1  ;;  %v1455_v2 = vpop.f32.mrb[140].mxu0 }
 0x1f8   :  { %v4102_v52 = vpop.f32.mrb[143].mxu1  ;;  %v1503_v46 = vadd.f32 %v1455_v2, %v5434_v62  ;;  %v4045_v5 = vpop.f32.mrb[141].mxu0 }
 0x1f9   :  { %v1458_v4 = vpop.f32.mrb[142].mxu0 }
 0x1fa   :  { %4332 = vmatmul.mubr.msk.bf16.gmra.mrb[248].mxu1 %vm2795_vm7, %v4425_v37  ;;  %v5705_v53 = vadd.f32 %v1702_v3, %v1503_v46  ;;  %v1504_v9 = vadd.f32 %v1458_v4, %v5443_v55  ;;  %v4046_v25 = vpop.f32.mrb[143].mxu0 }
 0x1fb   :  { %4335 = vmatprep.mubr.msk.bf16.mxu1 %vm4429_vm0, %v4428_v0 }
 0x1fc   :  { %v5708_v38 = vadd.f32 %v1705_v17, %v1504_v9  ;;  %4272 = vmatmul.mubr.msk.bf16.gmra.mrb[248].mxu0 %vm240_vm2, %v2460_v61 }
 0x1fd   :  { %v1710_v7 = vpop.f32.mrb[144].mxu1  ;;  %4275 = vmatprep.mubr.msk.bf16.mxu0 %vm4429_vm0, %v4428_v0 }
 0x1fe   :  { %v4105_v62 = vpop.f32.mrb[145].mxu1 }
 0x1ff   :  { %v1713_v44 = vpop.f32.mrb[146].mxu1  ;;  %v1463_v21 = vpop.f32.mrb[144].mxu0 }
 0x200   :  { %v4106_v49 = vpop.f32.mrb[147].mxu1  ;;  %v1505_v55 = vadd.f32 %v1463_v21, %v5460_v48  ;;  %v4049_v54 = vpop.f32.mrb[145].mxu0 }
 0x201   :  { %v1466_v24 = vpop.f32.mrb[146].mxu0 }
 0x202   :  { %4336 = vmatmul.mubr.msk.bf16.gmra.mrb[252].mxu1 %vm2795_vm7, %v4426_v36  ;;  %v5722_v50 = vadd.f32 %v1710_v7, %v1505_v55  ;;  %v1506_v31 = vadd.f32 %v1466_v24, %v5463_v22  ;;  %v4050_v27 = vpop.f32.mrb[147].mxu0 }
 0x203   :  { %4339 = vmatprep.mubr.msk.bf16.mxu1 %vm4429_vm0, %v4428_v0 }
 0x204   :  { %v5725_v59 = vadd.f32 %v1713_v44, %v1506_v31  ;;  %4276 = vmatmul.mubr.msk.bf16.gmra.mrb[252].mxu0 %vm240_vm2, %v2462_v16 }
 0x205   :  { %v1718_v19 = vpop.f32.mrb[148].mxu1  ;;  %4279 = vmatprep.mubr.msk.bf16.mxu0 %vm4429_vm0, %v4428_v0 }
 0x206   :  { %v4109_v48 = vpop.f32.mrb[149].mxu1 }
 0x207   :  { %v1721_v51 = vpop.f32.mrb[150].mxu1  ;;  %v1471_v14 = vpop.f32.mrb[148].mxu0 }
 0x208   :  { %v4110_v47 = vpop.f32.mrb[151].mxu1  ;;  %v1507_v8 = vadd.f32 %v1471_v14, %v5488_v28  ;;  %v4053_v22 = vpop.f32.mrb[149].mxu0 }
 0x209   :  { %v1474_v45 = vpop.f32.mrb[150].mxu0 }
 0x20a   :  { %4340 = vmatmul.mubr.msk.bf16.gmra.mrb[0].mxu1 %vm2795_vm7, %v4427_v29  ;;  %v5735_v40 = vadd.f32 %v1718_v19, %v1507_v8  ;;  %v1508_v11 = vadd.f32 %v1474_v45, %v5491_v13  ;;  %v4054_v33 = vpop.f32.mrb[151].mxu0 }
 0x20c   :  { %v5738_v18 = vadd.f32 %v1721_v51, %v1508_v11  ;;  %4280 = vmatmul.mubr.msk.bf16.gmra.mrb[0].mxu0 %vm240_vm2, %v2461_v39 }
 0x20d   :  { %v1726_v3 = vpop.f32.mrb[152].mxu1 }
 0x20e   :  { %v4113_v37 = vpop.f32.mrb[153].mxu1 }
 0x20f   :  { %v1729_v0 = vpop.f32.mrb[154].mxu1  ;;  %v1479_v43 = vpop.f32.mrb[152].mxu0 }
 0x210   :  { %v4114_v17 = vpop.f32.mrb[155].mxu1  ;;  %v1509_v28 = vadd.f32 %v1479_v43, %v5517_v12  ;;  %v4057_v52 = vpop.f32.mrb[153].mxu0 }
 0x211   :  { %v1482_v2 = vpop.f32.mrb[154].mxu0 }
 0x212   :  { %v5742_v46 = vadd.f32 %v1726_v3, %v1509_v28  ;;  %v4058_v5 = vpop.f32.mrb[155].mxu0 }
 0x215   :  { %v2301_v4 = vpop.f32.mrb[156].mxu1 }
 0x216   :  { %v4177_v61 = vpop.f32.mrb[157].mxu1 }
 0x217   :  { %v2304_v13 = vpop.f32.mrb[158].mxu1  ;;  %v1963_v25 = vpop.f32.mrb[156].mxu0 }
 0x218   :  { %v4178_v9 = vpop.f32.mrb[159].mxu1  ;;  %v2065_v7 = vadd.f32 %v1963_v25, %v5543_v42  ;;  %v4121_v62 = vpop.f32.mrb[157].mxu0 }
 0x219   :  { %v1966_v36 = vpop.f32.mrb[158].mxu0 }
 0x21a   :  { %v5745_v44 = vadd.f32 %v2301_v4, %v2065_v7  ;;  %v2066_v39 = vadd.f32 %v1966_v36, %v5546_v56  ;;  %v4122_v49 = vpop.f32.mrb[159].mxu0 }
 0x21c   :  { %v5748_v21 = vadd.f32 %v2304_v13, %v2066_v39 }
 0x21d   :  { %v2309_v12 = vpop.f32.mrb[160].mxu1 }
 0x21e   :  { %v4181_v55 = vpop.f32.mrb[161].mxu1 }
 0x21f   :  { %v2312_v54 = vpop.f32.mrb[162].mxu1  ;;  %v1971_v16 = vpop.f32.mrb[160].mxu0 }
 0x220   :  { %v4182_v24 = vpop.f32.mrb[163].mxu1  ;;  %v2067_v31 = vadd.f32 %v1971_v16, %v5569_v63  ;;  %v4125_v27 = vpop.f32.mrb[161].mxu0 }
 0x221   :  { %v1974_v19 = vpop.f32.mrb[162].mxu0 }
 0x222   :  { %v5751_v48 = vadd.f32 %v2309_v12, %v2067_v31  ;;  %v2068_v42 = vadd.f32 %v1974_v19, %v5572_v35  ;;  %v4126_v29 = vpop.f32.mrb[163].mxu0 }
 0x224   :  { %v5754_v47 = vadd.f32 %v2312_v54, %v2068_v42 }
 0x225   :  { %v2317_v51 = vpop.f32.mrb[164].mxu1 }
 0x226   :  { %v4185_v56 = vpop.f32.mrb[165].mxu1 }
 0x227   :  { %v2320_v14 = vpop.f32.mrb[166].mxu1  ;;  %v1979_v22 = vpop.f32.mrb[164].mxu0 }
 0x228   :  { %v4186_v8 = vpop.f32.mrb[167].mxu1  ;;  %v2069_v45 = vadd.f32 %v1979_v22, %v5586_v1  ;;  %v4129_v11 = vpop.f32.mrb[165].mxu0 }
 0x229   :  { %v1982_v33 = vpop.f32.mrb[166].mxu0 }
 0x22a   :  { %v5757_v3 = vadd.f32 %v2317_v51, %v2069_v45  ;;  %v2070_v63 = vadd.f32 %v1982_v33, %v5589_v23  ;;  %v4130_v37 = vpop.f32.mrb[167].mxu0 }
 0x22c   :  { %v5760_v17 = vadd.f32 %v2320_v14, %v2070_v63 }
 0x22d   :  { %v2325_v0 = vpop.f32.mrb[168].mxu1 }
 0x22e   :  { %v4189_v35 = vpop.f32.mrb[169].mxu1 }
 0x22f   :  { %v2328_v43 = vpop.f32.mrb[170].mxu1  ;;  %v1987_v52 = vpop.f32.mrb[168].mxu0 }
 0x230   :  { %v4190_v28 = vpop.f32.mrb[171].mxu1  ;;  %v2071_v2 = vadd.f32 %v1987_v52, %v5603_v6  ;;  %v4133_v5 = vpop.f32.mrb[169].mxu0 }
 0x231   :  { %v1990_v4 = vpop.f32.mrb[170].mxu0 }
 0x232   :  { %v5763_v61 = vadd.f32 %v2325_v0, %v2071_v2  ;;  %v2072_v1 = vadd.f32 %v1990_v4, %v5606_v32  ;;  %v4134_v13 = vpop.f32.mrb[171].mxu0 }
 0x234   :  { %v5766_v25 = vadd.f32 %v2328_v43, %v2072_v1 }
 0x235   :  { %v2333_v9 = vpop.f32.mrb[172].mxu1 }
 0x236   :  { %v4193_v23 = vpop.f32.mrb[173].mxu1 }
 0x237   :  { %v2336_v7 = vpop.f32.mrb[174].mxu1  ;;  %v1995_v36 = vpop.f32.mrb[172].mxu0 }
 0x238   :  { %v4194_v62 = vpop.f32.mrb[175].mxu1  ;;  %v2073_v39 = vadd.f32 %v1995_v36, %v5620_v41  ;;  %v4137_v49 = vpop.f32.mrb[173].mxu0 }
 0x239   :  { %v1998_v12 = vpop.f32.mrb[174].mxu0 }
 0x23a   :  { %v5769_v55 = vadd.f32 %v2333_v9, %v2073_v39  ;;  %v2074_v6 = vadd.f32 %v1998_v12, %v5623_v57  ;;  %v4138_v54 = vpop.f32.mrb[175].mxu0 }
 0x23c   :  { %v5772_v16 = vadd.f32 %v2336_v7, %v2074_v6 }
 0x23d   :  { %v2341_v24 = vpop.f32.mrb[176].mxu1 }
 0x23e   :  { %v4197_v32 = vpop.f32.mrb[177].mxu1 }
 0x23f   :  { %v2344_v31 = vpop.f32.mrb[178].mxu1  ;;  %v2003_v19 = vpop.f32.mrb[176].mxu0 }
 0x240   :  { %v4198_v27 = vpop.f32.mrb[179].mxu1  ;;  %v2075_v42 = vadd.f32 %v2003_v19, %v5637_v20  ;;  %v4141_v29 = vpop.f32.mrb[177].mxu0 }
 0x241   :  { %v2006_v51 = vpop.f32.mrb[178].mxu0 }
 0x242   :  { %v5775_v56 = vadd.f32 %v2341_v24, %v2075_v42  ;;  %v2076_v41 = vadd.f32 %v2006_v51, %v5640_v34  ;;  %v4142_v14 = vpop.f32.mrb[179].mxu0 }
 0x244   :  { %v5778_v22 = vadd.f32 %v2344_v31, %v2076_v41 }
 0x245   :  { %v2349_v8 = vpop.f32.mrb[180].mxu1 }
 0x246   :  { %v4201_v57 = vpop.f32.mrb[181].mxu1 }
 0x247   :  { %v2352_v45 = vpop.f32.mrb[182].mxu1  ;;  %v2011_v33 = vpop.f32.mrb[180].mxu0 }
 0x248   :  { %v4202_v11 = vpop.f32.mrb[183].mxu1  ;;  %v2077_v63 = vadd.f32 %v2011_v33, %v5654_v26  ;;  %v4145_v37 = vpop.f32.mrb[181].mxu0 }
 0x249   :  { %v2014_v0 = vpop.f32.mrb[182].mxu0 }
 0x24a   :  { %v5781_v35 = vadd.f32 %v2349_v8, %v2077_v63  ;;  %v2078_v20 = vadd.f32 %v2014_v0, %v5657_v30  ;;  %v4146_v43 = vpop.f32.mrb[183].mxu0 }
 0x24c   :  { %v5784_v52 = vadd.f32 %v2352_v45, %v2078_v20 }
 0x24d   :  { %v2357_v28 = vpop.f32.mrb[184].mxu1 }
 0x24e   :  { %v4205_v34 = vpop.f32.mrb[185].mxu1 }
 0x24f   :  { %v2360_v2 = vpop.f32.mrb[186].mxu1  ;;  %v2019_v4 = vpop.f32.mrb[184].mxu0 }
 0x250   :  { %v4206_v5 = vpop.f32.mrb[187].mxu1  ;;  %v2079_v1 = vadd.f32 %v2019_v4, %v5671_v15  ;;  %v4149_v13 = vpop.f32.mrb[185].mxu0 }
 0x251   :  { %v2022_v9 = vpop.f32.mrb[186].mxu0 }
 0x252   :  { %v5787_v23 = vadd.f32 %v2357_v28, %v2079_v1  ;;  %v2080_v26 = vadd.f32 %v2022_v9, %v5674_v60  ;;  %v4150_v7 = vpop.f32.mrb[187].mxu0 }
 0x254   :  { %v5790_v36 = vadd.f32 %v2360_v2, %v2080_v26 }
 0x255   :  { %v2365_v62 = vpop.f32.mrb[188].mxu1 }
 0x256   :  { %v4209_v30 = vpop.f32.mrb[189].mxu1 }
 0x257   :  { %v2368_v39 = vpop.f32.mrb[190].mxu1  ;;  %v2027_v12 = vpop.f32.mrb[188].mxu0 }
 0x258   :  { %v4210_v49 = vpop.f32.mrb[191].mxu1  ;;  %v2081_v6 = vadd.f32 %v2027_v12, %v5688_v58  ;;  %v4153_v54 = vpop.f32.mrb[189].mxu0 }
 0x259   :  { %v2030_v24 = vpop.f32.mrb[190].mxu0 }
 0x25a   :  { %v5793_v32 = vadd.f32 %v2365_v62, %v2081_v6  ;;  %v2082_v15 = vadd.f32 %v2030_v24, %v5691_v10  ;;  %v4154_v31 = vpop.f32.mrb[191].mxu0 }
 0x25c   :  { %v5796_v19 = vadd.f32 %v2368_v39, %v2082_v15 }
 0x25d   :  { %v2373_v27 = vpop.f32.mrb[192].mxu1 }
 0x25e   :  { %v4213_v60 = vpop.f32.mrb[193].mxu1 }
 0x25f   :  { %v2376_v42 = vpop.f32.mrb[194].mxu1  ;;  %v2035_v51 = vpop.f32.mrb[192].mxu0 }
 0x260   :  { %v4214_v29 = vpop.f32.mrb[195].mxu1  ;;  %v2083_v41 = vadd.f32 %v2035_v51, %v5705_v53  ;;  %v4157_v14 = vpop.f32.mrb[193].mxu0 }
 0x261   :  { %v2038_v8 = vpop.f32.mrb[194].mxu0  ;;  %v3056_v14 = vpop.permute.xlu0 %3055 }
 0x262   :  { %v5799_v57 = vadd.f32 %v2373_v27, %v2083_v41  ;;  %v2084_v58 = vadd.f32 %v2038_v8, %v5708_v38  ;;  %v4158_v45 = vpop.f32.mrb[195].mxu0 }
 0x264   :  { %v5802_v33 = vadd.f32 %v2376_v42, %v2084_v58 }
 0x265   :  { %v2381_v11 = vpop.f32.mrb[196].mxu1 }
 0x266   :  { %v4217_v10 = vpop.f32.mrb[197].mxu1 }
 0x267   :  { %v2384_v63 = vpop.f32.mrb[198].mxu1  ;;  %v2043_v0 = vpop.f32.mrb[196].mxu0 }
 0x268   :  { %v4218_v37 = vpop.f32.mrb[199].mxu1  ;;  %v2085_v20 = vadd.f32 %v2043_v0, %v5722_v50  ;;  %v4161_v43 = vpop.f32.mrb[197].mxu0 }
 0x269   :  { %v2046_v28 = vpop.f32.mrb[198].mxu0 }
 0x26a   :  { %v5805_v34 = vadd.f32 %v2381_v11, %v2085_v20  ;;  %v2086_v53 = vadd.f32 %v2046_v28, %v5725_v59  ;;  %v4162_v2 = vpop.f32.mrb[199].mxu0  ;;  %v5823_v11 = vld [vmem:[%s5979_s4] ss:$0 sm:$0xff]  ;;  %v3061_v28 = vpop.permute.xlu0 %3060 }
 0x26c   :  { %v5808_v4 = vadd.f32 %v2384_v63, %v2086_v53 }
 0x26d   :  { %v2389_v5 = vpop.f32.mrb[200].mxu1 }
 0x26e   :  { %v4221_v38 = vpop.f32.mrb[201].mxu1 }
 0x26f   :  { %v2392_v1 = vpop.f32.mrb[202].mxu1  ;;  %v2051_v9 = vpop.f32.mrb[200].mxu0 }
 0x270   :  { %v4222_v13 = vpop.f32.mrb[203].mxu1  ;;  %v2087_v26 = vadd.f32 %v2051_v9, %v5735_v40  ;;  %v4165_v7 = vpop.f32.mrb[201].mxu0 }
 0x271   :  { %v2054_v62 = vpop.f32.mrb[202].mxu0 }
 0x272   :  { %v5811_v30 = vadd.f32 %v2389_v5, %v2087_v26  ;;  %v2088_v50 = vadd.f32 %v2054_v62, %v5738_v18  ;;  %v4166_v39 = vpop.f32.mrb[203].mxu0 }
 0x274   :  { %v5814_v12 = vadd.f32 %v2392_v1, %v2088_v50  ;;  %v3066_v1 = vpop.permute.xlu1 %3065 }
 0x275   :  { %v2397_v49 = vpop.f32.mrb[204].mxu1 }
 0x276   :  { %v4225_v59 = vpop.f32.mrb[205].mxu1 }
 0x277   :  { %v2400_v6 = vpop.f32.mrb[206].mxu1  ;;  %v2059_v24 = vpop.f32.mrb[204].mxu0 }
 0x278   :  { %v4226_v54 = vpop.f32.mrb[207].mxu1  ;;  %v2089_v15 = vadd.f32 %v2059_v24, %v5742_v46  ;;  %v4169_v31 = vpop.f32.mrb[205].mxu0 }
 0x279   :  { %v2062_v27 = vpop.f32.mrb[206].mxu0  ;;  %v3071_v24 = vpop.permute.xlu1 %3070 }
 0x27a   :  { %v5817_v60 = vadd.f32 %v2397_v49, %v2089_v15  ;;  %v4170_v40 = vpop.f32.mrb[207].mxu0 }
 0x27d   :  { %v2869_v42 = vpop.f32.mrb[208].mxu1 }
 0x27e   :  { %v4293_v29 = vpop.f32.mrb[209].mxu1 }
 0x27f   :  { %v2872_v51 = vpop.f32.mrb[210].mxu1  ;;  %v2548_v18 = vpop.f32.mrb[208].mxu0 }
 0x280   :  { %v4294_v41 = vpop.f32.mrb[211].mxu1  ;;  %v2650_v8 = vadd.f32 %v2548_v18, %v5745_v44  ;;  %v4233_v58 = vpop.f32.mrb[209].mxu0 }
 0x281   :  { %v2551_v45 = vpop.f32.mrb[210].mxu0 }
 0x282   :  { %v2971_v46 = vadd.f32 %v2869_v42, %v2650_v8  ;;  %v2651_v10 = vadd.f32 %v2551_v45, %v5748_v21  ;;  %v4234_v63 = vpop.f32.mrb[211].mxu0 }
 0x284   :  { %v2972_v0 = vadd.f32 %v2872_v51, %v2651_v10  ;;  %v3003_v20 = vadd.f32 %v5823_v11, %v2971_v46 }
 0x285   :  { %v2877_v37 = vpop.f32.mrb[212].mxu1 }
 0x286   :  { %v4297_v43 = vpop.f32.mrb[213].mxu1  ;;  %v3178_v2 = vmul.f32 %v3056_v14, %v3003_v20  ;;  %v3004_v44 = vadd.f32 %v5823_v11, %v2972_v0 }
 0x287   :  { %v2880_v53 = vpop.f32.mrb[214].mxu1  ;;  %v2556_v38 = vpop.f32.mrb[212].mxu0 }
 0x288   :  { %v4298_v5 = vpop.f32.mrb[215].mxu1  ;;  %v3602_v13 = vpack.c.bf16 %v3178_v2, %v3178_v2  ;;  %v3179_v9 = vmul.f32 %v3061_v28, %v3004_v44  ;;  %v2652_v26 = vadd.f32 %v2556_v38, %v5751_v48  ;;  %v4237_v21 = vpop.f32.mrb[213].mxu0 }
 0x289   :  { %v2559_v7 = vpop.f32.mrb[214].mxu0 }
 0x28a   :  { %3305 = vst.msk [vmem:[%s5980_s6] sm:$0xf] %vm3304_vm9, %v3602_v13  ;;  %v3603_v62 = vpack.c.bf16 %v3179_v9, %v3179_v9  ;;  %v2973_v50 = vadd.f32 %v2877_v37, %v2652_v26  ;;  %v2653_v39 = vadd.f32 %v2559_v7, %v5754_v47  ;;  %v4238_v49 = vpop.f32.mrb[215].mxu0  ;;  %v3076_v37 = vpop.permute.xlu0 %3075 }
 0x28c   :  { %3306 = vst.msk [vmem:[%s5980_s6 + $0x4] sm:$0xf] %vm3304_vm9, %v3603_v62  ;;  %v2974_v6 = vadd.f32 %v2880_v53, %v2653_v39  ;;  %v3005_v48 = vadd.f32 %v5823_v11, %v2973_v50  ;;  %v3081_v53 = vpop.permute.xlu1 %3080 }
 0x28d   :  { %v2885_v59 = vpop.f32.mrb[216].mxu1 }
 0x28e   :  { %v4301_v54 = vpop.f32.mrb[217].mxu1  ;;  %v3180_v31 = vmul.f32 %v3066_v1, %v3005_v48  ;;  %v3006_v27 = vadd.f32 %v5823_v11, %v2974_v6  ;;  %v3086_v39 = vpop.permute.xlu0 %3085 }
 0x28f   :  { %v2888_v15 = vpop.f32.mrb[218].mxu1  ;;  %v2564_v42 = vpop.f32.mrb[216].mxu0 }
 0x290   :  { %v4302_v40 = vpop.f32.mrb[219].mxu1  ;;  %v3604_v29 = vpack.c.bf16 %v3180_v31, %v3180_v31  ;;  %v3181_v47 = vmul.f32 %v3071_v24, %v3006_v27  ;;  %v2654_v51 = vadd.f32 %v2564_v42, %v5757_v3  ;;  %v4241_v41 = vpop.f32.mrb[217].mxu0 }
 0x291   :  { %v2567_v18 = vpop.f32.mrb[218].mxu0  ;;  %v3091_v54 = vpop.permute.xlu1 %3090 }
 0x292   :  { %3307 = vst.msk [vmem:[%s5980_s6 + $0x8] sm:$0xf] %vm3304_vm9, %v3604_v29  ;;  %v3605_v14 = vpack.c.bf16 %v3181_v47, %v3181_v47  ;;  %v2975_v8 = vadd.f32 %v2885_v59, %v2654_v51  ;;  %v2655_v58 = vadd.f32 %v2567_v18, %v5760_v17  ;;  %v4242_v45 = vpop.f32.mrb[219].mxu0 }
 0x294   :  { %3308 = vst.msk [vmem:[%s5980_s6 + $0xc] sm:$0xf] %vm3304_vm9, %v3605_v14  ;;  %v3007_v3 = vadd.f32 %v5823_v11, %v2975_v8  ;;  %v2976_v10 = vadd.f32 %v2888_v15, %v2655_v58  ;;  %v3096_v8 = vpop.permute.xlu0 %3095 }
 0x295   :  { %v2893_v46 = vpop.f32.mrb[220].mxu1 }
 0x296   :  { %v4305_v63 = vpop.f32.mrb[221].mxu1  ;;  %v3182_v20 = vmul.f32 %v3076_v37, %v3007_v3  ;;  %v3008_v43 = vadd.f32 %v5823_v11, %v2976_v10  ;;  %v3101_v10 = vpop.permute.xlu1 %3100 }
 0x297   :  { %v2896_v0 = vpop.f32.mrb[222].mxu1  ;;  %v2572_v2 = vpop.f32.mrb[220].mxu0 }
 0x298   :  { %v4306_v28 = vpop.f32.mrb[223].mxu1  ;;  %v3606_v17 = vpack.c.bf16 %v3182_v20, %v3182_v20  ;;  %v3183_v44 = vmul.f32 %v3081_v53, %v3008_v43  ;;  %v2656_v5 = vadd.f32 %v2572_v2, %v5763_v61  ;;  %v4245_v38 = vpop.f32.mrb[221].mxu0 }
 0x299   :  { %v2575_v1 = vpop.f32.mrb[222].mxu0 }
 0x29a   :  { %3309 = vst.msk [vmem:[%s5980_s6 + $0x10] sm:$0xf] %vm3304_vm9, %v3606_v17  ;;  %v3607_v13 = vpack.c.bf16 %v3183_v44, %v3183_v44  ;;  %v2977_v9 = vadd.f32 %v2893_v46, %v2656_v5  ;;  %v2657_v26 = vadd.f32 %v2575_v1, %v5766_v25  ;;  %v4246_v21 = vpop.f32.mrb[223].mxu0  ;;  %v3106_v1 = vpop.permute.xlu0 %3105 }
 0x29c   :  { %3310 = vst.msk [vmem:[%s5980_s6 + $0x14] sm:$0xf] %vm3304_vm9, %v3607_v13  ;;  %v3009_v61 = vadd.f32 %v5823_v11, %v2977_v9  ;;  %v2978_v62 = vadd.f32 %v2896_v0, %v2657_v26 }
 0x29d   :  { %v2901_v7 = vpop.f32.mrb[224].mxu1 }
 0x29e   :  { %v4309_v50 = vpop.f32.mrb[225].mxu1  ;;  %v3184_v59 = vmul.f32 %v3086_v39, %v3009_v61  ;;  %v3010_v6 = vadd.f32 %v5823_v11, %v2978_v62 }
 0x29f   :  { %v2904_v49 = vpop.f32.mrb[226].mxu1  ;;  %v2580_v24 = vpop.f32.mrb[224].mxu0 }
 0x2a0   :  { %v4310_v48 = vpop.f32.mrb[227].mxu1  ;;  %v3608_v25 = vpack.c.bf16 %v3184_v59, %v3184_v59  ;;  %v3185_v15 = vmul.f32 %v3091_v54, %v3010_v6  ;;  %v2658_v31 = vadd.f32 %v2580_v24, %v5769_v55  ;;  %v4249_v27 = vpop.f32.mrb[225].mxu0 }
 0x2a1   :  { %v2583_v40 = vpop.f32.mrb[226].mxu0 }
 0x2a2   :  { %3311 = vst.msk [vmem:[%s5980_s6 + $0x18] sm:$0xf] %vm3304_vm9, %v3608_v25  ;;  %v3609_v42 = vpack.c.bf16 %v3185_v15, %v3185_v15  ;;  %v2979_v29 = vadd.f32 %v2901_v7, %v2658_v31  ;;  %v2659_v47 = vadd.f32 %v2583_v40, %v5772_v16  ;;  %v4250_v51 = vpop.f32.mrb[227].mxu0  ;;  %v3111_v7 = vpop.permute.xlu1 %3110 }
 0x2a3   :  { %v3116_v31 = vpop.permute.xlu0 %3115 }
 0x2a4   :  { %3312 = vst.msk [vmem:[%s5980_s6 + $0x1c] sm:$0xf] %vm3304_vm9, %v3609_v42  ;;  %v3011_v55 = vadd.f32 %v5823_v11, %v2979_v29  ;;  %v2980_v18 = vadd.f32 %v2904_v49, %v2659_v47 }
 0x2a5   :  { %v2909_v41 = vpop.f32.mrb[228].mxu1 }
 0x2a6   :  { %v4313_v14 = vpop.f32.mrb[229].mxu1  ;;  %v3186_v45 = vmul.f32 %v3096_v8, %v3011_v55  ;;  %v3012_v46 = vadd.f32 %v5823_v11, %v2980_v18  ;;  %v3121_v47 = vpop.permute.xlu1 %3120 }
 0x2a7   :  { %v2912_v58 = vpop.f32.mrb[230].mxu1  ;;  %v2588_v63 = vpop.f32.mrb[228].mxu0 }
 0x2a8   :  { %v4314_v3 = vpop.f32.mrb[231].mxu1  ;;  %v3610_v16 = vpack.c.bf16 %v3186_v45, %v3186_v45  ;;  %v3187_v37 = vmul.f32 %v3101_v10, %v3012_v46  ;;  %v2660_v0 = vadd.f32 %v2588_v63, %v5775_v56  ;;  %v4253_v20 = vpop.f32.mrb[229].mxu0 }
 0x2a9   :  { %v2591_v43 = vpop.f32.mrb[230].mxu0 }
 0x2aa   :  { %3313 = vst.msk [vmem:[%s5980_s6 + $0x20] sm:$0xf] %vm3304_vm9, %v3610_v16  ;;  %v3611_v28 = vpack.c.bf16 %v3187_v37, %v3187_v37  ;;  %v2981_v53 = vadd.f32 %v2909_v41, %v2660_v0  ;;  %v2661_v2 = vadd.f32 %v2591_v43, %v5778_v22  ;;  %v4254_v17 = vpop.f32.mrb[231].mxu0  ;;  %v3126_v16 = vpop.permute.xlu0 %3125 }
 0x2ac   :  { %3314 = vst.msk [vmem:[%s5980_s6 + $0x24] sm:$0xf] %vm3304_vm9, %v3611_v28  ;;  %v3013_v56 = vadd.f32 %v5823_v11, %v2981_v53  ;;  %v2982_v5 = vadd.f32 %v2912_v58, %v2661_v2  ;;  %v3131_v28 = vpop.permute.xlu1 %3130 }
 0x2ad   :  { %v2917_v44 = vpop.f32.mrb[232].mxu1 }
 0x2ae   :  { %v4317_v38 = vpop.f32.mrb[233].mxu1  ;;  %v3188_v9 = vmul.f32 %v3106_v1, %v3013_v56  ;;  %v3014_v26 = vadd.f32 %v5823_v11, %v2982_v5 }
 0x2af   :  { %v2920_v13 = vpop.f32.mrb[234].mxu1  ;;  %v2596_v61 = vpop.f32.mrb[232].mxu0 }
 0x2b0   :  { %v4318_v21 = vpop.f32.mrb[235].mxu1  ;;  %v3612_v22 = vpack.c.bf16 %v3188_v9, %v3188_v9  ;;  %v3189_v62 = vmul.f32 %v3111_v7, %v3014_v26  ;;  %v2662_v50 = vadd.f32 %v2596_v61, %v5781_v35  ;;  %v4257_v39 = vpop.f32.mrb[233].mxu0 }
 0x2b1   :  { %v2599_v49 = vpop.f32.mrb[234].mxu0  ;;  %v3136_v7 = vpop.permute.xlu0 %3135 }
 0x2b2   :  { %3315 = vst.msk [vmem:[%s5980_s6 + $0x28] sm:$0xf] %vm3304_vm9, %v3612_v22  ;;  %v3613_v59 = vpack.c.bf16 %v3189_v62, %v3189_v62  ;;  %v2983_v6 = vadd.f32 %v2917_v44, %v2662_v50  ;;  %v2663_v48 = vadd.f32 %v2599_v49, %v5784_v52  ;;  %v4258_v54 = vpop.f32.mrb[235].mxu0  ;;  %v3141_v39 = vpop.permute.xlu1 %3140 }
 0x2b4   :  { %3316 = vst.msk [vmem:[%s5980_s6 + $0x2c] sm:$0xf] %vm3304_vm9, %v3613_v59  ;;  %v3015_v35 = vadd.f32 %v5823_v11, %v2983_v6  ;;  %v2984_v25 = vadd.f32 %v2920_v13, %v2663_v48 }
 0x2b5   :  { %v2925_v24 = vpop.f32.mrb[236].mxu1 }
 0x2b6   :  { %v4321_v15 = vpop.f32.mrb[237].mxu1  ;;  %v3190_v40 = vmul.f32 %v3116_v31, %v3015_v35  ;;  %v3016_v42 = vadd.f32 %v5823_v11, %v2984_v25 }
 0x2b7   :  { %v2928_v27 = vpop.f32.mrb[238].mxu1  ;;  %v2604_v51 = vpop.f32.mrb[236].mxu0 }
 0x2b8   :  { %v4322_v29 = vpop.f32.mrb[239].mxu1  ;;  %v3614_v52 = vpack.c.bf16 %v3190_v40, %v3190_v40  ;;  %v3191_v41 = vmul.f32 %v3121_v47, %v3016_v42  ;;  %v2664_v55 = vadd.f32 %v2604_v51, %v5787_v23  ;;  %v4261_v18 = vpop.f32.mrb[237].mxu0 }
 0x2b9   :  { %v2607_v14 = vpop.f32.mrb[238].mxu0  ;;  %v3146_v42 = vpop.permute.xlu0 %3145 }
 0x2ba   :  { %3317 = vst.msk [vmem:[%s5980_s6 + $0x30] sm:$0xf] %vm3304_vm9, %v3614_v52  ;;  %v3615_v8 = vpack.c.bf16 %v3191_v41, %v3191_v41  ;;  %v2985_v58 = vadd.f32 %v2925_v24, %v2664_v55  ;;  %v2665_v45 = vadd.f32 %v2607_v14, %v5790_v36  ;;  %v4262_v46 = vpop.f32.mrb[239].mxu0  ;;  %v3151_v41 = vpop.permute.xlu1 %3150 }
 0x2bc   :  { %3318 = vst.msk [vmem:[%s5980_s6 + $0x34] sm:$0xf] %vm3304_vm9, %v3615_v8  ;;  %v3017_v23 = vadd.f32 %v5823_v11, %v2985_v58  ;;  %v2986_v10 = vadd.f32 %v2928_v27, %v2665_v45 }
 0x2bd   :  { %v2933_v3 = vpop.f32.mrb[240].mxu1 }
 0x2be   :  { %v4325_v63 = vpop.f32.mrb[241].mxu1  ;;  %v3192_v0 = vmul.f32 %v3126_v16, %v3017_v23  ;;  %v3018_v20 = vadd.f32 %v5823_v11, %v2986_v10 }
 0x2bf   :  { %v2936_v37 = vpop.f32.mrb[242].mxu1  ;;  %v2612_v53 = vpop.f32.mrb[240].mxu0 }
 0x2c0   :  { %v4326_v43 = vpop.f32.mrb[243].mxu1  ;;  %v3616_v36 = vpack.c.bf16 %v3192_v0, %v3192_v0  ;;  %v3193_v2 = vmul.f32 %v3131_v28, %v3018_v20  ;;  %v2666_v17 = vadd.f32 %v2612_v53, %v5793_v32  ;;  %v4265_v44 = vpop.f32.mrb[241].mxu0 }
 0x2c1   :  { %v2615_v56 = vpop.f32.mrb[242].mxu0  ;;  %v3161_v53 = vpop.permute.xlu1 %3160 }
 0x2c2   :  { %3319 = vst.msk [vmem:[%s5980_s6 + $0x38] sm:$0xf] %vm3304_vm9, %v3616_v36  ;;  %v3617_v5 = vpack.c.bf16 %v3193_v2, %v3193_v2  ;;  %v2987_v38 = vadd.f32 %v2933_v3, %v2666_v17  ;;  %v2667_v1 = vadd.f32 %v2615_v56, %v5796_v19  ;;  %v4266_v13 = vpop.f32.mrb[243].mxu0 }
 0x2c4   :  { %3320 = vst.msk [vmem:[%s5980_s6 + $0x3c] sm:$0xf] %vm3304_vm9, %v3617_v5  ;;  %v3019_v32 = vadd.f32 %v5823_v11, %v2987_v38  ;;  %v2988_v26 = vadd.f32 %v2936_v37, %v2667_v1  ;;  %v3156_v37 = vpop.permute.xlu0 %3155 }
 0x2c5   :  { %v2941_v9 = vpop.f32.mrb[244].mxu1 }
 0x2c6   :  { %v4329_v21 = vpop.f32.mrb[245].mxu1  ;;  %v3194_v22 = vmul.f32 %v3136_v7, %v3019_v32  ;;  %v3020_v62 = vadd.f32 %v5823_v11, %v2988_v26 }
 0x2c7   :  { %v2944_v61 = vpop.f32.mrb[246].mxu1  ;;  %v2620_v49 = vpop.f32.mrb[244].mxu0 }
 0x2c8   :  { %v4330_v50 = vpop.f32.mrb[247].mxu1  ;;  %v3618_v19 = vpack.c.bf16 %v3194_v22, %v3194_v22  ;;  %v3195_v59 = vmul.f32 %v3141_v39, %v3020_v62  ;;  %v2668_v6 = vadd.f32 %v2620_v49, %v5799_v57  ;;  %v4269_v48 = vpop.f32.mrb[245].mxu0 }
 0x2c9   :  { %v2623_v54 = vpop.f32.mrb[246].mxu0  ;;  %v3166_v21 = vpop.permute.xlu0 %3165 }
 0x2ca   :  { %3321 = vst.msk [vmem:[%s5980_s6 + $0x40] sm:$0xf] %vm3304_vm9, %v3618_v19  ;;  %v3619_v24 = vpack.c.bf16 %v3195_v59, %v3195_v59  ;;  %v2989_v35 = vadd.f32 %v2941_v9, %v2668_v6  ;;  %v2669_v25 = vadd.f32 %v2623_v54, %v5802_v33  ;;  %v4270_v15 = vpop.f32.mrb[247].mxu0  ;;  %v3171_v50 = vpop.permute.xlu1 %3170 }
 0x2cc   :  { %3322 = vst.msk [vmem:[%s5980_s6 + $0x44] sm:$0xf] %vm3304_vm9, %v3619_v24  ;;  %v3021_v57 = vadd.f32 %v5823_v11, %v2989_v35  ;;  %v2990_v27 = vadd.f32 %v2944_v61, %v2669_v25 }
 0x2cd   :  { %v2949_v31 = vpop.f32.mrb[248].mxu1  ;;  %v3176_v25 = vpop.permute.xlu0 %3175 }
 0x2ce   :  { %v4333_v40 = vpop.f32.mrb[249].mxu1  ;;  %v3196_v47 = vmul.f32 %v3146_v42, %v3021_v57  ;;  %v3022_v51 = vadd.f32 %v5823_v11, %v2990_v27 }
 0x2cf   :  { %v2952_v29 = vpop.f32.mrb[250].mxu1  ;;  %v2628_v55 = vpop.f32.mrb[248].mxu0 }
 0x2d0   :  { %v4334_v52 = vpop.f32.mrb[251].mxu1  ;;  %v3620_v33 = vpack.c.bf16 %v3196_v47, %v3196_v47  ;;  %v3197_v18 = vmul.f32 %v3151_v41, %v3022_v51  ;;  %v2670_v14 = vadd.f32 %v2628_v55, %v5805_v34  ;;  %v4273_v8 = vpop.f32.mrb[249].mxu0 }
 0x2d1   :  { %v2631_v58 = vpop.f32.mrb[250].mxu0 }
 0x2d2   :  { %3323 = vst.msk [vmem:[%s5980_s6 + $0x48] sm:$0xf] %vm3304_vm9, %v3620_v33  ;;  %v3621_v45 = vpack.c.bf16 %v3197_v18, %v3197_v18  ;;  %v2991_v46 = vadd.f32 %v2949_v31, %v2670_v14  ;;  %v2671_v3 = vadd.f32 %v2631_v58, %v5808_v4  ;;  %v4274_v23 = vpop.f32.mrb[251].mxu0 }
 0x2d4   :  { %3324 = vst.msk [vmem:[%s5980_s6 + $0x4c] sm:$0xf] %vm3304_vm9, %v3621_v45  ;;  %v3023_v34 = vadd.f32 %v5823_v11, %v2991_v46  ;;  %v2992_v63 = vadd.f32 %v2952_v29, %v2671_v3 }
 0x2d5   :  { %v2957_v10 = vpop.f32.mrb[252].mxu1 }
 0x2d6   :  { %v4337_v16 = vpop.f32.mrb[253].mxu1  ;;  %v3198_v20 = vmul.f32 %v3156_v37, %v3023_v34  ;;  %v3024_v43 = vadd.f32 %v5823_v11, %v2992_v63 }
 0x2d7   :  { %v2960_v0 = vpop.f32.mrb[254].mxu1  ;;  %v2636_v36 = vpop.f32.mrb[252].mxu0 }
 0x2d8   :  { %v4338_v28 = vpop.f32.mrb[255].mxu1  ;;  %v3622_v4 = vpack.c.bf16 %v3198_v20, %v3198_v20  ;;  %v3199_v2 = vmul.f32 %v3161_v53, %v3024_v43  ;;  %v2672_v17 = vadd.f32 %v2636_v36, %v5811_v30  ;;  %v4277_v44 = vpop.f32.mrb[253].mxu0 }
 0x2d9   :  { %v2639_v56 = vpop.f32.mrb[254].mxu0 }
 0x2da   :  { %3325 = vst.msk [vmem:[%s5980_s6 + $0x50] sm:$0xf] %vm3304_vm9, %v3622_v4  ;;  %v3623_v5 = vpack.c.bf16 %v3199_v2, %v3199_v2  ;;  %v2993_v38 = vadd.f32 %v2957_v10, %v2672_v17  ;;  %v2673_v1 = vadd.f32 %v2639_v56, %v5814_v12  ;;  %v4278_v13 = vpop.f32.mrb[255].mxu0 }
 0x2dc   :  { %3326 = vst.msk [vmem:[%s5980_s6 + $0x54] sm:$0xf] %vm3304_vm9, %v3623_v5  ;;  %v3025_v30 = vadd.f32 %v5823_v11, %v2993_v38  ;;  %v2994_v32 = vadd.f32 %v2960_v0, %v2673_v1 }
 0x2dd   :  { %v2965_v9 = vpop.f32.mrb[0].mxu1 }
 0x2de   :  { %v4341_v26 = vpop.f32.mrb[1].mxu1  ;;  %v3200_v61 = vmul.f32 %v3166_v21, %v3025_v30  ;;  %v3026_v22 = vadd.f32 %v5823_v11, %v2994_v32 }
 0x2df   :  { %v2968_v7 = vpop.f32.mrb[2].mxu1  ;;  %v2644_v39 = vpop.f32.mrb[0].mxu0 }
 0x2e0   :  { %v4342_v62 = vpop.f32.mrb[3].mxu1  ;;  %v3624_v12 = vpack.c.bf16 %v3200_v61, %v3200_v61  ;;  %v3201_v49 = vmul.f32 %v3171_v50, %v3026_v22  ;;  %v2674_v19 = vadd.f32 %v2644_v39, %v5817_v60  ;;  %v4281_v59 = vpop.f32.mrb[1].mxu0 }
 0x2e1   :  { %v2647_v6 = vpop.f32.mrb[2].mxu0 }
 0x2e2   :  { %3327 = vst.msk [vmem:[%s5980_s6 + $0x58] sm:$0xf] %vm3304_vm9, %v3624_v12  ;;  %v3625_v48 = vpack.c.bf16 %v3201_v49, %v3201_v49  ;;  %v2995_v54 = vadd.f32 %v2965_v9, %v2674_v19  ;;  %v4282_v24 = vpop.f32.mrb[3].mxu0 }
 0x2e4   :  { %3328 = vst.msk [vmem:[%s5980_s6 + $0x5c] sm:$0xf] %vm3304_vm9, %v3625_v48  ;;  %v3027_v35 = vadd.f32 %v5823_v11, %v2995_v54 }
 0x2e6   :  { %v3202_v15 = vmul.f32 %v3176_v25, %v3027_v35 }
 0x2e8   :  { %v3626_v60 = vpack.c.bf16 %v3202_v15, %v3202_v15 }
 0x2ea   :  { %3329 = vst.msk [vmem:[%s5980_s6 + $0x60] sm:$0xf] %vm3304_vm9, %v3626_v60 }

// kernel: _lambda_.9
= control target key start
LH: loop header
LB: loop body
LE: loop exit
PB: predicated region body
PF: predicated region fallthrough
CT: control target
= control target key end

     0   :  { %v3830_v0 = vmov 0.0   ;;  %vm118_vm0 = vsmask.f32 7424  ;;  %vm3831_vm1 = vmmov 0   ;;  %vm234_vm2 = vcmask 261120   ;;  %s5282_s1 = inlined_call_operand.vmem [shape: bf16[9,32,5], index: 1, kind: input, shape index: {}]   ;;  %s5283_s0 = inlined_call_operand.vmem [shape: bf16[222,32], index: 0, kind: input, shape index: {}]   ;;  %s5284_s3 = inlined_call_operand.vmem [shape: f32[200,1], index: 3, kind: input, shape index: {}]   ;;  %s5285_s2 = inlined_call_operand.vmem [shape: f32[1,5], index: 2, kind: input, shape index: {}]   ;;  %s5286_s4 = inlined_call_operand.vmem [shape: f32[200,5], index: 4, kind: output, shape index: {}]  }
   0x1   :  { %3254 = vmatprep.subr.bf16.mxu0 %v3830_v0  ;;  %3758 = vmatprep.subr.bf16.mxu1 %v3830_v0  ;;  %v3767_v1 = vld [vmem:[%s5282_s1 + $0x10] sm:$0xff]   ;;  %v3768_v2 = vld [vmem:[%s5282_s1 + $0x18] sm:$0xff]   ;;  %v18_v3 = vld [vmem:[%s5283_s0] sm:$0xf]  ;;  %vm595_vm3 = vcmask 1046528   ;;  %vm1513_vm5 = vcmask 1045504  }
   0x2   :  { %3258 = vmatprep.mubr.msk.bf16.mxu0 %vm3831_vm1, %v3830_v0  ;;  %3286 = vmatprep.mubr.msk.bf16.mxu1 %vm3831_vm1, %v3830_v0  ;;  %v3876_v4 = vld [vmem:[%s5283_s0 + $0x4] sm:$0xf]  ;;  %v3886_v6 = vld [vmem:[%s5283_s0 + $0x8] sm:$0xff]   ;;  %v3894_v10 = vld [vmem:[%s5283_s0 + $0x38] sm:$0xff]   ;;  %vm1175_vm4 = vsmask.f32 6400 }
   0x3   :  { %3255 = vmatpush3.bf16.msra.mxu0 %v3767_v1  ;;  %3760 = vmatpush3.bf16.msra.mxu1 %v3767_v1  ;;  %v3881_v5 = vcombine.low %v18_v3, %v3876_v4  ;;  %v127_v9 = vshll.u32 %v3886_v6, 16  ;;  %v3899_v11 = vld [vmem:[%s5283_s0 + $0x40] sm:$0xff]   ;;  %v175_v14 = vshll.u32 %v3894_v10, 16  ;;  %v179_v15 = vshrl.u32 %v3894_v10, 16  ;;  %v3914_v20 = vld [vmem:[%s5283_s0 + $0x10] sm:$0xff]   ;;  %v3920_v22 = vld [vmem:[%s5283_s0 + $0x48] sm:$0xff]  }
   0x4   :  { %3256 = vmatprep.subr.bf16.mxu0 %v3830_v0  ;;  %3759 = vmatprep.subr.bf16.mxu1 %v3830_v0  ;;  %v183_v16 = vshll.u32 %v3899_v11, 16  ;;  %v3773_v17 = vld [vmem:[%s5282_s1 + $0x20] sm:$0xff]   ;;  %v131_v21 = vshrl.u32 %v3886_v6, 16  ;;  %v135_v27 = vshll.u32 %v3914_v20, 16  ;;  %v187_v28 = vshrl.u32 %v3899_v11, 16  ;;  %v3937_v33 = vld [vmem:[%s5283_s0 + $0x18] sm:$0xff]  }
   0x5   :  { %v120_v7 = vshrl.u32 %v3881_v5, 16  ;;  %v122_v8 = vshll.u32 %v3881_v5, 16  ;;  %v129_v13 = vrot.slane %v127_v9, 1  ;;  %v3909_v19 = vrot.slane %v175_v14, 1  ;;  %v3774_v24 = vld [vmem:[%s5282_s1] sm:$0xff]   ;;  %v3946_v36 = vld [vmem:[%s5283_s0 + $0x50] sm:$0xff]  }
   0x6   :  { %v185_v23 = vrot.slane %v183_v16, 1  ;;  %v191_v29 = vshll.u32 %v3920_v22, 16  ;;  %v137_v32 = vrot.slane %v135_v27, 1  ;;  %v3781_v37 = vld [vmem:[%s5282_s1 + $0x28] sm:$0xff]   ;;  %v139_v38 = vshrl.u32 %v3914_v20, 16  ;;  %v3969_v47 = vld [vmem:[%s5283_s0 + $0x20] sm:$0xff]  }
   0x7   :  { %3257 = vmatpush3.bf16.msra.mxu0 %v3768_v2  ;;  %3761 = vmatpush3.bf16.msra.mxu1 %v3768_v2  ;;  %v124_v12 = vrot.slane %v122_v8, 1  ;;  %v181_v26 = vor.u32 %v179_v15, %v3909_v19  ;;  %v133_v31 = vor.u32 %v131_v21, %v129_v13  ;;  %v143_v40 = vshll.u32 %v3937_v33, 16  ;;  %v3782_v41 = vld [vmem:[%s5282_s1 + $0x8] sm:$0xff]   ;;  %v3975_v48 = vld [vmem:[%s5283_s0 + $0x58] sm:$0xff]   ;;  %v3993_v58 = vld [vmem:[%s5283_s0 + $0x60] sm:$0xf] }
   0x8   :  { %3366 = vmatprep.subr.bf16.mxu0 %v3830_v0  ;;  %3310 = vmatprep.subr.bf16.mxu1 %v3830_v0  ;;  %v189_v34 = vor.u32 %v187_v28, %v185_v23  ;;  %v193_v35 = vrot.slane %v191_v29, 1  ;;  %v195_v43 = vshrl.u32 %v3920_v22, 16  ;;  %v199_v44 = vshll.u32 %v3946_v36, 16  ;;  %v3987_v56 = vld [vmem:[%s5283_s0 + $0x28] sm:$0xff]   ;;  %v47_v59 = vld [vmem:[%s5283_s0 + $0x64] sm:$0x1] }
   0x9   :  { %v125_v18 = vor.u32 %v124_v12, %v120_v7  ;;  %v186_v30 = vsel %vm118_vm0, %v181_v26, %v185_v23  ;;  %v138_v39 = vsel %vm118_vm0, %v133_v31, %v137_v32  ;;  %v141_v45 = vor.u32 %v139_v38, %v137_v32  ;;  %v4016_v14 = vld [vmem:[%s5283_s0 + $0x30] sm:$0xff]   ;;  %v586_v32 = vld [vmem:[%s5283_s0] sm:$0xe] }
   0xa   :  { %3287 = vmatmul.mubr.msk.bf16.vlgmr.msra.gmra.mrb[0].mxu1 %vm234_vm2, %v186_v30  ;;  %v194_v42 = vsel %vm118_vm0, %v189_v34, %v193_v35  ;;  %v145_v46 = vrot.slane %v143_v40, 1  ;;  %v197_v49 = vor.u32 %v195_v43, %v193_v35  ;;  %v201_v50 = vrot.slane %v199_v44, 1  ;;  %v3788_v40 = vld [vmem:[%s5282_s1 + $0x40] sm:$0xff]  }
   0xb   :  { %v130_v25 = vsel %vm118_vm0, %v125_v18, %v129_v13  ;;  %3290 = vmatprep.mubr.msk.bf16.mxu1 %vm3831_vm1, %v3830_v0  ;;  %3311 = vmatpush3.bf16.msra.mxu1 %v3774_v24  ;;  %v147_v52 = vshrl.u32 %v3937_v33, 16  ;;  %v151_v53 = vshll.u32 %v3969_v47, 16  ;;  %v203_v54 = vshrl.u32 %v3946_v36, 16 }
   0xc   :  { %3259 = vmatmul.mubr.msk.bf16.vlgmr.msra.gmra.mrb[0].mxu0 %vm234_vm2, %v130_v25  ;;  %3312 = vmatprep.subr.bf16.mxu1 %v3830_v0  ;;  %v146_v51 = vsel %vm118_vm0, %v141_v45, %v145_v46  ;;  %v207_v55 = vshll.u32 %v3975_v48, 16  ;;  %v202_v57 = vsel %vm118_vm0, %v197_v49, %v201_v50  ;;  %v159_v1 = vshll.u32 %v3987_v56, 16 }
   0xd   :  { %3367 = vmatpush3.bf16.msra.mxu0 %v3773_v17  ;;  %3262 = vmatprep.mubr.msk.bf16.mxu0 %vm3831_vm1, %v3830_v0  ;;  %v149_v60 = vor.u32 %v147_v52, %v145_v46  ;;  %v153_v61 = vrot.slane %v151_v53, 1  ;;  %v205_v62 = vor.u32 %v203_v54, %v201_v50  ;;  %v4006_v2 = vcombine.low %v3993_v58, %v47_v59 }
   0xe   :  { %3368 = vmatprep.subr.bf16.mxu0 %v3830_v0  ;;  %v209_v63 = vrot.slane %v207_v55, 1  ;;  %v155_v7 = vshrl.u32 %v3969_v47, 16  ;;  %v211_v8 = vshrl.u32 %v3975_v48, 16  ;;  %v161_v12 = vrot.slane %v159_v1, 1 }
   0xf   :  { %3313 = vmatpush3.bf16.msra.mxu1 %v3782_v41  ;;  %v154_v3 = vsel %vm118_vm0, %v149_v60, %v153_v61  ;;  %v215_v13 = vshll.u32 %v4006_v2, 16  ;;  %v163_v21 = vshrl.u32 %v3987_v56, 16  ;;  %v167_v23 = vshll.u32 %v4016_v14, 16  ;;  %v3790_v41 = vld [vmem:[%s5282_s1 + $0x48] sm:$0xff]  }
  0x10   :  { %3422 = vmatprep.subr.bf16.mxu1 %v3830_v0  ;;  %v210_v9 = vsel %vm118_vm0, %v205_v62, %v209_v63  ;;  %v157_v15 = vor.u32 %v155_v7, %v153_v61  ;;  %v213_v16 = vor.u32 %v211_v8, %v209_v63  ;;  %v219_v27 = vshrl.u32 %v4006_v2, 16 }
  0x11   :  { %3369 = vmatpush3.bf16.msra.mxu0 %v3781_v37  ;;  %v217_v17 = vrot.slane %v215_v13, 1  ;;  %v165_v25 = vor.u32 %v163_v21, %v161_v12  ;;  %v169_v26 = vrot.slane %v167_v23, 1  ;;  %v171_v29 = vshrl.u32 %v4016_v14, 16  ;;  %v3786_v37 = vld [vmem:[%s5282_s1 + $0x30] sm:$0xff]  }
  0x12   :  { %3478 = vmatprep.subr.bf16.mxu0 %v3830_v0  ;;  %3291 = vmatmul.mubr.msk.bf16.gmra.mrb[4].mxu1 %vm234_vm2, %v194_v42  ;;  %v162_v18 = vsel %vm118_vm0, %v157_v15, %v161_v12  ;;  %v2958_v35 = vcombine.low %v586_v32, %v3876_v4  ;;  %v3789_v4 = vld [vmem:[%s5282_s1 + $0x38] sm:$0xff]   ;;  %v601_v43 = vrot.slane %v3937_v33, 1  ;;  %v603_v44 = vrot.slane %v3969_v47, 1 }
  0x13   :  { %3294 = vmatprep.mubr.msk.bf16.mxu1 %vm3831_vm1, %v3830_v0  ;;  %v218_v24 = vsel %vm118_vm0, %v213_v16, %v217_v17  ;;  %v170_v28 = vsel %vm118_vm0, %v165_v25, %v169_v26  ;;  %v221_v30 = vor.u32 %v219_v27, %v217_v17  ;;  %v173_v31 = vor.u32 %v171_v29, %v169_v26  ;;  %v4205_v15 = vld [vmem:[%s5283_s0 + $0x14] sm:$0xff]   ;;  %v3796_v26 = vld [vmem:[%s5282_s1 + $0x60] sm:$0xff]  }
  0x14   :  { %3263 = vmatmul.mubr.msk.bf16.gmra.mrb[4].mxu0 %vm234_vm2, %v138_v39  ;;  %v596_v38 = vrot.slane %v2958_v35, 1  ;;  %v597_v39 = vrot.slane %v3886_v6, 1  ;;  %v605_v45 = vrot.slane %v3987_v56, 1  ;;  %v607_v46 = vrot.slane %v4016_v14, 1  ;;  %v3804_v35 = vld [vmem:[%s5282_s1 + $0x68] sm:$0xff]  }
  0x15   :  { %3266 = vmatprep.mubr.msk.bf16.mxu0 %vm3831_vm1, %v3830_v0  ;;  %v178_v34 = vsel %vm118_vm0, %v173_v31, %v3909_v19  ;;  %v609_v49 = vrot.slane %v3894_v10, 1  ;;  %v613_v53 = vrot.slane %v3920_v22, 1  ;;  %v615_v54 = vrot.slane %v3946_v36, 1 }
  0x16   :  { %v598_v19 = vsel %vm595_vm3, %v596_v38, %v597_v39  ;;  %v617_v55 = vrot.slane %v3975_v48, 1  ;;  %v2938_v60 = vcombine.low %v3993_v58, %v3993_v58  ;;  %v1197_v21 = vshll.u32 %v4205_v15, 16 }
  0x17   :  { %v610_v50 = vsel %vm595_vm3, %v607_v46, %v609_v49  ;;  %v932_v23 = vrot.slane %v4205_v15, 1  ;;  %vm2093_vm6 = vsmask.f32 5376  ;;  %vm2431_vm7 = vcmask 1044480  }
  0x18   :  { %vm2876_vm8 = vcmask 39936  }
  0x1a   :  { %3295 = vmatmul.mubr.msk.bf16.gmra.mrb[8].mxu1 %vm234_vm2, %v202_v57  ;;  %v4178_v57 = vld [vmem:[%s5283_s0 + $0x8] sm:$0xf] }
  0x1b   :  { %3298 = vmatprep.mubr.msk.bf16.mxu1 %vm3831_vm1, %v3830_v0 }
  0x1c   :  { %3267 = vmatmul.mubr.msk.bf16.gmra.mrb[8].mxu0 %vm234_vm2, %v146_v51  ;;  %v611_v51 = vrot.slane %v3899_v11, 1 }
  0x1d   :  { %3270 = vmatprep.mubr.msk.bf16.mxu0 %vm3831_vm1, %v3830_v0 }
  0x1e   :  { %v612_v52 = vsel %vm595_vm3, %v609_v49, %v611_v51 }
  0x22   :  { %3299 = vmatmul.mubr.msk.bf16.gmra.mrb[12].mxu1 %vm234_vm2, %v210_v9 }
  0x23   :  { %3302 = vmatprep.mubr.msk.bf16.mxu1 %vm3831_vm1, %v3830_v0 }
  0x24   :  { %3271 = vmatmul.mubr.msk.bf16.gmra.mrb[12].mxu0 %vm234_vm2, %v154_v3 }
  0x25   :  { %3274 = vmatprep.mubr.msk.bf16.mxu0 %vm3831_vm1, %v3830_v0 }
  0x2a   :  { %3303 = vmatmul.mubr.msk.bf16.gmra.mrb[16].mxu1 %vm234_vm2, %v218_v24  ;;  %v3803_v24 = vld [vmem:[%s5282_s1 + $0x58] sm:$0xff]  }
  0x2b   :  { %3306 = vmatprep.mubr.msk.bf16.mxu1 %vm3831_vm1, %v3830_v0 }
  0x2c   :  { %3275 = vmatmul.mubr.msk.bf16.gmra.mrb[16].mxu0 %vm234_vm2, %v162_v18  ;;  %v1194_v18 = vshrl.u32 %v4205_v15, 16 }
  0x2d   :  { %3278 = vmatprep.mubr.msk.bf16.mxu0 %vm3831_vm1, %v3830_v0 }
  0x2e   :  { %v1196_v27 = vrot.slane %v1194_v18, 1 }
  0x32   :  { %3307 = vmatmul.mubr.msk.bf16.gmra.mrb[20].mxu1 %vm234_vm2, %v221_v30  ;;  %v4228_v30 = vld [vmem:[%s5283_s0 + $0x1c] sm:$0xff]  }
  0x33   :  { %3314 = vmatprep.mubr.msk.bf16.mxu1 %vm3831_vm1, %v3830_v0  ;;  %v1203_v32 = vshrl.u32 %v4228_v30, 16 }
  0x34   :  { %3279 = vmatmul.mubr.msk.bf16.gmra.mrb[20].mxu0 %vm234_vm2, %v170_v28  ;;  %v1199_v28 = vrot.slane %v1197_v21, 2 }
  0x35   :  { %3282 = vmatprep.mubr.msk.bf16.mxu0 %vm3831_vm1, %v3830_v0 }
  0x36   :  { %v1200_v31 = vor.u32 %v1199_v28, %v1196_v27 }
  0x3a   :  { %3315 = vmatmul.mubr.msk.bf16.vlgmr.msra.gmra.mrb[24].mxu1 %vm234_vm2, %v3881_v5  ;;  %v599_v5 = vrot.slane %v3914_v20, 1 }
  0x3b   :  { %3318 = vmatprep.mubr.msk.bf16.mxu1 %vm3831_vm1, %v3830_v0  ;;  %3423 = vmatpush3.bf16.msra.mxu1 %v3786_v37  ;;  %v934_v37 = vrot.slane %v4228_v30, 1 }
  0x3c   :  { %3283 = vmatmul.mubr.msk.bf16.gmra.mrb[24].mxu0 %vm234_vm2, %v178_v34  ;;  %3424 = vmatprep.subr.bf16.mxu1 %v3830_v0  ;;  %v600_v42 = vsel %vm595_vm3, %v597_v39, %v599_v5  ;;  %v1206_v34 = vshll.u32 %v4228_v30, 16  ;;  %v1205_v39 = vrot.slane %v1203_v32, 1 }
  0x3d   :  { %3370 = vmatprep.mubr.msk.bf16.mxu0 %vm3831_vm1, %v3830_v0 }
  0x3f   :  { %3425 = vmatpush3.bf16.msra.mxu1 %v3789_v4  ;;  %v1208_v4 = vrot.slane %v1206_v34, 2 }
  0x40   :  { %3534 = vmatprep.subr.bf16.mxu1 %v3830_v0 }
  0x42   :  { %3319 = vmatmul.mubr.msk.bf16.gmra.mrb[28].mxu1 %vm234_vm2, %v3886_v6  ;;  %v602_v6 = vsel %vm595_vm3, %v599_v5, %v601_v43  ;;  %v1209_v5 = vor.u32 %v1208_v4, %v1205_v39 }
  0x43   :  { %3322 = vmatprep.mubr.msk.bf16.mxu1 %vm3831_vm1, %v3830_v0 }
  0x44   :  { %3371 = vmatmul.mubr.msk.bf16.vlgmr.msra.gmra.mrb[28].mxu0 %vm234_vm2, %v598_v19  ;;  %v935_v19 = vsel %vm595_vm3, %v932_v23, %v934_v37 }
  0x45   :  { %3479 = vmatpush3.bf16.msra.mxu0 %v3788_v40  ;;  %3374 = vmatprep.mubr.msk.bf16.mxu0 %vm3831_vm1, %v3830_v0  ;;  %v4250_v40 = vld [vmem:[%s5283_s0 + $0x24] sm:$0xff]  }
  0x46   :  { %3480 = vmatprep.subr.bf16.mxu0 %v3830_v0 }
  0x49   :  { %3481 = vmatpush3.bf16.msra.mxu0 %v3790_v41  ;;  %v1212_v41 = vshrl.u32 %v4250_v40, 16 }
  0x4a   :  { %3590 = vmatprep.subr.bf16.mxu0 %v3830_v0  ;;  %3323 = vmatmul.mubr.msk.bf16.gmra.mrb[32].mxu1 %vm234_vm2, %v3914_v20  ;;  %v604_v20 = vsel %vm595_vm3, %v601_v43, %v603_v44  ;;  %v936_v43 = vrot.slane %v4250_v40, 1 }
  0x4b   :  { %3326 = vmatprep.mubr.msk.bf16.mxu1 %vm3831_vm1, %v3830_v0 }
  0x4c   :  { %3375 = vmatmul.mubr.msk.bf16.gmra.mrb[32].mxu0 %vm234_vm2, %v600_v42  ;;  %v1215_v42 = vshll.u32 %v4250_v40, 16 }
  0x4d   :  { %3378 = vmatprep.mubr.msk.bf16.mxu0 %vm3831_vm1, %v3830_v0 }
  0x52   :  { %3327 = vmatmul.mubr.msk.bf16.gmra.mrb[36].mxu1 %vm234_vm2, %v3937_v33  ;;  %v606_v33 = vsel %vm595_vm3, %v603_v44, %v605_v45  ;;  %v1214_v44 = vrot.slane %v1212_v41, 1 }
  0x53   :  { %3330 = vmatprep.mubr.msk.bf16.mxu1 %vm3831_vm1, %v3830_v0 }
  0x54   :  { %3379 = vmatmul.mubr.msk.bf16.gmra.mrb[36].mxu0 %vm234_vm2, %v602_v6  ;;  %v1210_v6 = vsel %vm1175_vm4, %v1200_v31, %v1209_v5 }
  0x55   :  { %3382 = vmatprep.mubr.msk.bf16.mxu0 %vm3831_vm1, %v3830_v0 }
  0x5a   :  { %3331 = vmatmul.mubr.msk.bf16.gmra.mrb[40].mxu1 %vm234_vm2, %v3969_v47  ;;  %v608_v47 = vsel %vm595_vm3, %v605_v45, %v607_v46  ;;  %v937_v45 = vsel %vm595_vm3, %v934_v37, %v936_v43 }
  0x5b   :  { %3334 = vmatprep.mubr.msk.bf16.mxu1 %vm3831_vm1, %v3830_v0 }
  0x5c   :  { %3383 = vmatmul.mubr.msk.bf16.gmra.mrb[40].mxu0 %vm234_vm2, %v604_v20  ;;  %v1217_v20 = vrot.slane %v1215_v42, 2  ;;  %v4354_v42 = vld [vmem:[%s5283_s0 + $0x54] sm:$0xff]  }
  0x5d   :  { %3386 = vmatprep.mubr.msk.bf16.mxu0 %vm3831_vm1, %v3830_v0 }
  0x5e   :  { %v1218_v46 = vor.u32 %v1217_v20, %v1214_v44  ;;  %v1266_v44 = vshrl.u32 %v4354_v42, 16  ;;  %v1269_v20 = vshll.u32 %v4354_v42, 16 }
  0x62   :  { %3335 = vmatmul.mubr.msk.bf16.gmra.mrb[44].mxu1 %vm234_vm2, %v3987_v56  ;;  %v619_v56 = vrot.slane %v4006_v2, 1 }
  0x63   :  { %3338 = vmatprep.mubr.msk.bf16.mxu1 %vm3831_vm1, %v3830_v0 }
  0x64   :  { %3387 = vmatmul.mubr.msk.bf16.gmra.mrb[44].mxu0 %vm234_vm2, %v606_v33  ;;  %v620_v59 = vsel %vm595_vm3, %v617_v55, %v619_v56  ;;  %v4266_v33 = vld [vmem:[%s5283_s0 + $0x2c] sm:$0xff]  }
  0x65   :  { %3390 = vmatprep.mubr.msk.bf16.mxu0 %vm3831_vm1, %v3830_v0  ;;  %v1224_v49 = vshll.u32 %v4266_v33, 16 }
  0x6a   :  { %3339 = vmatmul.mubr.msk.bf16.gmra.mrb[48].mxu1 %vm234_vm2, %v4016_v14  ;;  %v3794_v14 = vld [vmem:[%s5282_s1 + $0x50] sm:$0xff]  }
  0x6b   :  { %3342 = vmatprep.mubr.msk.bf16.mxu1 %vm3831_vm1, %v3830_v0 }
  0x6c   :  { %3391 = vmatmul.mubr.msk.bf16.gmra.mrb[48].mxu0 %vm234_vm2, %v608_v47  ;;  %v1221_v47 = vshrl.u32 %v4266_v33, 16 }
  0x6d   :  { %3394 = vmatprep.mubr.msk.bf16.mxu0 %vm3831_vm1, %v3830_v0 }
  0x72   :  { %3343 = vmatmul.mubr.msk.bf16.gmra.mrb[52].mxu1 %vm234_vm2, %v3894_v10  ;;  %v614_v10 = vsel %vm595_vm3, %v611_v51, %v613_v53  ;;  %v1219_v51 = vsel %vm1175_vm4, %v1209_v5, %v1218_v46 }
  0x73   :  { %3346 = vmatprep.mubr.msk.bf16.mxu1 %vm3831_vm1, %v3830_v0 }
  0x74   :  { %3395 = vmatmul.mubr.msk.bf16.gmra.mrb[52].mxu0 %vm234_vm2, %v610_v50  ;;  %v938_v50 = vrot.slane %v4266_v33, 1 }
  0x75   :  { %3398 = vmatprep.mubr.msk.bf16.mxu0 %vm3831_vm1, %v3830_v0 }
  0x7a   :  { %3347 = vmatmul.mubr.msk.bf16.gmra.mrb[56].mxu1 %vm234_vm2, %v3899_v11  ;;  %v616_v11 = vsel %vm595_vm3, %v613_v53, %v615_v54  ;;  %v1226_v53 = vrot.slane %v1224_v49, 2 }
  0x7b   :  { %3350 = vmatprep.mubr.msk.bf16.mxu1 %vm3831_vm1, %v3830_v0 }
  0x7c   :  { %3399 = vmatmul.mubr.msk.bf16.gmra.mrb[56].mxu0 %vm234_vm2, %v612_v52  ;;  %v1223_v52 = vrot.slane %v1221_v47, 1 }
  0x7d   :  { %3402 = vmatprep.mubr.msk.bf16.mxu0 %vm3831_vm1, %v3830_v0 }
  0x82   :  { %3351 = vmatmul.mubr.msk.bf16.gmra.mrb[60].mxu1 %vm234_vm2, %v3920_v22  ;;  %v618_v22 = vsel %vm595_vm3, %v615_v54, %v617_v55  ;;  %v4282_v54 = vld [vmem:[%s5283_s0 + $0x34] sm:$0xff]  }
  0x83   :  { %3354 = vmatprep.mubr.msk.bf16.mxu1 %vm3831_vm1, %v3830_v0  ;;  %v1230_v55 = vshrl.u32 %v4282_v54, 16 }
  0x84   :  { %3403 = vmatmul.mubr.msk.bf16.gmra.mrb[60].mxu0 %vm234_vm2, %v614_v10  ;;  %v939_v10 = vsel %vm595_vm3, %v936_v43, %v938_v50 }
  0x85   :  { %3406 = vmatprep.mubr.msk.bf16.mxu0 %vm3831_vm1, %v3830_v0 }
  0x8a   :  { %3355 = vmatmul.mubr.msk.bf16.gmra.mrb[64].mxu1 %vm234_vm2, %v3946_v36  ;;  %v833_v36 = vld [vmem:[%s5283_s0 + $0x4] sm:$0xe] }
  0x8b   :  { %3358 = vmatprep.mubr.msk.bf16.mxu1 %vm3831_vm1, %v3830_v0  ;;  %v2978_v61 = vcombine.low %v833_v36, %v4178_v57 }
  0x8c   :  { %3407 = vmatmul.mubr.msk.bf16.gmra.mrb[64].mxu0 %vm234_vm2, %v616_v11  ;;  %v1227_v11 = vor.u32 %v1226_v53, %v1223_v52  ;;  %v1268_v52 = vrot.slane %v1266_v44, 1  ;;  %v1271_v53 = vrot.slane %v1269_v20, 2 }
  0x8d   :  { %3410 = vmatprep.mubr.msk.bf16.mxu0 %vm3831_vm1, %v3830_v0  ;;  %v1177_v62 = vshrl.u32 %v2978_v61, 16  ;;  %v1180_v63 = vshll.u32 %v2978_v61, 16  ;;  %v929_v58 = vrot.slane %v2978_v61, 1 }
  0x8e   :  { %v1228_v36 = vsel %vm1175_vm4, %v1218_v46, %v1227_v11  ;;  %v948_v46 = vrot.slane %v4354_v42, 1 }
  0x8f   :  { %v1179_v7 = vrot.slane %v1177_v62, 1  ;;  %v1182_v8 = vrot.slane %v1180_v63, 2  ;;  %v4298_v62 = vld [vmem:[%s5283_s0 + $0x3c] sm:$0xff]  }
  0x91   :  { %v1183_v16 = vor.u32 %v1182_v8, %v1179_v7 }
  0x92   :  { %3359 = vmatmul.mubr.msk.bf16.gmra.mrb[68].mxu1 %vm234_vm2, %v3975_v48  ;;  %v4187_v48 = vld [vmem:[%s5283_s0 + $0xc] sm:$0xff]  }
  0x93   :  { %3362 = vmatprep.mubr.msk.bf16.mxu1 %vm3831_vm1, %v3830_v0  ;;  %v1185_v1 = vshrl.u32 %v4187_v48, 16  ;;  %v1188_v2 = vshll.u32 %v4187_v48, 16  ;;  %v930_v3 = vrot.slane %v4187_v48, 1 }
  0x94   :  { %3411 = vmatmul.mubr.msk.bf16.gmra.mrb[68].mxu0 %vm234_vm2, %v618_v22  ;;  %v1233_v22 = vshll.u32 %v4282_v54, 16 }
  0x95   :  { %3414 = vmatprep.mubr.msk.bf16.mxu0 %vm3831_vm1, %v3830_v0  ;;  %v1187_v9 = vrot.slane %v1185_v1, 1  ;;  %v1190_v12 = vrot.slane %v1188_v2, 2  ;;  %v931_v13 = vsel %vm595_vm3, %v929_v58, %v930_v3  ;;  %v933_v29 = vsel %vm595_vm3, %v930_v3, %v932_v23 }
  0x96   :  { %v1239_v1 = vshrl.u32 %v4298_v62, 16  ;;  %v1242_v2 = vshll.u32 %v4298_v62, 16  ;;  %v942_v58 = vrot.slane %v4298_v62, 1 }
  0x97   :  { %v1191_v17 = vor.u32 %v1190_v12, %v1187_v9  ;;  %v4314_v12 = vld [vmem:[%s5283_s0 + $0x44] sm:$0xff]  }
  0x98   :  { %v1241_v7 = vrot.slane %v1239_v1, 1  ;;  %v1244_v8 = vrot.slane %v1242_v2, 2 }
  0x99   :  { %v1192_v25 = vsel %vm1175_vm4, %v1183_v16, %v1191_v17  ;;  %v1201_v38 = vsel %vm1175_vm4, %v1191_v17, %v1200_v31  ;;  %v1251_v16 = vshll.u32 %v4314_v12, 16  ;;  %v944_v17 = vrot.slane %v4314_v12, 1 }
  0x9a   :  { %3363 = vmatmul.mubr.msk.bf16.gmra.mrb[72].mxu1 %vm234_vm2, %v2938_v60  ;;  %v1235_v60 = vrot.slane %v1233_v22, 2 }
  0x9b   :  { %3426 = vmatprep.mubr.msk.bf16.mxu1 %vm3831_vm1, %v3830_v0  ;;  %v1253_v23 = vrot.slane %v1251_v16, 2 }
  0x9c   :  { %3415 = vmatmul.mubr.msk.bf16.gmra.mrb[72].mxu0 %vm234_vm2, %v620_v59  ;;  %v1232_v59 = vrot.slane %v1230_v55, 1 }
  0x9d   :  { %3418 = vmatprep.mubr.msk.bf16.mxu0 %vm3831_vm1, %v3830_v0 }
  0x9e   :  { %v1236_v63 = vor.u32 %v1235_v60, %v1232_v59  ;;  %v1272_v59 = vor.u32 %v1271_v53, %v1268_v52 }
  0xa0   :  { %v1237_v3 = vsel %vm1175_vm4, %v1227_v11, %v1236_v63 }
  0xa2   :  { %3427 = vmatmul.mubr.msk.bf16.vlgmr.msra.gmra.mrb[76].mxu1 %vm234_vm2, %v931_v13  ;;  %v1245_v13 = vor.u32 %v1244_v8, %v1241_v7  ;;  %v858_v7 = vld [vmem:[%s5283_s0 + $0x68] sm:$0x1] }
  0xa3   :  { %3430 = vmatprep.mubr.msk.bf16.mxu1 %vm3831_vm1, %v3830_v0  ;;  %3535 = vmatpush3.bf16.msra.mxu1 %v3794_v14  ;;  %v1248_v14 = vshrl.u32 %v4314_v12, 16 }
  0xa4   :  { %3419 = vmatmul.mubr.msk.bf16.gmra.mrb[76].mxu0 %vm234_vm2, %v619_v56  ;;  %3536 = vmatprep.subr.bf16.mxu1 %v3830_v0  ;;  %v940_v56 = vrot.slane %v4282_v54, 1  ;;  %v1246_v18 = vsel %vm1175_vm4, %v1236_v63, %v1245_v13  ;;  %v1166_v63 = vld [vmem:[%s5283_s0 + $0x68] sm:$0x3] }
  0xa5   :  { %3482 = vmatprep.mubr.msk.bf16.mxu0 %vm3831_vm1, %v3830_v0  ;;  %v1250_v21 = vrot.slane %v1248_v14, 1 }
  0xa6   :  { %v941_v61 = vsel %vm595_vm3, %v938_v50, %v940_v56  ;;  %v943_v9 = vsel %vm595_vm3, %v940_v56, %v942_v58  ;;  %v4378_v56 = vld [vmem:[%s5283_s0 + $0x5c] sm:$0xff]  }
  0xa7   :  { %3537 = vmatpush3.bf16.msra.mxu1 %v3803_v24  ;;  %v945_v24 = vsel %vm595_vm3, %v942_v58, %v944_v17  ;;  %v1275_v60 = vshrl.u32 %v4378_v56, 16  ;;  %v950_v2 = vrot.slane %v4378_v56, 1 }
  0xa8   :  { %3646 = vmatprep.subr.bf16.mxu1 %v3830_v0 }
  0xa9   :  { %v1277_v16 = vrot.slane %v1275_v60, 1 }
  0xaa   :  { %3431 = vmatmul.mubr.msk.bf16.gmra.mrb[80].mxu1 %vm234_vm2, %v933_v29 }
  0xab   :  { %3434 = vmatprep.mubr.msk.bf16.mxu1 %vm3831_vm1, %v3830_v0 }
  0xac   :  { %3483 = vmatmul.mubr.msk.bf16.vlgmr.msra.gmra.mrb[80].mxu0 %vm234_vm2, %v1192_v25  ;;  %v4330_v25 = vld [vmem:[%s5283_s0 + $0x4c] sm:$0xff]  }
  0xad   :  { %3591 = vmatpush3.bf16.msra.mxu0 %v3796_v26  ;;  %3486 = vmatprep.mubr.msk.bf16.mxu0 %vm3831_vm1, %v3830_v0  ;;  %v1254_v26 = vor.u32 %v1253_v23, %v1250_v21  ;;  %v1257_v27 = vshrl.u32 %v4330_v25, 16  ;;  %v1260_v28 = vshll.u32 %v4330_v25, 16  ;;  %v946_v31 = vrot.slane %v4330_v25, 1 }
  0xae   :  { %3592 = vmatprep.subr.bf16.mxu0 %v3830_v0  ;;  %v951_v23 = vsel %vm595_vm3, %v948_v46, %v950_v2 }
  0xaf   :  { %v1255_v37 = vsel %vm1175_vm4, %v1245_v13, %v1254_v26  ;;  %v1262_v39 = vrot.slane %v1260_v28, 2  ;;  %v947_v5 = vsel %vm595_vm3, %v944_v17, %v946_v31  ;;  %v949_v55 = vsel %vm595_vm3, %v946_v31, %v948_v46 }
  0xb1   :  { %3593 = vmatpush3.bf16.msra.mxu0 %v3804_v35 }
  0xb2   :  { %3702 = vmatprep.subr.bf16.mxu0 %v3830_v0  ;;  %3435 = vmatmul.mubr.msk.bf16.gmra.mrb[84].mxu1 %vm234_vm2, %v935_v19 }
  0xb3   :  { %3438 = vmatprep.mubr.msk.bf16.mxu1 %vm3831_vm1, %v3830_v0 }
  0xb4   :  { %3487 = vmatmul.mubr.msk.bf16.gmra.mrb[84].mxu0 %vm234_vm2, %v1201_v38  ;;  %v1259_v38 = vrot.slane %v1257_v27, 1 }
  0xb5   :  { %3490 = vmatprep.mubr.msk.bf16.mxu0 %vm3831_vm1, %v3830_v0 }
  0xba   :  { %3439 = vmatmul.mubr.msk.bf16.gmra.mrb[88].mxu1 %vm234_vm2, %v937_v45 }
  0xbb   :  { %3442 = vmatprep.mubr.msk.bf16.mxu1 %vm3831_vm1, %v3830_v0 }
  0xbc   :  { %3491 = vmatmul.mubr.msk.bf16.gmra.mrb[88].mxu0 %vm234_vm2, %v1210_v6  ;;  %v1263_v6 = vor.u32 %v1262_v39, %v1259_v38 }
  0xbd   :  { %3494 = vmatprep.mubr.msk.bf16.mxu0 %vm3831_vm1, %v3830_v0 }
  0xbe   :  { %v1273_v13 = vsel %vm1175_vm4, %v1263_v6, %v1272_v59 }
  0xc2   :  { %3443 = vmatmul.mubr.msk.bf16.gmra.mrb[92].mxu1 %vm234_vm2, %v939_v10 }
  0xc3   :  { %3446 = vmatprep.mubr.msk.bf16.mxu1 %vm3831_vm1, %v3830_v0 }
  0xc4   :  { %3495 = vmatmul.mubr.msk.bf16.gmra.mrb[92].mxu0 %vm234_vm2, %v1219_v51  ;;  %v1264_v51 = vsel %vm1175_vm4, %v1254_v26, %v1263_v6 }
  0xc5   :  { %3498 = vmatprep.mubr.msk.bf16.mxu0 %vm3831_vm1, %v3830_v0 }
  0xca   :  { %3447 = vmatmul.mubr.msk.bf16.gmra.mrb[96].mxu1 %vm234_vm2, %v941_v61  ;;  %v1278_v61 = vshll.u32 %v4378_v56, 16 }
  0xcb   :  { %3450 = vmatprep.mubr.msk.bf16.mxu1 %vm3831_vm1, %v3830_v0 }
  0xcc   :  { %3499 = vmatmul.mubr.msk.bf16.gmra.mrb[96].mxu0 %vm234_vm2, %v1228_v36  ;;  %v1280_v17 = vrot.slane %v1278_v61, 2 }
  0xcd   :  { %3502 = vmatprep.mubr.msk.bf16.mxu0 %vm3831_vm1, %v3830_v0 }
  0xce   :  { %v1281_v28 = vor.u32 %v1280_v17, %v1277_v16  ;;  %v1515_v16 = vrot.slane %v4187_v48, 2  ;;  %v3811_v48 = vld [vmem:[%s5282_s1 + $0x70] sm:$0xff]  }
  0xd2   :  { %3451 = vmatmul.mubr.msk.bf16.gmra.mrb[100].mxu1 %vm234_vm2, %v943_v9 }
  0xd3   :  { %3454 = vmatprep.mubr.msk.bf16.mxu1 %vm3831_vm1, %v3830_v0 }
  0xd4   :  { %3503 = vmatmul.mubr.msk.bf16.gmra.mrb[100].mxu0 %vm234_vm2, %v1237_v3  ;;  %v857_v3 = vld [vmem:[%s5283_s0 + $0x64] sm:$0xf] }
  0xd5   :  { %3506 = vmatprep.mubr.msk.bf16.mxu0 %vm3831_vm1, %v3830_v0  ;;  %v4405_v14 = vcombine.low %v857_v3, %v1166_v63  ;;  %v2990_v26 = vcombine.low %v857_v3, %v858_v7  ;;  %v1751_v3 = vld [vmem:[%s5283_s0 + $0x8] sm:$0xc]  ;;  %v4457_v7 = vld [vmem:[%s5283_s0 + $0xc] sm:$0xf] }
  0xd7   :  { %v1284_v31 = vshrl.u32 %v4405_v14, 16  ;;  %v952_v38 = vrot.slane %v2990_v26, 1  ;;  %v4474_v26 = vld [vmem:[%s5283_s0 + $0x10] sm:$0xff]  }
  0xd9   :  { %v953_v46 = vsel %vm595_vm3, %v950_v2, %v952_v38 }
  0xda   :  { %3455 = vmatmul.mubr.msk.bf16.gmra.mrb[104].mxu1 %vm234_vm2, %v945_v24 }
  0xdb   :  { %3458 = vmatprep.mubr.msk.bf16.mxu1 %vm3831_vm1, %v3830_v0 }
  0xdc   :  { %3507 = vmatmul.mubr.msk.bf16.gmra.mrb[104].mxu0 %vm234_vm2, %v1246_v18 }
  0xdd   :  { %3510 = vmatprep.mubr.msk.bf16.mxu0 %vm3831_vm1, %v3830_v0  ;;  %v4345_v35 = vpop.f32.mrb[0].mxu1 }
  0xde   :  { %v3288_v19 = vpop.f32.mrb[1].mxu1 }
  0xdf   :  { %v4338_v29 = vpop.f32.mrb[0].mxu0  ;;  %v4349_v41 = vpop.f32.mrb[2].mxu1 }
  0xe0   :  { %v3260_v32 = vpop.f32.mrb[1].mxu0  ;;  %v3289_v43 = vpop.f32.mrb[3].mxu1 }
  0xe1   :  { %v4343_v34 = vpop.f32.mrb[2].mxu0  ;;  %v1287_v32 = vshll.u32 %v4405_v14, 16  ;;  %v1286_v43 = vrot.slane %v1284_v31, 1 }
  0xe2   :  { %v3261_v4 = vpop.f32.mrb[3].mxu0  ;;  %3459 = vmatmul.mubr.msk.bf16.gmra.mrb[108].mxu1 %vm234_vm2, %v947_v5  ;;  %v1282_v5 = vsel %vm1175_vm4, %v1272_v59, %v1281_v28 }
  0xe3   :  { %3462 = vmatprep.mubr.msk.bf16.mxu1 %vm3831_vm1, %v3830_v0  ;;  %v1289_v6 = vrot.slane %v1287_v32, 2 }
  0xe4   :  { %3511 = vmatmul.mubr.msk.bf16.gmra.mrb[108].mxu0 %vm234_vm2, %v1255_v37 }
  0xe5   :  { %3514 = vmatprep.mubr.msk.bf16.mxu0 %vm3831_vm1, %v3830_v0  ;;  %v4369_v50 = vpop.f32.mrb[4].mxu1  ;;  %v1290_v52 = vor.u32 %v1289_v6, %v1286_v43  ;;  %v1517_v6 = vrot.slane %v4205_v15, 2  ;;  %v4504_v15 = vld [vmem:[%s5283_s0 + $0x18] sm:$0xff]  }
  0xe6   :  { %v3292_v11 = vpop.f32.mrb[5].mxu1 }
  0xe7   :  { %v4362_v45 = vpop.f32.mrb[4].mxu0  ;;  %v4373_v22 = vpop.f32.mrb[6].mxu1  ;;  %v1504_v11 = vld [vmem:[%s5283_s0 + $0x4] sm:$0xc]  ;;  %v1291_v59 = vsel %vm1175_vm4, %v1281_v28, %v1290_v52 }
  0xe8   :  { %v3264_v47 = vpop.f32.mrb[5].mxu0  ;;  %v3293_v36 = vpop.f32.mrb[7].mxu1  ;;  %v3030_v2 = vcombine.low %v1504_v11, %v4178_v57 }
  0xe9   :  { %v4367_v49 = vpop.f32.mrb[6].mxu0 }
  0xea   :  { %v3265_v10 = vpop.f32.mrb[7].mxu0  ;;  %3463 = vmatmul.mubr.msk.bf16.gmra.mrb[112].mxu1 %vm234_vm2, %v949_v55  ;;  %v1514_v57 = vrot.slane %v3030_v2, 2  ;;  %v1518_v2 = vsel %vm1513_vm5, %v1515_v16, %v1517_v6 }
  0xeb   :  { %3466 = vmatprep.mubr.msk.bf16.mxu1 %vm3831_vm1, %v3830_v0 }
  0xec   :  { %3515 = vmatmul.mubr.msk.bf16.gmra.mrb[112].mxu0 %vm234_vm2, %v1264_v51  ;;  %v1516_v31 = vsel %vm1513_vm5, %v1514_v57, %v1515_v16  ;;  %v1850_v57 = vrot.slane %v4504_v15, 2 }
  0xed   :  { %3518 = vmatprep.mubr.msk.bf16.mxu0 %vm3831_vm1, %v3830_v0  ;;  %v4402_v9 = vpop.f32.mrb[8].mxu1 }
  0xee   :  { %v3296_v21 = vpop.f32.mrb[9].mxu1 }
  0xef   :  { %v4389_v1 = vpop.f32.mrb[8].mxu0  ;;  %v4408_v24 = vpop.f32.mrb[10].mxu1 }
  0xf0   :  { %v3268_v58 = vpop.f32.mrb[9].mxu0  ;;  %v3297_v27 = vpop.f32.mrb[11].mxu1 }
  0xf1   :  { %v4400_v8 = vpop.f32.mrb[10].mxu0 }
  0xf2   :  { %v3269_v18 = vpop.f32.mrb[11].mxu0  ;;  %3467 = vmatmul.mubr.msk.bf16.gmra.mrb[116].mxu1 %vm234_vm2, %v951_v23  ;;  %v4469_v23 = vcombine.low %v1751_v3, %v4457_v7 }
  0xf3   :  { %3470 = vmatprep.mubr.msk.bf16.mxu1 %vm3831_vm1, %v3830_v0 }
  0xf4   :  { %3519 = vmatmul.mubr.msk.bf16.gmra.mrb[116].mxu0 %vm234_vm2, %v1273_v13 }
  0xf5   :  { %3522 = vmatprep.mubr.msk.bf16.mxu0 %vm3831_vm1, %v3830_v0  ;;  %v4422_v19 = vpop.f32.mrb[12].mxu1 }
  0xf6   :  { %v3300_v20 = vpop.f32.mrb[13].mxu1 }
  0xf7   :  { %v4416_v37 = vpop.f32.mrb[12].mxu0  ;;  %v4426_v47 = vpop.f32.mrb[14].mxu1 }
  0xf8   :  { %v3272_v39 = vpop.f32.mrb[13].mxu0  ;;  %v3301_v51 = vpop.f32.mrb[15].mxu1 }
  0xf9   :  { %v4420_v4 = vpop.f32.mrb[14].mxu0  ;;  %v1847_v39 = vrot.slane %v4469_v23, 2 }
  0xfa   :  { %v3273_v44 = vpop.f32.mrb[15].mxu0  ;;  %3471 = vmatmul.mubr.msk.bf16.gmra.mrb[120].mxu1 %vm234_vm2, %v953_v46 }
  0xfb   :  { %3474 = vmatprep.mubr.msk.bf16.mxu1 %vm3831_vm1, %v3830_v0  ;;  %v3821_v44 = vld [vmem:[%s5282_s1 + $0x78] sm:$0xff]  }
  0xfc   :  { %3523 = vmatmul.mubr.msk.bf16.gmra.mrb[120].mxu0 %vm234_vm2, %v1282_v5  ;;  %v1848_v5 = vrot.slane %v4474_v26, 2 }
  0xfd   :  { %3526 = vmatprep.mubr.msk.bf16.mxu0 %vm3831_vm1, %v3830_v0  ;;  %v4441_v36 = vpop.f32.mrb[16].mxu1 }
  0xfe   :  { %v3304_v61 = vpop.f32.mrb[17].mxu1 }
  0xff   :  { %v4432_v53 = vpop.f32.mrb[16].mxu0  ;;  %v4444_v63 = vpop.f32.mrb[18].mxu1 }
 0x100   :  { %v3276_v10 = vpop.f32.mrb[17].mxu0  ;;  %v3305_v58 = vpop.f32.mrb[19].mxu1 }
 0x101   :  { %v4439_v55 = vpop.f32.mrb[18].mxu0  ;;  %v3814_v10 = vld [vmem:[%s5282_s1 + $0x80] sm:$0xff]  }
 0x102   :  { %v3277_v60 = vpop.f32.mrb[19].mxu0  ;;  %3475 = vmatmul.mubr.msk.bf16.gmra.mrb[124].mxu1 %vm234_vm2, %v952_v38 }
 0x103   :  { %3538 = vmatprep.mubr.msk.bf16.mxu1 %vm3831_vm1, %v3830_v0 }
 0x104   :  { %3527 = vmatmul.mubr.msk.bf16.gmra.mrb[124].mxu0 %vm234_vm2, %v1291_v59 }
 0x105   :  { %3530 = vmatprep.mubr.msk.bf16.mxu0 %vm3831_vm1, %v3830_v0  ;;  %v4466_v21 = vpop.f32.mrb[20].mxu1 }
 0x106   :  { %v3308_v28 = vpop.f32.mrb[21].mxu1 }
 0x107   :  { %v4459_v13 = vpop.f32.mrb[20].mxu0  ;;  %v407_v32 = vpop.f32.mrb[22].mxu1 }
 0x108   :  { %v3280_v17 = vpop.f32.mrb[21].mxu0  ;;  %v3309_v38 = vpop.f32.mrb[23].mxu1  ;;  %v1851_v32 = vsel %vm1513_vm5, %v1848_v5, %v1850_v57 }
 0x109   :  { %v4464_v18 = vpop.f32.mrb[22].mxu0 }
 0x10a   :  { %v3281_v27 = vpop.f32.mrb[23].mxu0  ;;  %3539 = vmatmul.mubr.msk.bf16.vlgmr.msra.gmra.mrb[128].mxu1 %vm234_vm2, %v1516_v31 }
 0x10b   :  { %3542 = vmatprep.mubr.msk.bf16.mxu1 %vm3831_vm1, %v3830_v0  ;;  %3647 = vmatpush3.bf16.msra.mxu1 %v3811_v48  ;;  %v4527_v48 = vld [vmem:[%s5283_s0 + $0x20] sm:$0xff]  }
 0x10c   :  { %3531 = vmatmul.mubr.msk.bf16.gmra.mrb[128].mxu0 %vm234_vm2, %v1290_v52  ;;  %3648 = vmatprep.subr.bf16.mxu1 %v3830_v0  ;;  %v1849_v52 = vsel %vm1513_vm5, %v1847_v39, %v1848_v5 }
 0x10d   :  { %3594 = vmatprep.mubr.msk.bf16.mxu0 %vm3831_vm1, %v3830_v0  ;;  %v484_v46 = vpop.f32.mrb[24].mxu1 }
 0x10e   :  { %v485_v11 = vadd.f32 %v484_v46, %v4338_v29  ;;  %v3316_v59 = vpop.f32.mrb[25].mxu1  ;;  %v3822_v29 = vld [vmem:[%s5282_s1 + $0x88] sm:$0xff]  }
 0x10f   :  { %v4486_v43 = vpop.f32.mrb[24].mxu0  ;;  %v487_v61 = vpop.f32.mrb[26].mxu1  ;;  %3649 = vmatpush3.bf16.msra.mxu1 %v3821_v44 }
 0x110   :  { %v3284_v20 = vpop.f32.mrb[25].mxu0  ;;  %v488_v58 = vadd.f32 %v487_v61, %v4343_v34  ;;  %v3317_v3 = vpop.f32.mrb[27].mxu1  ;;  %v1519_v34 = vrot.slane %v4228_v30, 2 }
 0x111   :  { %v4495_v51 = vpop.f32.mrb[26].mxu0 }
 0x112   :  { %v3285_v60 = vpop.f32.mrb[27].mxu0  ;;  %3543 = vmatmul.mubr.msk.bf16.gmra.mrb[132].mxu1 %vm234_vm2, %v1518_v2  ;;  %v1520_v46 = vsel %vm1513_vm5, %v1517_v6, %v1519_v34  ;;  %v4548_v2 = vld [vmem:[%s5283_s0 + $0x28] sm:$0xff]  }
 0x113   :  { %3546 = vmatprep.mubr.msk.bf16.mxu1 %vm3831_vm1, %v3830_v0 }
 0x114   :  { %3595 = vmatmul.mubr.msk.bf16.vlgmr.msra.gmra.mrb[132].mxu0 %vm234_vm2, %v1849_v52 }
 0x115   :  { %3703 = vmatpush3.bf16.msra.mxu0 %v3814_v10  ;;  %3598 = vmatprep.mubr.msk.bf16.mxu0 %vm3831_vm1, %v3830_v0  ;;  %v492_v28 = vpop.f32.mrb[28].mxu1  ;;  %v1852_v10 = vrot.slane %v4527_v48, 2 }
 0x116   :  { %3704 = vmatprep.subr.bf16.mxu0 %v3830_v0  ;;  %v493_v38 = vadd.f32 %v492_v28, %v4362_v45  ;;  %v3320_v39 = vpop.f32.mrb[29].mxu1 }
 0x117   :  { %v706_v16 = vpop.f32.mrb[28].mxu0  ;;  %v495_v30 = vpop.f32.mrb[30].mxu1  ;;  %v1853_v61 = vsel %vm1513_vm5, %v1850_v57, %v1852_v10  ;;  %v1854_v57 = vrot.slane %v4548_v2, 2 }
 0x118   :  { %v4521_v17 = vadd.f32 %v706_v16, %v485_v11  ;;  %v3372_v27 = vpop.f32.mrb[29].mxu0  ;;  %v496_v52 = vadd.f32 %v495_v30, %v4367_v49  ;;  %v3321_v5 = vpop.f32.mrb[31].mxu1  ;;  %v1521_v11 = vrot.slane %v4250_v40, 2  ;;  %v4569_v30 = vld [vmem:[%s5283_s0 + $0x30] sm:$0xff]  }
 0x119   :  { %v709_v31 = vpop.f32.mrb[30].mxu0  ;;  %3705 = vmatpush3.bf16.msra.mxu0 %v3822_v29 }
 0x11a   :  { %v4530_v44 = vadd.f32 %v709_v31, %v488_v58  ;;  %v3373_v20 = vpop.f32.mrb[31].mxu0  ;;  %3547 = vmatmul.mubr.msk.bf16.gmra.mrb[136].mxu1 %vm234_vm2, %v1520_v46  ;;  %v1522_v40 = vsel %vm1513_vm5, %v1519_v34, %v1521_v11 }
 0x11b   :  { %3550 = vmatprep.mubr.msk.bf16.mxu1 %vm3831_vm1, %v3830_v0  ;;  %v1855_v20 = vsel %vm1513_vm5, %v1852_v10, %v1854_v57  ;;  %v1856_v10 = vrot.slane %v4569_v30, 2 }
 0x11c   :  { %3599 = vmatmul.mubr.msk.bf16.gmra.mrb[136].mxu0 %vm234_vm2, %v1851_v32  ;;  %v1523_v32 = vrot.slane %v4266_v33, 2 }
 0x11d   :  { %3602 = vmatprep.mubr.msk.bf16.mxu0 %vm3831_vm1, %v3830_v0  ;;  %v500_v49 = vpop.f32.mrb[32].mxu1 }
 0x11e   :  { %v501_v58 = vadd.f32 %v500_v49, %v4389_v1  ;;  %v3324_v3 = vpop.f32.mrb[33].mxu1  ;;  %v1524_v33 = vsel %vm1513_vm5, %v1521_v11, %v1523_v32 }
 0x11f   :  { %v714_v45 = vpop.f32.mrb[32].mxu0  ;;  %v503_v27 = vpop.f32.mrb[34].mxu1 }
 0x120   :  { %v4542_v59 = vadd.f32 %v714_v45, %v493_v38  ;;  %v3376_v6 = vpop.f32.mrb[33].mxu0  ;;  %v504_v28 = vadd.f32 %v503_v27, %v4400_v8  ;;  %v3325_v31 = vpop.f32.mrb[35].mxu1  ;;  %v4590_v27 = vld [vmem:[%s5283_s0 + $0x38] sm:$0xff]  }
 0x121   :  { %v717_v60 = vpop.f32.mrb[34].mxu0 }
 0x122   :  { %v4551_v29 = vadd.f32 %v717_v60, %v496_v52  ;;  %v3377_v16 = vpop.f32.mrb[35].mxu0  ;;  %3551 = vmatmul.mubr.msk.bf16.gmra.mrb[140].mxu1 %vm234_vm2, %v1522_v40 }
 0x123   :  { %3554 = vmatprep.mubr.msk.bf16.mxu1 %vm3831_vm1, %v3830_v0  ;;  %v1857_v16 = vsel %vm1513_vm5, %v1854_v57, %v1856_v10  ;;  %v1858_v57 = vrot.slane %v4590_v27, 2 }
 0x124   :  { %3603 = vmatmul.mubr.msk.bf16.gmra.mrb[140].mxu0 %vm234_vm2, %v1853_v61  ;;  %v1525_v61 = vrot.slane %v4282_v54, 2 }
 0x125   :  { %3606 = vmatprep.mubr.msk.bf16.mxu0 %vm3831_vm1, %v3830_v0  ;;  %v508_v8 = vpop.f32.mrb[36].mxu1 }
 0x126   :  { %v509_v46 = vadd.f32 %v508_v8, %v4416_v37  ;;  %v3328_v52 = vpop.f32.mrb[37].mxu1  ;;  %v1526_v54 = vsel %vm1513_vm5, %v1523_v32, %v1525_v61 }
 0x127   :  { %v722_v1 = vpop.f32.mrb[36].mxu0  ;;  %v511_v6 = vpop.f32.mrb[38].mxu1 }
 0x128   :  { %v4563_v38 = vadd.f32 %v722_v1, %v501_v58  ;;  %v3380_v34 = vpop.f32.mrb[37].mxu0  ;;  %v512_v49 = vadd.f32 %v511_v6, %v4420_v4  ;;  %v3329_v60 = vpop.f32.mrb[39].mxu1  ;;  %v4611_v6 = vld [vmem:[%s5283_s0 + $0x40] sm:$0xff]  }
 0x129   :  { %v725_v39 = vpop.f32.mrb[38].mxu0 }
 0x12a   :  { %v4572_v5 = vadd.f32 %v725_v39, %v504_v28  ;;  %v3381_v45 = vpop.f32.mrb[39].mxu0  ;;  %3555 = vmatmul.mubr.msk.bf16.gmra.mrb[144].mxu1 %vm234_vm2, %v1524_v33 }
 0x12b   :  { %3558 = vmatprep.mubr.msk.bf16.mxu1 %vm3831_vm1, %v3830_v0  ;;  %v1859_v45 = vsel %vm1513_vm5, %v1856_v10, %v1858_v57  ;;  %v1860_v10 = vrot.slane %v4611_v6, 2 }
 0x12c   :  { %3607 = vmatmul.mubr.msk.bf16.gmra.mrb[144].mxu0 %vm234_vm2, %v1855_v20  ;;  %v1527_v20 = vrot.slane %v4298_v62, 2 }
 0x12d   :  { %3610 = vmatprep.mubr.msk.bf16.mxu0 %vm3831_vm1, %v3830_v0  ;;  %v516_v4 = vpop.f32.mrb[40].mxu1 }
 0x12e   :  { %v517_v40 = vadd.f32 %v516_v4, %v4432_v53  ;;  %v3332_v28 = vpop.f32.mrb[41].mxu1  ;;  %v1528_v62 = vsel %vm1513_vm5, %v1525_v61, %v1527_v20 }
 0x12f   :  { %v730_v37 = vpop.f32.mrb[40].mxu0  ;;  %v519_v34 = vpop.f32.mrb[42].mxu1 }
 0x130   :  { %v4584_v58 = vadd.f32 %v730_v37, %v509_v46  ;;  %v3384_v11 = vpop.f32.mrb[41].mxu0  ;;  %v520_v8 = vadd.f32 %v519_v34, %v4439_v55  ;;  %v3333_v39 = vpop.f32.mrb[43].mxu1  ;;  %v4632_v34 = vld [vmem:[%s5283_s0 + $0x48] sm:$0xff]  }
 0x131   :  { %v733_v3 = vpop.f32.mrb[42].mxu0 }
 0x132   :  { %v4593_v31 = vadd.f32 %v733_v3, %v512_v49  ;;  %v3385_v1 = vpop.f32.mrb[43].mxu0  ;;  %3559 = vmatmul.mubr.msk.bf16.gmra.mrb[148].mxu1 %vm234_vm2, %v1526_v54 }
 0x133   :  { %3562 = vmatprep.mubr.msk.bf16.mxu1 %vm3831_vm1, %v3830_v0  ;;  %v1861_v1 = vsel %vm1513_vm5, %v1858_v57, %v1860_v10  ;;  %v1862_v57 = vrot.slane %v4632_v34, 2 }
 0x134   :  { %3611 = vmatmul.mubr.msk.bf16.gmra.mrb[148].mxu0 %vm234_vm2, %v1857_v16  ;;  %v1529_v16 = vrot.slane %v4314_v12, 2 }
 0x135   :  { %3614 = vmatprep.mubr.msk.bf16.mxu0 %vm3831_vm1, %v3830_v0  ;;  %v524_v55 = vpop.f32.mrb[44].mxu1 }
 0x136   :  { %v525_v33 = vadd.f32 %v524_v55, %v4459_v13  ;;  %v3336_v49 = vpop.f32.mrb[45].mxu1  ;;  %v1530_v12 = vsel %vm1513_vm5, %v1527_v20, %v1529_v16 }
 0x137   :  { %v738_v53 = vpop.f32.mrb[44].mxu0  ;;  %v527_v11 = vpop.f32.mrb[46].mxu1 }
 0x138   :  { %v4605_v46 = vadd.f32 %v738_v53, %v517_v40  ;;  %v3388_v32 = vpop.f32.mrb[45].mxu0  ;;  %v528_v4 = vadd.f32 %v527_v11, %v4464_v18  ;;  %v3337_v3 = vpop.f32.mrb[47].mxu1  ;;  %v4653_v11 = vld [vmem:[%s5283_s0 + $0x50] sm:$0xff]  }
 0x139   :  { %v741_v52 = vpop.f32.mrb[46].mxu0 }
 0x13a   :  { %v4614_v60 = vadd.f32 %v741_v52, %v520_v8  ;;  %v3389_v37 = vpop.f32.mrb[47].mxu0  ;;  %3563 = vmatmul.mubr.msk.bf16.gmra.mrb[152].mxu1 %vm234_vm2, %v1528_v62 }
 0x13b   :  { %3566 = vmatprep.mubr.msk.bf16.mxu1 %vm3831_vm1, %v3830_v0  ;;  %v1863_v37 = vsel %vm1513_vm5, %v1860_v10, %v1862_v57  ;;  %v1864_v10 = vrot.slane %v4653_v11, 2 }
 0x13c   :  { %3615 = vmatmul.mubr.msk.bf16.gmra.mrb[152].mxu0 %vm234_vm2, %v1859_v45  ;;  %v1531_v45 = vrot.slane %v4330_v25, 2 }
 0x13d   :  { %3618 = vmatprep.mubr.msk.bf16.mxu0 %vm3831_vm1, %v3830_v0  ;;  %v532_v18 = vpop.f32.mrb[48].mxu1 }
 0x13e   :  { %v533_v54 = vadd.f32 %v532_v18, %v4486_v43  ;;  %v3340_v8 = vpop.f32.mrb[49].mxu1  ;;  %v1532_v25 = vsel %vm1513_vm5, %v1529_v16, %v1531_v45 }
 0x13f   :  { %v746_v13 = vpop.f32.mrb[48].mxu0  ;;  %v535_v32 = vpop.f32.mrb[50].mxu1 }
 0x140   :  { %v4626_v40 = vadd.f32 %v746_v13, %v525_v33  ;;  %v3392_v61 = vpop.f32.mrb[49].mxu0  ;;  %v536_v55 = vadd.f32 %v535_v32, %v4495_v51  ;;  %v3341_v52 = vpop.f32.mrb[51].mxu1  ;;  %v4674_v32 = vld [vmem:[%s5283_s0 + $0x58] sm:$0xff]  }
 0x141   :  { %v749_v28 = vpop.f32.mrb[50].mxu0 }
 0x142   :  { %v4635_v39 = vadd.f32 %v749_v28, %v528_v4  ;;  %v3393_v53 = vpop.f32.mrb[51].mxu0  ;;  %3567 = vmatmul.mubr.msk.bf16.gmra.mrb[156].mxu1 %vm234_vm2, %v1530_v12 }
 0x143   :  { %3570 = vmatprep.mubr.msk.bf16.mxu1 %vm3831_vm1, %v3830_v0  ;;  %v1865_v53 = vsel %vm1513_vm5, %v1862_v57, %v1864_v10 }
 0x144   :  { %3619 = vmatmul.mubr.msk.bf16.gmra.mrb[156].mxu0 %vm234_vm2, %v1861_v1  ;;  %v1533_v1 = vrot.slane %v4354_v42, 2 }
 0x145   :  { %3622 = vmatprep.mubr.msk.bf16.mxu0 %vm3831_vm1, %v3830_v0  ;;  %v540_v51 = vpop.f32.mrb[52].mxu1 }
 0x146   :  { %v541_v62 = vadd.f32 %v540_v51, %v4345_v35  ;;  %v3344_v4 = vpop.f32.mrb[53].mxu1  ;;  %v1534_v42 = vsel %vm1513_vm5, %v1531_v45, %v1533_v1  ;;  %v3832_v51 = vmov 0   ;;  %v2702_v45 = vld [vmem:[%s5284_s3 + $0x8] sm:$0xff] }
 0x147   :  { %v754_v43 = vpop.f32.mrb[52].mxu0  ;;  %v543_v61 = vpop.f32.mrb[54].mxu1  ;;  %3765 = vset.pattern.permute.xlu0 %v3832_v51  ;;  %3766 = vset.pattern.permute.xlu1 %v3832_v51  ;;  %v1537_v51 = vrot.slane %v4405_v14, 2  ;;  %v2707_v14 = vld [vmem:[%s5284_s3 + $0x30] sm:$0xff] }
 0x148   :  { %v4647_v33 = vadd.f32 %v754_v43, %v533_v54  ;;  %v3396_v20 = vpop.f32.mrb[53].mxu0  ;;  %v544_v18 = vadd.f32 %v543_v61, %v4349_v41  ;;  %v3345_v28 = vpop.f32.mrb[55].mxu1 }
 0x149   :  { %v757_v49 = vpop.f32.mrb[54].mxu0  ;;  %v4701_v28 = vld [vmem:[%s5283_s0 + $0x60] sm:$0xff]  }
 0x14a   :  { %v4656_v3 = vadd.f32 %v757_v49, %v536_v55  ;;  %v3397_v13 = vpop.f32.mrb[55].mxu0  ;;  %3571 = vmatmul.mubr.msk.bf16.gmra.mrb[160].mxu1 %vm234_vm2, %v1532_v25 }
 0x14b   :  { %3574 = vmatprep.mubr.msk.bf16.mxu1 %vm3831_vm1, %v3830_v0 }
 0x14c   :  { %3623 = vmatmul.mubr.msk.bf16.gmra.mrb[160].mxu0 %vm234_vm2, %v1863_v37  ;;  %v2701_v37 = vld [vmem:[%s5284_s3] sm:$0xff] }
 0x14d   :  { %3626 = vmatprep.mubr.msk.bf16.mxu0 %vm3831_vm1, %v3830_v0  ;;  %v548_v41 = vpop.f32.mrb[56].mxu1  ;;  %2728 = vperm.xlu0 %3765, %v2701_v37  }
 0x14e   :  { %v549_v12 = vadd.f32 %v548_v41, %v4369_v50  ;;  %v3348_v55 = vpop.f32.mrb[57].mxu1  ;;  %v1866_v50 = vrot.slane %v4674_v32, 2 }
 0x14f   :  { %v762_v35 = vpop.f32.mrb[56].mxu0  ;;  %v551_v20 = vpop.f32.mrb[58].mxu1 }
 0x150   :  { %v4668_v54 = vadd.f32 %v762_v35, %v541_v62  ;;  %v3400_v16 = vpop.f32.mrb[57].mxu0  ;;  %v552_v49 = vadd.f32 %v551_v20, %v4373_v22  ;;  %v3349_v57 = vpop.f32.mrb[59].mxu1  ;;  %v1535_v62 = vrot.slane %v4378_v56, 2  ;;  %v2703_v56 = vld [vmem:[%s5284_s3 + $0x10] sm:$0xff]  ;;  %v1868_v20 = vrot.slane %v4701_v28, 2 }
 0x151   :  { %v765_v8 = vpop.f32.mrb[58].mxu0  ;;  %2733 = vperm.xlu0 %3765, %v2702_v45   ;;  %2738 = vperm.xlu1 %3766, %v2703_v56  }
 0x152   :  { %v4677_v52 = vadd.f32 %v765_v8, %v544_v18  ;;  %v3401_v43 = vpop.f32.mrb[59].mxu0  ;;  %3575 = vmatmul.mubr.msk.bf16.gmra.mrb[164].mxu1 %vm234_vm2, %v1534_v42  ;;  %v1867_v18 = vsel %vm1513_vm5, %v1864_v10, %v1866_v50 }
 0x153   :  { %3578 = vmatprep.mubr.msk.bf16.mxu1 %vm3831_vm1, %v3830_v0  ;;  %v2704_v43 = vld [vmem:[%s5284_s3 + $0x18] sm:$0xff] }
 0x154   :  { %3627 = vmatmul.mubr.msk.bf16.gmra.mrb[164].mxu0 %vm234_vm2, %v1865_v53 }
 0x155   :  { %3630 = vmatprep.mubr.msk.bf16.mxu0 %vm3831_vm1, %v3830_v0  ;;  %v556_v61 = vpop.f32.mrb[60].mxu1  ;;  %2743 = vperm.xlu1 %3766, %v2704_v43  }
 0x156   :  { %v557_v35 = vadd.f32 %v556_v61, %v4402_v9  ;;  %v3352_v16 = vpop.f32.mrb[61].mxu1  ;;  %v2705_v9 = vld [vmem:[%s5284_s3 + $0x20] sm:$0xff] }
 0x157   :  { %v770_v22 = vpop.f32.mrb[60].mxu0  ;;  %v559_v53 = vpop.f32.mrb[62].mxu1  ;;  %2748 = vperm.xlu0 %3765, %v2705_v9   ;;  %v2106_v9 = vshll.u32 %v4474_v26, 16 }
 0x158   :  { %v4695_v4 = vadd.f32 %v770_v22, %v549_v12  ;;  %v3404_v13 = vpop.f32.mrb[61].mxu0  ;;  %v1536_v12 = vsel %vm1513_vm5, %v1533_v1, %v1535_v62  ;;  %v560_v10 = vadd.f32 %v559_v53, %v4408_v24  ;;  %v3353_v55 = vpop.f32.mrb[63].mxu1  ;;  %v4725_v24 = vld [vmem:[%s5283_s0 + $0x68] sm:$0xf]  ;;  %v1776_v1 = vld [vmem:[%s5283_s0 + $0x6c] sm:$0x3]  ;;  %v1869_v22 = vsel %vm1513_vm5, %v1866_v50, %v1868_v20 }
 0x159   :  { %v773_v25 = vpop.f32.mrb[62].mxu0  ;;  %v3062_v13 = vcombine.low %v4725_v24, %v1776_v1  ;;  %v2709_v53 = vld [vmem:[%s5284_s3 + $0x40] sm:$0xff]  ;;  %v2103_v55 = vshrl.u32 %v4474_v26, 16 }
 0x15a   :  { %v4704_v41 = vadd.f32 %v773_v25, %v552_v49  ;;  %v3405_v8 = vpop.f32.mrb[63].mxu0  ;;  %3579 = vmatmul.mubr.msk.bf16.gmra.mrb[168].mxu1 %vm234_vm2, %v1536_v12 }
 0x15b   :  { %3582 = vmatprep.mubr.msk.bf16.mxu1 %vm3831_vm1, %v3830_v0  ;;  %2758 = vperm.xlu0 %3765, %v2707_v14   ;;  %v1870_v12 = vrot.slane %v3062_v13, 2 }
 0x15c   :  { %3631 = vmatmul.mubr.msk.bf16.gmra.mrb[168].mxu0 %vm234_vm2, %v1867_v18 }
 0x15d   :  { %3634 = vmatprep.mubr.msk.bf16.mxu0 %vm3831_vm1, %v3830_v0  ;;  %v564_v37 = vpop.f32.mrb[64].mxu1 }
 0x15e   :  { %v565_v61 = vadd.f32 %v564_v37, %v4422_v19  ;;  %v3356_v25 = vpop.f32.mrb[65].mxu1  ;;  %v2706_v19 = vld [vmem:[%s5284_s3 + $0x28] sm:$0xff]  ;;  %v1871_v37 = vsel %vm1513_vm5, %v1868_v20, %v1870_v12 }
 0x15f   :  { %v778_v42 = vpop.f32.mrb[64].mxu0  ;;  %v567_v8 = vpop.f32.mrb[66].mxu1  ;;  %2753 = vperm.xlu1 %3766, %v2706_v19   ;;  %2768 = vperm.xlu0 %3765, %v2709_v53   ;;  %v2713_v19 = vld [vmem:[%s5284_s3 + $0x60] sm:$0xff] }
 0x160   :  { %v4733_v49 = vadd.f32 %v778_v42, %v557_v35  ;;  %v3408_v57 = vpop.f32.mrb[65].mxu0  ;;  %v1538_v35 = vsel %vm1513_vm5, %v1535_v62, %v1537_v51  ;;  %v568_v56 = vadd.f32 %v567_v8, %v4426_v47  ;;  %v3357_v50 = vpop.f32.mrb[67].mxu1  ;;  %v2095_v47 = vshrl.u32 %v4469_v23, 16 }
 0x161   :  { %v781_v45 = vpop.f32.mrb[66].mxu0  ;;  %v2108_v50 = vrot.slane %v2106_v9, 3 }
 0x162   :  { %v4738_v18 = vadd.f32 %v781_v45, %v560_v10  ;;  %v3409_v16 = vpop.f32.mrb[67].mxu0  ;;  %3583 = vmatmul.mubr.msk.bf16.gmra.mrb[172].mxu1 %vm234_vm2, %v1538_v35  ;;  %v2098_v10 = vshll.u32 %v4469_v23, 16  ;;  %v2708_v23 = vld [vmem:[%s5284_s3 + $0x38] sm:$0xff]  ;;  %v2097_v14 = vrot.slane %v2095_v47, 2  ;;  %v2105_v35 = vrot.slane %v2103_v55, 2 }
 0x163   :  { %3586 = vmatprep.mubr.msk.bf16.mxu1 %vm3831_vm1, %v3830_v0  ;;  %2763 = vperm.xlu1 %3766, %v2708_v23   ;;  %v2115_v55 = vshll.u32 %v4504_v15, 16 }
 0x164   :  { %3635 = vmatmul.mubr.msk.bf16.gmra.mrb[172].mxu0 %vm234_vm2, %v1869_v22  ;;  %v2100_v8 = vrot.slane %v2098_v10, 3  ;;  %v2109_v47 = vor.u32 %v2108_v50, %v2105_v35  ;;  %v2112_v10 = vshrl.u32 %v4504_v15, 16 }
 0x165   :  { %3638 = vmatprep.mubr.msk.bf16.mxu0 %vm3831_vm1, %v3830_v0  ;;  %v572_v42 = vpop.f32.mrb[68].mxu1  ;;  %v2117_v35 = vrot.slane %v2115_v55, 3 }
 0x166   :  { %v573_v45 = vadd.f32 %v572_v42, %v4441_v36  ;;  %v3360_v22 = vpop.f32.mrb[69].mxu1 }
 0x167   :  { %v786_v62 = vpop.f32.mrb[68].mxu0  ;;  %v575_v16 = vpop.f32.mrb[70].mxu1 }
 0x168   :  { %v4761_v43 = vadd.f32 %v786_v62, %v565_v61  ;;  %v3412_v1 = vpop.f32.mrb[69].mxu0  ;;  %v2711_v61 = vld [vmem:[%s5284_s3 + $0x50] sm:$0xff]  ;;  %v576_v36 = vadd.f32 %v575_v16, %v4444_v63  ;;  %v3361_v20 = vpop.f32.mrb[71].mxu1  ;;  %v2422_v63 = vld [vmem:[%s5283_s0 + $0x8] sm:$0x8]  ;;  %v2101_v62 = vor.u32 %v2100_v8, %v2097_v14  ;;  %v2114_v8 = vrot.slane %v2112_v10, 2 }
 0x169   :  { %v789_v57 = vpop.f32.mrb[70].mxu0  ;;  %2778 = vperm.xlu0 %3765, %v2711_v61   ;;  %v2712_v61 = vld [vmem:[%s5284_s3 + $0x58] sm:$0xff]  ;;  %v2717_v20 = vld [vmem:[%s5284_s3 + $0x80] sm:$0xff] }
 0x16a   :  { %v4765_v13 = vadd.f32 %v789_v57, %v568_v56  ;;  %v3413_v25 = vpop.f32.mrb[71].mxu0  ;;  %v2710_v56 = vld [vmem:[%s5284_s3 + $0x48] sm:$0xff]  ;;  %3587 = vmatmul.mubr.msk.bf16.gmra.mrb[176].mxu1 %vm234_vm2, %v1537_v51  ;;  %v3102_v57 = vcombine.low %v2422_v63, %v4457_v7  ;;  %v2110_v16 = vsel %vm2093_vm6, %v2101_v62, %v2109_v47  ;;  %v2124_v63 = vshll.u32 %v4527_v48, 16 }
 0x16b   :  { %3650 = vmatprep.mubr.msk.bf16.mxu1 %vm3831_vm1, %v3830_v0  ;;  %2773 = vperm.xlu1 %3766, %v2710_v56   ;;  %v2118_v56 = vor.u32 %v2117_v35, %v2114_v8  ;;  %v2435_v8 = vrot.slane %v4504_v15, 3 }
 0x16c   :  { %3639 = vmatmul.mubr.msk.bf16.gmra.mrb[176].mxu0 %vm234_vm2, %v1871_v37  ;;  %v2432_v50 = vrot.slane %v3102_v57, 3  ;;  %v2716_v57 = vld [vmem:[%s5284_s3 + $0x78] sm:$0xff] }
 0x16d   :  { %3642 = vmatprep.mubr.msk.bf16.mxu0 %vm3831_vm1, %v3830_v0  ;;  %2788 = vperm.xlu0 %3765, %v2713_v19   ;;  %v580_v51 = vpop.f32.mrb[72].mxu1  ;;  %v2121_v19 = vshrl.u32 %v4527_v48, 16 }
 0x16e   :  { %v581_v37 = vadd.f32 %v580_v51, %v4466_v21  ;;  %v3364_v23 = vpop.f32.mrb[73].mxu1  ;;  %v2714_v21 = vld [vmem:[%s5284_s3 + $0x68] sm:$0xff] }
 0x16f   :  { %v794_v53 = vpop.f32.mrb[72].mxu0  ;;  %v583_v14 = vpop.f32.mrb[74].mxu1  ;;  %2783 = vperm.xlu1 %3766, %v2712_v61   ;;  %v2119_v23 = vsel %vm2093_vm6, %v2109_v47, %v2118_v56  ;;  %v2123_v61 = vrot.slane %v2121_v19, 2  ;;  %v2721_v47 = vld [vmem:[%s5284_s3 + $0xa0] sm:$0xff] }
 0x170   :  { %v4791_v9 = vadd.f32 %v794_v53, %v573_v45  ;;  %v3416_v1 = vpop.f32.mrb[73].mxu0  ;;  %v2715_v45 = vld [vmem:[%s5284_s3 + $0x70] sm:$0xff]  ;;  %v3365_v7 = vpop.f32.mrb[75].mxu1  ;;  %v2718_v14 = vld [vmem:[%s5284_s3 + $0x88] sm:$0xff] }
 0x171   :  { %v797_v42 = vpop.f32.mrb[74].mxu0  ;;  %2798 = vperm.xlu0 %3765, %v2715_v45   ;;  %v2126_v45 = vrot.slane %v2124_v63, 3  ;;  %v2130_v7 = vshrl.u32 %v4548_v2, 16 }
 0x172   :  { %v4795_v22 = vadd.f32 %v797_v42, %v576_v36  ;;  %v3417_v25 = vpop.f32.mrb[75].mxu0  ;;  %v2433_v36 = vrot.slane %v4474_v26, 3  ;;  %3651 = vmatmul.mubr.msk.bf16.vlgmr.msra.gmra.mrb[180].mxu1 %vm234_vm2, %v2110_v16 }
 0x173   :  { %3654 = vmatprep.mubr.msk.bf16.mxu1 %vm3831_vm1, %v3830_v0  ;;  %2793 = vperm.xlu1 %3766, %v2714_v21   ;;  %v2719_v25 = vld [vmem:[%s5284_s3 + $0x90] sm:$0xff]  ;;  %v2127_v35 = vor.u32 %v2126_v45, %v2123_v61  ;;  %v2133_v21 = vshll.u32 %v4548_v2, 16  ;;  %v2139_v45 = vshrl.u32 %v4569_v30, 16 }
 0x174   :  { %3643 = vmatmul.mubr.msk.bf16.gmra.mrb[180].mxu0 %vm234_vm2, %v1870_v12  ;;  %v2434_v55 = vsel %vm2431_vm7, %v2432_v50, %v2433_v36  ;;  %v2436_v19 = vsel %vm2431_vm7, %v2433_v36, %v2435_v8 }
 0x175   :  { %3706 = vmatprep.mubr.msk.bf16.mxu0 %vm3831_vm1, %v3830_v0  ;;  %2808 = vperm.xlu0 %3765, %v2717_v20   ;;  %v1039_v62 = vpop.f32.mrb[76].mxu1 }
 0x176   :  { %v1141_v1 = vadd.f32 %v1039_v62, %v4521_v17  ;;  %v3428_v51 = vpop.f32.mrb[77].mxu1 }
 0x177   :  { %v802_v12 = vpop.f32.mrb[76].mxu0  ;;  %2803 = vperm.xlu1 %3766, %v2716_v57   ;;  %v2132_v57 = vrot.slane %v2130_v7, 2 }
 0x178   :  { %v4819_v53 = vadd.f32 %v802_v12, %v581_v37  ;;  %v3420_v26 = vpop.f32.mrb[77].mxu0  ;;  %v1042_v37 = vpop.f32.mrb[78].mxu1 }
 0x179   :  { %v805_v10 = vpop.f32.mrb[78].mxu0  ;;  %v1142_v16 = vadd.f32 %v1042_v37, %v4530_v44  ;;  %v3429_v17 = vpop.f32.mrb[79].mxu1  ;;  %2818 = vperm.xlu0 %3765, %v2719_v25   ;;  %v2135_v25 = vrot.slane %v2133_v21, 3  ;;  %v2722_v37 = vld [vmem:[%s5284_s3 + $0xa8] sm:$0xff] }
 0x17a   :  { %v3421_v42 = vpop.f32.mrb[79].mxu0  ;;  %3655 = vmatmul.mubr.msk.bf16.gmra.mrb[184].mxu1 %vm234_vm2, %v2119_v23  ;;  %v2437_v23 = vrot.slane %v4527_v48, 3 }
 0x17b   :  { %3658 = vmatprep.mubr.msk.bf16.mxu1 %vm3831_vm1, %v3830_v0  ;;  %2813 = vperm.xlu1 %3766, %v2718_v14   ;;  %v2128_v42 = vsel %vm2093_vm6, %v2118_v56, %v2127_v35  ;;  %v2725_v56 = vld [vmem:[%s5284_s3 + $0xc0] sm:$0xff]  ;;  %v2136_v61 = vor.u32 %v2135_v25, %v2132_v57 }
 0x17c   :  { %3707 = vmatmul.mubr.msk.bf16.vlgmr.msra.gmra.mrb[184].mxu0 %vm234_vm2, %v2434_v55  ;;  %v2720_v55 = vld [vmem:[%s5284_s3 + $0x98] sm:$0xff] }
 0x17d   :  { %3710 = vmatprep.mubr.msk.bf16.mxu0 %vm3831_vm1, %v3830_v0  ;;  %2828 = vperm.xlu0 %3765, %v2721_v47   ;;  %v1047_v15 = vpop.f32.mrb[80].mxu1 }
 0x17e   :  { %v1143_v63 = vadd.f32 %v1047_v15, %v4542_v59  ;;  %v3432_v26 = vpop.f32.mrb[81].mxu1 }
 0x17f   :  { %v1377_v44 = vpop.f32.mrb[80].mxu0  ;;  %v1050_v51 = vpop.f32.mrb[82].mxu1  ;;  %2823 = vperm.xlu1 %3766, %v2720_v55   ;;  %v2141_v26 = vrot.slane %v2139_v45, 2 }
 0x180   :  { %v4846_v50 = vadd.f32 %v1377_v44, %v1141_v1  ;;  %v3484_v20 = vpop.f32.mrb[81].mxu0  ;;  %v2723_v1 = vld [vmem:[%s5284_s3 + $0xb0] sm:$0xff]  ;;  %v1144_v59 = vadd.f32 %v1050_v51, %v4551_v29  ;;  %v3433_v36 = vpop.f32.mrb[83].mxu1  ;;  %v2438_v44 = vsel %vm2431_vm7, %v2435_v8, %v2437_v23  ;;  %v2148_v51 = vshrl.u32 %v4590_v27, 16 }
 0x181   :  { %v1380_v12 = vpop.f32.mrb[82].mxu0  ;;  %2838 = vperm.xlu0 %3765, %v2723_v1  }
 0x182   :  { %v4850_v62 = vadd.f32 %v1380_v12, %v1142_v16  ;;  %v3485_v10 = vpop.f32.mrb[83].mxu0  ;;  %3659 = vmatmul.mubr.msk.bf16.gmra.mrb[188].mxu1 %vm234_vm2, %v2128_v42  ;;  %v2142_v16 = vshll.u32 %v4569_v30, 16  ;;  %v2724_v12 = vld [vmem:[%s5284_s3 + $0xb8] sm:$0xff]  ;;  %v2151_v42 = vshll.u32 %v4590_v27, 16 }
 0x183   :  { %3662 = vmatprep.mubr.msk.bf16.mxu1 %vm3831_vm1, %v3830_v0  ;;  %2833 = vperm.xlu1 %3766, %v2722_v37  }
 0x184   :  { %3711 = vmatmul.mubr.msk.bf16.gmra.mrb[188].mxu0 %vm234_vm2, %v2436_v19  ;;  %v2144_v10 = vrot.slane %v2142_v16, 3 }
 0x185   :  { %3714 = vmatprep.mubr.msk.bf16.mxu0 %vm3831_vm1, %v3830_v0  ;;  %2848 = vperm.xlu0 %3765, %v2725_v56   ;;  %v1055_v48 = vpop.f32.mrb[84].mxu1 }
 0x186   :  { %v1145_v7 = vadd.f32 %v1055_v48, %v4563_v38  ;;  %v3436_v21 = vpop.f32.mrb[85].mxu1  ;;  %v2439_v38 = vrot.slane %v4548_v2, 3  ;;  %v2153_v48 = vrot.slane %v2151_v42, 3 }
 0x187   :  { %v1385_v29 = vpop.f32.mrb[84].mxu0  ;;  %v1058_v19 = vpop.f32.mrb[86].mxu1  ;;  %2843 = vperm.xlu1 %3766, %v2724_v12   ;;  %v2160_v21 = vshll.u32 %v4611_v6, 16 }
 0x188   :  { %v4875_v17 = vadd.f32 %v1385_v29, %v1143_v63  ;;  %v3488_v14 = vpop.f32.mrb[85].mxu0  ;;  %v2137_v63 = vsel %vm2093_vm6, %v2127_v35, %v2136_v61  ;;  %v1146_v55 = vadd.f32 %v1058_v19, %v4572_v5  ;;  %v3437_v8 = vpop.f32.mrb[87].mxu1  ;;  %v2145_v35 = vor.u32 %v2144_v10, %v2141_v26 }
 0x189   :  { %v1388_v47 = vpop.f32.mrb[86].mxu0  ;;  %v2440_v36 = vsel %vm2431_vm7, %v2437_v23, %v2439_v38  ;;  %v2150_v14 = vrot.slane %v2148_v51, 2  ;;  %v2441_v23 = vrot.slane %v4569_v30, 3  ;;  %v2162_v42 = vrot.slane %v2160_v21, 3 }
 0x18a   :  { %v4879_v20 = vadd.f32 %v1388_v47, %v1144_v59  ;;  %v3489_v15 = vpop.f32.mrb[87].mxu0  ;;  %3663 = vmatmul.mubr.msk.bf16.gmra.mrb[192].mxu1 %vm234_vm2, %v2137_v63  ;;  %v2146_v16 = vsel %vm2093_vm6, %v2136_v61, %v2145_v35  ;;  %v2157_v61 = vshrl.u32 %v4611_v6, 16 }
 0x18b   :  { %3666 = vmatprep.mubr.msk.bf16.mxu1 %vm3831_vm1, %v3830_v0  ;;  %v2442_v63 = vsel %vm2431_vm7, %v2439_v38, %v2441_v23  ;;  %v2443_v38 = vrot.slane %v4590_v27, 3 }
 0x18c   :  { %3715 = vmatmul.mubr.msk.bf16.gmra.mrb[192].mxu0 %vm234_vm2, %v2438_v44  ;;  %v2159_v51 = vrot.slane %v2157_v61, 2 }
 0x18d   :  { %3718 = vmatprep.mubr.msk.bf16.mxu0 %vm3831_vm1, %v3830_v0  ;;  %v1063_v25 = vpop.f32.mrb[88].mxu1 }
 0x18e   :  { %v1147_v2 = vadd.f32 %v1063_v25, %v4584_v58  ;;  %v3440_v37 = vpop.f32.mrb[89].mxu1 }
 0x18f   :  { %v1393_v1 = vpop.f32.mrb[88].mxu0  ;;  %v1066_v45 = vpop.f32.mrb[90].mxu1 }
 0x190   :  { %v4895_v5 = vadd.f32 %v1393_v1, %v1145_v7  ;;  %v3492_v57 = vpop.f32.mrb[89].mxu0  ;;  %v1148_v47 = vadd.f32 %v1066_v45, %v4593_v31  ;;  %v3441_v44 = vpop.f32.mrb[91].mxu1  ;;  %v2154_v7 = vor.u32 %v2153_v48, %v2150_v14  ;;  %v2444_v45 = vsel %vm2431_vm7, %v2441_v23, %v2443_v38 }
 0x191   :  { %v1396_v59 = vpop.f32.mrb[90].mxu0  ;;  %v2445_v23 = vrot.slane %v4611_v6, 3 }
 0x192   :  { %v4899_v56 = vadd.f32 %v1396_v59, %v1146_v55  ;;  %v3493_v29 = vpop.f32.mrb[91].mxu0  ;;  %3667 = vmatmul.mubr.msk.bf16.gmra.mrb[196].mxu1 %vm234_vm2, %v2146_v16  ;;  %v2155_v1 = vsel %vm2093_vm6, %v2145_v35, %v2154_v7  ;;  %v2163_v59 = vor.u32 %v2162_v42, %v2159_v51  ;;  %v2166_v35 = vshrl.u32 %v4632_v34, 16 }
 0x193   :  { %3670 = vmatprep.mubr.msk.bf16.mxu1 %vm3831_vm1, %v3830_v0 }
 0x194   :  { %3719 = vmatmul.mubr.msk.bf16.gmra.mrb[196].mxu0 %vm234_vm2, %v2440_v36  ;;  %v2169_v36 = vshll.u32 %v4632_v34, 16  ;;  %v2164_v44 = vsel %vm2093_vm6, %v2154_v7, %v2163_v59  ;;  %v2175_v7 = vshrl.u32 %v4653_v11, 16 }
 0x195   :  { %3722 = vmatprep.mubr.msk.bf16.mxu0 %vm3831_vm1, %v3830_v0  ;;  %v1071_v12 = vpop.f32.mrb[92].mxu1 }
 0x196   :  { %v1149_v30 = vadd.f32 %v1071_v12, %v4605_v46  ;;  %v3444_v26 = vpop.f32.mrb[93].mxu1  ;;  %v2171_v61 = vrot.slane %v2169_v36, 3 }
 0x197   :  { %v1401_v58 = vpop.f32.mrb[92].mxu0  ;;  %v1074_v8 = vpop.f32.mrb[94].mxu1 }
 0x198   :  { %v4912_v31 = vadd.f32 %v1401_v58, %v1147_v2  ;;  %v3496_v15 = vpop.f32.mrb[93].mxu0  ;;  %v1150_v57 = vadd.f32 %v1074_v8, %v4614_v60  ;;  %v3445_v25 = vpop.f32.mrb[95].mxu1  ;;  %v2168_v58 = vrot.slane %v2166_v35, 2 }
 0x199   :  { %v1404_v19 = vpop.f32.mrb[94].mxu0  ;;  %v2177_v25 = vrot.slane %v2175_v7, 2 }
 0x19a   :  { %v4916_v10 = vadd.f32 %v1404_v19, %v1148_v47  ;;  %v3497_v55 = vpop.f32.mrb[95].mxu0  ;;  %3671 = vmatmul.mubr.msk.bf16.gmra.mrb[200].mxu1 %vm234_vm2, %v2155_v1  ;;  %v2172_v12 = vor.u32 %v2171_v61, %v2168_v58  ;;  %v2178_v19 = vshll.u32 %v4653_v11, 16 }
 0x19b   :  { %3674 = vmatprep.mubr.msk.bf16.mxu1 %vm3831_vm1, %v3830_v0  ;;  %v2446_v55 = vsel %vm2431_vm7, %v2443_v38, %v2445_v23  ;;  %v2447_v38 = vrot.slane %v4632_v34, 3 }
 0x19c   :  { %3723 = vmatmul.mubr.msk.bf16.gmra.mrb[200].mxu0 %vm234_vm2, %v2442_v63 }
 0x19d   :  { %3726 = vmatprep.mubr.msk.bf16.mxu0 %vm3831_vm1, %v3830_v0  ;;  %v1079_v37 = vpop.f32.mrb[96].mxu1 }
 0x19e   :  { %v1151_v27 = vadd.f32 %v1079_v37, %v4626_v40  ;;  %v3448_v16 = vpop.f32.mrb[97].mxu1  ;;  %v2187_v37 = vshll.u32 %v4674_v32, 16 }
 0x19f   :  { %v1409_v46 = vpop.f32.mrb[96].mxu0  ;;  %v1082_v47 = vpop.f32.mrb[98].mxu1  ;;  %v2448_v16 = vsel %vm2431_vm7, %v2445_v23, %v2447_v38  ;;  %v2449_v23 = vrot.slane %v4653_v11, 3 }
 0x1a0   :  { %v4929_v60 = vadd.f32 %v1409_v46, %v1149_v30  ;;  %v3500_v2 = vpop.f32.mrb[97].mxu0  ;;  %v1152_v21 = vadd.f32 %v1082_v47, %v4635_v39  ;;  %v3449_v15 = vpop.f32.mrb[99].mxu1  ;;  %v2180_v46 = vrot.slane %v2178_v19, 3 }
 0x1a1   :  { %v1412_v29 = vpop.f32.mrb[98].mxu0  ;;  %v2189_v15 = vrot.slane %v2187_v37, 3 }
 0x1a2   :  { %v4933_v14 = vadd.f32 %v1412_v29, %v1150_v57  ;;  %v3501_v48 = vpop.f32.mrb[99].mxu0  ;;  %3675 = vmatmul.mubr.msk.bf16.gmra.mrb[204].mxu1 %vm234_vm2, %v2164_v44  ;;  %v2173_v57 = vsel %vm2093_vm6, %v2163_v59, %v2172_v12  ;;  %v2181_v2 = vor.u32 %v2180_v46, %v2177_v25  ;;  %v2184_v59 = vshrl.u32 %v4674_v32, 16 }
 0x1a3   :  { %3678 = vmatprep.mubr.msk.bf16.mxu1 %vm3831_vm1, %v3830_v0 }
 0x1a4   :  { %3727 = vmatmul.mubr.msk.bf16.gmra.mrb[204].mxu0 %vm234_vm2, %v2444_v45  ;;  %v2182_v61 = vsel %vm2093_vm6, %v2172_v12, %v2181_v2  ;;  %v2193_v12 = vshrl.u32 %v4701_v28, 16 }
 0x1a5   :  { %3730 = vmatprep.mubr.msk.bf16.mxu0 %vm3831_vm1, %v3830_v0  ;;  %v1087_v30 = vpop.f32.mrb[100].mxu1 }
 0x1a6   :  { %v1153_v6 = vadd.f32 %v1087_v30, %v4647_v33  ;;  %v3452_v8 = vpop.f32.mrb[101].mxu1 }
 0x1a7   :  { %v1417_v40 = vpop.f32.mrb[100].mxu0  ;;  %v1090_v42 = vpop.f32.mrb[102].mxu1 }
 0x1a8   :  { %v4946_v39 = vadd.f32 %v1417_v40, %v1151_v27  ;;  %v3504_v63 = vpop.f32.mrb[101].mxu0  ;;  %v1154_v35 = vadd.f32 %v1090_v42, %v4656_v3  ;;  %v3453_v36 = vpop.f32.mrb[103].mxu1 }
 0x1a9   :  { %v1420_v26 = vpop.f32.mrb[102].mxu0  ;;  %v2196_v63 = vshll.u32 %v4701_v28, 16  ;;  %v2195_v36 = vrot.slane %v2193_v12, 2 }
 0x1aa   :  { %v4950_v1 = vadd.f32 %v1420_v26, %v1152_v21  ;;  %v3505_v51 = vpop.f32.mrb[103].mxu0  ;;  %3679 = vmatmul.mubr.msk.bf16.gmra.mrb[208].mxu1 %vm234_vm2, %v2173_v57  ;;  %v2186_v21 = vrot.slane %v2184_v59, 2 }
 0x1ab   :  { %3682 = vmatprep.mubr.msk.bf16.mxu1 %vm3831_vm1, %v3830_v0 }
 0x1ac   :  { %3731 = vmatmul.mubr.msk.bf16.gmra.mrb[208].mxu0 %vm234_vm2, %v2446_v55  ;;  %v2190_v19 = vor.u32 %v2189_v15, %v2186_v21 }
 0x1ad   :  { %3734 = vmatprep.mubr.msk.bf16.mxu0 %vm3831_vm1, %v3830_v0  ;;  %v1095_v45 = vpop.f32.mrb[104].mxu1 }
 0x1ae   :  { %v1155_v34 = vadd.f32 %v1095_v45, %v4668_v54  ;;  %v3456_v48 = vpop.f32.mrb[105].mxu1 }
 0x1af   :  { %v1425_v33 = vpop.f32.mrb[104].mxu0  ;;  %v1098_v58 = vpop.f32.mrb[106].mxu1 }
 0x1b0   :  { %v4963_v3 = vadd.f32 %v1425_v33, %v1153_v6  ;;  %v3508_v29 = vpop.f32.mrb[105].mxu0  ;;  %v1156_v40 = vadd.f32 %v1098_v58, %v4677_v52  ;;  %v3457_v7 = vpop.f32.mrb[107].mxu1  ;;  %v2084_v52 = vld [vmem:[%s5283_s0 + $0x6c] sm:$0x7]  ;;  %v2450_v6 = vsel %vm2431_vm7, %v2447_v38, %v2449_v23  ;;  %v2198_v33 = vrot.slane %v2196_v63, 3 }
 0x1b1   :  { %v1428_v27 = vpop.f32.mrb[106].mxu0  ;;  %v4990_v25 = vcombine.low %v4725_v24, %v2084_v52 }
 0x1b2   :  { %v4967_v47 = vadd.f32 %v1428_v27, %v1154_v35  ;;  %v3509_v44 = vpop.f32.mrb[107].mxu0  ;;  %3683 = vmatmul.mubr.msk.bf16.gmra.mrb[212].mxu1 %vm234_vm2, %v2182_v61  ;;  %v2191_v35 = vsel %vm2093_vm6, %v2181_v2, %v2190_v19  ;;  %v2199_v24 = vor.u32 %v2198_v33, %v2195_v36 }
 0x1b3   :  { %3686 = vmatprep.mubr.msk.bf16.mxu1 %vm3831_vm1, %v3830_v0  ;;  %v2202_v2 = vshrl.u32 %v4990_v25, 16  ;;  %v2205_v29 = vshll.u32 %v4990_v25, 16 }
 0x1b4   :  { %3735 = vmatmul.mubr.msk.bf16.gmra.mrb[212].mxu0 %vm234_vm2, %v2448_v16  ;;  %v2200_v21 = vsel %vm2093_vm6, %v2190_v19, %v2199_v24 }
 0x1b5   :  { %3738 = vmatprep.mubr.msk.bf16.mxu0 %vm3831_vm1, %v3830_v0  ;;  %v1103_v55 = vpop.f32.mrb[108].mxu1  ;;  %v2204_v15 = vrot.slane %v2202_v2, 2 }
 0x1b6   :  { %v1157_v8 = vadd.f32 %v1103_v55, %v4695_v4  ;;  %v3460_v51 = vpop.f32.mrb[109].mxu1  ;;  %v2451_v4 = vrot.slane %v4674_v32, 3 }
 0x1b7   :  { %v1433_v54 = vpop.f32.mrb[108].mxu0  ;;  %v1106_v46 = vpop.f32.mrb[110].mxu1 }
 0x1b8   :  { %v4983_v30 = vadd.f32 %v1433_v54, %v1155_v34  ;;  %v3512_v26 = vpop.f32.mrb[109].mxu0  ;;  %v1158_v59 = vadd.f32 %v1106_v46, %v4704_v41  ;;  %v3461_v37 = vpop.f32.mrb[111].mxu1  ;;  %v2452_v34 = vsel %vm2431_vm7, %v2449_v23, %v2451_v4  ;;  %v2453_v23 = vrot.slane %v4701_v28, 3 }
 0x1b9   :  { %v1436_v11 = vpop.f32.mrb[110].mxu0 }
 0x1ba   :  { %v4987_v42 = vadd.f32 %v1436_v11, %v1156_v40  ;;  %v3513_v57 = vpop.f32.mrb[111].mxu0  ;;  %3687 = vmatmul.mubr.msk.bf16.gmra.mrb[216].mxu1 %vm234_vm2, %v2191_v35  ;;  %v2207_v40 = vrot.slane %v2205_v29, 3  ;;  %v2454_v26 = vsel %vm2431_vm7, %v2451_v4, %v2453_v23  ;;  %v2455_v35 = vrot.slane %v4990_v25, 3 }
 0x1bb   :  { %3690 = vmatprep.mubr.msk.bf16.mxu1 %vm3831_vm1, %v3830_v0 }
 0x1bc   :  { %3739 = vmatmul.mubr.msk.bf16.gmra.mrb[216].mxu0 %vm234_vm2, %v2450_v6  ;;  %v2208_v12 = vor.u32 %v2207_v40, %v2204_v15 }
 0x1bd   :  { %3742 = vmatprep.mubr.msk.bf16.mxu0 %vm3831_vm1, %v3830_v0  ;;  %v1111_v27 = vpop.f32.mrb[112].mxu1 }
 0x1be   :  { %v1159_v32 = vadd.f32 %v1111_v27, %v4733_v49  ;;  %v3464_v48 = vpop.f32.mrb[113].mxu1  ;;  %v2209_v51 = vsel %vm2093_vm6, %v2199_v24, %v2208_v12 }
 0x1bf   :  { %v1441_v38 = vpop.f32.mrb[112].mxu0  ;;  %v1114_v61 = vpop.f32.mrb[114].mxu1 }
 0x1c0   :  { %v5003_v41 = vadd.f32 %v1441_v38, %v1157_v8  ;;  %v3516_v45 = vpop.f32.mrb[113].mxu0  ;;  %v1160_v7 = vadd.f32 %v1114_v61, %v4738_v18  ;;  %v3465_v54 = vpop.f32.mrb[115].mxu1 }
 0x1c1   :  { %v1444_v16 = vpop.f32.mrb[114].mxu0 }
 0x1c2   :  { %v5007_v44 = vadd.f32 %v1444_v16, %v1158_v59  ;;  %v3517_v58 = vpop.f32.mrb[115].mxu0  ;;  %3691 = vmatmul.mubr.msk.bf16.gmra.mrb[220].mxu1 %vm234_vm2, %v2200_v21 }
 0x1c3   :  { %3694 = vmatprep.mubr.msk.bf16.mxu1 %vm3831_vm1, %v3830_v0 }
 0x1c4   :  { %3743 = vmatmul.mubr.msk.bf16.gmra.mrb[220].mxu0 %vm234_vm2, %v2452_v34 }
 0x1c5   :  { %3746 = vmatprep.mubr.msk.bf16.mxu0 %vm3831_vm1, %v3830_v0  ;;  %v1119_v52 = vpop.f32.mrb[116].mxu1 }
 0x1c6   :  { %v1161_v55 = vadd.f32 %v1119_v52, %v4761_v43  ;;  %v3468_v11 = vpop.f32.mrb[117].mxu1 }
 0x1c7   :  { %v1449_v49 = vpop.f32.mrb[116].mxu0  ;;  %v1122_v8 = vpop.f32.mrb[118].mxu1 }
 0x1c8   :  { %v5018_v19 = vadd.f32 %v1449_v49, %v1159_v32  ;;  %v3520_v63 = vpop.f32.mrb[117].mxu0  ;;  %v1162_v57 = vadd.f32 %v1122_v8, %v4765_v13  ;;  %v3469_v46 = vpop.f32.mrb[119].mxu1  ;;  %v2456_v13 = vsel %vm2431_vm7, %v2453_v23, %v2455_v35 }
 0x1c9   :  { %v1452_v18 = vpop.f32.mrb[118].mxu0 }
 0x1ca   :  { %v5022_v6 = vadd.f32 %v1452_v18, %v1160_v7  ;;  %v3521_v28 = vpop.f32.mrb[119].mxu0  ;;  %3695 = vmatmul.mubr.msk.bf16.gmra.mrb[224].mxu1 %vm234_vm2, %v2209_v51 }
 0x1cb   :  { %3698 = vmatprep.mubr.msk.bf16.mxu1 %vm3831_vm1, %v3830_v0 }
 0x1cc   :  { %3747 = vmatmul.mubr.msk.bf16.gmra.mrb[224].mxu0 %vm234_vm2, %v2454_v26 }
 0x1cd   :  { %3750 = vmatprep.mubr.msk.bf16.mxu0 %vm3831_vm1, %v3830_v0  ;;  %v1127_v59 = vpop.f32.mrb[120].mxu1 }
 0x1ce   :  { %v1163_v4 = vadd.f32 %v1127_v59, %v4791_v9  ;;  %v3472_v38 = vpop.f32.mrb[121].mxu1 }
 0x1cf   :  { %v1457_v43 = vpop.f32.mrb[120].mxu0  ;;  %v1130_v25 = vpop.f32.mrb[122].mxu1 }
 0x1d0   :  { %v5033_v36 = vadd.f32 %v1457_v43, %v1161_v55  ;;  %v3524_v33 = vpop.f32.mrb[121].mxu0  ;;  %v1164_v29 = vadd.f32 %v1130_v25, %v4795_v22  ;;  %v3473_v45 = vpop.f32.mrb[123].mxu1 }
 0x1d1   :  { %v1460_v37 = vpop.f32.mrb[122].mxu0 }
 0x1d2   :  { %v5037_v24 = vadd.f32 %v1460_v37, %v1162_v57  ;;  %v3525_v2 = vpop.f32.mrb[123].mxu0  ;;  %3699 = vmatmul.mubr.msk.bf16.gmra.mrb[228].mxu1 %vm234_vm2, %v2208_v12 }
 0x1d4   :  { %3751 = vmatmul.mubr.msk.bf16.gmra.mrb[228].mxu0 %vm234_vm2, %v2456_v13 }
 0x1d5   :  { %3754 = vmatprep.mubr.msk.bf16.mxu0 %vm3831_vm1, %v3830_v0  ;;  %v1135_v9 = vpop.f32.mrb[124].mxu1 }
 0x1d6   :  { %v1165_v48 = vadd.f32 %v1135_v9, %v4819_v53  ;;  %v3476_v22 = vpop.f32.mrb[125].mxu1 }
 0x1d7   :  { %v1465_v27 = vpop.f32.mrb[124].mxu0  ;;  %v1138_v21 = vpop.f32.mrb[126].mxu1 }
 0x1d8   :  { %v5044_v16 = vadd.f32 %v1465_v27, %v1163_v4  ;;  %v3528_v34 = vpop.f32.mrb[125].mxu0  ;;  %v3477_v15 = vpop.f32.mrb[127].mxu1 }
 0x1d9   :  { %v1468_v32 = vpop.f32.mrb[126].mxu0 }
 0x1da   :  { %v5047_v58 = vadd.f32 %v1468_v32, %v1164_v29  ;;  %v3529_v61 = vpop.f32.mrb[127].mxu0 }
 0x1dc   :  { %3755 = vmatmul.mubr.msk.bf16.gmra.mrb[232].mxu0 %vm234_vm2, %v2455_v35 }
 0x1dd   :  { %v1624_v54 = vpop.f32.mrb[128].mxu1 }
 0x1de   :  { %v1726_v49 = vadd.f32 %v1624_v54, %v4846_v50  ;;  %v3540_v12 = vpop.f32.mrb[129].mxu1 }
 0x1df   :  { %v1473_v40 = vpop.f32.mrb[128].mxu0  ;;  %v1627_v52 = vpop.f32.mrb[130].mxu1 }
 0x1e0   :  { %v5050_v0 = vadd.f32 %v1473_v40, %v1165_v48  ;;  %v3532_v7 = vpop.f32.mrb[129].mxu0  ;;  %v1727_v53 = vadd.f32 %v1627_v52, %v4850_v62  ;;  %v3541_v18 = vpop.f32.mrb[131].mxu1 }
 0x1e1   :  { %v1476_v23 = vpop.f32.mrb[130].mxu0 }
 0x1e2   :  { %v3533_v63 = vpop.f32.mrb[131].mxu0 }
 0x1e5   :  { %v1632_v28 = vpop.f32.mrb[132].mxu1 }
 0x1e6   :  { %v1728_v51 = vadd.f32 %v1632_v28, %v4875_v17  ;;  %v3544_v57 = vpop.f32.mrb[133].mxu1 }
 0x1e7   :  { %v1957_v26 = vpop.f32.mrb[132].mxu0  ;;  %v1635_v43 = vpop.f32.mrb[134].mxu1 }
 0x1e8   :  { %v5054_v55 = vadd.f32 %v1957_v26, %v1726_v49  ;;  %v3596_v11 = vpop.f32.mrb[133].mxu0  ;;  %v1729_v50 = vadd.f32 %v1635_v43, %v4879_v20  ;;  %v3545_v33 = vpop.f32.mrb[135].mxu1 }
 0x1e9   :  { %v1960_v8 = vpop.f32.mrb[134].mxu0 }
 0x1ea   :  { %v5057_v46 = vadd.f32 %v1960_v8, %v1727_v53  ;;  %v3597_v35 = vpop.f32.mrb[135].mxu0 }
 0x1ed   :  { %v1640_v13 = vpop.f32.mrb[136].mxu1 }
 0x1ee   :  { %v1730_v38 = vadd.f32 %v1640_v13, %v4895_v5  ;;  %v3548_v2 = vpop.f32.mrb[137].mxu1 }
 0x1ef   :  { %v1965_v59 = vpop.f32.mrb[136].mxu0  ;;  %v1643_v29 = vpop.f32.mrb[138].mxu1 }
 0x1f0   :  { %v5060_v37 = vadd.f32 %v1965_v59, %v1728_v51  ;;  %v3600_v62 = vpop.f32.mrb[137].mxu0  ;;  %v1731_v45 = vadd.f32 %v1643_v29, %v4899_v56  ;;  %v3549_v27 = vpop.f32.mrb[139].mxu1 }
 0x1f1   :  { %v1968_v4 = vpop.f32.mrb[138].mxu0 }
 0x1f2   :  { %v5063_v25 = vadd.f32 %v1968_v4, %v1729_v50  ;;  %v3601_v17 = vpop.f32.mrb[139].mxu0 }
 0x1f5   :  { %v1648_v32 = vpop.f32.mrb[140].mxu1 }
 0x1f6   :  { %v1732_v61 = vadd.f32 %v1648_v32, %v4912_v31  ;;  %v3552_v22 = vpop.f32.mrb[141].mxu1 }
 0x1f7   :  { %v1973_v34 = vpop.f32.mrb[140].mxu0  ;;  %v1651_v15 = vpop.f32.mrb[142].mxu1 }
 0x1f8   :  { %v5066_v9 = vadd.f32 %v1973_v34, %v1730_v38  ;;  %v3604_v20 = vpop.f32.mrb[141].mxu0  ;;  %v1733_v40 = vadd.f32 %v1651_v15, %v4916_v10  ;;  %v3553_v7 = vpop.f32.mrb[143].mxu1 }
 0x1f9   :  { %v1976_v48 = vpop.f32.mrb[142].mxu0 }
 0x1fa   :  { %v5069_v21 = vadd.f32 %v1976_v48, %v1731_v45  ;;  %v3605_v5 = vpop.f32.mrb[143].mxu0 }
 0x1fd   :  { %v1656_v49 = vpop.f32.mrb[144].mxu1 }
 0x1fe   :  { %v1734_v63 = vadd.f32 %v1656_v49, %v4929_v60  ;;  %v3556_v52 = vpop.f32.mrb[145].mxu1 }
 0x1ff   :  { %v1981_v54 = vpop.f32.mrb[144].mxu0  ;;  %v1659_v18 = vpop.f32.mrb[146].mxu1 }
 0x200   :  { %v5072_v23 = vadd.f32 %v1981_v54, %v1732_v61  ;;  %v3608_v56 = vpop.f32.mrb[145].mxu0  ;;  %v1735_v26 = vadd.f32 %v1659_v18, %v4933_v14  ;;  %v3557_v11 = vpop.f32.mrb[147].mxu1 }
 0x201   :  { %v1984_v12 = vpop.f32.mrb[146].mxu0 }
 0x202   :  { %v5075_v53 = vadd.f32 %v1984_v12, %v1733_v40  ;;  %v3609_v31 = vpop.f32.mrb[147].mxu0 }
 0x205   :  { %v1664_v51 = vpop.f32.mrb[148].mxu1 }
 0x206   :  { %v1736_v35 = vadd.f32 %v1664_v51, %v4946_v39  ;;  %v3560_v43 = vpop.f32.mrb[149].mxu1 }
 0x207   :  { %v1989_v28 = vpop.f32.mrb[148].mxu0  ;;  %v1667_v33 = vpop.f32.mrb[150].mxu1 }
 0x208   :  { %v5078_v8 = vadd.f32 %v1989_v28, %v1734_v63  ;;  %v3612_v10 = vpop.f32.mrb[149].mxu0  ;;  %v1737_v59 = vadd.f32 %v1667_v33, %v4950_v1  ;;  %v3561_v62 = vpop.f32.mrb[151].mxu1 }
 0x209   :  { %v1992_v57 = vpop.f32.mrb[150].mxu0 }
 0x20a   :  { %v5081_v50 = vadd.f32 %v1992_v57, %v1735_v26  ;;  %v3613_v60 = vpop.f32.mrb[151].mxu0 }
 0x20d   :  { %v1672_v38 = vpop.f32.mrb[152].mxu1 }
 0x20e   :  { %v1738_v17 = vadd.f32 %v1672_v38, %v4963_v3  ;;  %v3564_v29 = vpop.f32.mrb[153].mxu1 }
 0x20f   :  { %v1997_v13 = vpop.f32.mrb[152].mxu0  ;;  %v1675_v27 = vpop.f32.mrb[154].mxu1 }
 0x210   :  { %v5084_v4 = vadd.f32 %v1997_v13, %v1736_v35  ;;  %v3616_v14 = vpop.f32.mrb[153].mxu0  ;;  %v1739_v34 = vadd.f32 %v1675_v27, %v4967_v47  ;;  %v3565_v20 = vpop.f32.mrb[155].mxu1 }
 0x211   :  { %v2000_v2 = vpop.f32.mrb[154].mxu0 }
 0x212   :  { %v5087_v45 = vadd.f32 %v2000_v2, %v1737_v59  ;;  %v3617_v39 = vpop.f32.mrb[155].mxu0 }
 0x215   :  { %v1680_v61 = vpop.f32.mrb[156].mxu1 }
 0x216   :  { %v1740_v5 = vadd.f32 %v1680_v61, %v4983_v30  ;;  %v3568_v15 = vpop.f32.mrb[157].mxu1 }
 0x217   :  { %v2005_v32 = vpop.f32.mrb[156].mxu0  ;;  %v1683_v7 = vpop.f32.mrb[158].mxu1 }
 0x218   :  { %v5090_v48 = vadd.f32 %v2005_v32, %v1738_v17  ;;  %v3620_v1 = vpop.f32.mrb[157].mxu0  ;;  %v1741_v54 = vadd.f32 %v1683_v7, %v4987_v42  ;;  %v3569_v56 = vpop.f32.mrb[159].mxu1 }
 0x219   :  { %v2008_v22 = vpop.f32.mrb[158].mxu0 }
 0x21a   :  { %v5093_v40 = vadd.f32 %v2008_v22, %v1739_v34  ;;  %v3621_v3 = vpop.f32.mrb[159].mxu0 }
 0x21d   :  { %v1688_v63 = vpop.f32.mrb[160].mxu1 }
 0x21e   :  { %v1742_v31 = vadd.f32 %v1688_v63, %v5003_v41  ;;  %v3572_v18 = vpop.f32.mrb[161].mxu1 }
 0x21f   :  { %v2013_v49 = vpop.f32.mrb[160].mxu0  ;;  %v1691_v11 = vpop.f32.mrb[162].mxu1 }
 0x220   :  { %v5096_v12 = vadd.f32 %v2013_v49, %v1740_v5  ;;  %v3624_v47 = vpop.f32.mrb[161].mxu0  ;;  %v1743_v28 = vadd.f32 %v1691_v11, %v5007_v44  ;;  %v3573_v10 = vpop.f32.mrb[163].mxu1 }
 0x221   :  { %v2016_v52 = vpop.f32.mrb[162].mxu0 }
 0x222   :  { %v5099_v26 = vadd.f32 %v2016_v52, %v1741_v54  ;;  %v3625_v30 = vpop.f32.mrb[163].mxu0 }
 0x225   :  { %v1696_v35 = vpop.f32.mrb[164].mxu1 }
 0x226   :  { %v1744_v60 = vadd.f32 %v1696_v35, %v5018_v19  ;;  %v3576_v33 = vpop.f32.mrb[165].mxu1 }
 0x227   :  { %v2021_v51 = vpop.f32.mrb[164].mxu0  ;;  %v1699_v62 = vpop.f32.mrb[166].mxu1 }
 0x228   :  { %v5102_v57 = vadd.f32 %v2021_v51, %v1742_v31  ;;  %v3628_v42 = vpop.f32.mrb[165].mxu0  ;;  %v1745_v13 = vadd.f32 %v1699_v62, %v5022_v6  ;;  %v3577_v14 = vpop.f32.mrb[167].mxu1 }
 0x229   :  { %v2024_v43 = vpop.f32.mrb[166].mxu0 }
 0x22a   :  { %v5105_v59 = vadd.f32 %v2024_v43, %v1743_v28  ;;  %v3629_v41 = vpop.f32.mrb[167].mxu0 }
 0x22d   :  { %v1704_v17 = vpop.f32.mrb[168].mxu1 }
 0x22e   :  { %v1746_v39 = vadd.f32 %v1704_v17, %v5033_v36  ;;  %v3580_v27 = vpop.f32.mrb[169].mxu1  ;;  %v5132_v17 = vld [vmem:[%s5285_s2] ss:$0 sm:$0xff] }
 0x22f   :  { %v2029_v38 = vpop.f32.mrb[168].mxu0  ;;  %v1707_v20 = vpop.f32.mrb[170].mxu1 }
 0x230   :  { %v5108_v2 = vadd.f32 %v2029_v38, %v1744_v60  ;;  %v3632_v44 = vpop.f32.mrb[169].mxu0  ;;  %v1747_v32 = vadd.f32 %v1707_v20, %v5037_v24  ;;  %v3581_v1 = vpop.f32.mrb[171].mxu1 }
 0x231   :  { %v2032_v29 = vpop.f32.mrb[170].mxu0  ;;  %v2729_v38 = vpop.permute.xlu0 %2728 }
 0x232   :  { %v5111_v34 = vadd.f32 %v2032_v29, %v1745_v13  ;;  %v3633_v19 = vpop.f32.mrb[171].mxu0 }
 0x235   :  { %v1712_v5 = vpop.f32.mrb[172].mxu1 }
 0x236   :  { %v1748_v3 = vadd.f32 %v1712_v5, %v5044_v16  ;;  %v3584_v7 = vpop.f32.mrb[173].mxu1 }
 0x237   :  { %v2037_v61 = vpop.f32.mrb[172].mxu0  ;;  %v1715_v56 = vpop.f32.mrb[174].mxu1 }
 0x238   :  { %v5114_v22 = vadd.f32 %v2037_v61, %v1746_v39  ;;  %v3636_v6 = vpop.f32.mrb[173].mxu0  ;;  %v1749_v49 = vadd.f32 %v1715_v56, %v5047_v58  ;;  %v3585_v47 = vpop.f32.mrb[175].mxu1 }
 0x239   :  { %v2040_v15 = vpop.f32.mrb[174].mxu0  ;;  %v2734_v6 = vpop.permute.xlu0 %2733 }
 0x23a   :  { %v5117_v54 = vadd.f32 %v2040_v15, %v1747_v32  ;;  %v3637_v36 = vpop.f32.mrb[175].mxu0 }
 0x23b   :  { %v2739_v36 = vpop.permute.xlu1 %2738 }
 0x23d   :  { %v1720_v31 = vpop.f32.mrb[176].mxu1 }
 0x23e   :  { %v1750_v30 = vadd.f32 %v1720_v31, %v5050_v0  ;;  %v3588_v16 = vpop.f32.mrb[177].mxu1 }
 0x23f   :  { %v2045_v63 = vpop.f32.mrb[176].mxu0  ;;  %v1723_v10 = vpop.f32.mrb[178].mxu1 }
 0x240   :  { %v5120_v52 = vadd.f32 %v2045_v63, %v1748_v3  ;;  %v3640_v24 = vpop.f32.mrb[177].mxu0  ;;  %v3589_v51 = vpop.f32.mrb[179].mxu1 }
 0x241   :  { %v2048_v18 = vpop.f32.mrb[178].mxu0  ;;  %v2744_v10 = vpop.permute.xlu1 %2743 }
 0x242   :  { %v5123_v11 = vadd.f32 %v2048_v18, %v1749_v49  ;;  %v3641_v28 = vpop.f32.mrb[179].mxu0 }
 0x245   :  { %v2295_v58 = vpop.f32.mrb[180].mxu1 }
 0x246   :  { %v2397_v33 = vadd.f32 %v2295_v58, %v5054_v55  ;;  %v3652_v41 = vpop.f32.mrb[181].mxu1 }
 0x247   :  { %v2053_v42 = vpop.f32.mrb[180].mxu0  ;;  %v2298_v13 = vpop.f32.mrb[182].mxu1 }
 0x248   :  { %v5125_v35 = vadd.f32 %v2053_v42, %v1750_v30  ;;  %v3644_v43 = vpop.f32.mrb[181].mxu0  ;;  %v2398_v14 = vadd.f32 %v2298_v13, %v5057_v46  ;;  %v3653_v0 = vpop.f32.mrb[183].mxu1 }
 0x249   :  { %v2056_v60 = vpop.f32.mrb[182].mxu0 }
 0x24a   :  { %v3645_v62 = vpop.f32.mrb[183].mxu0 }
 0x24d   :  { %v2303_v27 = vpop.f32.mrb[184].mxu1 }
 0x24e   :  { %v2399_v20 = vadd.f32 %v2303_v27, %v5060_v37  ;;  %v3656_v55 = vpop.f32.mrb[185].mxu1 }
 0x24f   :  { %v2542_v44 = vpop.f32.mrb[184].mxu0  ;;  %v2306_v46 = vpop.f32.mrb[186].mxu1 }
 0x250   :  { %v2644_v29 = vadd.f32 %v2542_v44, %v2397_v33  ;;  %v3708_v39 = vpop.f32.mrb[185].mxu0  ;;  %v2400_v15 = vadd.f32 %v2306_v46, %v5063_v25  ;;  %v3657_v7 = vpop.f32.mrb[187].mxu1 }
 0x251   :  { %v2545_v19 = vpop.f32.mrb[186].mxu0 }
 0x252   :  { %v2676_v32 = vadd.f32 %v5132_v17, %v2644_v29  ;;  %v2645_v1 = vadd.f32 %v2545_v19, %v2398_v14  ;;  %v3709_v61 = vpop.f32.mrb[187].mxu0  ;;  %v2749_v29 = vpop.permute.xlu0 %2748 }
 0x254   :  { %v2851_v5 = vmul.f32 %v2729_v38, %v2676_v32  ;;  %v2677_v3 = vadd.f32 %v5132_v17, %v2645_v1  ;;  %v2754_v32 = vpop.permute.xlu1 %2753 }
 0x255   :  { %v2311_v63 = vpop.f32.mrb[188].mxu1 }
 0x256   :  { %2877 = vst.msk [vmem:[%s5286_s4] sm:$0xff] %vm2876_vm8, %v2851_v5  ;;  %v2852_v37 = vmul.f32 %v2734_v6, %v2677_v3  ;;  %v2401_v24 = vadd.f32 %v2311_v63, %v5066_v9  ;;  %v3660_v31 = vpop.f32.mrb[189].mxu1 }
 0x257   :  { %v2550_v56 = vpop.f32.mrb[188].mxu0  ;;  %v2314_v16 = vpop.f32.mrb[190].mxu1 }
 0x258   :  { %2878 = vst.msk [vmem:[%s5286_s4 + $0x8] sm:$0xff] %vm2876_vm8, %v2852_v37  ;;  %v2646_v49 = vadd.f32 %v2550_v56, %v2399_v20  ;;  %v3712_v47 = vpop.f32.mrb[189].mxu0  ;;  %v2402_v42 = vadd.f32 %v2314_v16, %v5069_v21  ;;  %v3661_v58 = vpop.f32.mrb[191].mxu1 }
 0x259   :  { %v2553_v25 = vpop.f32.mrb[190].mxu0  ;;  %v2759_v37 = vpop.permute.xlu0 %2758 }
 0x25a   :  { %v2678_v18 = vadd.f32 %v5132_v17, %v2646_v49  ;;  %v2647_v30 = vadd.f32 %v2553_v25, %v2400_v15  ;;  %v3713_v28 = vpop.f32.mrb[191].mxu0 }
 0x25c   :  { %v2853_v51 = vmul.f32 %v2739_v36, %v2678_v18  ;;  %v2679_v43 = vadd.f32 %v5132_v17, %v2647_v30 }
 0x25d   :  { %v2319_v62 = vpop.f32.mrb[192].mxu1  ;;  %v2769_v58 = vpop.permute.xlu0 %2768 }
 0x25e   :  { %2879 = vst.msk [vmem:[%s5286_s4 + $0x10] sm:$0xff] %vm2876_vm8, %v2853_v51  ;;  %v2854_v60 = vmul.f32 %v2744_v10, %v2679_v43  ;;  %v2403_v21 = vadd.f32 %v2319_v62, %v5072_v23  ;;  %v3664_v0 = vpop.f32.mrb[193].mxu1 }
 0x25f   :  { %v2558_v9 = vpop.f32.mrb[192].mxu0  ;;  %v2322_v39 = vpop.f32.mrb[194].mxu1 }
 0x260   :  { %2880 = vst.msk [vmem:[%s5286_s4 + $0x18] sm:$0xff] %vm2876_vm8, %v2854_v60  ;;  %v2648_v33 = vadd.f32 %v2558_v9, %v2401_v24  ;;  %v3716_v41 = vpop.f32.mrb[193].mxu0  ;;  %v2404_v19 = vadd.f32 %v2322_v39, %v5075_v53  ;;  %v3665_v55 = vpop.f32.mrb[195].mxu1 }
 0x261   :  { %v2561_v13 = vpop.f32.mrb[194].mxu0  ;;  %v2764_v24 = vpop.permute.xlu1 %2763 }
 0x262   :  { %v2680_v14 = vadd.f32 %v5132_v17, %v2648_v33  ;;  %v2649_v38 = vadd.f32 %v2561_v13, %v2402_v42  ;;  %v3717_v44 = vpop.f32.mrb[195].mxu0 }
 0x264   :  { %v2855_v27 = vmul.f32 %v2749_v29, %v2680_v14  ;;  %v2681_v20 = vadd.f32 %v5132_v17, %v2649_v38 }
 0x265   :  { %v2327_v6 = vpop.f32.mrb[196].mxu1  ;;  %v2774_v13 = vpop.permute.xlu1 %2773 }
 0x266   :  { %2881 = vst.msk [vmem:[%s5286_s4 + $0x20] sm:$0xff] %vm2876_vm8, %v2855_v27  ;;  %v2856_v23 = vmul.f32 %v2754_v32, %v2681_v20  ;;  %v2405_v5 = vadd.f32 %v2327_v6, %v5078_v8  ;;  %v3668_v3 = vpop.f32.mrb[197].mxu1  ;;  %v2779_v20 = vpop.permute.xlu0 %2778 }
 0x267   :  { %v2566_v1 = vpop.f32.mrb[196].mxu0  ;;  %v2330_v56 = vpop.f32.mrb[198].mxu1 }
 0x268   :  { %2882 = vst.msk [vmem:[%s5286_s4 + $0x28] sm:$0xff] %vm2876_vm8, %v2856_v23  ;;  %v2650_v61 = vadd.f32 %v2566_v1, %v2403_v21  ;;  %v3720_v46 = vpop.f32.mrb[197].mxu0  ;;  %v2406_v47 = vadd.f32 %v2330_v56, %v5081_v50  ;;  %v3669_v25 = vpop.f32.mrb[199].mxu1 }
 0x269   :  { %v2569_v53 = vpop.f32.mrb[198].mxu0  ;;  %v2784_v46 = vpop.permute.xlu1 %2783 }
 0x26a   :  { %v2682_v15 = vadd.f32 %v5132_v17, %v2650_v61  ;;  %v2651_v7 = vadd.f32 %v2569_v53, %v2404_v19  ;;  %v3721_v36 = vpop.f32.mrb[199].mxu0 }
 0x26c   :  { %v2857_v49 = vmul.f32 %v2759_v37, %v2682_v15  ;;  %v2683_v63 = vadd.f32 %v5132_v17, %v2651_v7 }
 0x26d   :  { %v2335_v28 = vpop.f32.mrb[200].mxu1 }
 0x26e   :  { %2883 = vst.msk [vmem:[%s5286_s4 + $0x30] sm:$0xff] %vm2876_vm8, %v2857_v49  ;;  %v2858_v8 = vmul.f32 %v2764_v24, %v2683_v63  ;;  %v2407_v16 = vadd.f32 %v2335_v28, %v5084_v4  ;;  %v3672_v51 = vpop.f32.mrb[201].mxu1  ;;  %v2789_v49 = vpop.permute.xlu0 %2788 }
 0x26f   :  { %v2574_v31 = vpop.f32.mrb[200].mxu0  ;;  %v2338_v60 = vpop.f32.mrb[202].mxu1 }
 0x270   :  { %2884 = vst.msk [vmem:[%s5286_s4 + $0x38] sm:$0xff] %vm2876_vm8, %v2858_v8  ;;  %v2652_v18 = vadd.f32 %v2574_v31, %v2405_v5  ;;  %v3724_v30 = vpop.f32.mrb[201].mxu0  ;;  %v2408_v33 = vadd.f32 %v2338_v60, %v5087_v45  ;;  %v3673_v62 = vpop.f32.mrb[203].mxu1 }
 0x271   :  { %v2577_v50 = vpop.f32.mrb[202].mxu0  ;;  %v2794_v31 = vpop.permute.xlu1 %2793 }
 0x272   :  { %v2684_v10 = vadd.f32 %v5132_v17, %v2652_v18  ;;  %v2653_v42 = vadd.f32 %v2577_v50, %v2406_v47  ;;  %v3725_v43 = vpop.f32.mrb[203].mxu0 }
 0x274   :  { %v2859_v9 = vmul.f32 %v2769_v58, %v2684_v10  ;;  %v2685_v41 = vadd.f32 %v5132_v17, %v2653_v42  ;;  %v2799_v58 = vpop.permute.xlu0 %2798 }
 0x275   :  { %v2343_v38 = vpop.f32.mrb[204].mxu1 }
 0x276   :  { %2885 = vst.msk [vmem:[%s5286_s4 + $0x40] sm:$0xff] %vm2876_vm8, %v2859_v9  ;;  %v2860_v4 = vmul.f32 %v2774_v13, %v2685_v41  ;;  %v2409_v44 = vadd.f32 %v2343_v38, %v5090_v48  ;;  %v3676_v39 = vpop.f32.mrb[205].mxu1  ;;  %v2804_v13 = vpop.permute.xlu1 %2803 }
 0x277   :  { %v2582_v21 = vpop.f32.mrb[204].mxu0  ;;  %v2346_v55 = vpop.f32.mrb[206].mxu1 }
 0x278   :  { %2886 = vst.msk [vmem:[%s5286_s4 + $0x48] sm:$0xff] %vm2876_vm8, %v2860_v4  ;;  %v2654_v14 = vadd.f32 %v2582_v21, %v2407_v16  ;;  %v3728_v0 = vpop.f32.mrb[205].mxu0  ;;  %v2410_v23 = vadd.f32 %v2346_v55, %v5093_v40  ;;  %v3677_v61 = vpop.f32.mrb[207].mxu1 }
 0x279   :  { %v2585_v45 = vpop.f32.mrb[206].mxu0 }
 0x27a   :  { %v2686_v29 = vadd.f32 %v5132_v17, %v2654_v14  ;;  %v2655_v27 = vadd.f32 %v2585_v45, %v2408_v33  ;;  %v3729_v19 = vpop.f32.mrb[207].mxu0 }
 0x27c   :  { %v2861_v32 = vmul.f32 %v2779_v20, %v2686_v29  ;;  %v2687_v1 = vadd.f32 %v5132_v17, %v2655_v27  ;;  %v2809_v27 = vpop.permute.xlu0 %2808 }
 0x27d   :  { %v2351_v15 = vpop.f32.mrb[208].mxu1 }
 0x27e   :  { %2887 = vst.msk [vmem:[%s5286_s4 + $0x50] sm:$0xff] %vm2876_vm8, %v2861_v32  ;;  %v2862_v48 = vmul.f32 %v2784_v46, %v2687_v1  ;;  %v2411_v3 = vadd.f32 %v2351_v15, %v5096_v12  ;;  %v3680_v36 = vpop.f32.mrb[209].mxu1  ;;  %v2814_v1 = vpop.permute.xlu1 %2813 }
 0x27f   :  { %v2590_v6 = vpop.f32.mrb[208].mxu0  ;;  %v2354_v47 = vpop.f32.mrb[210].mxu1 }
 0x280   :  { %2888 = vst.msk [vmem:[%s5286_s4 + $0x58] sm:$0xff] %vm2876_vm8, %v2862_v48  ;;  %v2656_v53 = vadd.f32 %v2590_v6, %v2409_v44  ;;  %v3732_v5 = vpop.f32.mrb[209].mxu0  ;;  %v2412_v25 = vadd.f32 %v2354_v47, %v5099_v26  ;;  %v3681_v8 = vpop.f32.mrb[211].mxu1 }
 0x281   :  { %v2593_v40 = vpop.f32.mrb[210].mxu0 }
 0x282   :  { %v2688_v7 = vadd.f32 %v5132_v17, %v2656_v53  ;;  %v2657_v37 = vadd.f32 %v2593_v40, %v2410_v23  ;;  %v3733_v56 = vpop.f32.mrb[211].mxu0 }
 0x284   :  { %v2863_v63 = vmul.f32 %v2789_v49, %v2688_v7  ;;  %v2689_v24 = vadd.f32 %v5132_v17, %v2657_v37  ;;  %v2819_v7 = vpop.permute.xlu0 %2818 }
 0x285   :  { %v2359_v50 = vpop.f32.mrb[212].mxu1 }
 0x286   :  { %2889 = vst.msk [vmem:[%s5286_s4 + $0x60] sm:$0xff] %vm2876_vm8, %v2863_v63  ;;  %v2864_v12 = vmul.f32 %v2794_v31, %v2689_v24  ;;  %v2413_v16 = vadd.f32 %v2359_v50, %v5102_v57  ;;  %v3684_v51 = vpop.f32.mrb[213].mxu1  ;;  %v2824_v63 = vpop.permute.xlu1 %2823 }
 0x287   :  { %v2598_v18 = vpop.f32.mrb[212].mxu0  ;;  %v2362_v60 = vpop.f32.mrb[214].mxu1 }
 0x288   :  { %2890 = vst.msk [vmem:[%s5286_s4 + $0x68] sm:$0xff] %vm2876_vm8, %v2864_v12  ;;  %v2658_v30 = vadd.f32 %v2598_v18, %v2411_v3  ;;  %v3736_v28 = vpop.f32.mrb[213].mxu0  ;;  %v2414_v33 = vadd.f32 %v2362_v60, %v5105_v59  ;;  %v3685_v62 = vpop.f32.mrb[215].mxu1 }
 0x289   :  { %v2601_v26 = vpop.f32.mrb[214].mxu0 }
 0x28a   :  { %v2690_v10 = vadd.f32 %v5132_v17, %v2658_v30  ;;  %v2659_v42 = vadd.f32 %v2601_v26, %v2412_v25  ;;  %v3737_v43 = vpop.f32.mrb[215].mxu0  ;;  %v2829_v26 = vpop.permute.xlu0 %2828 }
 0x28c   :  { %v2865_v9 = vmul.f32 %v2799_v58, %v2690_v10  ;;  %v2691_v41 = vadd.f32 %v5132_v17, %v2659_v42  ;;  %v2834_v58 = vpop.permute.xlu1 %2833 }
 0x28d   :  { %v2367_v0 = vpop.f32.mrb[216].mxu1 }
 0x28e   :  { %2891 = vst.msk [vmem:[%s5286_s4 + $0x70] sm:$0xff] %vm2876_vm8, %v2865_v9  ;;  %v2866_v57 = vmul.f32 %v2804_v13, %v2691_v41  ;;  %v2415_v38 = vadd.f32 %v2367_v0, %v5108_v2  ;;  %v3688_v44 = vpop.f32.mrb[217].mxu1 }
 0x28f   :  { %v2606_v4 = vpop.f32.mrb[216].mxu0  ;;  %v2370_v19 = vpop.f32.mrb[218].mxu1 }
 0x290   :  { %2892 = vst.msk [vmem:[%s5286_s4 + $0x78] sm:$0xff] %vm2876_vm8, %v2866_v57  ;;  %v2660_v21 = vadd.f32 %v2606_v4, %v2413_v16  ;;  %v3740_v14 = vpop.f32.mrb[217].mxu0  ;;  %v2416_v55 = vadd.f32 %v2370_v19, %v5111_v34  ;;  %v3689_v23 = vpop.f32.mrb[219].mxu1 }
 0x291   :  { %v2609_v59 = vpop.f32.mrb[218].mxu0  ;;  %v2839_v14 = vpop.permute.xlu0 %2838 }
 0x292   :  { %v2692_v45 = vadd.f32 %v5132_v17, %v2660_v21  ;;  %v2661_v29 = vadd.f32 %v2609_v59, %v2414_v33  ;;  %v3741_v39 = vpop.f32.mrb[219].mxu0  ;;  %v2844_v44 = vpop.permute.xlu1 %2843 }
 0x294   :  { %v2867_v20 = vmul.f32 %v2809_v27, %v2692_v45  ;;  %v2693_v32 = vadd.f32 %v5132_v17, %v2661_v29 }
 0x295   :  { %v2375_v6 = vpop.f32.mrb[220].mxu1 }
 0x296   :  { %2893 = vst.msk [vmem:[%s5286_s4 + $0x80] sm:$0xff] %vm2876_vm8, %v2867_v20  ;;  %v2868_v2 = vmul.f32 %v2814_v1, %v2693_v32  ;;  %v2417_v53 = vadd.f32 %v2375_v6, %v5114_v22  ;;  %v3692_v15 = vpop.f32.mrb[221].mxu1  ;;  %v2849_v32 = vpop.permute.xlu0 %2848 }
 0x297   :  { %v2614_v61 = vpop.f32.mrb[220].mxu0  ;;  %v2378_v36 = vpop.f32.mrb[222].mxu1 }
 0x298   :  { %2894 = vst.msk [vmem:[%s5286_s4 + $0x88] sm:$0xff] %vm2876_vm8, %v2868_v2  ;;  %v2662_v46 = vadd.f32 %v2614_v61, %v2415_v38  ;;  %v3744_v48 = vpop.f32.mrb[221].mxu0  ;;  %v2418_v56 = vadd.f32 %v2378_v36, %v5117_v54  ;;  %v3693_v47 = vpop.f32.mrb[223].mxu1 }
 0x299   :  { %v2617_v34 = vpop.f32.mrb[222].mxu0 }
 0x29a   :  { %v2694_v5 = vadd.f32 %v5132_v17, %v2662_v46  ;;  %v2663_v40 = vadd.f32 %v2617_v34, %v2416_v55  ;;  %v3745_v3 = vpop.f32.mrb[223].mxu0 }
 0x29c   :  { %v2869_v37 = vmul.f32 %v2819_v7, %v2694_v5  ;;  %v2695_v49 = vadd.f32 %v5132_v17, %v2663_v40 }
 0x29d   :  { %v2383_v31 = vpop.f32.mrb[224].mxu1 }
 0x29e   :  { %2895 = vst.msk [vmem:[%s5286_s4 + $0x90] sm:$0xff] %vm2876_vm8, %v2869_v37  ;;  %v2870_v22 = vmul.f32 %v2824_v63, %v2695_v49  ;;  %v2419_v12 = vadd.f32 %v2383_v31, %v5120_v52  ;;  %v3696_v30 = vpop.f32.mrb[225].mxu1 }
 0x29f   :  { %v2622_v25 = vpop.f32.mrb[224].mxu0  ;;  %v2386_v16 = vpop.f32.mrb[226].mxu1 }
 0x2a0   :  { %2896 = vst.msk [vmem:[%s5286_s4 + $0x98] sm:$0xff] %vm2876_vm8, %v2870_v22  ;;  %v2664_v24 = vadd.f32 %v2622_v25, %v2417_v53  ;;  %v3748_v8 = vpop.f32.mrb[225].mxu0  ;;  %v2420_v51 = vadd.f32 %v2386_v16, %v5123_v11  ;;  %v3697_v43 = vpop.f32.mrb[227].mxu1 }
 0x2a1   :  { %v2625_v54 = vpop.f32.mrb[226].mxu0 }
 0x2a2   :  { %v2696_v18 = vadd.f32 %v5132_v17, %v2664_v24  ;;  %v2665_v28 = vadd.f32 %v2625_v54, %v2418_v56  ;;  %v3749_v50 = vpop.f32.mrb[227].mxu0 }
 0x2a4   :  { %v2871_v10 = vmul.f32 %v2829_v26, %v2696_v18  ;;  %v2697_v42 = vadd.f32 %v5132_v17, %v2665_v28 }
 0x2a5   :  { %v2391_v41 = vpop.f32.mrb[228].mxu1 }
 0x2a6   :  { %2897 = vst.msk [vmem:[%s5286_s4 + $0xa0] sm:$0xff] %vm2876_vm8, %v2871_v10  ;;  %v2872_v52 = vmul.f32 %v2834_v58, %v2697_v42  ;;  %v2421_v62 = vadd.f32 %v2391_v41, %v5125_v35  ;;  %v3700_v21 = vpop.f32.mrb[229].mxu1 }
 0x2a7   :  { %v2630_v60 = vpop.f32.mrb[228].mxu0  ;;  %v2394_v0 = vpop.f32.mrb[230].mxu1 }
 0x2a8   :  { %2898 = vst.msk [vmem:[%s5286_s4 + $0xa8] sm:$0xff] %vm2876_vm8, %v2872_v52  ;;  %v2666_v9 = vadd.f32 %v2630_v60, %v2419_v12  ;;  %v3752_v33 = vpop.f32.mrb[229].mxu0  ;;  %v3701_v45 = vpop.f32.mrb[231].mxu1 }
 0x2a9   :  { %v2633_v11 = vpop.f32.mrb[230].mxu0 }
 0x2aa   :  { %v2698_v13 = vadd.f32 %v5132_v17, %v2666_v9  ;;  %v2667_v57 = vadd.f32 %v2633_v11, %v2420_v51  ;;  %v3753_v4 = vpop.f32.mrb[231].mxu0 }
 0x2ac   :  { %v2873_v59 = vmul.f32 %v2839_v14, %v2698_v13  ;;  %v2699_v38 = vadd.f32 %v5132_v17, %v2667_v57 }
 0x2ae   :  { %2899 = vst.msk [vmem:[%s5286_s4 + $0xb0] sm:$0xff] %vm2876_vm8, %v2873_v59  ;;  %v2874_v29 = vmul.f32 %v2844_v44, %v2699_v38 }
 0x2af   :  { %v2638_v39 = vpop.f32.mrb[232].mxu0 }
 0x2b0   :  { %2900 = vst.msk [vmem:[%s5286_s4 + $0xb8] sm:$0xff] %vm2876_vm8, %v2874_v29  ;;  %v2668_v35 = vadd.f32 %v2638_v39, %v2421_v62  ;;  %v3756_v27 = vpop.f32.mrb[233].mxu0 }
 0x2b1   :  { %v2641_v19 = vpop.f32.mrb[234].mxu0 }
 0x2b2   :  { %v2700_v20 = vadd.f32 %v5132_v17, %v2668_v35  ;;  %v3757_v55 = vpop.f32.mrb[235].mxu0 }
 0x2b4   :  { %v2875_v23 = vmul.f32 %v2849_v32, %v2700_v20 }
 0x2b6   :  { %2901 = vst.msk [vmem:[%s5286_s4 + $0xc0] sm:$0xff] %vm2876_vm8, %v2875_v23 }

</bundles_post_ra>
